<compile_context>
chip_gen: v7x
topology: tpu7x:2x2x1
jax: 0.10.0
libtpu: 0.0.40
codegen_flags: <defaults>
</compile_context>

<pallas_src>
import jax
import jax.numpy as jnp
from jax import lax
from jax.experimental import pallas as pl
from jax.experimental.pallas import tpu as pltpu


def _round_up(x, m):
    return (x + m - 1) // m * m


def _make_kernel(T, J, has_pos, pos_is_arange, has_type, type_has_ids, type_vocab):
    """Builds the kernel body, specialized on which tables / id tensors exist."""
    use_type_select = has_type and type_has_ids and type_vocab <= 8
    gather_unroll = True if T <= 128 else 8   # full unroll for small tiles

    def kernel(*refs):
        it = iter(refs)
        ids_ref = next(it)                     # SMEM (B*S_pad,) int32 (scalar prefetch)
        if has_pos:
            if pos_is_arange:
                pos_slice_ref = next(it)       # VMEM (T, D): rows [j*T, (j+1)*T) of table
            else:
                pos_ids_ref = next(it)         # VMEM (T, 1) int32
                pos_tbl_hbm = next(it)         # HBM (max_pos, D)
        if has_type:
            if type_has_ids:
                type_ids_ref = next(it)        # VMEM (T, 1) int32
            type_tbl_ref = next(it)            # VMEM (V, D), pinned (constant index)
        word_hbm = next(it)                    # HBM (vocab, D)
        o_ref = next(it)                       # VMEM (T, D) output tile
        wbuf = next(it)                        # VMEM (2T, D) double-buffered staging
        sem = next(it)                         # DMA sems (2,), one per slot
        if has_pos and not pos_is_arange:
            pos_tbl_vmem = next(it)            # VMEM (max_pos, D): single-buffered copy
            pos_sem = next(it)                 # DMA sem (1,)

        b = pl.program_id(0)
        j = pl.program_id(1)
        slot = j % 2
        row_base = b * (J * T)                 # first flat token of this batch row

        def issue_gather(tile_j, s):
            base = row_base + tile_j * T

            def body(t, carry):
                r = ids_ref[base + t]
                pltpu.make_async_copy(
                    word_hbm.at[r], wbuf.at[s * T + t], sem.at[s]).start()
                return carry

            # Unrolled descriptor issue: overlaps SMEM id loads with DMA pushes.
            lax.fori_loop(0, T, body, 0, unroll=gather_unroll)

        # Per-row prime (j == 0): megacore-safe — every core primes its own rows.
        @pl.when(j == 0)
        def _prime():
            issue_gather(0, 0)
            if has_pos and not pos_is_arange:
                # One table copy per batch row into a single-buffered scratch.
                cp = pltpu.make_async_copy(pos_tbl_hbm, pos_tbl_vmem, pos_sem.at[0])
                cp.start()
                cp.wait()

        # Prefetch the next seq tile's word rows into the other slot.
        @pl.when(j + 1 < J)
        def _prefetch():
            issue_gather(j + 1, 1 - slot)

        # Single cumulative wait: the T row copies of this slot all signal sem[slot];
        # one descriptor covering the whole (T, D) slot waits for the same byte count.
        pltpu.make_async_copy(
            word_hbm.at[pl.ds(0, T)], wbuf.at[pl.ds(slot * T, T)], sem.at[slot]
        ).wait()

        start = pl.multiple_of(slot * T, T)
        acc = wbuf[pl.ds(start, T), :].astype(jnp.float32)
        D = acc.shape[1]

        if has_pos:
            if pos_is_arange:
                # arange positions: already the right (T, D) rows — just add.
                acc = acc + pos_slice_ref[...].astype(jnp.float32)
            else:
                # explicit positions: one-hot gather on the MXU from the VMEM copy.
                V = pos_tbl_vmem.shape[0]
                oh = (pos_ids_ref[...] == lax.broadcasted_iota(jnp.int32, (T, V), 1))
                acc = acc + jnp.dot(oh.astype(pos_tbl_vmem.dtype), pos_tbl_vmem[...],
                                    preferred_element_type=jnp.float32)

        if has_type:
            tt = type_tbl_ref[...].astype(jnp.float32)        # (V, D), tiny
            if not type_has_ids:
                acc = acc + tt[0:1, :]                        # default ids == 0
            elif use_type_select:
                # Small vocab: VPU sum-of-selects instead of a K-padded MXU matmul.
                tids = type_ids_ref[...]                      # (T, 1)
                contrib = jnp.zeros((T, D), jnp.float32)
                for v in range(type_vocab):
                    contrib = contrib + jnp.where(tids == v, tt[v:v + 1, :], 0.0)
                acc = acc + contrib
            else:
                V = type_vocab
                oh = (type_ids_ref[...] == lax.broadcasted_iota(jnp.int32, (T, V), 1))
                acc = acc + jnp.dot(oh.astype(jnp.float32), tt,
                                    preferred_element_type=jnp.float32)

        o_ref[...] = acc.astype(o_ref.dtype)

    return kernel


def bert_embeddings_fwd(input_ids, word_table, pos_table=None, type_table=None,
                        position_ids=None, token_type_ids=None, tile_tokens=512,
                        vmem_budget_bytes=12 * 1024 * 1024):
    """Semantics match BertEmbeddings.forward.

    pos_table=None  <=> max_position_embeddings <= 0 (no position embeddings)
    type_table=None <=> type_vocab_size <= 0         (no token-type embeddings)
    """
    B, S = input_ids.shape
    vocab, D = word_table.shape
    out_dtype = word_table.dtype

    has_pos = pos_table is not None
    has_type = type_table is not None
    pos_is_arange = has_pos and position_ids is None
    type_has_ids = has_type and token_type_ids is not None
    type_vocab = type_table.shape[0] if has_type else 0

    w_item = jnp.dtype(word_table.dtype).itemsize
    o_item = jnp.dtype(out_dtype).itemsize
    # dtype-aware sublane multiple: 8 rows (f32), 16 (bf16), 32 (int8/fp8).
    sub = max(8, 32 // w_item)

    T = max(sub, min(int(tile_tokens), _round_up(S, sub)))
    T = _round_up(T, sub)

    def _vmem_estimate(t):
        e = 2 * t * D * w_item            # double-buffered word-row staging
        e += 2 * t * D * o_item           # pipelined (double-buffered) output tile
        if has_pos:
            p_item = jnp.dtype(pos_table.dtype).itemsize
            if pos_is_arange:
                e += 2 * t * D * p_item                    # pipelined position slice
            else:
                e += pos_table.shape[0] * D * p_item       # single-buffered copy
        if has_type:
            e += 2 * type_vocab * D * jnp.dtype(type_table.dtype).itemsize
        return e

    # Keep the tile inside a conservative scoped-VMEM budget (v5e default ~16 MiB).
    while T > sub and _vmem_estimate(T) > vmem_budget_bytes:
        T = _round_up(max(sub, T // 2), sub)

    S_pad = _round_up(S, T)
    J = S_pad // T
    n_pad = B * S_pad
    pad_s = S_pad - S

    ids_flat = jnp.pad(input_ids.astype(jnp.int32), ((0, 0), (0, pad_s))).reshape(n_pad)

    inputs = [ids_flat]                     # scalar-prefetch operand (SMEM)
    in_specs = []
    scratch = [pltpu.VMEM((2 * T, D), word_table.dtype),   # gather staging (2 slots)
               pltpu.SemaphoreType.DMA((2,))]              # one DMA sem per slot

    if has_pos:
        max_pos = pos_table.shape[0]
        if pos_is_arange:
            if S > max_pos:
                raise ValueError("seqlen exceeds max_position_embeddings")
            if max_pos >= S_pad:
                pos_src = pos_table[:S_pad]
            else:
                # padded tail rows are never part of the returned output
                pos_src = jnp.pad(pos_table, ((0, S_pad - max_pos), (0, 0)))
            inputs.append(pos_src)
            # arange positions: tile j directly selects rows [j*T, (j+1)*T) — a plain
            # pipelined slice, no one-hot matmul and no pinned table.
            in_specs.append(pl.BlockSpec((T, D), lambda b, j, ids: (j, 0)))
        else:
            pos_flat = jnp.pad(position_ids.astype(jnp.int32),
                               ((0, 0), (0, pad_s))).reshape(n_pad, 1)
            inputs += [pos_flat, pos_table]
            in_specs += [
                pl.BlockSpec((T, 1), lambda b, j, ids: (b * J + j, 0)),
                # Table stays in HBM; copied once per batch row into a single-buffered
                # VMEM scratch (avoids the default 2x buffers of a pinned input).
                pl.BlockSpec(memory_space=pl.ANY),
            ]
            scratch += [pltpu.VMEM(pos_table.shape, pos_table.dtype),
                        pltpu.SemaphoreType.DMA((1,))]

    if has_type:
        if type_has_ids:
            tok_flat = jnp.pad(token_type_ids.astype(jnp.int32),
                               ((0, 0), (0, pad_s))).reshape(n_pad, 1)
            inputs.append(tok_flat)
            in_specs.append(pl.BlockSpec((T, 1), lambda b, j, ids: (b * J + j, 0)))
        inputs.append(type_table)
        # Tiny (type_vocab, D) table pinned whole in VMEM (constant index map).
        in_specs.append(pl.BlockSpec(type_table.shape, lambda b, j, ids: (0, 0)))

    # Word table stays in HBM; rows are gathered manually inside the kernel.
    inputs.append(word_table)
    in_specs.append(pl.BlockSpec(memory_space=pl.ANY))

    kernel = _make_kernel(T, J, has_pos, pos_is_arange, has_type, type_has_ids,
                          type_vocab)

    out = pl.pallas_call(
        kernel,
        out_shape=jax.ShapeDtypeStruct((n_pad, D), out_dtype),
        grid_spec=pltpu.PrefetchScalarGridSpec(
            num_scalar_prefetch=1,
            grid=(B, J),                     # batch rows x seq tiles
            in_specs=in_specs,
            out_specs=pl.BlockSpec((T, D), lambda b, j, ids: (b * J + j, 0)),
            scratch_shapes=scratch,
        ),
        compiler_params=pltpu.CompilerParams(
            # Batch rows are independent (each row primes its own double buffer at
            # j == 0) -> "parallel" lets v7x shard rows across both TensorCores;
            # the seq-tile axis carries the cross-step gather prefetch -> "arbitrary".
            dimension_semantics=("parallel", "arbitrary"),
        ),
    )(*inputs)

    return out.reshape(B, S_pad, D)[:, :S, :]


def init_bert_embedding_params(key, embed_dim, vocab_size, max_position_embeddings,
                               type_vocab_size, padding_idx=None, dtype=jnp.float32):
    kw, kp, kt = jax.random.split(key, 3)
    word = jax.random.normal(kw, (vocab_size, embed_dim), dtype)
    if padding_idx is not None:
        word = word.at[padding_idx].set(0.0)    # nn.Embedding padding_idx row is zeroed
    pos = (jax.random.normal(kp, (max_position_embeddings, embed_dim), dtype)
           if max_position_embeddings > 0 else None)
    typ = (jax.random.normal(kt, (type_vocab_size, embed_dim), dtype)
           if type_vocab_size > 0 else None)
    return word, pos, typ


if __name__ == "__main__":
    B, S, D = 2, 128, 128
    vocab_size, max_pos, type_vocab = 512, 128, 2
    padding_idx = 0

    key = jax.random.PRNGKey(0)
    kparams, kids, ktok, kpos = jax.random.split(key, 4)

    word_table, pos_table, type_table = init_bert_embedding_params(
        kparams, D, vocab_size, max_pos, type_vocab, padding_idx=padding_idx)

    input_ids = jax.random.randint(kids, (B, S), 0, vocab_size, dtype=jnp.int32)
    token_type_ids = jax.random.randint(ktok, (B, S), 0, type_vocab, dtype=jnp.int32)
    pos_arange = pos_table[jnp.arange(S)][None, :, :]

    # 1) default positions (arange -> BlockSpec slice) + explicit types (VPU select).
    out1 = jax.block_until_ready(bert_embeddings_fwd(
        input_ids, word_table, pos_table, type_table,
        position_ids=None, token_type_ids=token_type_ids, tile_tokens=64))
    ref1 = word_table[input_ids] + pos_arange + type_table[token_type_ids]
    assert out1.shape == (B, S, D) and out1.dtype == word_table.dtype
    assert jnp.allclose(out1, ref1, atol=1e-5), "mismatch: default-pos / explicit-type"

    # 2) default token types (all zeros -> broadcast of row 0).
    out2 = jax.block_until_ready(bert_embeddings_fwd(
        input_ids, word_table, pos_table, type_table, tile_tokens=64))
    ref2 = word_table[input_ids] + pos_arange + type_table[0][None, None, :]
    assert jnp.allclose(out2, ref2, atol=1e-5), "mismatch: default-type"

    # 3) explicit position ids (HBM->VMEM table copy + one-hot MXU gather path).
    position_ids = jax.random.randint(kpos, (B, S), 0, max_pos, dtype=jnp.int32)
    out3 = jax.block_until_ready(bert_embeddings_fwd(
        input_ids, word_table, pos_table, type_table,
        position_ids=position_ids, token_type_ids=token_type_ids, tile_tokens=64))
    ref3 = word_table[input_ids] + pos_table[position_ids] + type_table[token_type_ids]
    assert jnp.allclose(out3, ref3, atol=1e-5), "mismatch: explicit-pos"

    # 4) no position / no token-type tables; default tile -> single seq tile per row.
    out4 = jax.block_until_ready(bert_embeddings_fwd(input_ids, word_table))
    assert jnp.allclose(out4, word_table[input_ids], atol=1e-5), "mismatch: word-only"

    # 5) non-tile-divisible seqlen (exercises seq padding; S=100 -> S_pad=128).
    ids_odd = input_ids[:, :100]
    tok_odd = token_type_ids[:, :100]
    out5 = jax.block_until_ready(bert_embeddings_fwd(
        ids_odd, word_table, pos_table, type_table,
        token_type_ids=tok_odd, tile_tokens=64))
    ref5 = (word_table[ids_odd] + pos_table[jnp.arange(100)][None, :, :]
            + type_table[tok_odd])
    assert jnp.allclose(out5, ref5, atol=1e-5), "mismatch: padded seqlen"

    print("KERNEL_OK")
</pallas_src>

<mosaic_0001>
module attributes {stable_mosaic.version = 11 : i64} {
  func.func @kernel(%arg0: i32, %arg1: i32, %arg2: memref<256xi32, #tpu.memory_space<smem>>, %arg3: memref<64x128xf32, #tpu.memory_space<vmem>>, %arg4: memref<64x1xi32, #tpu.memory_space<vmem>>, %arg5: memref<2x128xf32, #tpu.memory_space<vmem>>, %arg6: memref<512x128xf32, #tpu.memory_space<any>>, %arg7: memref<64x128xf32, #tpu.memory_space<vmem>>, %arg8: memref<128x128xf32, #tpu.memory_space<vmem>>, %arg9: memref<2x!tpu.dma_semaphore, #tpu.memory_space<semaphore_mem>>) attributes {dimension_semantics = [#tpu.dimension_semantics<parallel>, #tpu.dimension_semantics<arbitrary>], iteration_bounds = array<i64: 2, 2>, scalar_prefetch = 1 : i64, scratch_operands = 2 : i64, tpu.core_type = #tpu.core_type<tc>, window_params = [{transform_indices = @transform_0, window_bounds = array<i64: 64, 128>}, {transform_indices = @transform_1, window_bounds = array<i64: 64, 1>}, {pipeline_mode = #tpu.pipeline_mode<synchronous>, transform_indices = @transform_2, window_bounds = array<i64: 2, 128>}, {}, {transform_indices = @transform_4, window_bounds = array<i64: 64, 128>}]} {
    %c2_i32 = arith.constant 2 : i32
    %c0_i32 = arith.constant 0 : i32
    %0 = arith.cmpi eq, %c2_i32, %c0_i32 : i32
    %c1_i32 = arith.constant 1 : i32
    %1 = arith.select %0, %c1_i32, %c2_i32 : i32
    %2 = arith.remsi %arg1, %1 : i32
    %c0_i32_0 = arith.constant 0 : i32
    %3 = arith.cmpi ne, %2, %c0_i32_0 : i32
    %c0_i32_1 = arith.constant 0 : i32
    %4 = arith.cmpi slt, %2, %c0_i32_1 : i32
    %c0_i32_2 = arith.constant 0 : i32
    %5 = arith.cmpi slt, %1, %c0_i32_2 : i32
    %6 = arith.xori %4, %5 : i1
    %7 = arith.andi %6, %3 : i1
    %8 = arith.addi %2, %1 : i32
    %9 = arith.select %7, %8, %2 : i32
    %c128_i32 = arith.constant 128 : i32
    %10 = arith.muli %arg0, %c128_i32 : i32
    %c0_i32_3 = arith.constant 0 : i32
    %11 = arith.cmpi eq, %arg1, %c0_i32_3 : i32
    %12 = arith.extui %11 : i1 to i32
    %c0_i32_4 = arith.constant 0 : i32
    %13 = arith.cmpi ne, %12, %c0_i32_4 : i32
    scf.if %13 {
      %c0_i32_24 = arith.constant 0 : i32
      %54 = arith.addi %10, %c0_i32_24 : i32
      %c0_i32_25 = arith.constant 0 : i32
      %55 = arith.addi %54, %c0_i32_25 : i32
      %56 = arith.index_cast %55 : i32 to index
      %57 = memref.load %arg2[%56] : memref<256xi32, #tpu.memory_space<smem>>
      %c0_i32_26 = arith.constant 0 : i32
      %58 = arith.addi %c0_i32_26, %c0_i32_25 : i32
      %c0_i32_27 = arith.constant 0 : i32
      %c0_i32_28 = arith.constant 0 : i32
      %59 = tpu.memref_slice %arg6[%57, %c0_i32_28] : memref<512x128xf32, #tpu.memory_space<any>> -> memref<1x128xf32, #tpu.memory_space<any>>
      %60 = tpu.memref_squeeze %59 : memref<1x128xf32, #tpu.memory_space<any>> -> memref<128xf32, #tpu.memory_space<any>>
      %c0_i32_29 = arith.constant 0 : i32
      %61 = tpu.memref_slice %arg8[%58, %c0_i32_29] : memref<128x128xf32, #tpu.memory_space<vmem>> -> memref<1x128xf32, #tpu.memory_space<vmem>>
      %62 = tpu.memref_squeeze %61 : memref<1x128xf32, #tpu.memory_space<vmem>> -> memref<128xf32, #tpu.memory_space<vmem>>
      %63 = tpu.memref_slice %arg9[%c0_i32_27] : memref<2x!tpu.dma_semaphore, #tpu.memory_space<semaphore_mem>> -> memref<1x!tpu.dma_semaphore, #tpu.memory_space<semaphore_mem>>
      %64 = tpu.memref_squeeze %63 : memref<1x!tpu.dma_semaphore, #tpu.memory_space<semaphore_mem>> -> memref<!tpu.dma_semaphore, #tpu.memory_space<semaphore_mem>>
      tpu.enqueue_dma source(%60 : memref<128xf32, #tpu.memory_space<any>>) target(%62 : memref<128xf32, #tpu.memory_space<vmem>>) target_semaphore(%64 : memref<!tpu.dma_semaphore, #tpu.memory_space<semaphore_mem>>)
      %c1_i32_30 = arith.constant 1 : i32
      %65 = arith.addi %54, %c1_i32_30 : i32
      %66 = arith.index_cast %65 : i32 to index
      %67 = memref.load %arg2[%66] : memref<256xi32, #tpu.memory_space<smem>>
      %c0_i32_31 = arith.constant 0 : i32
      %68 = arith.addi %c0_i32_31, %c1_i32_30 : i32
      %c0_i32_32 = arith.constant 0 : i32
      %c0_i32_33 = arith.constant 0 : i32
      %69 = tpu.memref_slice %arg6[%67, %c0_i32_33] : memref<512x128xf32, #tpu.memory_space<any>> -> memref<1x128xf32, #tpu.memory_space<any>>
      %70 = tpu.memref_squeeze %69 : memref<1x128xf32, #tpu.memory_space<any>> -> memref<128xf32, #tpu.memory_space<any>>
      %c0_i32_34 = arith.constant 0 : i32
      %71 = tpu.memref_slice %arg8[%68, %c0_i32_34] : memref<128x128xf32, #tpu.memory_space<vmem>> -> memref<1x128xf32, #tpu.memory_space<vmem>>
      %72 = tpu.memref_squeeze %71 : memref<1x128xf32, #tpu.memory_space<vmem>> -> memref<128xf32, #tpu.memory_space<vmem>>
      %73 = tpu.memref_slice %arg9[%c0_i32_32] : memref<2x!tpu.dma_semaphore, #tpu.memory_space<semaphore_mem>> -> memref<1x!tpu.dma_semaphore, #tpu.memory_space<semaphore_mem>>
      %74 = tpu.memref_squeeze %73 : memref<1x!tpu.dma_semaphore, #tpu.memory_space<semaphore_mem>> -> memref<!tpu.dma_semaphore, #tpu.memory_space<semaphore_mem>>
      tpu.enqueue_dma source(%70 : memref<128xf32, #tpu.memory_space<any>>) target(%72 : memref<128xf32, #tpu.memory_space<vmem>>) target_semaphore(%74 : memref<!tpu.dma_semaphore, #tpu.memory_space<semaphore_mem>>)
      %c2_i32_35 = arith.constant 2 : i32
      %75 = arith.addi %54, %c2_i32_35 : i32
      %76 = arith.index_cast %75 : i32 to index
      %77 = memref.load %arg2[%76] : memref<256xi32, #tpu.memory_space<smem>>
      %c0_i32_36 = arith.constant 0 : i32
      %78 = arith.addi %c0_i32_36, %c2_i32_35 : i32
      %c0_i32_37 = arith.constant 0 : i32
      %c0_i32_38 = arith.constant 0 : i32
      %79 = tpu.memref_slice %arg6[%77, %c0_i32_38] : memref<512x128xf32, #tpu.memory_space<any>> -> memref<1x128xf32, #tpu.memory_space<any>>
      %80 = tpu.memref_squeeze %79 : memref<1x128xf32, #tpu.memory_space<any>> -> memref<128xf32, #tpu.memory_space<any>>
      %c0_i32_39 = arith.constant 0 : i32
      %81 = tpu.memref_slice %arg8[%78, %c0_i32_39] : memref<128x128xf32, #tpu.memory_space<vmem>> -> memref<1x128xf32, #tpu.memory_space<vmem>>
      %82 = tpu.memref_squeeze %81 : memref<1x128xf32, #tpu.memory_space<vmem>> -> memref<128xf32, #tpu.memory_space<vmem>>
      %83 = tpu.memref_slice %arg9[%c0_i32_37] : memref<2x!tpu.dma_semaphore, #tpu.memory_space<semaphore_mem>> -> memref<1x!tpu.dma_semaphore, #tpu.memory_space<semaphore_mem>>
      %84 = tpu.memref_squeeze %83 : memref<1x!tpu.dma_semaphore, #tpu.memory_space<semaphore_mem>> -> memref<!tpu.dma_semaphore, #tpu.memory_space<semaphore_mem>>
      tpu.enqueue_dma source(%80 : memref<128xf32, #tpu.memory_space<any>>) target(%82 : memref<128xf32, #tpu.memory_space<vmem>>) target_semaphore(%84 : memref<!tpu.dma_semaphore, #tpu.memory_space<semaphore_mem>>)
      %c3_i32 = arith.constant 3 : i32
      %85 = arith.addi %54, %c3_i32 : i32
      %86 = arith.index_cast %85 : i32 to index
      %87 = memref.load %arg2[%86] : memref<256xi32, #tpu.memory_space<smem>>
      %c0_i32_40 = arith.constant 0 : i32
      %88 = arith.addi %c0_i32_40, %c3_i32 : i32
      %c0_i32_41 = arith.constant 0 : i32
      %c0_i32_42 = arith.constant 0 : i32
      %89 = tpu.memref_slice %arg6[%87, %c0_i32_42] : memref<512x128xf32, #tpu.memory_space<any>> -> memref<1x128xf32, #tpu.memory_space<any>>
      %90 = tpu.memref_squeeze %89 : memref<1x128xf32, #tpu.memory_space<any>> -> memref<128xf32, #tpu.memory_space<any>>
      %c0_i32_43 = arith.constant 0 : i32
      %91 = tpu.memref_slice %arg8[%88, %c0_i32_43] : memref<128x128xf32, #tpu.memory_space<vmem>> -> memref<1x128xf32, #tpu.memory_space<vmem>>
      %92 = tpu.memref_squeeze %91 : memref<1x128xf32, #tpu.memory_space<vmem>> -> memref<128xf32, #tpu.memory_space<vmem>>
      %93 = tpu.memref_slice %arg9[%c0_i32_41] : memref<2x!tpu.dma_semaphore, #tpu.memory_space<semaphore_mem>> -> memref<1x!tpu.dma_semaphore, #tpu.memory_space<semaphore_mem>>
      %94 = tpu.memref_squeeze %93 : memref<1x!tpu.dma_semaphore, #tpu.memory_space<semaphore_mem>> -> memref<!tpu.dma_semaphore, #tpu.memory_space<semaphore_mem>>
      tpu.enqueue_dma source(%90 : memref<128xf32, #tpu.memory_space<any>>) target(%92 : memref<128xf32, #tpu.memory_space<vmem>>) target_semaphore(%94 : memref<!tpu.dma_semaphore, #tpu.memory_space<semaphore_mem>>)
      %c4_i32 = arith.constant 4 : i32
      %95 = arith.addi %54, %c4_i32 : i32
      %96 = arith.index_cast %95 : i32 to index
      %97 = memref.load %arg2[%96] : memref<256xi32, #tpu.memory_space<smem>>
      %c0_i32_44 = arith.constant 0 : i32
      %98 = arith.addi %c0_i32_44, %c4_i32 : i32
      %c0_i32_45 = arith.constant 0 : i32
      %c0_i32_46 = arith.constant 0 : i32
      %99 = tpu.memref_slice %arg6[%97, %c0_i32_46] : memref<512x128xf32, #tpu.memory_space<any>> -> memref<1x128xf32, #tpu.memory_space<any>>
      %100 = tpu.memref_squeeze %99 : memref<1x128xf32, #tpu.memory_space<any>> -> memref<128xf32, #tpu.memory_space<any>>
      %c0_i32_47 = arith.constant 0 : i32
      %101 = tpu.memref_slice %arg8[%98, %c0_i32_47] : memref<128x128xf32, #tpu.memory_space<vmem>> -> memref<1x128xf32, #tpu.memory_space<vmem>>
      %102 = tpu.memref_squeeze %101 : memref<1x128xf32, #tpu.memory_space<vmem>> -> memref<128xf32, #tpu.memory_space<vmem>>
      %103 = tpu.memref_slice %arg9[%c0_i32_45] : memref<2x!tpu.dma_semaphore, #tpu.memory_space<semaphore_mem>> -> memref<1x!tpu.dma_semaphore, #tpu.memory_space<semaphore_mem>>
      %104 = tpu.memref_squeeze %103 : memref<1x!tpu.dma_semaphore, #tpu.memory_space<semaphore_mem>> -> memref<!tpu.dma_semaphore, #tpu.memory_space<semaphore_mem>>
      tpu.enqueue_dma source(%100 : memref<128xf32, #tpu.memory_space<any>>) target(%102 : memref<128xf32, #tpu.memory_space<vmem>>) target_semaphore(%104 : memref<!tpu.dma_semaphore, #tpu.memory_space<semaphore_mem>>)
      %c5_i32 = arith.constant 5 : i32
      %105 = arith.addi %54, %c5_i32 : i32
      %106 = arith.index_cast %105 : i32 to index
      %107 = memref.load %arg2[%106] : memref<256xi32, #tpu.memory_space<smem>>
      %c0_i32_48 = arith.constant 0 : i32
      %108 = arith.addi %c0_i32_48, %c5_i32 : i32
      %c0_i32_49 = arith.constant 0 : i32
      %c0_i32_50 = arith.constant 0 : i32
      %109 = tpu.memref_slice %arg6[%107, %c0_i32_50] : memref<512x128xf32, #tpu.memory_space<any>> -> memref<1x128xf32, #tpu.memory_space<any>>
      %110 = tpu.memref_squeeze %109 : memref<1x128xf32, #tpu.memory_space<any>> -> memref<128xf32, #tpu.memory_space<any>>
      %c0_i32_51 = arith.constant 0 : i32
      %111 = tpu.memref_slice %arg8[%108, %c0_i32_51] : memref<128x128xf32, #tpu.memory_space<vmem>> -> memref<1x128xf32, #tpu.memory_space<vmem>>
      %112 = tpu.memref_squeeze %111 : memref<1x128xf32, #tpu.memory_space<vmem>> -> memref<128xf32, #tpu.memory_space<vmem>>
      %113 = tpu.memref_slice %arg9[%c0_i32_49] : memref<2x!tpu.dma_semaphore, #tpu.memory_space<semaphore_mem>> -> memref<1x!tpu.dma_semaphore, #tpu.memory_space<semaphore_mem>>
      %114 = tpu.memref_squeeze %113 : memref<1x!tpu.dma_semaphore, #tpu.memory_space<semaphore_mem>> -> memref<!tpu.dma_semaphore, #tpu.memory_space<semaphore_mem>>
      tpu.enqueue_dma source(%110 : memref<128xf32, #tpu.memory_space<any>>) target(%112 : memref<128xf32, #tpu.memory_space<vmem>>) target_semaphore(%114 : memref<!tpu.dma_semaphore, #tpu.memory_space<semaphore_mem>>)
      %c6_i32 = arith.constant 6 : i32
      %115 = arith.addi %54, %c6_i32 : i32
      %116 = arith.index_cast %115 : i32 to index
      %117 = memref.load %arg2[%116] : memref<256xi32, #tpu.memory_space<smem>>
      %c0_i32_52 = arith.constant 0 : i32
      %118 = arith.addi %c0_i32_52, %c6_i32 : i32
      %c0_i32_53 = arith.constant 0 : i32
      %c0_i32_54 = arith.constant 0 : i32
      %119 = tpu.memref_slice %arg6[%117, %c0_i32_54] : memref<512x128xf32, #tpu.memory_space<any>> -> memref<1x128xf32, #tpu.memory_space<any>>
      %120 = tpu.memref_squeeze %119 : memref<1x128xf32, #tpu.memory_space<any>> -> memref<128xf32, #tpu.memory_space<any>>
      %c0_i32_55 = arith.constant 0 : i32
      %121 = tpu.memref_slice %arg8[%118, %c0_i32_55] : memref<128x128xf32, #tpu.memory_space<vmem>> -> memref<1x128xf32, #tpu.memory_space<vmem>>
      %122 = tpu.memref_squeeze %121 : memref<1x128xf32, #tpu.memory_space<vmem>> -> memref<128xf32, #tpu.memory_space<vmem>>
      %123 = tpu.memref_slice %arg9[%c0_i32_53] : memref<2x!tpu.dma_semaphore, #tpu.memory_space<semaphore_mem>> -> memref<1x!tpu.dma_semaphore, #tpu.memory_space<semaphore_mem>>
      %124 = tpu.memref_squeeze %123 : memref<1x!tpu.dma_semaphore, #tpu.memory_space<semaphore_mem>> -> memref<!tpu.dma_semaphore, #tpu.memory_space<semaphore_mem>>
      tpu.enqueue_dma source(%120 : memref<128xf32, #tpu.memory_space<any>>) target(%122 : memref<128xf32, #tpu.memory_space<vmem>>) target_semaphore(%124 : memref<!tpu.dma_semaphore, #tpu.memory_space<semaphore_mem>>)
      %c7_i32 = arith.constant 7 : i32
      %125 = arith.addi %54, %c7_i32 : i32
      %126 = arith.index_cast %125 : i32 to index
      %127 = memref.load %arg2[%126] : memref<256xi32, #tpu.memory_space<smem>>
      %c0_i32_56 = arith.constant 0 : i32
      %128 = arith.addi %c0_i32_56, %c7_i32 : i32
      %c0_i32_57 = arith.constant 0 : i32
      %c0_i32_58 = arith.constant 0 : i32
      %129 = tpu.memref_slice %arg6[%127, %c0_i32_58] : memref<512x128xf32, #tpu.memory_space<any>> -> memref<1x128xf32, #tpu.memory_space<any>>
      %130 = tpu.memref_squeeze %129 : memref<1x128xf32, #tpu.memory_space<any>> -> memref<128xf32, #tpu.memory_space<any>>
      %c0_i32_59 = arith.constant 0 : i32
      %131 = tpu.memref_slice %arg8[%128, %c0_i32_59] : memref<128x128xf32, #tpu.memory_space<vmem>> -> memref<1x128xf32, #tpu.memory_space<vmem>>
      %132 = tpu.memref_squeeze %131 : memref<1x128xf32, #tpu.memory_space<vmem>> -> memref<128xf32, #tpu.memory_space<vmem>>
      %133 = tpu.memref_slice %arg9[%c0_i32_57] : memref<2x!tpu.dma_semaphore, #tpu.memory_space<semaphore_mem>> -> memref<1x!tpu.dma_semaphore, #tpu.memory_space<semaphore_mem>>
      %134 = tpu.memref_squeeze %133 : memref<1x!tpu.dma_semaphore, #tpu.memory_space<semaphore_mem>> -> memref<!tpu.dma_semaphore, #tpu.memory_space<semaphore_mem>>
      tpu.enqueue_dma source(%130 : memref<128xf32, #tpu.memory_space<any>>) target(%132 : memref<128xf32, #tpu.memory_space<vmem>>) target_semaphore(%134 : memref<!tpu.dma_semaphore, #tpu.memory_space<semaphore_mem>>)
      %c8_i32 = arith.constant 8 : i32
      %135 = arith.addi %54, %c8_i32 : i32
      %136 = arith.index_cast %135 : i32 to index
      %137 = memref.load %arg2[%136] : memref<256xi32, #tpu.memory_space<smem>>
      %c0_i32_60 = arith.constant 0 : i32
      %138 = arith.addi %c0_i32_60, %c8_i32 : i32
      %c0_i32_61 = arith.constant 0 : i32
      %c0_i32_62 = arith.constant 0 : i32
      %139 = tpu.memref_slice %arg6[%137, %c0_i32_62] : memref<512x128xf32, #tpu.memory_space<any>> -> memref<1x128xf32, #tpu.memory_space<any>>
      %140 = tpu.memref_squeeze %139 : memref<1x128xf32, #tpu.memory_space<any>> -> memref<128xf32, #tpu.memory_space<any>>
      %c0_i32_63 = arith.constant 0 : i32
      %141 = tpu.memref_slice %arg8[%138, %c0_i32_63] : memref<128x128xf32, #tpu.memory_space<vmem>> -> memref<1x128xf32, #tpu.memory_space<vmem>>
      %142 = tpu.memref_squeeze %141 : memref<1x128xf32, #tpu.memory_space<vmem>> -> memref<128xf32, #tpu.memory_space<vmem>>
      %143 = tpu.memref_slice %arg9[%c0_i32_61] : memref<2x!tpu.dma_semaphore, #tpu.memory_space<semaphore_mem>> -> memref<1x!tpu.dma_semaphore, #tpu.memory_space<semaphore_mem>>
      %144 = tpu.memref_squeeze %143 : memref<1x!tpu.dma_semaphore, #tpu.memory_space<semaphore_mem>> -> memref<!tpu.dma_semaphore, #tpu.memory_space<semaphore_mem>>
      tpu.enqueue_dma source(%140 : memref<128xf32, #tpu.memory_space<any>>) target(%142 : memref<128xf32, #tpu.memory_space<vmem>>) target_semaphore(%144 : memref<!tpu.dma_semaphore, #tpu.memory_space<semaphore_mem>>)
      %c9_i32 = arith.constant 9 : i32
      %145 = arith.addi %54, %c9_i32 : i32
      %146 = arith.index_cast %145 : i32 to index
      %147 = memref.load %arg2[%146] : memref<256xi32, #tpu.memory_space<smem>>
      %c0_i32_64 = arith.constant 0 : i32
      %148 = arith.addi %c0_i32_64, %c9_i32 : i32
      %c0_i32_65 = arith.constant 0 : i32
      %c0_i32_66 = arith.constant 0 : i32
      %149 = tpu.memref_slice %arg6[%147, %c0_i32_66] : memref<512x128xf32, #tpu.memory_space<any>> -> memref<1x128xf32, #tpu.memory_space<any>>
      %150 = tpu.memref_squeeze %149 : memref<1x128xf32, #tpu.memory_space<any>> -> memref<128xf32, #tpu.memory_space<any>>
      %c0_i32_67 = arith.constant 0 : i32
      %151 = tpu.memref_slice %arg8[%148, %c0_i32_67] : memref<128x128xf32, #tpu.memory_space<vmem>> -> memref<1x128xf32, #tpu.memory_space<vmem>>
      %152 = tpu.memref_squeeze %151 : memref<1x128xf32, #tpu.memory_space<vmem>> -> memref<128xf32, #tpu.memory_space<vmem>>
      %153 = tpu.memref_slice %arg9[%c0_i32_65] : memref<2x!tpu.dma_semaphore, #tpu.memory_space<semaphore_mem>> -> memref<1x!tpu.dma_semaphore, #tpu.memory_space<semaphore_mem>>
      %154 = tpu.memref_squeeze %153 : memref<1x!tpu.dma_semaphore, #tpu.memory_space<semaphore_mem>> -> memref<!tpu.dma_semaphore, #tpu.memory_space<semaphore_mem>>
      tpu.enqueue_dma source(%150 : memref<128xf32, #tpu.memory_space<any>>) target(%152 : memref<128xf32, #tpu.memory_space<vmem>>) target_semaphore(%154 : memref<!tpu.dma_semaphore, #tpu.memory_space<semaphore_mem>>)
      %c10_i32 = arith.constant 10 : i32
      %155 = arith.addi %54, %c10_i32 : i32
      %156 = arith.index_cast %155 : i32 to index
      %157 = memref.load %arg2[%156] : memref<256xi32, #tpu.memory_space<smem>>
      %c0_i32_68 = arith.constant 0 : i32
      %158 = arith.addi %c0_i32_68, %c10_i32 : i32
      %c0_i32_69 = arith.constant 0 : i32
      %c0_i32_70 = arith.constant 0 : i32
      %159 = tpu.memref_slice %arg6[%157, %c0_i32_70] : memref<512x128xf32, #tpu.memory_space<any>> -> memref<1x128xf32, #tpu.memory_space<any>>
      %160 = tpu.memref_squeeze %159 : memref<1x128xf32, #tpu.memory_space<any>> -> memref<128xf32, #tpu.memory_space<any>>
      %c0_i32_71 = arith.constant 0 : i32
      %161 = tpu.memref_slice %arg8[%158, %c0_i32_71] : memref<128x128xf32, #tpu.memory_space<vmem>> -> memref<1x128xf32, #tpu.memory_space<vmem>>
      %162 = tpu.memref_squeeze %161 : memref<1x128xf32, #tpu.memory_space<vmem>> -> memref<128xf32, #tpu.memory_space<vmem>>
      %163 = tpu.memref_slice %arg9[%c0_i32_69] : memref<2x!tpu.dma_semaphore, #tpu.memory_space<semaphore_mem>> -> memref<1x!tpu.dma_semaphore, #tpu.memory_space<semaphore_mem>>
      %164 = tpu.memref_squeeze %163 : memref<1x!tpu.dma_semaphore, #tpu.memory_space<semaphore_mem>> -> memref<!tpu.dma_semaphore, #tpu.memory_space<semaphore_mem>>
      tpu.enqueue_dma source(%160 : memref<128xf32, #tpu.memory_space<any>>) target(%162 : memref<128xf32, #tpu.memory_space<vmem>>) target_semaphore(%164 : memref<!tpu.dma_semaphore, #tpu.memory_space<semaphore_mem>>)
      %c11_i32 = arith.constant 11 : i32
      %165 = arith.addi %54, %c11_i32 : i32
      %166 = arith.index_cast %165 : i32 to index
      %167 = memref.load %arg2[%166] : memref<256xi32, #tpu.memory_space<smem>>
      %c0_i32_72 = arith.constant 0 : i32
      %168 = arith.addi %c0_i32_72, %c11_i32 : i32
      %c0_i32_73 = arith.constant 0 : i32
      %c0_i32_74 = arith.constant 0 : i32
      %169 = tpu.memref_slice %arg6[%167, %c0_i32_74] : memref<512x128xf32, #tpu.memory_space<any>> -> memref<1x128xf32, #tpu.memory_space<any>>
      %170 = tpu.memref_squeeze %169 : memref<1x128xf32, #tpu.memory_space<any>> -> memref<128xf32, #tpu.memory_space<any>>
      %c0_i32_75 = arith.constant 0 : i32
      %171 = tpu.memref_slice %arg8[%168, %c0_i32_75] : memref<128x128xf32, #tpu.memory_space<vmem>> -> memref<1x128xf32, #tpu.memory_space<vmem>>
      %172 = tpu.memref_squeeze %171 : memref<1x128xf32, #tpu.memory_space<vmem>> -> memref<128xf32, #tpu.memory_space<vmem>>
      %173 = tpu.memref_slice %arg9[%c0_i32_73] : memref<2x!tpu.dma_semaphore, #tpu.memory_space<semaphore_mem>> -> memref<1x!tpu.dma_semaphore, #tpu.memory_space<semaphore_mem>>
      %174 = tpu.memref_squeeze %173 : memref<1x!tpu.dma_semaphore, #tpu.memory_space<semaphore_mem>> -> memref<!tpu.dma_semaphore, #tpu.memory_space<semaphore_mem>>
      tpu.enqueue_dma source(%170 : memref<128xf32, #tpu.memory_space<any>>) target(%172 : memref<128xf32, #tpu.memory_space<vmem>>) target_semaphore(%174 : memref<!tpu.dma_semaphore, #tpu.memory_space<semaphore_mem>>)
      %c12_i32 = arith.constant 12 : i32
      %175 = arith.addi %54, %c12_i32 : i32
      %176 = arith.index_cast %175 : i32 to index
      %177 = memref.load %arg2[%176] : memref<256xi32, #tpu.memory_space<smem>>
      %c0_i32_76 = arith.constant 0 : i32
      %178 = arith.addi %c0_i32_76, %c12_i32 : i32
      %c0_i32_77 = arith.constant 0 : i32
      %c0_i32_78 = arith.constant 0 : i32
      %179 = tpu.memref_slice %arg6[%177, %c0_i32_78] : memref<512x128xf32, #tpu.memory_space<any>> -> memref<1x128xf32, #tpu.memory_space<any>>
      %180 = tpu.memref_squeeze %179 : memref<1x128xf32, #tpu.memory_space<any>> -> memref<128xf32, #tpu.memory_space<any>>
      %c0_i32_79 = arith.constant 0 : i32
      %181 = tpu.memref_slice %arg8[%178, %c0_i32_79] : memref<128x128xf32, #tpu.memory_space<vmem>> -> memref<1x128xf32, #tpu.memory_space<vmem>>
      %182 = tpu.memref_squeeze %181 : memref<1x128xf32, #tpu.memory_space<vmem>> -> memref<128xf32, #tpu.memory_space<vmem>>
      %183 = tpu.memref_slice %arg9[%c0_i32_77] : memref<2x!tpu.dma_semaphore, #tpu.memory_space<semaphore_mem>> -> memref<1x!tpu.dma_semaphore, #tpu.memory_space<semaphore_mem>>
      %184 = tpu.memref_squeeze %183 : memref<1x!tpu.dma_semaphore, #tpu.memory_space<semaphore_mem>> -> memref<!tpu.dma_semaphore, #tpu.memory_space<semaphore_mem>>
      tpu.enqueue_dma source(%180 : memref<128xf32, #tpu.memory_space<any>>) target(%182 : memref<128xf32, #tpu.memory_space<vmem>>) target_semaphore(%184 : memref<!tpu.dma_semaphore, #tpu.memory_space<semaphore_mem>>)
      %c13_i32 = arith.constant 13 : i32
      %185 = arith.addi %54, %c13_i32 : i32
      %186 = arith.index_cast %185 : i32 to index
      %187 = memref.load %arg2[%186] : memref<256xi32, #tpu.memory_space<smem>>
      %c0_i32_80 = arith.constant 0 : i32
      %188 = arith.addi %c0_i32_80, %c13_i32 : i32
      %c0_i32_81 = arith.constant 0 : i32
      %c0_i32_82 = arith.constant 0 : i32
      %189 = tpu.memref_slice %arg6[%187, %c0_i32_82] : memref<512x128xf32, #tpu.memory_space<any>> -> memref<1x128xf32, #tpu.memory_space<any>>
      %190 = tpu.memref_squeeze %189 : memref<1x128xf32, #tpu.memory_space<any>> -> memref<128xf32, #tpu.memory_space<any>>
      %c0_i32_83 = arith.constant 0 : i32
      %191 = tpu.memref_slice %arg8[%188, %c0_i32_83] : memref<128x128xf32, #tpu.memory_space<vmem>> -> memref<1x128xf32, #tpu.memory_space<vmem>>
      %192 = tpu.memref_squeeze %191 : memref<1x128xf32, #tpu.memory_space<vmem>> -> memref<128xf32, #tpu.memory_space<vmem>>
      %193 = tpu.memref_slice %arg9[%c0_i32_81] : memref<2x!tpu.dma_semaphore, #tpu.memory_space<semaphore_mem>> -> memref<1x!tpu.dma_semaphore, #tpu.memory_space<semaphore_mem>>
      %194 = tpu.memref_squeeze %193 : memref<1x!tpu.dma_semaphore, #tpu.memory_space<semaphore_mem>> -> memref<!tpu.dma_semaphore, #tpu.memory_space<semaphore_mem>>
      tpu.enqueue_dma source(%190 : memref<128xf32, #tpu.memory_space<any>>) target(%192 : memref<128xf32, #tpu.memory_space<vmem>>) target_semaphore(%194 : memref<!tpu.dma_semaphore, #tpu.memory_space<semaphore_mem>>)
      %c14_i32 = arith.constant 14 : i32
      %195 = arith.addi %54, %c14_i32 : i32
      %196 = arith.index_cast %195 : i32 to index
      %197 = memref.load %arg2[%196] : memref<256xi32, #tpu.memory_space<smem>>
      %c0_i32_84 = arith.constant 0 : i32
      %198 = arith.addi %c0_i32_84, %c14_i32 : i32
      %c0_i32_85 = arith.constant 0 : i32
      %c0_i32_86 = arith.constant 0 : i32
      %199 = tpu.memref_slice %arg6[%197, %c0_i32_86] : memref<512x128xf32, #tpu.memory_space<any>> -> memref<1x128xf32, #tpu.memory_space<any>>
      %200 = tpu.memref_squeeze %199 : memref<1x128xf32, #tpu.memory_space<any>> -> memref<128xf32, #tpu.memory_space<any>>
      %c0_i32_87 = arith.constant 0 : i32
      %201 = tpu.memref_slice %arg8[%198, %c0_i32_87] : memref<128x128xf32, #tpu.memory_space<vmem>> -> memref<1x128xf32, #tpu.memory_space<vmem>>
      %202 = tpu.memref_squeeze %201 : memref<1x128xf32, #tpu.memory_space<vmem>> -> memref<128xf32, #tpu.memory_space<vmem>>
      %203 = tpu.memref_slice %arg9[%c0_i32_85] : memref<2x!tpu.dma_semaphore, #tpu.memory_space<semaphore_mem>> -> memref<1x!tpu.dma_semaphore, #tpu.memory_space<semaphore_mem>>
      %204 = tpu.memref_squeeze %203 : memref<1x!tpu.dma_semaphore, #tpu.memory_space<semaphore_mem>> -> memref<!tpu.dma_semaphore, #tpu.memory_space<semaphore_mem>>
      tpu.enqueue_dma source(%200 : memref<128xf32, #tpu.memory_space<any>>) target(%202 : memref<128xf32, #tpu.memory_space<vmem>>) target_semaphore(%204 : memref<!tpu.dma_semaphore, #tpu.memory_space<semaphore_mem>>)
      %c15_i32 = arith.constant 15 : i32
      %205 = arith.addi %54, %c15_i32 : i32
      %206 = arith.index_cast %205 : i32 to index
      %207 = memref.load %arg2[%206] : memref<256xi32, #tpu.memory_space<smem>>
      %c0_i32_88 = arith.constant 0 : i32
      %208 = arith.addi %c0_i32_88, %c15_i32 : i32
      %c0_i32_89 = arith.constant 0 : i32
      %c0_i32_90 = arith.constant 0 : i32
      %209 = tpu.memref_slice %arg6[%207, %c0_i32_90] : memref<512x128xf32, #tpu.memory_space<any>> -> memref<1x128xf32, #tpu.memory_space<any>>
      %210 = tpu.memref_squeeze %209 : memref<1x128xf32, #tpu.memory_space<any>> -> memref<128xf32, #tpu.memory_space<any>>
      %c0_i32_91 = arith.constant 0 : i32
      %211 = tpu.memref_slice %arg8[%208, %c0_i32_91] : memref<128x128xf32, #tpu.memory_space<vmem>> -> memref<1x128xf32, #tpu.memory_space<vmem>>
      %212 = tpu.memref_squeeze %211 : memref<1x128xf32, #tpu.memory_space<vmem>> -> memref<128xf32, #tpu.memory_space<vmem>>
      %213 = tpu.memref_slice %arg9[%c0_i32_89] : memref<2x!tpu.dma_semaphore, #tpu.memory_space<semaphore_mem>> -> memref<1x!tpu.dma_semaphore, #tpu.memory_space<semaphore_mem>>
      %214 = tpu.memref_squeeze %213 : memref<1x!tpu.dma_semaphore, #tpu.memory_space<semaphore_mem>> -> memref<!tpu.dma_semaphore, #tpu.memory_space<semaphore_mem>>
      tpu.enqueue_dma source(%210 : memref<128xf32, #tpu.memory_space<any>>) target(%212 : memref<128xf32, #tpu.memory_space<vmem>>) target_semaphore(%214 : memref<!tpu.dma_semaphore, #tpu.memory_space<semaphore_mem>>)
      %c16_i32 = arith.constant 16 : i32
      %215 = arith.addi %54, %c16_i32 : i32
      %216 = arith.index_cast %215 : i32 to index
      %217 = memref.load %arg2[%216] : memref<256xi32, #tpu.memory_space<smem>>
      %c0_i32_92 = arith.constant 0 : i32
      %218 = arith.addi %c0_i32_92, %c16_i32 : i32
      %c0_i32_93 = arith.constant 0 : i32
      %c0_i32_94 = arith.constant 0 : i32
      %219 = tpu.memref_slice %arg6[%217, %c0_i32_94] : memref<512x128xf32, #tpu.memory_space<any>> -> memref<1x128xf32, #tpu.memory_space<any>>
      %220 = tpu.memref_squeeze %219 : memref<1x128xf32, #tpu.memory_space<any>> -> memref<128xf32, #tpu.memory_space<any>>
      %c0_i32_95 = arith.constant 0 : i32
      %221 = tpu.memref_slice %arg8[%218, %c0_i32_95] : memref<128x128xf32, #tpu.memory_space<vmem>> -> memref<1x128xf32, #tpu.memory_space<vmem>>
      %222 = tpu.memref_squeeze %221 : memref<1x128xf32, #tpu.memory_space<vmem>> -> memref<128xf32, #tpu.memory_space<vmem>>
      %223 = tpu.memref_slice %arg9[%c0_i32_93] : memref<2x!tpu.dma_semaphore, #tpu.memory_space<semaphore_mem>> -> memref<1x!tpu.dma_semaphore, #tpu.memory_space<semaphore_mem>>
      %224 = tpu.memref_squeeze %223 : memref<1x!tpu.dma_semaphore, #tpu.memory_space<semaphore_mem>> -> memref<!tpu.dma_semaphore, #tpu.memory_space<semaphore_mem>>
      tpu.enqueue_dma source(%220 : memref<128xf32, #tpu.memory_space<any>>) target(%222 : memref<128xf32, #tpu.memory_space<vmem>>) target_semaphore(%224 : memref<!tpu.dma_semaphore, #tpu.memory_space<semaphore_mem>>)
      %c17_i32 = arith.constant 17 : i32
      %225 = arith.addi %54, %c17_i32 : i32
      %226 = arith.index_cast %225 : i32 to index
      %227 = memref.load %arg2[%226] : memref<256xi32, #tpu.memory_space<smem>>
      %c0_i32_96 = arith.constant 0 : i32
      %228 = arith.addi %c0_i32_96, %c17_i32 : i32
      %c0_i32_97 = arith.constant 0 : i32
      %c0_i32_98 = arith.constant 0 : i32
      %229 = tpu.memref_slice %arg6[%227, %c0_i32_98] : memref<512x128xf32, #tpu.memory_space<any>> -> memref<1x128xf32, #tpu.memory_space<any>>
      %230 = tpu.memref_squeeze %229 : memref<1x128xf32, #tpu.memory_space<any>> -> memref<128xf32, #tpu.memory_space<any>>
      %c0_i32_99 = arith.constant 0 : i32
      %231 = tpu.memref_slice %arg8[%228, %c0_i32_99] : memref<128x128xf32, #tpu.memory_space<vmem>> -> memref<1x128xf32, #tpu.memory_space<vmem>>
      %232 = tpu.memref_squeeze %231 : memref<1x128xf32, #tpu.memory_space<vmem>> -> memref<128xf32, #tpu.memory_space<vmem>>
      %233 = tpu.memref_slice %arg9[%c0_i32_97] : memref<2x!tpu.dma_semaphore, #tpu.memory_space<semaphore_mem>> -> memref<1x!tpu.dma_semaphore, #tpu.memory_space<semaphore_mem>>
      %234 = tpu.memref_squeeze %233 : memref<1x!tpu.dma_semaphore, #tpu.memory_space<semaphore_mem>> -> memref<!tpu.dma_semaphore, #tpu.memory_space<semaphore_mem>>
      tpu.enqueue_dma source(%230 : memref<128xf32, #tpu.memory_space<any>>) target(%232 : memref<128xf32, #tpu.memory_space<vmem>>) target_semaphore(%234 : memref<!tpu.dma_semaphore, #tpu.memory_space<semaphore_mem>>)
      %c18_i32 = arith.constant 18 : i32
      %235 = arith.addi %54, %c18_i32 : i32
      %236 = arith.index_cast %235 : i32 to index
      %237 = memref.load %arg2[%236] : memref<256xi32, #tpu.memory_space<smem>>
      %c0_i32_100 = arith.constant 0 : i32
      %238 = arith.addi %c0_i32_100, %c18_i32 : i32
      %c0_i32_101 = arith.constant 0 : i32
      %c0_i32_102 = arith.constant 0 : i32
      %239 = tpu.memref_slice %arg6[%237, %c0_i32_102] : memref<512x128xf32, #tpu.memory_space<any>> -> memref<1x128xf32, #tpu.memory_space<any>>
      %240 = tpu.memref_squeeze %239 : memref<1x128xf32, #tpu.memory_space<any>> -> memref<128xf32, #tpu.memory_space<any>>
      %c0_i32_103 = arith.constant 0 : i32
      %241 = tpu.memref_slice %arg8[%238, %c0_i32_103] : memref<128x128xf32, #tpu.memory_space<vmem>> -> memref<1x128xf32, #tpu.memory_space<vmem>>
      %242 = tpu.memref_squeeze %241 : memref<1x128xf32, #tpu.memory_space<vmem>> -> memref<128xf32, #tpu.memory_space<vmem>>
      %243 = tpu.memref_slice %arg9[%c0_i32_101] : memref<2x!tpu.dma_semaphore, #tpu.memory_space<semaphore_mem>> -> memref<1x!tpu.dma_semaphore, #tpu.memory_space<semaphore_mem>>
      %244 = tpu.memref_squeeze %243 : memref<1x!tpu.dma_semaphore, #tpu.memory_space<semaphore_mem>> -> memref<!tpu.dma_semaphore, #tpu.memory_space<semaphore_mem>>
      tpu.enqueue_dma source(%240 : memref<128xf32, #tpu.memory_space<any>>) target(%242 : memref<128xf32, #tpu.memory_space<vmem>>) target_semaphore(%244 : memref<!tpu.dma_semaphore, #tpu.memory_space<semaphore_mem>>)
      %c19_i32 = arith.constant 19 : i32
      %245 = arith.addi %54, %c19_i32 : i32
      %246 = arith.index_cast %245 : i32 to index
      %247 = memref.load %arg2[%246] : memref<256xi32, #tpu.memory_space<smem>>
      %c0_i32_104 = arith.constant 0 : i32
      %248 = arith.addi %c0_i32_104, %c19_i32 : i32
      %c0_i32_105 = arith.constant 0 : i32
      %c0_i32_106 = arith.constant 0 : i32
      %249 = tpu.memref_slice %arg6[%247, %c0_i32_106] : memref<512x128xf32, #tpu.memory_space<any>> -> memref<1x128xf32, #tpu.memory_space<any>>
      %250 = tpu.memref_squeeze %249 : memref<1x128xf32, #tpu.memory_space<any>> -> memref<128xf32, #tpu.memory_space<any>>
      %c0_i32_107 = arith.constant 0 : i32
      %251 = tpu.memref_slice %arg8[%248, %c0_i32_107] : memref<128x128xf32, #tpu.memory_space<vmem>> -> memref<1x128xf32, #tpu.memory_space<vmem>>
      %252 = tpu.memref_squeeze %251 : memref<1x128xf32, #tpu.memory_space<vmem>> -> memref<128xf32, #tpu.memory_space<vmem>>
      %253 = tpu.memref_slice %arg9[%c0_i32_105] : memref<2x!tpu.dma_semaphore, #tpu.memory_space<semaphore_mem>> -> memref<1x!tpu.dma_semaphore, #tpu.memory_space<semaphore_mem>>
      %254 = tpu.memref_squeeze %253 : memref<1x!tpu.dma_semaphore, #tpu.memory_space<semaphore_mem>> -> memref<!tpu.dma_semaphore, #tpu.memory_space<semaphore_mem>>
      tpu.enqueue_dma source(%250 : memref<128xf32, #tpu.memory_space<any>>) target(%252 : memref<128xf32, #tpu.memory_space<vmem>>) target_semaphore(%254 : memref<!tpu.dma_semaphore, #tpu.memory_space<semaphore_mem>>)
      %c20_i32 = arith.constant 20 : i32
      %255 = arith.addi %54, %c20_i32 : i32
      %256 = arith.index_cast %255 : i32 to index
      %257 = memref.load %arg2[%256] : memref<256xi32, #tpu.memory_space<smem>>
      %c0_i32_108 = arith.constant 0 : i32
      %258 = arith.addi %c0_i32_108, %c20_i32 : i32
      %c0_i32_109 = arith.constant 0 : i32
      %c0_i32_110 = arith.constant 0 : i32
      %259 = tpu.memref_slice %arg6[%257, %c0_i32_110] : memref<512x128xf32, #tpu.memory_space<any>> -> memref<1x128xf32, #tpu.memory_space<any>>
      %260 = tpu.memref_squeeze %259 : memref<1x128xf32, #tpu.memory_space<any>> -> memref<128xf32, #tpu.memory_space<any>>
      %c0_i32_111 = arith.constant 0 : i32
      %261 = tpu.memref_slice %arg8[%258, %c0_i32_111] : memref<128x128xf32, #tpu.memory_space<vmem>> -> memref<1x128xf32, #tpu.memory_space<vmem>>
      %262 = tpu.memref_squeeze %261 : memref<1x128xf32, #tpu.memory_space<vmem>> -> memref<128xf32, #tpu.memory_space<vmem>>
      %263 = tpu.memref_slice %arg9[%c0_i32_109] : memref<2x!tpu.dma_semaphore, #tpu.memory_space<semaphore_mem>> -> memref<1x!tpu.dma_semaphore, #tpu.memory_space<semaphore_mem>>
      %264 = tpu.memref_squeeze %263 : memref<1x!tpu.dma_semaphore, #tpu.memory_space<semaphore_mem>> -> memref<!tpu.dma_semaphore, #tpu.memory_space<semaphore_mem>>
      tpu.enqueue_dma source(%260 : memref<128xf32, #tpu.memory_space<any>>) target(%262 : memref<128xf32, #tpu.memory_space<vmem>>) target_semaphore(%264 : memref<!tpu.dma_semaphore, #tpu.memory_space<semaphore_mem>>)
      %c21_i32 = arith.constant 21 : i32
      %265 = arith.addi %54, %c21_i32 : i32
      %266 = arith.index_cast %265 : i32 to index
      %267 = memref.load %arg2[%266] : memref<256xi32, #tpu.memory_space<smem>>
      %c0_i32_112 = arith.constant 0 : i32
      %268 = arith.addi %c0_i32_112, %c21_i32 : i32
      %c0_i32_113 = arith.constant 0 : i32
      %c0_i32_114 = arith.constant 0 : i32
      %269 = tpu.memref_slice %arg6[%267, %c0_i32_114] : memref<512x128xf32, #tpu.memory_space<any>> -> memref<1x128xf32, #tpu.memory_space<any>>
      %270 = tpu.memref_squeeze %269 : memref<1x128xf32, #tpu.memory_space<any>> -> memref<128xf32, #tpu.memory_space<any>>
      %c0_i32_115 = arith.constant 0 : i32
      %271 = tpu.memref_slice %arg8[%268, %c0_i32_115] : memref<128x128xf32, #tpu.memory_space<vmem>> -> memref<1x128xf32, #tpu.memory_space<vmem>>
      %272 = tpu.memref_squeeze %271 : memref<1x128xf32, #tpu.memory_space<vmem>> -> memref<128xf32, #tpu.memory_space<vmem>>
      %273 = tpu.memref_slice %arg9[%c0_i32_113] : memref<2x!tpu.dma_semaphore, #tpu.memory_space<semaphore_mem>> -> memref<1x!tpu.dma_semaphore, #tpu.memory_space<semaphore_mem>>
      %274 = tpu.memref_squeeze %273 : memref<1x!tpu.dma_semaphore, #tpu.memory_space<semaphore_mem>> -> memref<!tpu.dma_semaphore, #tpu.memory_space<semaphore_mem>>
      tpu.enqueue_dma source(%270 : memref<128xf32, #tpu.memory_space<any>>) target(%272 : memref<128xf32, #tpu.memory_space<vmem>>) target_semaphore(%274 : memref<!tpu.dma_semaphore, #tpu.memory_space<semaphore_mem>>)
      %c22_i32 = arith.constant 22 : i32
      %275 = arith.addi %54, %c22_i32 : i32
      %276 = arith.index_cast %275 : i32 to index
      %277 = memref.load %arg2[%276] : memref<256xi32, #tpu.memory_space<smem>>
      %c0_i32_116 = arith.constant 0 : i32
      %278 = arith.addi %c0_i32_116, %c22_i32 : i32
      %c0_i32_117 = arith.constant 0 : i32
      %c0_i32_118 = arith.constant 0 : i32
      %279 = tpu.memref_slice %arg6[%277, %c0_i32_118] : memref<512x128xf32, #tpu.memory_space<any>> -> memref<1x128xf32, #tpu.memory_space<any>>
      %280 = tpu.memref_squeeze %279 : memref<1x128xf32, #tpu.memory_space<any>> -> memref<128xf32, #tpu.memory_space<any>>
      %c0_i32_119 = arith.constant 0 : i32
      %281 = tpu.memref_slice %arg8[%278, %c0_i32_119] : memref<128x128xf32, #tpu.memory_space<vmem>> -> memref<1x128xf32, #tpu.memory_space<vmem>>
      %282 = tpu.memref_squeeze %281 : memref<1x128xf32, #tpu.memory_space<vmem>> -> memref<128xf32, #tpu.memory_space<vmem>>
      %283 = tpu.memref_slice %arg9[%c0_i32_117] : memref<2x!tpu.dma_semaphore, #tpu.memory_space<semaphore_mem>> -> memref<1x!tpu.dma_semaphore, #tpu.memory_space<semaphore_mem>>
      %284 = tpu.memref_squeeze %283 : memref<1x!tpu.dma_semaphore, #tpu.memory_space<semaphore_mem>> -> memref<!tpu.dma_semaphore, #tpu.memory_space<semaphore_mem>>
      tpu.enqueue_dma source(%280 : memref<128xf32, #tpu.memory_space<any>>) target(%282 : memref<128xf32, #tpu.memory_space<vmem>>) target_semaphore(%284 : memref<!tpu.dma_semaphore, #tpu.memory_space<semaphore_mem>>)
      %c23_i32 = arith.constant 23 : i32
      %285 = arith.addi %54, %c23_i32 : i32
      %286 = arith.index_cast %285 : i32 to index
      %287 = memref.load %arg2[%286] : memref<256xi32, #tpu.memory_space<smem>>
      %c0_i32_120 = arith.constant 0 : i32
      %288 = arith.addi %c0_i32_120, %c23_i32 : i32
      %c0_i32_121 = arith.constant 0 : i32
      %c0_i32_122 = arith.constant 0 : i32
      %289 = tpu.memref_slice %arg6[%287, %c0_i32_122] : memref<512x128xf32, #tpu.memory_space<any>> -> memref<1x128xf32, #tpu.memory_space<any>>
      %290 = tpu.memref_squeeze %289 : memref<1x128xf32, #tpu.memory_space<any>> -> memref<128xf32, #tpu.memory_space<any>>
      %c0_i32_123 = arith.constant 0 : i32
      %291 = tpu.memref_slice %arg8[%288, %c0_i32_123] : memref<128x128xf32, #tpu.memory_space<vmem>> -> memref<1x128xf32, #tpu.memory_space<vmem>>
      %292 = tpu.memref_squeeze %291 : memref<1x128xf32, #tpu.memory_space<vmem>> -> memref<128xf32, #tpu.memory_space<vmem>>
      %293 = tpu.memref_slice %arg9[%c0_i32_121] : memref<2x!tpu.dma_semaphore, #tpu.memory_space<semaphore_mem>> -> memref<1x!tpu.dma_semaphore, #tpu.memory_space<semaphore_mem>>
      %294 = tpu.memref_squeeze %293 : memref<1x!tpu.dma_semaphore, #tpu.memory_space<semaphore_mem>> -> memref<!tpu.dma_semaphore, #tpu.memory_space<semaphore_mem>>
      tpu.enqueue_dma source(%290 : memref<128xf32, #tpu.memory_space<any>>) target(%292 : memref<128xf32, #tpu.memory_space<vmem>>) target_semaphore(%294 : memref<!tpu.dma_semaphore, #tpu.memory_space<semaphore_mem>>)
      %c24_i32 = arith.constant 24 : i32
      %295 = arith.addi %54, %c24_i32 : i32
      %296 = arith.index_cast %295 : i32 to index
      %297 = memref.load %arg2[%296] : memref<256xi32, #tpu.memory_space<smem>>
      %c0_i32_124 = arith.constant 0 : i32
      %298 = arith.addi %c0_i32_124, %c24_i32 : i32
      %c0_i32_125 = arith.constant 0 : i32
      %c0_i32_126 = arith.constant 0 : i32
      %299 = tpu.memref_slice %arg6[%297, %c0_i32_126] : memref<512x128xf32, #tpu.memory_space<any>> -> memref<1x128xf32, #tpu.memory_space<any>>
      %300 = tpu.memref_squeeze %299 : memref<1x128xf32, #tpu.memory_space<any>> -> memref<128xf32, #tpu.memory_space<any>>
      %c0_i32_127 = arith.constant 0 : i32
      %301 = tpu.memref_slice %arg8[%298, %c0_i32_127] : memref<128x128xf32, #tpu.memory_space<vmem>> -> memref<1x128xf32, #tpu.memory_space<vmem>>
      %302 = tpu.memref_squeeze %301 : memref<1x128xf32, #tpu.memory_space<vmem>> -> memref<128xf32, #tpu.memory_space<vmem>>
      %303 = tpu.memref_slice %arg9[%c0_i32_125] : memref<2x!tpu.dma_semaphore, #tpu.memory_space<semaphore_mem>> -> memref<1x!tpu.dma_semaphore, #tpu.memory_space<semaphore_mem>>
      %304 = tpu.memref_squeeze %303 : memref<1x!tpu.dma_semaphore, #tpu.memory_space<semaphore_mem>> -> memref<!tpu.dma_semaphore, #tpu.memory_space<semaphore_mem>>
      tpu.enqueue_dma source(%300 : memref<128xf32, #tpu.memory_space<any>>) target(%302 : memref<128xf32, #tpu.memory_space<vmem>>) target_semaphore(%304 : memref<!tpu.dma_semaphore, #tpu.memory_space<semaphore_mem>>)
      %c25_i32 = arith.constant 25 : i32
      %305 = arith.addi %54, %c25_i32 : i32
      %306 = arith.index_cast %305 : i32 to index
      %307 = memref.load %arg2[%306] : memref<256xi32, #tpu.memory_space<smem>>
      %c0_i32_128 = arith.constant 0 : i32
      %308 = arith.addi %c0_i32_128, %c25_i32 : i32
      %c0_i32_129 = arith.constant 0 : i32
      %c0_i32_130 = arith.constant 0 : i32
      %309 = tpu.memref_slice %arg6[%307, %c0_i32_130] : memref<512x128xf32, #tpu.memory_space<any>> -> memref<1x128xf32, #tpu.memory_space<any>>
      %310 = tpu.memref_squeeze %309 : memref<1x128xf32, #tpu.memory_space<any>> -> memref<128xf32, #tpu.memory_space<any>>
      %c0_i32_131 = arith.constant 0 : i32
      %311 = tpu.memref_slice %arg8[%308, %c0_i32_131] : memref<128x128xf32, #tpu.memory_space<vmem>> -> memref<1x128xf32, #tpu.memory_space<vmem>>
      %312 = tpu.memref_squeeze %311 : memref<1x128xf32, #tpu.memory_space<vmem>> -> memref<128xf32, #tpu.memory_space<vmem>>
      %313 = tpu.memref_slice %arg9[%c0_i32_129] : memref<2x!tpu.dma_semaphore, #tpu.memory_space<semaphore_mem>> -> memref<1x!tpu.dma_semaphore, #tpu.memory_space<semaphore_mem>>
      %314 = tpu.memref_squeeze %313 : memref<1x!tpu.dma_semaphore, #tpu.memory_space<semaphore_mem>> -> memref<!tpu.dma_semaphore, #tpu.memory_space<semaphore_mem>>
      tpu.enqueue_dma source(%310 : memref<128xf32, #tpu.memory_space<any>>) target(%312 : memref<128xf32, #tpu.memory_space<vmem>>) target_semaphore(%314 : memref<!tpu.dma_semaphore, #tpu.memory_space<semaphore_mem>>)
      %c26_i32 = arith.constant 26 : i32
      %315 = arith.addi %54, %c26_i32 : i32
      %316 = arith.index_cast %315 : i32 to index
      %317 = memref.load %arg2[%316] : memref<256xi32, #tpu.memory_space<smem>>
      %c0_i32_132 = arith.constant 0 : i32
      %318 = arith.addi %c0_i32_132, %c26_i32 : i32
      %c0_i32_133 = arith.constant 0 : i32
      %c0_i32_134 = arith.constant 0 : i32
      %319 = tpu.memref_slice %arg6[%317, %c0_i32_134] : memref<512x128xf32, #tpu.memory_space<any>> -> memref<1x128xf32, #tpu.memory_space<any>>
      %320 = tpu.memref_squeeze %319 : memref<1x128xf32, #tpu.memory_space<any>> -> memref<128xf32, #tpu.memory_space<any>>
      %c0_i32_135 = arith.constant 0 : i32
      %321 = tpu.memref_slice %arg8[%318, %c0_i32_135] : memref<128x128xf32, #tpu.memory_space<vmem>> -> memref<1x128xf32, #tpu.memory_space<vmem>>
      %322 = tpu.memref_squeeze %321 : memref<1x128xf32, #tpu.memory_space<vmem>> -> memref<128xf32, #tpu.memory_space<vmem>>
      %323 = tpu.memref_slice %arg9[%c0_i32_133] : memref<2x!tpu.dma_semaphore, #tpu.memory_space<semaphore_mem>> -> memref<1x!tpu.dma_semaphore, #tpu.memory_space<semaphore_mem>>
      %324 = tpu.memref_squeeze %323 : memref<1x!tpu.dma_semaphore, #tpu.memory_space<semaphore_mem>> -> memref<!tpu.dma_semaphore, #tpu.memory_space<semaphore_mem>>
      tpu.enqueue_dma source(%320 : memref<128xf32, #tpu.memory_space<any>>) target(%322 : memref<128xf32, #tpu.memory_space<vmem>>) target_semaphore(%324 : memref<!tpu.dma_semaphore, #tpu.memory_space<semaphore_mem>>)
      %c27_i32 = arith.constant 27 : i32
      %325 = arith.addi %54, %c27_i32 : i32
      %326 = arith.index_cast %325 : i32 to index
      %327 = memref.load %arg2[%326] : memref<256xi32, #tpu.memory_space<smem>>
      %c0_i32_136 = arith.constant 0 : i32
      %328 = arith.addi %c0_i32_136, %c27_i32 : i32
      %c0_i32_137 = arith.constant 0 : i32
      %c0_i32_138 = arith.constant 0 : i32
      %329 = tpu.memref_slice %arg6[%327, %c0_i32_138] : memref<512x128xf32, #tpu.memory_space<any>> -> memref<1x128xf32, #tpu.memory_space<any>>
      %330 = tpu.memref_squeeze %329 : memref<1x128xf32, #tpu.memory_space<any>> -> memref<128xf32, #tpu.memory_space<any>>
      %c0_i32_139 = arith.constant 0 : i32
      %331 = tpu.memref_slice %arg8[%328, %c0_i32_139] : memref<128x128xf32, #tpu.memory_space<vmem>> -> memref<1x128xf32, #tpu.memory_space<vmem>>
      %332 = tpu.memref_squeeze %331 : memref<1x128xf32, #tpu.memory_space<vmem>> -> memref<128xf32, #tpu.memory_space<vmem>>
      %333 = tpu.memref_slice %arg9[%c0_i32_137] : memref<2x!tpu.dma_semaphore, #tpu.memory_space<semaphore_mem>> -> memref<1x!tpu.dma_semaphore, #tpu.memory_space<semaphore_mem>>
      %334 = tpu.memref_squeeze %333 : memref<1x!tpu.dma_semaphore, #tpu.memory_space<semaphore_mem>> -> memref<!tpu.dma_semaphore, #tpu.memory_space<semaphore_mem>>
      tpu.enqueue_dma source(%330 : memref<128xf32, #tpu.memory_space<any>>) target(%332 : memref<128xf32, #tpu.memory_space<vmem>>) target_semaphore(%334 : memref<!tpu.dma_semaphore, #tpu.memory_space<semaphore_mem>>)
      %c28_i32 = arith.constant 28 : i32
      %335 = arith.addi %54, %c28_i32 : i32
      %336 = arith.index_cast %335 : i32 to index
      %337 = memref.load %arg2[%336] : memref<256xi32, #tpu.memory_space<smem>>
      %c0_i32_140 = arith.constant 0 : i32
      %338 = arith.addi %c0_i32_140, %c28_i32 : i32
      %c0_i32_141 = arith.constant 0 : i32
      %c0_i32_142 = arith.constant 0 : i32
      %339 = tpu.memref_slice %arg6[%337, %c0_i32_142] : memref<512x128xf32, #tpu.memory_space<any>> -> memref<1x128xf32, #tpu.memory_space<any>>
      %340 = tpu.memref_squeeze %339 : memref<1x128xf32, #tpu.memory_space<any>> -> memref<128xf32, #tpu.memory_space<any>>
      %c0_i32_143 = arith.constant 0 : i32
      %341 = tpu.memref_slice %arg8[%338, %c0_i32_143] : memref<128x128xf32, #tpu.memory_space<vmem>> -> memref<1x128xf32, #tpu.memory_space<vmem>>
      %342 = tpu.memref_squeeze %341 : memref<1x128xf32, #tpu.memory_space<vmem>> -> memref<128xf32, #tpu.memory_space<vmem>>
      %343 = tpu.memref_slice %arg9[%c0_i32_141] : memref<2x!tpu.dma_semaphore, #tpu.memory_space<semaphore_mem>> -> memref<1x!tpu.dma_semaphore, #tpu.memory_space<semaphore_mem>>
      %344 = tpu.memref_squeeze %343 : memref<1x!tpu.dma_semaphore, #tpu.memory_space<semaphore_mem>> -> memref<!tpu.dma_semaphore, #tpu.memory_space<semaphore_mem>>
      tpu.enqueue_dma source(%340 : memref<128xf32, #tpu.memory_space<any>>) target(%342 : memref<128xf32, #tpu.memory_space<vmem>>) target_semaphore(%344 : memref<!tpu.dma_semaphore, #tpu.memory_space<semaphore_mem>>)
      %c29_i32 = arith.constant 29 : i32
      %345 = arith.addi %54, %c29_i32 : i32
      %346 = arith.index_cast %345 : i32 to index
      %347 = memref.load %arg2[%346] : memref<256xi32, #tpu.memory_space<smem>>
      %c0_i32_144 = arith.constant 0 : i32
      %348 = arith.addi %c0_i32_144, %c29_i32 : i32
      %c0_i32_145 = arith.constant 0 : i32
      %c0_i32_146 = arith.constant 0 : i32
      %349 = tpu.memref_slice %arg6[%347, %c0_i32_146] : memref<512x128xf32, #tpu.memory_space<any>> -> memref<1x128xf32, #tpu.memory_space<any>>
      %350 = tpu.memref_squeeze %349 : memref<1x128xf32, #tpu.memory_space<any>> -> memref<128xf32, #tpu.memory_space<any>>
      %c0_i32_147 = arith.constant 0 : i32
      %351 = tpu.memref_slice %arg8[%348, %c0_i32_147] : memref<128x128xf32, #tpu.memory_space<vmem>> -> memref<1x128xf32, #tpu.memory_space<vmem>>
      %352 = tpu.memref_squeeze %351 : memref<1x128xf32, #tpu.memory_space<vmem>> -> memref<128xf32, #tpu.memory_space<vmem>>
      %353 = tpu.memref_slice %arg9[%c0_i32_145] : memref<2x!tpu.dma_semaphore, #tpu.memory_space<semaphore_mem>> -> memref<1x!tpu.dma_semaphore, #tpu.memory_space<semaphore_mem>>
      %354 = tpu.memref_squeeze %353 : memref<1x!tpu.dma_semaphore, #tpu.memory_space<semaphore_mem>> -> memref<!tpu.dma_semaphore, #tpu.memory_space<semaphore_mem>>
      tpu.enqueue_dma source(%350 : memref<128xf32, #tpu.memory_space<any>>) target(%352 : memref<128xf32, #tpu.memory_space<vmem>>) target_semaphore(%354 : memref<!tpu.dma_semaphore, #tpu.memory_space<semaphore_mem>>)
      %c30_i32 = arith.constant 30 : i32
      %355 = arith.addi %54, %c30_i32 : i32
      %356 = arith.index_cast %355 : i32 to index
      %357 = memref.load %arg2[%356] : memref<256xi32, #tpu.memory_space<smem>>
      %c0_i32_148 = arith.constant 0 : i32
      %358 = arith.addi %c0_i32_148, %c30_i32 : i32
      %c0_i32_149 = arith.constant 0 : i32
      %c0_i32_150 = arith.constant 0 : i32
      %359 = tpu.memref_slice %arg6[%357, %c0_i32_150] : memref<512x128xf32, #tpu.memory_space<any>> -> memref<1x128xf32, #tpu.memory_space<any>>
      %360 = tpu.memref_squeeze %359 : memref<1x128xf32, #tpu.memory_space<any>> -> memref<128xf32, #tpu.memory_space<any>>
      %c0_i32_151 = arith.constant 0 : i32
      %361 = tpu.memref_slice %arg8[%358, %c0_i32_151] : memref<128x128xf32, #tpu.memory_space<vmem>> -> memref<1x128xf32, #tpu.memory_space<vmem>>
      %362 = tpu.memref_squeeze %361 : memref<1x128xf32, #tpu.memory_space<vmem>> -> memref<128xf32, #tpu.memory_space<vmem>>
      %363 = tpu.memref_slice %arg9[%c0_i32_149] : memref<2x!tpu.dma_semaphore, #tpu.memory_space<semaphore_mem>> -> memref<1x!tpu.dma_semaphore, #tpu.memory_space<semaphore_mem>>
      %364 = tpu.memref_squeeze %363 : memref<1x!tpu.dma_semaphore, #tpu.memory_space<semaphore_mem>> -> memref<!tpu.dma_semaphore, #tpu.memory_space<semaphore_mem>>
      tpu.enqueue_dma source(%360 : memref<128xf32, #tpu.memory_space<any>>) target(%362 : memref<128xf32, #tpu.memory_space<vmem>>) target_semaphore(%364 : memref<!tpu.dma_semaphore, #tpu.memory_space<semaphore_mem>>)
      %c31_i32 = arith.constant 31 : i32
      %365 = arith.addi %54, %c31_i32 : i32
      %366 = arith.index_cast %365 : i32 to index
      %367 = memref.load %arg2[%366] : memref<256xi32, #tpu.memory_space<smem>>
      %c0_i32_152 = arith.constant 0 : i32
      %368 = arith.addi %c0_i32_152, %c31_i32 : i32
      %c0_i32_153 = arith.constant 0 : i32
      %c0_i32_154 = arith.constant 0 : i32
      %369 = tpu.memref_slice %arg6[%367, %c0_i32_154] : memref<512x128xf32, #tpu.memory_space<any>> -> memref<1x128xf32, #tpu.memory_space<any>>
      %370 = tpu.memref_squeeze %369 : memref<1x128xf32, #tpu.memory_space<any>> -> memref<128xf32, #tpu.memory_space<any>>
      %c0_i32_155 = arith.constant 0 : i32
      %371 = tpu.memref_slice %arg8[%368, %c0_i32_155] : memref<128x128xf32, #tpu.memory_space<vmem>> -> memref<1x128xf32, #tpu.memory_space<vmem>>
      %372 = tpu.memref_squeeze %371 : memref<1x128xf32, #tpu.memory_space<vmem>> -> memref<128xf32, #tpu.memory_space<vmem>>
      %373 = tpu.memref_slice %arg9[%c0_i32_153] : memref<2x!tpu.dma_semaphore, #tpu.memory_space<semaphore_mem>> -> memref<1x!tpu.dma_semaphore, #tpu.memory_space<semaphore_mem>>
      %374 = tpu.memref_squeeze %373 : memref<1x!tpu.dma_semaphore, #tpu.memory_space<semaphore_mem>> -> memref<!tpu.dma_semaphore, #tpu.memory_space<semaphore_mem>>
      tpu.enqueue_dma source(%370 : memref<128xf32, #tpu.memory_space<any>>) target(%372 : memref<128xf32, #tpu.memory_space<vmem>>) target_semaphore(%374 : memref<!tpu.dma_semaphore, #tpu.memory_space<semaphore_mem>>)
      %c32_i32 = arith.constant 32 : i32
      %375 = arith.addi %54, %c32_i32 : i32
      %376 = arith.index_cast %375 : i32 to index
      %377 = memref.load %arg2[%376] : memref<256xi32, #tpu.memory_space<smem>>
      %c0_i32_156 = arith.constant 0 : i32
      %378 = arith.addi %c0_i32_156, %c32_i32 : i32
      %c0_i32_157 = arith.constant 0 : i32
      %c0_i32_158 = arith.constant 0 : i32
      %379 = tpu.memref_slice %arg6[%377, %c0_i32_158] : memref<512x128xf32, #tpu.memory_space<any>> -> memref<1x128xf32, #tpu.memory_space<any>>
      %380 = tpu.memref_squeeze %379 : memref<1x128xf32, #tpu.memory_space<any>> -> memref<128xf32, #tpu.memory_space<any>>
      %c0_i32_159 = arith.constant 0 : i32
      %381 = tpu.memref_slice %arg8[%378, %c0_i32_159] : memref<128x128xf32, #tpu.memory_space<vmem>> -> memref<1x128xf32, #tpu.memory_space<vmem>>
      %382 = tpu.memref_squeeze %381 : memref<1x128xf32, #tpu.memory_space<vmem>> -> memref<128xf32, #tpu.memory_space<vmem>>
      %383 = tpu.memref_slice %arg9[%c0_i32_157] : memref<2x!tpu.dma_semaphore, #tpu.memory_space<semaphore_mem>> -> memref<1x!tpu.dma_semaphore, #tpu.memory_space<semaphore_mem>>
      %384 = tpu.memref_squeeze %383 : memref<1x!tpu.dma_semaphore, #tpu.memory_space<semaphore_mem>> -> memref<!tpu.dma_semaphore, #tpu.memory_space<semaphore_mem>>
      tpu.enqueue_dma source(%380 : memref<128xf32, #tpu.memory_space<any>>) target(%382 : memref<128xf32, #tpu.memory_space<vmem>>) target_semaphore(%384 : memref<!tpu.dma_semaphore, #tpu.memory_space<semaphore_mem>>)
      %c33_i32 = arith.constant 33 : i32
      %385 = arith.addi %54, %c33_i32 : i32
      %386 = arith.index_cast %385 : i32 to index
      %387 = memref.load %arg2[%386] : memref<256xi32, #tpu.memory_space<smem>>
      %c0_i32_160 = arith.constant 0 : i32
      %388 = arith.addi %c0_i32_160, %c33_i32 : i32
      %c0_i32_161 = arith.constant 0 : i32
      %c0_i32_162 = arith.constant 0 : i32
      %389 = tpu.memref_slice %arg6[%387, %c0_i32_162] : memref<512x128xf32, #tpu.memory_space<any>> -> memref<1x128xf32, #tpu.memory_space<any>>
      %390 = tpu.memref_squeeze %389 : memref<1x128xf32, #tpu.memory_space<any>> -> memref<128xf32, #tpu.memory_space<any>>
      %c0_i32_163 = arith.constant 0 : i32
      %391 = tpu.memref_slice %arg8[%388, %c0_i32_163] : memref<128x128xf32, #tpu.memory_space<vmem>> -> memref<1x128xf32, #tpu.memory_space<vmem>>
      %392 = tpu.memref_squeeze %391 : memref<1x128xf32, #tpu.memory_space<vmem>> -> memref<128xf32, #tpu.memory_space<vmem>>
      %393 = tpu.memref_slice %arg9[%c0_i32_161] : memref<2x!tpu.dma_semaphore, #tpu.memory_space<semaphore_mem>> -> memref<1x!tpu.dma_semaphore, #tpu.memory_space<semaphore_mem>>
      %394 = tpu.memref_squeeze %393 : memref<1x!tpu.dma_semaphore, #tpu.memory_space<semaphore_mem>> -> memref<!tpu.dma_semaphore, #tpu.memory_space<semaphore_mem>>
      tpu.enqueue_dma source(%390 : memref<128xf32, #tpu.memory_space<any>>) target(%392 : memref<128xf32, #tpu.memory_space<vmem>>) target_semaphore(%394 : memref<!tpu.dma_semaphore, #tpu.memory_space<semaphore_mem>>)
      %c34_i32 = arith.constant 34 : i32
      %395 = arith.addi %54, %c34_i32 : i32
      %396 = arith.index_cast %395 : i32 to index
      %397 = memref.load %arg2[%396] : memref<256xi32, #tpu.memory_space<smem>>
      %c0_i32_164 = arith.constant 0 : i32
      %398 = arith.addi %c0_i32_164, %c34_i32 : i32
      %c0_i32_165 = arith.constant 0 : i32
      %c0_i32_166 = arith.constant 0 : i32
      %399 = tpu.memref_slice %arg6[%397, %c0_i32_166] : memref<512x128xf32, #tpu.memory_space<any>> -> memref<1x128xf32, #tpu.memory_space<any>>
      %400 = tpu.memref_squeeze %399 : memref<1x128xf32, #tpu.memory_space<any>> -> memref<128xf32, #tpu.memory_space<any>>
      %c0_i32_167 = arith.constant 0 : i32
      %401 = tpu.memref_slice %arg8[%398, %c0_i32_167] : memref<128x128xf32, #tpu.memory_space<vmem>> -> memref<1x128xf32, #tpu.memory_space<vmem>>
      %402 = tpu.memref_squeeze %401 : memref<1x128xf32, #tpu.memory_space<vmem>> -> memref<128xf32, #tpu.memory_space<vmem>>
      %403 = tpu.memref_slice %arg9[%c0_i32_165] : memref<2x!tpu.dma_semaphore, #tpu.memory_space<semaphore_mem>> -> memref<1x!tpu.dma_semaphore, #tpu.memory_space<semaphore_mem>>
      %404 = tpu.memref_squeeze %403 : memref<1x!tpu.dma_semaphore, #tpu.memory_space<semaphore_mem>> -> memref<!tpu.dma_semaphore, #tpu.memory_space<semaphore_mem>>
      tpu.enqueue_dma source(%400 : memref<128xf32, #tpu.memory_space<any>>) target(%402 : memref<128xf32, #tpu.memory_space<vmem>>) target_semaphore(%404 : memref<!tpu.dma_semaphore, #tpu.memory_space<semaphore_mem>>)
      %c35_i32 = arith.constant 35 : i32
      %405 = arith.addi %54, %c35_i32 : i32
      %406 = arith.index_cast %405 : i32 to index
      %407 = memref.load %arg2[%406] : memref<256xi32, #tpu.memory_space<smem>>
      %c0_i32_168 = arith.constant 0 : i32
      %408 = arith.addi %c0_i32_168, %c35_i32 : i32
      %c0_i32_169 = arith.constant 0 : i32
      %c0_i32_170 = arith.constant 0 : i32
      %409 = tpu.memref_slice %arg6[%407, %c0_i32_170] : memref<512x128xf32, #tpu.memory_space<any>> -> memref<1x128xf32, #tpu.memory_space<any>>
      %410 = tpu.memref_squeeze %409 : memref<1x128xf32, #tpu.memory_space<any>> -> memref<128xf32, #tpu.memory_space<any>>
      %c0_i32_171 = arith.constant 0 : i32
      %411 = tpu.memref_slice %arg8[%408, %c0_i32_171] : memref<128x128xf32, #tpu.memory_space<vmem>> -> memref<1x128xf32, #tpu.memory_space<vmem>>
      %412 = tpu.memref_squeeze %411 : memref<1x128xf32, #tpu.memory_space<vmem>> -> memref<128xf32, #tpu.memory_space<vmem>>
      %413 = tpu.memref_slice %arg9[%c0_i32_169] : memref<2x!tpu.dma_semaphore, #tpu.memory_space<semaphore_mem>> -> memref<1x!tpu.dma_semaphore, #tpu.memory_space<semaphore_mem>>
      %414 = tpu.memref_squeeze %413 : memref<1x!tpu.dma_semaphore, #tpu.memory_space<semaphore_mem>> -> memref<!tpu.dma_semaphore, #tpu.memory_space<semaphore_mem>>
      tpu.enqueue_dma source(%410 : memref<128xf32, #tpu.memory_space<any>>) target(%412 : memref<128xf32, #tpu.memory_space<vmem>>) target_semaphore(%414 : memref<!tpu.dma_semaphore, #tpu.memory_space<semaphore_mem>>)
      %c36_i32 = arith.constant 36 : i32
      %415 = arith.addi %54, %c36_i32 : i32
      %416 = arith.index_cast %415 : i32 to index
      %417 = memref.load %arg2[%416] : memref<256xi32, #tpu.memory_space<smem>>
      %c0_i32_172 = arith.constant 0 : i32
      %418 = arith.addi %c0_i32_172, %c36_i32 : i32
      %c0_i32_173 = arith.constant 0 : i32
      %c0_i32_174 = arith.constant 0 : i32
      %419 = tpu.memref_slice %arg6[%417, %c0_i32_174] : memref<512x128xf32, #tpu.memory_space<any>> -> memref<1x128xf32, #tpu.memory_space<any>>
      %420 = tpu.memref_squeeze %419 : memref<1x128xf32, #tpu.memory_space<any>> -> memref<128xf32, #tpu.memory_space<any>>
      %c0_i32_175 = arith.constant 0 : i32
      %421 = tpu.memref_slice %arg8[%418, %c0_i32_175] : memref<128x128xf32, #tpu.memory_space<vmem>> -> memref<1x128xf32, #tpu.memory_space<vmem>>
      %422 = tpu.memref_squeeze %421 : memref<1x128xf32, #tpu.memory_space<vmem>> -> memref<128xf32, #tpu.memory_space<vmem>>
      %423 = tpu.memref_slice %arg9[%c0_i32_173] : memref<2x!tpu.dma_semaphore, #tpu.memory_space<semaphore_mem>> -> memref<1x!tpu.dma_semaphore, #tpu.memory_space<semaphore_mem>>
      %424 = tpu.memref_squeeze %423 : memref<1x!tpu.dma_semaphore, #tpu.memory_space<semaphore_mem>> -> memref<!tpu.dma_semaphore, #tpu.memory_space<semaphore_mem>>
      tpu.enqueue_dma source(%420 : memref<128xf32, #tpu.memory_space<any>>) target(%422 : memref<128xf32, #tpu.memory_space<vmem>>) target_semaphore(%424 : memref<!tpu.dma_semaphore, #tpu.memory_space<semaphore_mem>>)
      %c37_i32 = arith.constant 37 : i32
      %425 = arith.addi %54, %c37_i32 : i32
      %426 = arith.index_cast %425 : i32 to index
      %427 = memref.load %arg2[%426] : memref<256xi32, #tpu.memory_space<smem>>
      %c0_i32_176 = arith.constant 0 : i32
      %428 = arith.addi %c0_i32_176, %c37_i32 : i32
      %c0_i32_177 = arith.constant 0 : i32
      %c0_i32_178 = arith.constant 0 : i32
      %429 = tpu.memref_slice %arg6[%427, %c0_i32_178] : memref<512x128xf32, #tpu.memory_space<any>> -> memref<1x128xf32, #tpu.memory_space<any>>
      %430 = tpu.memref_squeeze %429 : memref<1x128xf32, #tpu.memory_space<any>> -> memref<128xf32, #tpu.memory_space<any>>
      %c0_i32_179 = arith.constant 0 : i32
      %431 = tpu.memref_slice %arg8[%428, %c0_i32_179] : memref<128x128xf32, #tpu.memory_space<vmem>> -> memref<1x128xf32, #tpu.memory_space<vmem>>
      %432 = tpu.memref_squeeze %431 : memref<1x128xf32, #tpu.memory_space<vmem>> -> memref<128xf32, #tpu.memory_space<vmem>>
      %433 = tpu.memref_slice %arg9[%c0_i32_177] : memref<2x!tpu.dma_semaphore, #tpu.memory_space<semaphore_mem>> -> memref<1x!tpu.dma_semaphore, #tpu.memory_space<semaphore_mem>>
      %434 = tpu.memref_squeeze %433 : memref<1x!tpu.dma_semaphore, #tpu.memory_space<semaphore_mem>> -> memref<!tpu.dma_semaphore, #tpu.memory_space<semaphore_mem>>
      tpu.enqueue_dma source(%430 : memref<128xf32, #tpu.memory_space<any>>) target(%432 : memref<128xf32, #tpu.memory_space<vmem>>) target_semaphore(%434 : memref<!tpu.dma_semaphore, #tpu.memory_space<semaphore_mem>>)
      %c38_i32 = arith.constant 38 : i32
      %435 = arith.addi %54, %c38_i32 : i32
      %436 = arith.index_cast %435 : i32 to index
      %437 = memref.load %arg2[%436] : memref<256xi32, #tpu.memory_space<smem>>
      %c0_i32_180 = arith.constant 0 : i32
      %438 = arith.addi %c0_i32_180, %c38_i32 : i32
      %c0_i32_181 = arith.constant 0 : i32
      %c0_i32_182 = arith.constant 0 : i32
      %439 = tpu.memref_slice %arg6[%437, %c0_i32_182] : memref<512x128xf32, #tpu.memory_space<any>> -> memref<1x128xf32, #tpu.memory_space<any>>
      %440 = tpu.memref_squeeze %439 : memref<1x128xf32, #tpu.memory_space<any>> -> memref<128xf32, #tpu.memory_space<any>>
      %c0_i32_183 = arith.constant 0 : i32
      %441 = tpu.memref_slice %arg8[%438, %c0_i32_183] : memref<128x128xf32, #tpu.memory_space<vmem>> -> memref<1x128xf32, #tpu.memory_space<vmem>>
      %442 = tpu.memref_squeeze %441 : memref<1x128xf32, #tpu.memory_space<vmem>> -> memref<128xf32, #tpu.memory_space<vmem>>
      %443 = tpu.memref_slice %arg9[%c0_i32_181] : memref<2x!tpu.dma_semaphore, #tpu.memory_space<semaphore_mem>> -> memref<1x!tpu.dma_semaphore, #tpu.memory_space<semaphore_mem>>
      %444 = tpu.memref_squeeze %443 : memref<1x!tpu.dma_semaphore, #tpu.memory_space<semaphore_mem>> -> memref<!tpu.dma_semaphore, #tpu.memory_space<semaphore_mem>>
      tpu.enqueue_dma source(%440 : memref<128xf32, #tpu.memory_space<any>>) target(%442 : memref<128xf32, #tpu.memory_space<vmem>>) target_semaphore(%444 : memref<!tpu.dma_semaphore, #tpu.memory_space<semaphore_mem>>)
      %c39_i32 = arith.constant 39 : i32
      %445 = arith.addi %54, %c39_i32 : i32
      %446 = arith.index_cast %445 : i32 to index
      %447 = memref.load %arg2[%446] : memref<256xi32, #tpu.memory_space<smem>>
      %c0_i32_184 = arith.constant 0 : i32
      %448 = arith.addi %c0_i32_184, %c39_i32 : i32
      %c0_i32_185 = arith.constant 0 : i32
      %c0_i32_186 = arith.constant 0 : i32
      %449 = tpu.memref_slice %arg6[%447, %c0_i32_186] : memref<512x128xf32, #tpu.memory_space<any>> -> memref<1x128xf32, #tpu.memory_space<any>>
      %450 = tpu.memref_squeeze %449 : memref<1x128xf32, #tpu.memory_space<any>> -> memref<128xf32, #tpu.memory_space<any>>
      %c0_i32_187 = arith.constant 0 : i32
      %451 = tpu.memref_slice %arg8[%448, %c0_i32_187] : memref<128x128xf32, #tpu.memory_space<vmem>> -> memref<1x128xf32, #tpu.memory_space<vmem>>
      %452 = tpu.memref_squeeze %451 : memref<1x128xf32, #tpu.memory_space<vmem>> -> memref<128xf32, #tpu.memory_space<vmem>>
      %453 = tpu.memref_slice %arg9[%c0_i32_185] : memref<2x!tpu.dma_semaphore, #tpu.memory_space<semaphore_mem>> -> memref<1x!tpu.dma_semaphore, #tpu.memory_space<semaphore_mem>>
      %454 = tpu.memref_squeeze %453 : memref<1x!tpu.dma_semaphore, #tpu.memory_space<semaphore_mem>> -> memref<!tpu.dma_semaphore, #tpu.memory_space<semaphore_mem>>
      tpu.enqueue_dma source(%450 : memref<128xf32, #tpu.memory_space<any>>) target(%452 : memref<128xf32, #tpu.memory_space<vmem>>) target_semaphore(%454 : memref<!tpu.dma_semaphore, #tpu.memory_space<semaphore_mem>>)
      %c40_i32 = arith.constant 40 : i32
      %455 = arith.addi %54, %c40_i32 : i32
      %456 = arith.index_cast %455 : i32 to index
      %457 = memref.load %arg2[%456] : memref<256xi32, #tpu.memory_space<smem>>
      %c0_i32_188 = arith.constant 0 : i32
      %458 = arith.addi %c0_i32_188, %c40_i32 : i32
      %c0_i32_189 = arith.constant 0 : i32
      %c0_i32_190 = arith.constant 0 : i32
      %459 = tpu.memref_slice %arg6[%457, %c0_i32_190] : memref<512x128xf32, #tpu.memory_space<any>> -> memref<1x128xf32, #tpu.memory_space<any>>
      %460 = tpu.memref_squeeze %459 : memref<1x128xf32, #tpu.memory_space<any>> -> memref<128xf32, #tpu.memory_space<any>>
      %c0_i32_191 = arith.constant 0 : i32
      %461 = tpu.memref_slice %arg8[%458, %c0_i32_191] : memref<128x128xf32, #tpu.memory_space<vmem>> -> memref<1x128xf32, #tpu.memory_space<vmem>>
      %462 = tpu.memref_squeeze %461 : memref<1x128xf32, #tpu.memory_space<vmem>> -> memref<128xf32, #tpu.memory_space<vmem>>
      %463 = tpu.memref_slice %arg9[%c0_i32_189] : memref<2x!tpu.dma_semaphore, #tpu.memory_space<semaphore_mem>> -> memref<1x!tpu.dma_semaphore, #tpu.memory_space<semaphore_mem>>
      %464 = tpu.memref_squeeze %463 : memref<1x!tpu.dma_semaphore, #tpu.memory_space<semaphore_mem>> -> memref<!tpu.dma_semaphore, #tpu.memory_space<semaphore_mem>>
      tpu.enqueue_dma source(%460 : memref<128xf32, #tpu.memory_space<any>>) target(%462 : memref<128xf32, #tpu.memory_space<vmem>>) target_semaphore(%464 : memref<!tpu.dma_semaphore, #tpu.memory_space<semaphore_mem>>)
      %c41_i32 = arith.constant 41 : i32
      %465 = arith.addi %54, %c41_i32 : i32
      %466 = arith.index_cast %465 : i32 to index
      %467 = memref.load %arg2[%466] : memref<256xi32, #tpu.memory_space<smem>>
      %c0_i32_192 = arith.constant 0 : i32
      %468 = arith.addi %c0_i32_192, %c41_i32 : i32
      %c0_i32_193 = arith.constant 0 : i32
      %c0_i32_194 = arith.constant 0 : i32
      %469 = tpu.memref_slice %arg6[%467, %c0_i32_194] : memref<512x128xf32, #tpu.memory_space<any>> -> memref<1x128xf32, #tpu.memory_space<any>>
      %470 = tpu.memref_squeeze %469 : memref<1x128xf32, #tpu.memory_space<any>> -> memref<128xf32, #tpu.memory_space<any>>
      %c0_i32_195 = arith.constant 0 : i32
      %471 = tpu.memref_slice %arg8[%468, %c0_i32_195] : memref<128x128xf32, #tpu.memory_space<vmem>> -> memref<1x128xf32, #tpu.memory_space<vmem>>
      %472 = tpu.memref_squeeze %471 : memref<1x128xf32, #tpu.memory_space<vmem>> -> memref<128xf32, #tpu.memory_space<vmem>>
      %473 = tpu.memref_slice %arg9[%c0_i32_193] : memref<2x!tpu.dma_semaphore, #tpu.memory_space<semaphore_mem>> -> memref<1x!tpu.dma_semaphore, #tpu.memory_space<semaphore_mem>>
      %474 = tpu.memref_squeeze %473 : memref<1x!tpu.dma_semaphore, #tpu.memory_space<semaphore_mem>> -> memref<!tpu.dma_semaphore, #tpu.memory_space<semaphore_mem>>
      tpu.enqueue_dma source(%470 : memref<128xf32, #tpu.memory_space<any>>) target(%472 : memref<128xf32, #tpu.memory_space<vmem>>) target_semaphore(%474 : memref<!tpu.dma_semaphore, #tpu.memory_space<semaphore_mem>>)
      %c42_i32 = arith.constant 42 : i32
      %475 = arith.addi %54, %c42_i32 : i32
      %476 = arith.index_cast %475 : i32 to index
      %477 = memref.load %arg2[%476] : memref<256xi32, #tpu.memory_space<smem>>
      %c0_i32_196 = arith.constant 0 : i32
      %478 = arith.addi %c0_i32_196, %c42_i32 : i32
      %c0_i32_197 = arith.constant 0 : i32
      %c0_i32_198 = arith.constant 0 : i32
      %479 = tpu.memref_slice %arg6[%477, %c0_i32_198] : memref<512x128xf32, #tpu.memory_space<any>> -> memref<1x128xf32, #tpu.memory_space<any>>
      %480 = tpu.memref_squeeze %479 : memref<1x128xf32, #tpu.memory_space<any>> -> memref<128xf32, #tpu.memory_space<any>>
      %c0_i32_199 = arith.constant 0 : i32
      %481 = tpu.memref_slice %arg8[%478, %c0_i32_199] : memref<128x128xf32, #tpu.memory_space<vmem>> -> memref<1x128xf32, #tpu.memory_space<vmem>>
      %482 = tpu.memref_squeeze %481 : memref<1x128xf32, #tpu.memory_space<vmem>> -> memref<128xf32, #tpu.memory_space<vmem>>
      %483 = tpu.memref_slice %arg9[%c0_i32_197] : memref<2x!tpu.dma_semaphore, #tpu.memory_space<semaphore_mem>> -> memref<1x!tpu.dma_semaphore, #tpu.memory_space<semaphore_mem>>
      %484 = tpu.memref_squeeze %483 : memref<1x!tpu.dma_semaphore, #tpu.memory_space<semaphore_mem>> -> memref<!tpu.dma_semaphore, #tpu.memory_space<semaphore_mem>>
      tpu.enqueue_dma source(%480 : memref<128xf32, #tpu.memory_space<any>>) target(%482 : memref<128xf32, #tpu.memory_space<vmem>>) target_semaphore(%484 : memref<!tpu.dma_semaphore, #tpu.memory_space<semaphore_mem>>)
      %c43_i32 = arith.constant 43 : i32
      %485 = arith.addi %54, %c43_i32 : i32
      %486 = arith.index_cast %485 : i32 to index
      %487 = memref.load %arg2[%486] : memref<256xi32, #tpu.memory_space<smem>>
      %c0_i32_200 = arith.constant 0 : i32
      %488 = arith.addi %c0_i32_200, %c43_i32 : i32
      %c0_i32_201 = arith.constant 0 : i32
      %c0_i32_202 = arith.constant 0 : i32
      %489 = tpu.memref_slice %arg6[%487, %c0_i32_202] : memref<512x128xf32, #tpu.memory_space<any>> -> memref<1x128xf32, #tpu.memory_space<any>>
      %490 = tpu.memref_squeeze %489 : memref<1x128xf32, #tpu.memory_space<any>> -> memref<128xf32, #tpu.memory_space<any>>
      %c0_i32_203 = arith.constant 0 : i32
      %491 = tpu.memref_slice %arg8[%488, %c0_i32_203] : memref<128x128xf32, #tpu.memory_space<vmem>> -> memref<1x128xf32, #tpu.memory_space<vmem>>
      %492 = tpu.memref_squeeze %491 : memref<1x128xf32, #tpu.memory_space<vmem>> -> memref<128xf32, #tpu.memory_space<vmem>>
      %493 = tpu.memref_slice %arg9[%c0_i32_201] : memref<2x!tpu.dma_semaphore, #tpu.memory_space<semaphore_mem>> -> memref<1x!tpu.dma_semaphore, #tpu.memory_space<semaphore_mem>>
      %494 = tpu.memref_squeeze %493 : memref<1x!tpu.dma_semaphore, #tpu.memory_space<semaphore_mem>> -> memref<!tpu.dma_semaphore, #tpu.memory_space<semaphore_mem>>
      tpu.enqueue_dma source(%490 : memref<128xf32, #tpu.memory_space<any>>) target(%492 : memref<128xf32, #tpu.memory_space<vmem>>) target_semaphore(%494 : memref<!tpu.dma_semaphore, #tpu.memory_space<semaphore_mem>>)
      %c44_i32 = arith.constant 44 : i32
      %495 = arith.addi %54, %c44_i32 : i32
      %496 = arith.index_cast %495 : i32 to index
      %497 = memref.load %arg2[%496] : memref<256xi32, #tpu.memory_space<smem>>
      %c0_i32_204 = arith.constant 0 : i32
      %498 = arith.addi %c0_i32_204, %c44_i32 : i32
      %c0_i32_205 = arith.constant 0 : i32
      %c0_i32_206 = arith.constant 0 : i32
      %499 = tpu.memref_slice %arg6[%497, %c0_i32_206] : memref<512x128xf32, #tpu.memory_space<any>> -> memref<1x128xf32, #tpu.memory_space<any>>
      %500 = tpu.memref_squeeze %499 : memref<1x128xf32, #tpu.memory_space<any>> -> memref<128xf32, #tpu.memory_space<any>>
      %c0_i32_207 = arith.constant 0 : i32
      %501 = tpu.memref_slice %arg8[%498, %c0_i32_207] : memref<128x128xf32, #tpu.memory_space<vmem>> -> memref<1x128xf32, #tpu.memory_space<vmem>>
      %502 = tpu.memref_squeeze %501 : memref<1x128xf32, #tpu.memory_space<vmem>> -> memref<128xf32, #tpu.memory_space<vmem>>
      %503 = tpu.memref_slice %arg9[%c0_i32_205] : memref<2x!tpu.dma_semaphore, #tpu.memory_space<semaphore_mem>> -> memref<1x!tpu.dma_semaphore, #tpu.memory_space<semaphore_mem>>
      %504 = tpu.memref_squeeze %503 : memref<1x!tpu.dma_semaphore, #tpu.memory_space<semaphore_mem>> -> memref<!tpu.dma_semaphore, #tpu.memory_space<semaphore_mem>>
      tpu.enqueue_dma source(%500 : memref<128xf32, #tpu.memory_space<any>>) target(%502 : memref<128xf32, #tpu.memory_space<vmem>>) target_semaphore(%504 : memref<!tpu.dma_semaphore, #tpu.memory_space<semaphore_mem>>)
      %c45_i32 = arith.constant 45 : i32
      %505 = arith.addi %54, %c45_i32 : i32
      %506 = arith.index_cast %505 : i32 to index
      %507 = memref.load %arg2[%506] : memref<256xi32, #tpu.memory_space<smem>>
      %c0_i32_208 = arith.constant 0 : i32
      %508 = arith.addi %c0_i32_208, %c45_i32 : i32
      %c0_i32_209 = arith.constant 0 : i32
      %c0_i32_210 = arith.constant 0 : i32
      %509 = tpu.memref_slice %arg6[%507, %c0_i32_210] : memref<512x128xf32, #tpu.memory_space<any>> -> memref<1x128xf32, #tpu.memory_space<any>>
      %510 = tpu.memref_squeeze %509 : memref<1x128xf32, #tpu.memory_space<any>> -> memref<128xf32, #tpu.memory_space<any>>
      %c0_i32_211 = arith.constant 0 : i32
      %511 = tpu.memref_slice %arg8[%508, %c0_i32_211] : memref<128x128xf32, #tpu.memory_space<vmem>> -> memref<1x128xf32, #tpu.memory_space<vmem>>
      %512 = tpu.memref_squeeze %511 : memref<1x128xf32, #tpu.memory_space<vmem>> -> memref<128xf32, #tpu.memory_space<vmem>>
      %513 = tpu.memref_slice %arg9[%c0_i32_209] : memref<2x!tpu.dma_semaphore, #tpu.memory_space<semaphore_mem>> -> memref<1x!tpu.dma_semaphore, #tpu.memory_space<semaphore_mem>>
      %514 = tpu.memref_squeeze %513 : memref<1x!tpu.dma_semaphore, #tpu.memory_space<semaphore_mem>> -> memref<!tpu.dma_semaphore, #tpu.memory_space<semaphore_mem>>
      tpu.enqueue_dma source(%510 : memref<128xf32, #tpu.memory_space<any>>) target(%512 : memref<128xf32, #tpu.memory_space<vmem>>) target_semaphore(%514 : memref<!tpu.dma_semaphore, #tpu.memory_space<semaphore_mem>>)
      %c46_i32 = arith.constant 46 : i32
      %515 = arith.addi %54, %c46_i32 : i32
      %516 = arith.index_cast %515 : i32 to index
      %517 = memref.load %arg2[%516] : memref<256xi32, #tpu.memory_space<smem>>
      %c0_i32_212 = arith.constant 0 : i32
      %518 = arith.addi %c0_i32_212, %c46_i32 : i32
      %c0_i32_213 = arith.constant 0 : i32
      %c0_i32_214 = arith.constant 0 : i32
      %519 = tpu.memref_slice %arg6[%517, %c0_i32_214] : memref<512x128xf32, #tpu.memory_space<any>> -> memref<1x128xf32, #tpu.memory_space<any>>
      %520 = tpu.memref_squeeze %519 : memref<1x128xf32, #tpu.memory_space<any>> -> memref<128xf32, #tpu.memory_space<any>>
      %c0_i32_215 = arith.constant 0 : i32
      %521 = tpu.memref_slice %arg8[%518, %c0_i32_215] : memref<128x128xf32, #tpu.memory_space<vmem>> -> memref<1x128xf32, #tpu.memory_space<vmem>>
      %522 = tpu.memref_squeeze %521 : memref<1x128xf32, #tpu.memory_space<vmem>> -> memref<128xf32, #tpu.memory_space<vmem>>
      %523 = tpu.memref_slice %arg9[%c0_i32_213] : memref<2x!tpu.dma_semaphore, #tpu.memory_space<semaphore_mem>> -> memref<1x!tpu.dma_semaphore, #tpu.memory_space<semaphore_mem>>
      %524 = tpu.memref_squeeze %523 : memref<1x!tpu.dma_semaphore, #tpu.memory_space<semaphore_mem>> -> memref<!tpu.dma_semaphore, #tpu.memory_space<semaphore_mem>>
      tpu.enqueue_dma source(%520 : memref<128xf32, #tpu.memory_space<any>>) target(%522 : memref<128xf32, #tpu.memory_space<vmem>>) target_semaphore(%524 : memref<!tpu.dma_semaphore, #tpu.memory_space<semaphore_mem>>)
      %c47_i32 = arith.constant 47 : i32
      %525 = arith.addi %54, %c47_i32 : i32
      %526 = arith.index_cast %525 : i32 to index
      %527 = memref.load %arg2[%526] : memref<256xi32, #tpu.memory_space<smem>>
      %c0_i32_216 = arith.constant 0 : i32
      %528 = arith.addi %c0_i32_216, %c47_i32 : i32
      %c0_i32_217 = arith.constant 0 : i32
      %c0_i32_218 = arith.constant 0 : i32
      %529 = tpu.memref_slice %arg6[%527, %c0_i32_218] : memref<512x128xf32, #tpu.memory_space<any>> -> memref<1x128xf32, #tpu.memory_space<any>>
      %530 = tpu.memref_squeeze %529 : memref<1x128xf32, #tpu.memory_space<any>> -> memref<128xf32, #tpu.memory_space<any>>
      %c0_i32_219 = arith.constant 0 : i32
      %531 = tpu.memref_slice %arg8[%528, %c0_i32_219] : memref<128x128xf32, #tpu.memory_space<vmem>> -> memref<1x128xf32, #tpu.memory_space<vmem>>
      %532 = tpu.memref_squeeze %531 : memref<1x128xf32, #tpu.memory_space<vmem>> -> memref<128xf32, #tpu.memory_space<vmem>>
      %533 = tpu.memref_slice %arg9[%c0_i32_217] : memref<2x!tpu.dma_semaphore, #tpu.memory_space<semaphore_mem>> -> memref<1x!tpu.dma_semaphore, #tpu.memory_space<semaphore_mem>>
      %534 = tpu.memref_squeeze %533 : memref<1x!tpu.dma_semaphore, #tpu.memory_space<semaphore_mem>> -> memref<!tpu.dma_semaphore, #tpu.memory_space<semaphore_mem>>
      tpu.enqueue_dma source(%530 : memref<128xf32, #tpu.memory_space<any>>) target(%532 : memref<128xf32, #tpu.memory_space<vmem>>) target_semaphore(%534 : memref<!tpu.dma_semaphore, #tpu.memory_space<semaphore_mem>>)
      %c48_i32 = arith.constant 48 : i32
      %535 = arith.addi %54, %c48_i32 : i32
      %536 = arith.index_cast %535 : i32 to index
      %537 = memref.load %arg2[%536] : memref<256xi32, #tpu.memory_space<smem>>
      %c0_i32_220 = arith.constant 0 : i32
      %538 = arith.addi %c0_i32_220, %c48_i32 : i32
      %c0_i32_221 = arith.constant 0 : i32
      %c0_i32_222 = arith.constant 0 : i32
      %539 = tpu.memref_slice %arg6[%537, %c0_i32_222] : memref<512x128xf32, #tpu.memory_space<any>> -> memref<1x128xf32, #tpu.memory_space<any>>
      %540 = tpu.memref_squeeze %539 : memref<1x128xf32, #tpu.memory_space<any>> -> memref<128xf32, #tpu.memory_space<any>>
      %c0_i32_223 = arith.constant 0 : i32
      %541 = tpu.memref_slice %arg8[%538, %c0_i32_223] : memref<128x128xf32, #tpu.memory_space<vmem>> -> memref<1x128xf32, #tpu.memory_space<vmem>>
      %542 = tpu.memref_squeeze %541 : memref<1x128xf32, #tpu.memory_space<vmem>> -> memref<128xf32, #tpu.memory_space<vmem>>
      %543 = tpu.memref_slice %arg9[%c0_i32_221] : memref<2x!tpu.dma_semaphore, #tpu.memory_space<semaphore_mem>> -> memref<1x!tpu.dma_semaphore, #tpu.memory_space<semaphore_mem>>
      %544 = tpu.memref_squeeze %543 : memref<1x!tpu.dma_semaphore, #tpu.memory_space<semaphore_mem>> -> memref<!tpu.dma_semaphore, #tpu.memory_space<semaphore_mem>>
      tpu.enqueue_dma source(%540 : memref<128xf32, #tpu.memory_space<any>>) target(%542 : memref<128xf32, #tpu.memory_space<vmem>>) target_semaphore(%544 : memref<!tpu.dma_semaphore, #tpu.memory_space<semaphore_mem>>)
      %c49_i32 = arith.constant 49 : i32
      %545 = arith.addi %54, %c49_i32 : i32
      %546 = arith.index_cast %545 : i32 to index
      %547 = memref.load %arg2[%546] : memref<256xi32, #tpu.memory_space<smem>>
      %c0_i32_224 = arith.constant 0 : i32
      %548 = arith.addi %c0_i32_224, %c49_i32 : i32
      %c0_i32_225 = arith.constant 0 : i32
      %c0_i32_226 = arith.constant 0 : i32
      %549 = tpu.memref_slice %arg6[%547, %c0_i32_226] : memref<512x128xf32, #tpu.memory_space<any>> -> memref<1x128xf32, #tpu.memory_space<any>>
      %550 = tpu.memref_squeeze %549 : memref<1x128xf32, #tpu.memory_space<any>> -> memref<128xf32, #tpu.memory_space<any>>
      %c0_i32_227 = arith.constant 0 : i32
      %551 = tpu.memref_slice %arg8[%548, %c0_i32_227] : memref<128x128xf32, #tpu.memory_space<vmem>> -> memref<1x128xf32, #tpu.memory_space<vmem>>
      %552 = tpu.memref_squeeze %551 : memref<1x128xf32, #tpu.memory_space<vmem>> -> memref<128xf32, #tpu.memory_space<vmem>>
      %553 = tpu.memref_slice %arg9[%c0_i32_225] : memref<2x!tpu.dma_semaphore, #tpu.memory_space<semaphore_mem>> -> memref<1x!tpu.dma_semaphore, #tpu.memory_space<semaphore_mem>>
      %554 = tpu.memref_squeeze %553 : memref<1x!tpu.dma_semaphore, #tpu.memory_space<semaphore_mem>> -> memref<!tpu.dma_semaphore, #tpu.memory_space<semaphore_mem>>
      tpu.enqueue_dma source(%550 : memref<128xf32, #tpu.memory_space<any>>) target(%552 : memref<128xf32, #tpu.memory_space<vmem>>) target_semaphore(%554 : memref<!tpu.dma_semaphore, #tpu.memory_space<semaphore_mem>>)
      %c50_i32 = arith.constant 50 : i32
      %555 = arith.addi %54, %c50_i32 : i32
      %556 = arith.index_cast %555 : i32 to index
      %557 = memref.load %arg2[%556] : memref<256xi32, #tpu.memory_space<smem>>
      %c0_i32_228 = arith.constant 0 : i32
      %558 = arith.addi %c0_i32_228, %c50_i32 : i32
      %c0_i32_229 = arith.constant 0 : i32
      %c0_i32_230 = arith.constant 0 : i32
      %559 = tpu.memref_slice %arg6[%557, %c0_i32_230] : memref<512x128xf32, #tpu.memory_space<any>> -> memref<1x128xf32, #tpu.memory_space<any>>
      %560 = tpu.memref_squeeze %559 : memref<1x128xf32, #tpu.memory_space<any>> -> memref<128xf32, #tpu.memory_space<any>>
      %c0_i32_231 = arith.constant 0 : i32
      %561 = tpu.memref_slice %arg8[%558, %c0_i32_231] : memref<128x128xf32, #tpu.memory_space<vmem>> -> memref<1x128xf32, #tpu.memory_space<vmem>>
      %562 = tpu.memref_squeeze %561 : memref<1x128xf32, #tpu.memory_space<vmem>> -> memref<128xf32, #tpu.memory_space<vmem>>
      %563 = tpu.memref_slice %arg9[%c0_i32_229] : memref<2x!tpu.dma_semaphore, #tpu.memory_space<semaphore_mem>> -> memref<1x!tpu.dma_semaphore, #tpu.memory_space<semaphore_mem>>
      %564 = tpu.memref_squeeze %563 : memref<1x!tpu.dma_semaphore, #tpu.memory_space<semaphore_mem>> -> memref<!tpu.dma_semaphore, #tpu.memory_space<semaphore_mem>>
      tpu.enqueue_dma source(%560 : memref<128xf32, #tpu.memory_space<any>>) target(%562 : memref<128xf32, #tpu.memory_space<vmem>>) target_semaphore(%564 : memref<!tpu.dma_semaphore, #tpu.memory_space<semaphore_mem>>)
      %c51_i32 = arith.constant 51 : i32
      %565 = arith.addi %54, %c51_i32 : i32
      %566 = arith.index_cast %565 : i32 to index
      %567 = memref.load %arg2[%566] : memref<256xi32, #tpu.memory_space<smem>>
      %c0_i32_232 = arith.constant 0 : i32
      %568 = arith.addi %c0_i32_232, %c51_i32 : i32
      %c0_i32_233 = arith.constant 0 : i32
      %c0_i32_234 = arith.constant 0 : i32
      %569 = tpu.memref_slice %arg6[%567, %c0_i32_234] : memref<512x128xf32, #tpu.memory_space<any>> -> memref<1x128xf32, #tpu.memory_space<any>>
      %570 = tpu.memref_squeeze %569 : memref<1x128xf32, #tpu.memory_space<any>> -> memref<128xf32, #tpu.memory_space<any>>
      %c0_i32_235 = arith.constant 0 : i32
      %571 = tpu.memref_slice %arg8[%568, %c0_i32_235] : memref<128x128xf32, #tpu.memory_space<vmem>> -> memref<1x128xf32, #tpu.memory_space<vmem>>
      %572 = tpu.memref_squeeze %571 : memref<1x128xf32, #tpu.memory_space<vmem>> -> memref<128xf32, #tpu.memory_space<vmem>>
      %573 = tpu.memref_slice %arg9[%c0_i32_233] : memref<2x!tpu.dma_semaphore, #tpu.memory_space<semaphore_mem>> -> memref<1x!tpu.dma_semaphore, #tpu.memory_space<semaphore_mem>>
      %574 = tpu.memref_squeeze %573 : memref<1x!tpu.dma_semaphore, #tpu.memory_space<semaphore_mem>> -> memref<!tpu.dma_semaphore, #tpu.memory_space<semaphore_mem>>
      tpu.enqueue_dma source(%570 : memref<128xf32, #tpu.memory_space<any>>) target(%572 : memref<128xf32, #tpu.memory_space<vmem>>) target_semaphore(%574 : memref<!tpu.dma_semaphore, #tpu.memory_space<semaphore_mem>>)
      %c52_i32 = arith.constant 52 : i32
      %575 = arith.addi %54, %c52_i32 : i32
      %576 = arith.index_cast %575 : i32 to index
      %577 = memref.load %arg2[%576] : memref<256xi32, #tpu.memory_space<smem>>
      %c0_i32_236 = arith.constant 0 : i32
      %578 = arith.addi %c0_i32_236, %c52_i32 : i32
      %c0_i32_237 = arith.constant 0 : i32
      %c0_i32_238 = arith.constant 0 : i32
      %579 = tpu.memref_slice %arg6[%577, %c0_i32_238] : memref<512x128xf32, #tpu.memory_space<any>> -> memref<1x128xf32, #tpu.memory_space<any>>
      %580 = tpu.memref_squeeze %579 : memref<1x128xf32, #tpu.memory_space<any>> -> memref<128xf32, #tpu.memory_space<any>>
      %c0_i32_239 = arith.constant 0 : i32
      %581 = tpu.memref_slice %arg8[%578, %c0_i32_239] : memref<128x128xf32, #tpu.memory_space<vmem>> -> memref<1x128xf32, #tpu.memory_space<vmem>>
      %582 = tpu.memref_squeeze %581 : memref<1x128xf32, #tpu.memory_space<vmem>> -> memref<128xf32, #tpu.memory_space<vmem>>
      %583 = tpu.memref_slice %arg9[%c0_i32_237] : memref<2x!tpu.dma_semaphore, #tpu.memory_space<semaphore_mem>> -> memref<1x!tpu.dma_semaphore, #tpu.memory_space<semaphore_mem>>
      %584 = tpu.memref_squeeze %583 : memref<1x!tpu.dma_semaphore, #tpu.memory_space<semaphore_mem>> -> memref<!tpu.dma_semaphore, #tpu.memory_space<semaphore_mem>>
      tpu.enqueue_dma source(%580 : memref<128xf32, #tpu.memory_space<any>>) target(%582 : memref<128xf32, #tpu.memory_space<vmem>>) target_semaphore(%584 : memref<!tpu.dma_semaphore, #tpu.memory_space<semaphore_mem>>)
      %c53_i32 = arith.constant 53 : i32
      %585 = arith.addi %54, %c53_i32 : i32
      %586 = arith.index_cast %585 : i32 to index
      %587 = memref.load %arg2[%586] : memref<256xi32, #tpu.memory_space<smem>>
      %c0_i32_240 = arith.constant 0 : i32
      %588 = arith.addi %c0_i32_240, %c53_i32 : i32
      %c0_i32_241 = arith.constant 0 : i32
      %c0_i32_242 = arith.constant 0 : i32
      %589 = tpu.memref_slice %arg6[%587, %c0_i32_242] : memref<512x128xf32, #tpu.memory_space<any>> -> memref<1x128xf32, #tpu.memory_space<any>>
      %590 = tpu.memref_squeeze %589 : memref<1x128xf32, #tpu.memory_space<any>> -> memref<128xf32, #tpu.memory_space<any>>
      %c0_i32_243 = arith.constant 0 : i32
      %591 = tpu.memref_slice %arg8[%588, %c0_i32_243] : memref<128x128xf32, #tpu.memory_space<vmem>> -> memref<1x128xf32, #tpu.memory_space<vmem>>
      %592 = tpu.memref_squeeze %591 : memref<1x128xf32, #tpu.memory_space<vmem>> -> memref<128xf32, #tpu.memory_space<vmem>>
      %593 = tpu.memref_slice %arg9[%c0_i32_241] : memref<2x!tpu.dma_semaphore, #tpu.memory_space<semaphore_mem>> -> memref<1x!tpu.dma_semaphore, #tpu.memory_space<semaphore_mem>>
      %594 = tpu.memref_squeeze %593 : memref<1x!tpu.dma_semaphore, #tpu.memory_space<semaphore_mem>> -> memref<!tpu.dma_semaphore, #tpu.memory_space<semaphore_mem>>
      tpu.enqueue_dma source(%590 : memref<128xf32, #tpu.memory_space<any>>) target(%592 : memref<128xf32, #tpu.memory_space<vmem>>) target_semaphore(%594 : memref<!tpu.dma_semaphore, #tpu.memory_space<semaphore_mem>>)
      %c54_i32 = arith.constant 54 : i32
      %595 = arith.addi %54, %c54_i32 : i32
      %596 = arith.index_cast %595 : i32 to index
      %597 = memref.load %arg2[%596] : memref<256xi32, #tpu.memory_space<smem>>
      %c0_i32_244 = arith.constant 0 : i32
      %598 = arith.addi %c0_i32_244, %c54_i32 : i32
      %c0_i32_245 = arith.constant 0 : i32
      %c0_i32_246 = arith.constant 0 : i32
      %599 = tpu.memref_slice %arg6[%597, %c0_i32_246] : memref<512x128xf32, #tpu.memory_space<any>> -> memref<1x128xf32, #tpu.memory_space<any>>
      %600 = tpu.memref_squeeze %599 : memref<1x128xf32, #tpu.memory_space<any>> -> memref<128xf32, #tpu.memory_space<any>>
      %c0_i32_247 = arith.constant 0 : i32
      %601 = tpu.memref_slice %arg8[%598, %c0_i32_247] : memref<128x128xf32, #tpu.memory_space<vmem>> -> memref<1x128xf32, #tpu.memory_space<vmem>>
      %602 = tpu.memref_squeeze %601 : memref<1x128xf32, #tpu.memory_space<vmem>> -> memref<128xf32, #tpu.memory_space<vmem>>
      %603 = tpu.memref_slice %arg9[%c0_i32_245] : memref<2x!tpu.dma_semaphore, #tpu.memory_space<semaphore_mem>> -> memref<1x!tpu.dma_semaphore, #tpu.memory_space<semaphore_mem>>
      %604 = tpu.memref_squeeze %603 : memref<1x!tpu.dma_semaphore, #tpu.memory_space<semaphore_mem>> -> memref<!tpu.dma_semaphore, #tpu.memory_space<semaphore_mem>>
      tpu.enqueue_dma source(%600 : memref<128xf32, #tpu.memory_space<any>>) target(%602 : memref<128xf32, #tpu.memory_space<vmem>>) target_semaphore(%604 : memref<!tpu.dma_semaphore, #tpu.memory_space<semaphore_mem>>)
      %c55_i32 = arith.constant 55 : i32
      %605 = arith.addi %54, %c55_i32 : i32
      %606 = arith.index_cast %605 : i32 to index
      %607 = memref.load %arg2[%606] : memref<256xi32, #tpu.memory_space<smem>>
      %c0_i32_248 = arith.constant 0 : i32
      %608 = arith.addi %c0_i32_248, %c55_i32 : i32
      %c0_i32_249 = arith.constant 0 : i32
      %c0_i32_250 = arith.constant 0 : i32
      %609 = tpu.memref_slice %arg6[%607, %c0_i32_250] : memref<512x128xf32, #tpu.memory_space<any>> -> memref<1x128xf32, #tpu.memory_space<any>>
      %610 = tpu.memref_squeeze %609 : memref<1x128xf32, #tpu.memory_space<any>> -> memref<128xf32, #tpu.memory_space<any>>
      %c0_i32_251 = arith.constant 0 : i32
      %611 = tpu.memref_slice %arg8[%608, %c0_i32_251] : memref<128x128xf32, #tpu.memory_space<vmem>> -> memref<1x128xf32, #tpu.memory_space<vmem>>
      %612 = tpu.memref_squeeze %611 : memref<1x128xf32, #tpu.memory_space<vmem>> -> memref<128xf32, #tpu.memory_space<vmem>>
      %613 = tpu.memref_slice %arg9[%c0_i32_249] : memref<2x!tpu.dma_semaphore, #tpu.memory_space<semaphore_mem>> -> memref<1x!tpu.dma_semaphore, #tpu.memory_space<semaphore_mem>>
      %614 = tpu.memref_squeeze %613 : memref<1x!tpu.dma_semaphore, #tpu.memory_space<semaphore_mem>> -> memref<!tpu.dma_semaphore, #tpu.memory_space<semaphore_mem>>
      tpu.enqueue_dma source(%610 : memref<128xf32, #tpu.memory_space<any>>) target(%612 : memref<128xf32, #tpu.memory_space<vmem>>) target_semaphore(%614 : memref<!tpu.dma_semaphore, #tpu.memory_space<semaphore_mem>>)
      %c56_i32 = arith.constant 56 : i32
      %615 = arith.addi %54, %c56_i32 : i32
      %616 = arith.index_cast %615 : i32 to index
      %617 = memref.load %arg2[%616] : memref<256xi32, #tpu.memory_space<smem>>
      %c0_i32_252 = arith.constant 0 : i32
      %618 = arith.addi %c0_i32_252, %c56_i32 : i32
      %c0_i32_253 = arith.constant 0 : i32
      %c0_i32_254 = arith.constant 0 : i32
      %619 = tpu.memref_slice %arg6[%617, %c0_i32_254] : memref<512x128xf32, #tpu.memory_space<any>> -> memref<1x128xf32, #tpu.memory_space<any>>
      %620 = tpu.memref_squeeze %619 : memref<1x128xf32, #tpu.memory_space<any>> -> memref<128xf32, #tpu.memory_space<any>>
      %c0_i32_255 = arith.constant 0 : i32
      %621 = tpu.memref_slice %arg8[%618, %c0_i32_255] : memref<128x128xf32, #tpu.memory_space<vmem>> -> memref<1x128xf32, #tpu.memory_space<vmem>>
      %622 = tpu.memref_squeeze %621 : memref<1x128xf32, #tpu.memory_space<vmem>> -> memref<128xf32, #tpu.memory_space<vmem>>
      %623 = tpu.memref_slice %arg9[%c0_i32_253] : memref<2x!tpu.dma_semaphore, #tpu.memory_space<semaphore_mem>> -> memref<1x!tpu.dma_semaphore, #tpu.memory_space<semaphore_mem>>
      %624 = tpu.memref_squeeze %623 : memref<1x!tpu.dma_semaphore, #tpu.memory_space<semaphore_mem>> -> memref<!tpu.dma_semaphore, #tpu.memory_space<semaphore_mem>>
      tpu.enqueue_dma source(%620 : memref<128xf32, #tpu.memory_space<any>>) target(%622 : memref<128xf32, #tpu.memory_space<vmem>>) target_semaphore(%624 : memref<!tpu.dma_semaphore, #tpu.memory_space<semaphore_mem>>)
      %c57_i32 = arith.constant 57 : i32
      %625 = arith.addi %54, %c57_i32 : i32
      %626 = arith.index_cast %625 : i32 to index
      %627 = memref.load %arg2[%626] : memref<256xi32, #tpu.memory_space<smem>>
      %c0_i32_256 = arith.constant 0 : i32
      %628 = arith.addi %c0_i32_256, %c57_i32 : i32
      %c0_i32_257 = arith.constant 0 : i32
      %c0_i32_258 = arith.constant 0 : i32
      %629 = tpu.memref_slice %arg6[%627, %c0_i32_258] : memref<512x128xf32, #tpu.memory_space<any>> -> memref<1x128xf32, #tpu.memory_space<any>>
      %630 = tpu.memref_squeeze %629 : memref<1x128xf32, #tpu.memory_space<any>> -> memref<128xf32, #tpu.memory_space<any>>
      %c0_i32_259 = arith.constant 0 : i32
      %631 = tpu.memref_slice %arg8[%628, %c0_i32_259] : memref<128x128xf32, #tpu.memory_space<vmem>> -> memref<1x128xf32, #tpu.memory_space<vmem>>
      %632 = tpu.memref_squeeze %631 : memref<1x128xf32, #tpu.memory_space<vmem>> -> memref<128xf32, #tpu.memory_space<vmem>>
      %633 = tpu.memref_slice %arg9[%c0_i32_257] : memref<2x!tpu.dma_semaphore, #tpu.memory_space<semaphore_mem>> -> memref<1x!tpu.dma_semaphore, #tpu.memory_space<semaphore_mem>>
      %634 = tpu.memref_squeeze %633 : memref<1x!tpu.dma_semaphore, #tpu.memory_space<semaphore_mem>> -> memref<!tpu.dma_semaphore, #tpu.memory_space<semaphore_mem>>
      tpu.enqueue_dma source(%630 : memref<128xf32, #tpu.memory_space<any>>) target(%632 : memref<128xf32, #tpu.memory_space<vmem>>) target_semaphore(%634 : memref<!tpu.dma_semaphore, #tpu.memory_space<semaphore_mem>>)
      %c58_i32 = arith.constant 58 : i32
      %635 = arith.addi %54, %c58_i32 : i32
      %636 = arith.index_cast %635 : i32 to index
      %637 = memref.load %arg2[%636] : memref<256xi32, #tpu.memory_space<smem>>
      %c0_i32_260 = arith.constant 0 : i32
      %638 = arith.addi %c0_i32_260, %c58_i32 : i32
      %c0_i32_261 = arith.constant 0 : i32
      %c0_i32_262 = arith.constant 0 : i32
      %639 = tpu.memref_slice %arg6[%637, %c0_i32_262] : memref<512x128xf32, #tpu.memory_space<any>> -> memref<1x128xf32, #tpu.memory_space<any>>
      %640 = tpu.memref_squeeze %639 : memref<1x128xf32, #tpu.memory_space<any>> -> memref<128xf32, #tpu.memory_space<any>>
      %c0_i32_263 = arith.constant 0 : i32
      %641 = tpu.memref_slice %arg8[%638, %c0_i32_263] : memref<128x128xf32, #tpu.memory_space<vmem>> -> memref<1x128xf32, #tpu.memory_space<vmem>>
      %642 = tpu.memref_squeeze %641 : memref<1x128xf32, #tpu.memory_space<vmem>> -> memref<128xf32, #tpu.memory_space<vmem>>
      %643 = tpu.memref_slice %arg9[%c0_i32_261] : memref<2x!tpu.dma_semaphore, #tpu.memory_space<semaphore_mem>> -> memref<1x!tpu.dma_semaphore, #tpu.memory_space<semaphore_mem>>
      %644 = tpu.memref_squeeze %643 : memref<1x!tpu.dma_semaphore, #tpu.memory_space<semaphore_mem>> -> memref<!tpu.dma_semaphore, #tpu.memory_space<semaphore_mem>>
      tpu.enqueue_dma source(%640 : memref<128xf32, #tpu.memory_space<any>>) target(%642 : memref<128xf32, #tpu.memory_space<vmem>>) target_semaphore(%644 : memref<!tpu.dma_semaphore, #tpu.memory_space<semaphore_mem>>)
      %c59_i32 = arith.constant 59 : i32
      %645 = arith.addi %54, %c59_i32 : i32
      %646 = arith.index_cast %645 : i32 to index
      %647 = memref.load %arg2[%646] : memref<256xi32, #tpu.memory_space<smem>>
      %c0_i32_264 = arith.constant 0 : i32
      %648 = arith.addi %c0_i32_264, %c59_i32 : i32
      %c0_i32_265 = arith.constant 0 : i32
      %c0_i32_266 = arith.constant 0 : i32
      %649 = tpu.memref_slice %arg6[%647, %c0_i32_266] : memref<512x128xf32, #tpu.memory_space<any>> -> memref<1x128xf32, #tpu.memory_space<any>>
      %650 = tpu.memref_squeeze %649 : memref<1x128xf32, #tpu.memory_space<any>> -> memref<128xf32, #tpu.memory_space<any>>
      %c0_i32_267 = arith.constant 0 : i32
      %651 = tpu.memref_slice %arg8[%648, %c0_i32_267] : memref<128x128xf32, #tpu.memory_space<vmem>> -> memref<1x128xf32, #tpu.memory_space<vmem>>
      %652 = tpu.memref_squeeze %651 : memref<1x128xf32, #tpu.memory_space<vmem>> -> memref<128xf32, #tpu.memory_space<vmem>>
      %653 = tpu.memref_slice %arg9[%c0_i32_265] : memref<2x!tpu.dma_semaphore, #tpu.memory_space<semaphore_mem>> -> memref<1x!tpu.dma_semaphore, #tpu.memory_space<semaphore_mem>>
      %654 = tpu.memref_squeeze %653 : memref<1x!tpu.dma_semaphore, #tpu.memory_space<semaphore_mem>> -> memref<!tpu.dma_semaphore, #tpu.memory_space<semaphore_mem>>
      tpu.enqueue_dma source(%650 : memref<128xf32, #tpu.memory_space<any>>) target(%652 : memref<128xf32, #tpu.memory_space<vmem>>) target_semaphore(%654 : memref<!tpu.dma_semaphore, #tpu.memory_space<semaphore_mem>>)
      %c60_i32 = arith.constant 60 : i32
      %655 = arith.addi %54, %c60_i32 : i32
      %656 = arith.index_cast %655 : i32 to index
      %657 = memref.load %arg2[%656] : memref<256xi32, #tpu.memory_space<smem>>
      %c0_i32_268 = arith.constant 0 : i32
      %658 = arith.addi %c0_i32_268, %c60_i32 : i32
      %c0_i32_269 = arith.constant 0 : i32
      %c0_i32_270 = arith.constant 0 : i32
      %659 = tpu.memref_slice %arg6[%657, %c0_i32_270] : memref<512x128xf32, #tpu.memory_space<any>> -> memref<1x128xf32, #tpu.memory_space<any>>
      %660 = tpu.memref_squeeze %659 : memref<1x128xf32, #tpu.memory_space<any>> -> memref<128xf32, #tpu.memory_space<any>>
      %c0_i32_271 = arith.constant 0 : i32
      %661 = tpu.memref_slice %arg8[%658, %c0_i32_271] : memref<128x128xf32, #tpu.memory_space<vmem>> -> memref<1x128xf32, #tpu.memory_space<vmem>>
      %662 = tpu.memref_squeeze %661 : memref<1x128xf32, #tpu.memory_space<vmem>> -> memref<128xf32, #tpu.memory_space<vmem>>
      %663 = tpu.memref_slice %arg9[%c0_i32_269] : memref<2x!tpu.dma_semaphore, #tpu.memory_space<semaphore_mem>> -> memref<1x!tpu.dma_semaphore, #tpu.memory_space<semaphore_mem>>
      %664 = tpu.memref_squeeze %663 : memref<1x!tpu.dma_semaphore, #tpu.memory_space<semaphore_mem>> -> memref<!tpu.dma_semaphore, #tpu.memory_space<semaphore_mem>>
      tpu.enqueue_dma source(%660 : memref<128xf32, #tpu.memory_space<any>>) target(%662 : memref<128xf32, #tpu.memory_space<vmem>>) target_semaphore(%664 : memref<!tpu.dma_semaphore, #tpu.memory_space<semaphore_mem>>)
      %c61_i32 = arith.constant 61 : i32
      %665 = arith.addi %54, %c61_i32 : i32
      %666 = arith.index_cast %665 : i32 to index
      %667 = memref.load %arg2[%666] : memref<256xi32, #tpu.memory_space<smem>>
      %c0_i32_272 = arith.constant 0 : i32
      %668 = arith.addi %c0_i32_272, %c61_i32 : i32
      %c0_i32_273 = arith.constant 0 : i32
      %c0_i32_274 = arith.constant 0 : i32
      %669 = tpu.memref_slice %arg6[%667, %c0_i32_274] : memref<512x128xf32, #tpu.memory_space<any>> -> memref<1x128xf32, #tpu.memory_space<any>>
      %670 = tpu.memref_squeeze %669 : memref<1x128xf32, #tpu.memory_space<any>> -> memref<128xf32, #tpu.memory_space<any>>
      %c0_i32_275 = arith.constant 0 : i32
      %671 = tpu.memref_slice %arg8[%668, %c0_i32_275] : memref<128x128xf32, #tpu.memory_space<vmem>> -> memref<1x128xf32, #tpu.memory_space<vmem>>
      %672 = tpu.memref_squeeze %671 : memref<1x128xf32, #tpu.memory_space<vmem>> -> memref<128xf32, #tpu.memory_space<vmem>>
      %673 = tpu.memref_slice %arg9[%c0_i32_273] : memref<2x!tpu.dma_semaphore, #tpu.memory_space<semaphore_mem>> -> memref<1x!tpu.dma_semaphore, #tpu.memory_space<semaphore_mem>>
      %674 = tpu.memref_squeeze %673 : memref<1x!tpu.dma_semaphore, #tpu.memory_space<semaphore_mem>> -> memref<!tpu.dma_semaphore, #tpu.memory_space<semaphore_mem>>
      tpu.enqueue_dma source(%670 : memref<128xf32, #tpu.memory_space<any>>) target(%672 : memref<128xf32, #tpu.memory_space<vmem>>) target_semaphore(%674 : memref<!tpu.dma_semaphore, #tpu.memory_space<semaphore_mem>>)
      %c62_i32 = arith.constant 62 : i32
      %675 = arith.addi %54, %c62_i32 : i32
      %676 = arith.index_cast %675 : i32 to index
      %677 = memref.load %arg2[%676] : memref<256xi32, #tpu.memory_space<smem>>
      %c0_i32_276 = arith.constant 0 : i32
      %678 = arith.addi %c0_i32_276, %c62_i32 : i32
      %c0_i32_277 = arith.constant 0 : i32
      %c0_i32_278 = arith.constant 0 : i32
      %679 = tpu.memref_slice %arg6[%677, %c0_i32_278] : memref<512x128xf32, #tpu.memory_space<any>> -> memref<1x128xf32, #tpu.memory_space<any>>
      %680 = tpu.memref_squeeze %679 : memref<1x128xf32, #tpu.memory_space<any>> -> memref<128xf32, #tpu.memory_space<any>>
      %c0_i32_279 = arith.constant 0 : i32
      %681 = tpu.memref_slice %arg8[%678, %c0_i32_279] : memref<128x128xf32, #tpu.memory_space<vmem>> -> memref<1x128xf32, #tpu.memory_space<vmem>>
      %682 = tpu.memref_squeeze %681 : memref<1x128xf32, #tpu.memory_space<vmem>> -> memref<128xf32, #tpu.memory_space<vmem>>
      %683 = tpu.memref_slice %arg9[%c0_i32_277] : memref<2x!tpu.dma_semaphore, #tpu.memory_space<semaphore_mem>> -> memref<1x!tpu.dma_semaphore, #tpu.memory_space<semaphore_mem>>
      %684 = tpu.memref_squeeze %683 : memref<1x!tpu.dma_semaphore, #tpu.memory_space<semaphore_mem>> -> memref<!tpu.dma_semaphore, #tpu.memory_space<semaphore_mem>>
      tpu.enqueue_dma source(%680 : memref<128xf32, #tpu.memory_space<any>>) target(%682 : memref<128xf32, #tpu.memory_space<vmem>>) target_semaphore(%684 : memref<!tpu.dma_semaphore, #tpu.memory_space<semaphore_mem>>)
      %c63_i32 = arith.constant 63 : i32
      %685 = arith.addi %54, %c63_i32 : i32
      %686 = arith.index_cast %685 : i32 to index
      %687 = memref.load %arg2[%686] : memref<256xi32, #tpu.memory_space<smem>>
      %c0_i32_280 = arith.constant 0 : i32
      %688 = arith.addi %c0_i32_280, %c63_i32 : i32
      %c0_i32_281 = arith.constant 0 : i32
      %c0_i32_282 = arith.constant 0 : i32
      %689 = tpu.memref_slice %arg6[%687, %c0_i32_282] : memref<512x128xf32, #tpu.memory_space<any>> -> memref<1x128xf32, #tpu.memory_space<any>>
      %690 = tpu.memref_squeeze %689 : memref<1x128xf32, #tpu.memory_space<any>> -> memref<128xf32, #tpu.memory_space<any>>
      %c0_i32_283 = arith.constant 0 : i32
      %691 = tpu.memref_slice %arg8[%688, %c0_i32_283] : memref<128x128xf32, #tpu.memory_space<vmem>> -> memref<1x128xf32, #tpu.memory_space<vmem>>
      %692 = tpu.memref_squeeze %691 : memref<1x128xf32, #tpu.memory_space<vmem>> -> memref<128xf32, #tpu.memory_space<vmem>>
      %693 = tpu.memref_slice %arg9[%c0_i32_281] : memref<2x!tpu.dma_semaphore, #tpu.memory_space<semaphore_mem>> -> memref<1x!tpu.dma_semaphore, #tpu.memory_space<semaphore_mem>>
      %694 = tpu.memref_squeeze %693 : memref<1x!tpu.dma_semaphore, #tpu.memory_space<semaphore_mem>> -> memref<!tpu.dma_semaphore, #tpu.memory_space<semaphore_mem>>
      tpu.enqueue_dma source(%690 : memref<128xf32, #tpu.memory_space<any>>) target(%692 : memref<128xf32, #tpu.memory_space<vmem>>) target_semaphore(%694 : memref<!tpu.dma_semaphore, #tpu.memory_space<semaphore_mem>>)
      %c64_i32_284 = arith.constant 64 : i32
    } else {
    }
    %c1_i32_5 = arith.constant 1 : i32
    %14 = arith.addi %arg1, %c1_i32_5 : i32
    %c2_i32_6 = arith.constant 2 : i32
    %15 = arith.cmpi slt, %14, %c2_i32_6 : i32
    %16 = arith.extui %15 : i1 to i32
    %c0_i32_7 = arith.constant 0 : i32
    %17 = arith.cmpi ne, %16, %c0_i32_7 : i32
    scf.if %17 {
      %c1_i32_24 = arith.constant 1 : i32
      %54 = arith.addi %arg1, %c1_i32_24 : i32
      %c1_i32_25 = arith.constant 1 : i32
      %55 = arith.subi %c1_i32_25, %9 : i32
      %c64_i32_26 = arith.constant 64 : i32
      %56 = arith.muli %54, %c64_i32_26 : i32
      %57 = arith.addi %10, %56 : i32
      %c0_i32_27 = arith.constant 0 : i32
      %58 = arith.addi %57, %c0_i32_27 : i32
      %59 = arith.index_cast %58 : i32 to index
      %60 = memref.load %arg2[%59] : memref<256xi32, #tpu.memory_space<smem>>
      %c64_i32_28 = arith.constant 64 : i32
      %61 = arith.muli %55, %c64_i32_28 : i32
      %62 = arith.addi %61, %c0_i32_27 : i32
      %c0_i32_29 = arith.constant 0 : i32
      %63 = tpu.memref_slice %arg6[%60, %c0_i32_29] : memref<512x128xf32, #tpu.memory_space<any>> -> memref<1x128xf32, #tpu.memory_space<any>>
      %64 = tpu.memref_squeeze %63 : memref<1x128xf32, #tpu.memory_space<any>> -> memref<128xf32, #tpu.memory_space<any>>
      %c0_i32_30 = arith.constant 0 : i32
      %65 = tpu.memref_slice %arg8[%62, %c0_i32_30] : memref<128x128xf32, #tpu.memory_space<vmem>> -> memref<1x128xf32, #tpu.memory_space<vmem>>
      %66 = tpu.memref_squeeze %65 : memref<1x128xf32, #tpu.memory_space<vmem>> -> memref<128xf32, #tpu.memory_space<vmem>>
      %67 = tpu.memref_slice %arg9[%55] : memref<2x!tpu.dma_semaphore, #tpu.memory_space<semaphore_mem>> -> memref<1x!tpu.dma_semaphore, #tpu.memory_space<semaphore_mem>>
      %68 = tpu.memref_squeeze %67 : memref<1x!tpu.dma_semaphore, #tpu.memory_space<semaphore_mem>> -> memref<!tpu.dma_semaphore, #tpu.memory_space<semaphore_mem>>
      tpu.enqueue_dma source(%64 : memref<128xf32, #tpu.memory_space<any>>) target(%66 : memref<128xf32, #tpu.memory_space<vmem>>) target_semaphore(%68 : memref<!tpu.dma_semaphore, #tpu.memory_space<semaphore_mem>>)
      %c1_i32_31 = arith.constant 1 : i32
      %69 = arith.addi %57, %c1_i32_31 : i32
      %70 = arith.index_cast %69 : i32 to index
      %71 = memref.load %arg2[%70] : memref<256xi32, #tpu.memory_space<smem>>
      %c64_i32_32 = arith.constant 64 : i32
      %72 = arith.muli %55, %c64_i32_32 : i32
      %73 = arith.addi %72, %c1_i32_31 : i32
      %c0_i32_33 = arith.constant 0 : i32
      %74 = tpu.memref_slice %arg6[%71, %c0_i32_33] : memref<512x128xf32, #tpu.memory_space<any>> -> memref<1x128xf32, #tpu.memory_space<any>>
      %75 = tpu.memref_squeeze %74 : memref<1x128xf32, #tpu.memory_space<any>> -> memref<128xf32, #tpu.memory_space<any>>
      %c0_i32_34 = arith.constant 0 : i32
      %76 = tpu.memref_slice %arg8[%73, %c0_i32_34] : memref<128x128xf32, #tpu.memory_space<vmem>> -> memref<1x128xf32, #tpu.memory_space<vmem>>
      %77 = tpu.memref_squeeze %76 : memref<1x128xf32, #tpu.memory_space<vmem>> -> memref<128xf32, #tpu.memory_space<vmem>>
      %78 = tpu.memref_slice %arg9[%55] : memref<2x!tpu.dma_semaphore, #tpu.memory_space<semaphore_mem>> -> memref<1x!tpu.dma_semaphore, #tpu.memory_space<semaphore_mem>>
      %79 = tpu.memref_squeeze %78 : memref<1x!tpu.dma_semaphore, #tpu.memory_space<semaphore_mem>> -> memref<!tpu.dma_semaphore, #tpu.memory_space<semaphore_mem>>
      tpu.enqueue_dma source(%75 : memref<128xf32, #tpu.memory_space<any>>) target(%77 : memref<128xf32, #tpu.memory_space<vmem>>) target_semaphore(%79 : memref<!tpu.dma_semaphore, #tpu.memory_space<semaphore_mem>>)
      %c2_i32_35 = arith.constant 2 : i32
      %80 = arith.addi %57, %c2_i32_35 : i32
      %81 = arith.index_cast %80 : i32 to index
      %82 = memref.load %arg2[%81] : memref<256xi32, #tpu.memory_space<smem>>
      %c64_i32_36 = arith.constant 64 : i32
      %83 = arith.muli %55, %c64_i32_36 : i32
      %84 = arith.addi %83, %c2_i32_35 : i32
      %c0_i32_37 = arith.constant 0 : i32
      %85 = tpu.memref_slice %arg6[%82, %c0_i32_37] : memref<512x128xf32, #tpu.memory_space<any>> -> memref<1x128xf32, #tpu.memory_space<any>>
      %86 = tpu.memref_squeeze %85 : memref<1x128xf32, #tpu.memory_space<any>> -> memref<128xf32, #tpu.memory_space<any>>
      %c0_i32_38 = arith.constant 0 : i32
      %87 = tpu.memref_slice %arg8[%84, %c0_i32_38] : memref<128x128xf32, #tpu.memory_space<vmem>> -> memref<1x128xf32, #tpu.memory_space<vmem>>
      %88 = tpu.memref_squeeze %87 : memref<1x128xf32, #tpu.memory_space<vmem>> -> memref<128xf32, #tpu.memory_space<vmem>>
      %89 = tpu.memref_slice %arg9[%55] : memref<2x!tpu.dma_semaphore, #tpu.memory_space<semaphore_mem>> -> memref<1x!tpu.dma_semaphore, #tpu.memory_space<semaphore_mem>>
      %90 = tpu.memref_squeeze %89 : memref<1x!tpu.dma_semaphore, #tpu.memory_space<semaphore_mem>> -> memref<!tpu.dma_semaphore, #tpu.memory_space<semaphore_mem>>
      tpu.enqueue_dma source(%86 : memref<128xf32, #tpu.memory_space<any>>) target(%88 : memref<128xf32, #tpu.memory_space<vmem>>) target_semaphore(%90 : memref<!tpu.dma_semaphore, #tpu.memory_space<semaphore_mem>>)
      %c3_i32 = arith.constant 3 : i32
      %91 = arith.addi %57, %c3_i32 : i32
      %92 = arith.index_cast %91 : i32 to index
      %93 = memref.load %arg2[%92] : memref<256xi32, #tpu.memory_space<smem>>
      %c64_i32_39 = arith.constant 64 : i32
      %94 = arith.muli %55, %c64_i32_39 : i32
      %95 = arith.addi %94, %c3_i32 : i32
      %c0_i32_40 = arith.constant 0 : i32
      %96 = tpu.memref_slice %arg6[%93, %c0_i32_40] : memref<512x128xf32, #tpu.memory_space<any>> -> memref<1x128xf32, #tpu.memory_space<any>>
      %97 = tpu.memref_squeeze %96 : memref<1x128xf32, #tpu.memory_space<any>> -> memref<128xf32, #tpu.memory_space<any>>
      %c0_i32_41 = arith.constant 0 : i32
      %98 = tpu.memref_slice %arg8[%95, %c0_i32_41] : memref<128x128xf32, #tpu.memory_space<vmem>> -> memref<1x128xf32, #tpu.memory_space<vmem>>
      %99 = tpu.memref_squeeze %98 : memref<1x128xf32, #tpu.memory_space<vmem>> -> memref<128xf32, #tpu.memory_space<vmem>>
      %100 = tpu.memref_slice %arg9[%55] : memref<2x!tpu.dma_semaphore, #tpu.memory_space<semaphore_mem>> -> memref<1x!tpu.dma_semaphore, #tpu.memory_space<semaphore_mem>>
      %101 = tpu.memref_squeeze %100 : memref<1x!tpu.dma_semaphore, #tpu.memory_space<semaphore_mem>> -> memref<!tpu.dma_semaphore, #tpu.memory_space<semaphore_mem>>
      tpu.enqueue_dma source(%97 : memref<128xf32, #tpu.memory_space<any>>) target(%99 : memref<128xf32, #tpu.memory_space<vmem>>) target_semaphore(%101 : memref<!tpu.dma_semaphore, #tpu.memory_space<semaphore_mem>>)
      %c4_i32 = arith.constant 4 : i32
      %102 = arith.addi %57, %c4_i32 : i32
      %103 = arith.index_cast %102 : i32 to index
      %104 = memref.load %arg2[%103] : memref<256xi32, #tpu.memory_space<smem>>
      %c64_i32_42 = arith.constant 64 : i32
      %105 = arith.muli %55, %c64_i32_42 : i32
      %106 = arith.addi %105, %c4_i32 : i32
      %c0_i32_43 = arith.constant 0 : i32
      %107 = tpu.memref_slice %arg6[%104, %c0_i32_43] : memref<512x128xf32, #tpu.memory_space<any>> -> memref<1x128xf32, #tpu.memory_space<any>>
      %108 = tpu.memref_squeeze %107 : memref<1x128xf32, #tpu.memory_space<any>> -> memref<128xf32, #tpu.memory_space<any>>
      %c0_i32_44 = arith.constant 0 : i32
      %109 = tpu.memref_slice %arg8[%106, %c0_i32_44] : memref<128x128xf32, #tpu.memory_space<vmem>> -> memref<1x128xf32, #tpu.memory_space<vmem>>
      %110 = tpu.memref_squeeze %109 : memref<1x128xf32, #tpu.memory_space<vmem>> -> memref<128xf32, #tpu.memory_space<vmem>>
      %111 = tpu.memref_slice %arg9[%55] : memref<2x!tpu.dma_semaphore, #tpu.memory_space<semaphore_mem>> -> memref<1x!tpu.dma_semaphore, #tpu.memory_space<semaphore_mem>>
      %112 = tpu.memref_squeeze %111 : memref<1x!tpu.dma_semaphore, #tpu.memory_space<semaphore_mem>> -> memref<!tpu.dma_semaphore, #tpu.memory_space<semaphore_mem>>
      tpu.enqueue_dma source(%108 : memref<128xf32, #tpu.memory_space<any>>) target(%110 : memref<128xf32, #tpu.memory_space<vmem>>) target_semaphore(%112 : memref<!tpu.dma_semaphore, #tpu.memory_space<semaphore_mem>>)
      %c5_i32 = arith.constant 5 : i32
      %113 = arith.addi %57, %c5_i32 : i32
      %114 = arith.index_cast %113 : i32 to index
      %115 = memref.load %arg2[%114] : memref<256xi32, #tpu.memory_space<smem>>
      %c64_i32_45 = arith.constant 64 : i32
      %116 = arith.muli %55, %c64_i32_45 : i32
      %117 = arith.addi %116, %c5_i32 : i32
      %c0_i32_46 = arith.constant 0 : i32
      %118 = tpu.memref_slice %arg6[%115, %c0_i32_46] : memref<512x128xf32, #tpu.memory_space<any>> -> memref<1x128xf32, #tpu.memory_space<any>>
      %119 = tpu.memref_squeeze %118 : memref<1x128xf32, #tpu.memory_space<any>> -> memref<128xf32, #tpu.memory_space<any>>
      %c0_i32_47 = arith.constant 0 : i32
      %120 = tpu.memref_slice %arg8[%117, %c0_i32_47] : memref<128x128xf32, #tpu.memory_space<vmem>> -> memref<1x128xf32, #tpu.memory_space<vmem>>
      %121 = tpu.memref_squeeze %120 : memref<1x128xf32, #tpu.memory_space<vmem>> -> memref<128xf32, #tpu.memory_space<vmem>>
      %122 = tpu.memref_slice %arg9[%55] : memref<2x!tpu.dma_semaphore, #tpu.memory_space<semaphore_mem>> -> memref<1x!tpu.dma_semaphore, #tpu.memory_space<semaphore_mem>>
      %123 = tpu.memref_squeeze %122 : memref<1x!tpu.dma_semaphore, #tpu.memory_space<semaphore_mem>> -> memref<!tpu.dma_semaphore, #tpu.memory_space<semaphore_mem>>
      tpu.enqueue_dma source(%119 : memref<128xf32, #tpu.memory_space<any>>) target(%121 : memref<128xf32, #tpu.memory_space<vmem>>) target_semaphore(%123 : memref<!tpu.dma_semaphore, #tpu.memory_space<semaphore_mem>>)
      %c6_i32 = arith.constant 6 : i32
      %124 = arith.addi %57, %c6_i32 : i32
      %125 = arith.index_cast %124 : i32 to index
      %126 = memref.load %arg2[%125] : memref<256xi32, #tpu.memory_space<smem>>
      %c64_i32_48 = arith.constant 64 : i32
      %127 = arith.muli %55, %c64_i32_48 : i32
      %128 = arith.addi %127, %c6_i32 : i32
      %c0_i32_49 = arith.constant 0 : i32
      %129 = tpu.memref_slice %arg6[%126, %c0_i32_49] : memref<512x128xf32, #tpu.memory_space<any>> -> memref<1x128xf32, #tpu.memory_space<any>>
      %130 = tpu.memref_squeeze %129 : memref<1x128xf32, #tpu.memory_space<any>> -> memref<128xf32, #tpu.memory_space<any>>
      %c0_i32_50 = arith.constant 0 : i32
      %131 = tpu.memref_slice %arg8[%128, %c0_i32_50] : memref<128x128xf32, #tpu.memory_space<vmem>> -> memref<1x128xf32, #tpu.memory_space<vmem>>
      %132 = tpu.memref_squeeze %131 : memref<1x128xf32, #tpu.memory_space<vmem>> -> memref<128xf32, #tpu.memory_space<vmem>>
      %133 = tpu.memref_slice %arg9[%55] : memref<2x!tpu.dma_semaphore, #tpu.memory_space<semaphore_mem>> -> memref<1x!tpu.dma_semaphore, #tpu.memory_space<semaphore_mem>>
      %134 = tpu.memref_squeeze %133 : memref<1x!tpu.dma_semaphore, #tpu.memory_space<semaphore_mem>> -> memref<!tpu.dma_semaphore, #tpu.memory_space<semaphore_mem>>
      tpu.enqueue_dma source(%130 : memref<128xf32, #tpu.memory_space<any>>) target(%132 : memref<128xf32, #tpu.memory_space<vmem>>) target_semaphore(%134 : memref<!tpu.dma_semaphore, #tpu.memory_space<semaphore_mem>>)
      %c7_i32 = arith.constant 7 : i32
      %135 = arith.addi %57, %c7_i32 : i32
      %136 = arith.index_cast %135 : i32 to index
      %137 = memref.load %arg2[%136] : memref<256xi32, #tpu.memory_space<smem>>
      %c64_i32_51 = arith.constant 64 : i32
      %138 = arith.muli %55, %c64_i32_51 : i32
      %139 = arith.addi %138, %c7_i32 : i32
      %c0_i32_52 = arith.constant 0 : i32
      %140 = tpu.memref_slice %arg6[%137, %c0_i32_52] : memref<512x128xf32, #tpu.memory_space<any>> -> memref<1x128xf32, #tpu.memory_space<any>>
      %141 = tpu.memref_squeeze %140 : memref<1x128xf32, #tpu.memory_space<any>> -> memref<128xf32, #tpu.memory_space<any>>
      %c0_i32_53 = arith.constant 0 : i32
      %142 = tpu.memref_slice %arg8[%139, %c0_i32_53] : memref<128x128xf32, #tpu.memory_space<vmem>> -> memref<1x128xf32, #tpu.memory_space<vmem>>
      %143 = tpu.memref_squeeze %142 : memref<1x128xf32, #tpu.memory_space<vmem>> -> memref<128xf32, #tpu.memory_space<vmem>>
      %144 = tpu.memref_slice %arg9[%55] : memref<2x!tpu.dma_semaphore, #tpu.memory_space<semaphore_mem>> -> memref<1x!tpu.dma_semaphore, #tpu.memory_space<semaphore_mem>>
      %145 = tpu.memref_squeeze %144 : memref<1x!tpu.dma_semaphore, #tpu.memory_space<semaphore_mem>> -> memref<!tpu.dma_semaphore, #tpu.memory_space<semaphore_mem>>
      tpu.enqueue_dma source(%141 : memref<128xf32, #tpu.memory_space<any>>) target(%143 : memref<128xf32, #tpu.memory_space<vmem>>) target_semaphore(%145 : memref<!tpu.dma_semaphore, #tpu.memory_space<semaphore_mem>>)
      %c8_i32 = arith.constant 8 : i32
      %146 = arith.addi %57, %c8_i32 : i32
      %147 = arith.index_cast %146 : i32 to index
      %148 = memref.load %arg2[%147] : memref<256xi32, #tpu.memory_space<smem>>
      %c64_i32_54 = arith.constant 64 : i32
      %149 = arith.muli %55, %c64_i32_54 : i32
      %150 = arith.addi %149, %c8_i32 : i32
      %c0_i32_55 = arith.constant 0 : i32
      %151 = tpu.memref_slice %arg6[%148, %c0_i32_55] : memref<512x128xf32, #tpu.memory_space<any>> -> memref<1x128xf32, #tpu.memory_space<any>>
      %152 = tpu.memref_squeeze %151 : memref<1x128xf32, #tpu.memory_space<any>> -> memref<128xf32, #tpu.memory_space<any>>
      %c0_i32_56 = arith.constant 0 : i32
      %153 = tpu.memref_slice %arg8[%150, %c0_i32_56] : memref<128x128xf32, #tpu.memory_space<vmem>> -> memref<1x128xf32, #tpu.memory_space<vmem>>
      %154 = tpu.memref_squeeze %153 : memref<1x128xf32, #tpu.memory_space<vmem>> -> memref<128xf32, #tpu.memory_space<vmem>>
      %155 = tpu.memref_slice %arg9[%55] : memref<2x!tpu.dma_semaphore, #tpu.memory_space<semaphore_mem>> -> memref<1x!tpu.dma_semaphore, #tpu.memory_space<semaphore_mem>>
      %156 = tpu.memref_squeeze %155 : memref<1x!tpu.dma_semaphore, #tpu.memory_space<semaphore_mem>> -> memref<!tpu.dma_semaphore, #tpu.memory_space<semaphore_mem>>
      tpu.enqueue_dma source(%152 : memref<128xf32, #tpu.memory_space<any>>) target(%154 : memref<128xf32, #tpu.memory_space<vmem>>) target_semaphore(%156 : memref<!tpu.dma_semaphore, #tpu.memory_space<semaphore_mem>>)
      %c9_i32 = arith.constant 9 : i32
      %157 = arith.addi %57, %c9_i32 : i32
      %158 = arith.index_cast %157 : i32 to index
      %159 = memref.load %arg2[%158] : memref<256xi32, #tpu.memory_space<smem>>
      %c64_i32_57 = arith.constant 64 : i32
      %160 = arith.muli %55, %c64_i32_57 : i32
      %161 = arith.addi %160, %c9_i32 : i32
      %c0_i32_58 = arith.constant 0 : i32
      %162 = tpu.memref_slice %arg6[%159, %c0_i32_58] : memref<512x128xf32, #tpu.memory_space<any>> -> memref<1x128xf32, #tpu.memory_space<any>>
      %163 = tpu.memref_squeeze %162 : memref<1x128xf32, #tpu.memory_space<any>> -> memref<128xf32, #tpu.memory_space<any>>
      %c0_i32_59 = arith.constant 0 : i32
      %164 = tpu.memref_slice %arg8[%161, %c0_i32_59] : memref<128x128xf32, #tpu.memory_space<vmem>> -> memref<1x128xf32, #tpu.memory_space<vmem>>
      %165 = tpu.memref_squeeze %164 : memref<1x128xf32, #tpu.memory_space<vmem>> -> memref<128xf32, #tpu.memory_space<vmem>>
      %166 = tpu.memref_slice %arg9[%55] : memref<2x!tpu.dma_semaphore, #tpu.memory_space<semaphore_mem>> -> memref<1x!tpu.dma_semaphore, #tpu.memory_space<semaphore_mem>>
      %167 = tpu.memref_squeeze %166 : memref<1x!tpu.dma_semaphore, #tpu.memory_space<semaphore_mem>> -> memref<!tpu.dma_semaphore, #tpu.memory_space<semaphore_mem>>
      tpu.enqueue_dma source(%163 : memref<128xf32, #tpu.memory_space<any>>) target(%165 : memref<128xf32, #tpu.memory_space<vmem>>) target_semaphore(%167 : memref<!tpu.dma_semaphore, #tpu.memory_space<semaphore_mem>>)
      %c10_i32 = arith.constant 10 : i32
      %168 = arith.addi %57, %c10_i32 : i32
      %169 = arith.index_cast %168 : i32 to index
      %170 = memref.load %arg2[%169] : memref<256xi32, #tpu.memory_space<smem>>
      %c64_i32_60 = arith.constant 64 : i32
      %171 = arith.muli %55, %c64_i32_60 : i32
      %172 = arith.addi %171, %c10_i32 : i32
      %c0_i32_61 = arith.constant 0 : i32
      %173 = tpu.memref_slice %arg6[%170, %c0_i32_61] : memref<512x128xf32, #tpu.memory_space<any>> -> memref<1x128xf32, #tpu.memory_space<any>>
      %174 = tpu.memref_squeeze %173 : memref<1x128xf32, #tpu.memory_space<any>> -> memref<128xf32, #tpu.memory_space<any>>
      %c0_i32_62 = arith.constant 0 : i32
      %175 = tpu.memref_slice %arg8[%172, %c0_i32_62] : memref<128x128xf32, #tpu.memory_space<vmem>> -> memref<1x128xf32, #tpu.memory_space<vmem>>
      %176 = tpu.memref_squeeze %175 : memref<1x128xf32, #tpu.memory_space<vmem>> -> memref<128xf32, #tpu.memory_space<vmem>>
      %177 = tpu.memref_slice %arg9[%55] : memref<2x!tpu.dma_semaphore, #tpu.memory_space<semaphore_mem>> -> memref<1x!tpu.dma_semaphore, #tpu.memory_space<semaphore_mem>>
      %178 = tpu.memref_squeeze %177 : memref<1x!tpu.dma_semaphore, #tpu.memory_space<semaphore_mem>> -> memref<!tpu.dma_semaphore, #tpu.memory_space<semaphore_mem>>
      tpu.enqueue_dma source(%174 : memref<128xf32, #tpu.memory_space<any>>) target(%176 : memref<128xf32, #tpu.memory_space<vmem>>) target_semaphore(%178 : memref<!tpu.dma_semaphore, #tpu.memory_space<semaphore_mem>>)
      %c11_i32 = arith.constant 11 : i32
      %179 = arith.addi %57, %c11_i32 : i32
      %180 = arith.index_cast %179 : i32 to index
      %181 = memref.load %arg2[%180] : memref<256xi32, #tpu.memory_space<smem>>
      %c64_i32_63 = arith.constant 64 : i32
      %182 = arith.muli %55, %c64_i32_63 : i32
      %183 = arith.addi %182, %c11_i32 : i32
      %c0_i32_64 = arith.constant 0 : i32
      %184 = tpu.memref_slice %arg6[%181, %c0_i32_64] : memref<512x128xf32, #tpu.memory_space<any>> -> memref<1x128xf32, #tpu.memory_space<any>>
      %185 = tpu.memref_squeeze %184 : memref<1x128xf32, #tpu.memory_space<any>> -> memref<128xf32, #tpu.memory_space<any>>
      %c0_i32_65 = arith.constant 0 : i32
      %186 = tpu.memref_slice %arg8[%183, %c0_i32_65] : memref<128x128xf32, #tpu.memory_space<vmem>> -> memref<1x128xf32, #tpu.memory_space<vmem>>
      %187 = tpu.memref_squeeze %186 : memref<1x128xf32, #tpu.memory_space<vmem>> -> memref<128xf32, #tpu.memory_space<vmem>>
      %188 = tpu.memref_slice %arg9[%55] : memref<2x!tpu.dma_semaphore, #tpu.memory_space<semaphore_mem>> -> memref<1x!tpu.dma_semaphore, #tpu.memory_space<semaphore_mem>>
      %189 = tpu.memref_squeeze %188 : memref<1x!tpu.dma_semaphore, #tpu.memory_space<semaphore_mem>> -> memref<!tpu.dma_semaphore, #tpu.memory_space<semaphore_mem>>
      tpu.enqueue_dma source(%185 : memref<128xf32, #tpu.memory_space<any>>) target(%187 : memref<128xf32, #tpu.memory_space<vmem>>) target_semaphore(%189 : memref<!tpu.dma_semaphore, #tpu.memory_space<semaphore_mem>>)
      %c12_i32 = arith.constant 12 : i32
      %190 = arith.addi %57, %c12_i32 : i32
      %191 = arith.index_cast %190 : i32 to index
      %192 = memref.load %arg2[%191] : memref<256xi32, #tpu.memory_space<smem>>
      %c64_i32_66 = arith.constant 64 : i32
      %193 = arith.muli %55, %c64_i32_66 : i32
      %194 = arith.addi %193, %c12_i32 : i32
      %c0_i32_67 = arith.constant 0 : i32
      %195 = tpu.memref_slice %arg6[%192, %c0_i32_67] : memref<512x128xf32, #tpu.memory_space<any>> -> memref<1x128xf32, #tpu.memory_space<any>>
      %196 = tpu.memref_squeeze %195 : memref<1x128xf32, #tpu.memory_space<any>> -> memref<128xf32, #tpu.memory_space<any>>
      %c0_i32_68 = arith.constant 0 : i32
      %197 = tpu.memref_slice %arg8[%194, %c0_i32_68] : memref<128x128xf32, #tpu.memory_space<vmem>> -> memref<1x128xf32, #tpu.memory_space<vmem>>
      %198 = tpu.memref_squeeze %197 : memref<1x128xf32, #tpu.memory_space<vmem>> -> memref<128xf32, #tpu.memory_space<vmem>>
      %199 = tpu.memref_slice %arg9[%55] : memref<2x!tpu.dma_semaphore, #tpu.memory_space<semaphore_mem>> -> memref<1x!tpu.dma_semaphore, #tpu.memory_space<semaphore_mem>>
      %200 = tpu.memref_squeeze %199 : memref<1x!tpu.dma_semaphore, #tpu.memory_space<semaphore_mem>> -> memref<!tpu.dma_semaphore, #tpu.memory_space<semaphore_mem>>
      tpu.enqueue_dma source(%196 : memref<128xf32, #tpu.memory_space<any>>) target(%198 : memref<128xf32, #tpu.memory_space<vmem>>) target_semaphore(%200 : memref<!tpu.dma_semaphore, #tpu.memory_space<semaphore_mem>>)
      %c13_i32 = arith.constant 13 : i32
      %201 = arith.addi %57, %c13_i32 : i32
      %202 = arith.index_cast %201 : i32 to index
      %203 = memref.load %arg2[%202] : memref<256xi32, #tpu.memory_space<smem>>
      %c64_i32_69 = arith.constant 64 : i32
      %204 = arith.muli %55, %c64_i32_69 : i32
      %205 = arith.addi %204, %c13_i32 : i32
      %c0_i32_70 = arith.constant 0 : i32
      %206 = tpu.memref_slice %arg6[%203, %c0_i32_70] : memref<512x128xf32, #tpu.memory_space<any>> -> memref<1x128xf32, #tpu.memory_space<any>>
      %207 = tpu.memref_squeeze %206 : memref<1x128xf32, #tpu.memory_space<any>> -> memref<128xf32, #tpu.memory_space<any>>
      %c0_i32_71 = arith.constant 0 : i32
      %208 = tpu.memref_slice %arg8[%205, %c0_i32_71] : memref<128x128xf32, #tpu.memory_space<vmem>> -> memref<1x128xf32, #tpu.memory_space<vmem>>
      %209 = tpu.memref_squeeze %208 : memref<1x128xf32, #tpu.memory_space<vmem>> -> memref<128xf32, #tpu.memory_space<vmem>>
      %210 = tpu.memref_slice %arg9[%55] : memref<2x!tpu.dma_semaphore, #tpu.memory_space<semaphore_mem>> -> memref<1x!tpu.dma_semaphore, #tpu.memory_space<semaphore_mem>>
      %211 = tpu.memref_squeeze %210 : memref<1x!tpu.dma_semaphore, #tpu.memory_space<semaphore_mem>> -> memref<!tpu.dma_semaphore, #tpu.memory_space<semaphore_mem>>
      tpu.enqueue_dma source(%207 : memref<128xf32, #tpu.memory_space<any>>) target(%209 : memref<128xf32, #tpu.memory_space<vmem>>) target_semaphore(%211 : memref<!tpu.dma_semaphore, #tpu.memory_space<semaphore_mem>>)
      %c14_i32 = arith.constant 14 : i32
      %212 = arith.addi %57, %c14_i32 : i32
      %213 = arith.index_cast %212 : i32 to index
      %214 = memref.load %arg2[%213] : memref<256xi32, #tpu.memory_space<smem>>
      %c64_i32_72 = arith.constant 64 : i32
      %215 = arith.muli %55, %c64_i32_72 : i32
      %216 = arith.addi %215, %c14_i32 : i32
      %c0_i32_73 = arith.constant 0 : i32
      %217 = tpu.memref_slice %arg6[%214, %c0_i32_73] : memref<512x128xf32, #tpu.memory_space<any>> -> memref<1x128xf32, #tpu.memory_space<any>>
      %218 = tpu.memref_squeeze %217 : memref<1x128xf32, #tpu.memory_space<any>> -> memref<128xf32, #tpu.memory_space<any>>
      %c0_i32_74 = arith.constant 0 : i32
      %219 = tpu.memref_slice %arg8[%216, %c0_i32_74] : memref<128x128xf32, #tpu.memory_space<vmem>> -> memref<1x128xf32, #tpu.memory_space<vmem>>
      %220 = tpu.memref_squeeze %219 : memref<1x128xf32, #tpu.memory_space<vmem>> -> memref<128xf32, #tpu.memory_space<vmem>>
      %221 = tpu.memref_slice %arg9[%55] : memref<2x!tpu.dma_semaphore, #tpu.memory_space<semaphore_mem>> -> memref<1x!tpu.dma_semaphore, #tpu.memory_space<semaphore_mem>>
      %222 = tpu.memref_squeeze %221 : memref<1x!tpu.dma_semaphore, #tpu.memory_space<semaphore_mem>> -> memref<!tpu.dma_semaphore, #tpu.memory_space<semaphore_mem>>
      tpu.enqueue_dma source(%218 : memref<128xf32, #tpu.memory_space<any>>) target(%220 : memref<128xf32, #tpu.memory_space<vmem>>) target_semaphore(%222 : memref<!tpu.dma_semaphore, #tpu.memory_space<semaphore_mem>>)
      %c15_i32 = arith.constant 15 : i32
      %223 = arith.addi %57, %c15_i32 : i32
      %224 = arith.index_cast %223 : i32 to index
      %225 = memref.load %arg2[%224] : memref<256xi32, #tpu.memory_space<smem>>
      %c64_i32_75 = arith.constant 64 : i32
      %226 = arith.muli %55, %c64_i32_75 : i32
      %227 = arith.addi %226, %c15_i32 : i32
      %c0_i32_76 = arith.constant 0 : i32
      %228 = tpu.memref_slice %arg6[%225, %c0_i32_76] : memref<512x128xf32, #tpu.memory_space<any>> -> memref<1x128xf32, #tpu.memory_space<any>>
      %229 = tpu.memref_squeeze %228 : memref<1x128xf32, #tpu.memory_space<any>> -> memref<128xf32, #tpu.memory_space<any>>
      %c0_i32_77 = arith.constant 0 : i32
      %230 = tpu.memref_slice %arg8[%227, %c0_i32_77] : memref<128x128xf32, #tpu.memory_space<vmem>> -> memref<1x128xf32, #tpu.memory_space<vmem>>
      %231 = tpu.memref_squeeze %230 : memref<1x128xf32, #tpu.memory_space<vmem>> -> memref<128xf32, #tpu.memory_space<vmem>>
      %232 = tpu.memref_slice %arg9[%55] : memref<2x!tpu.dma_semaphore, #tpu.memory_space<semaphore_mem>> -> memref<1x!tpu.dma_semaphore, #tpu.memory_space<semaphore_mem>>
      %233 = tpu.memref_squeeze %232 : memref<1x!tpu.dma_semaphore, #tpu.memory_space<semaphore_mem>> -> memref<!tpu.dma_semaphore, #tpu.memory_space<semaphore_mem>>
      tpu.enqueue_dma source(%229 : memref<128xf32, #tpu.memory_space<any>>) target(%231 : memref<128xf32, #tpu.memory_space<vmem>>) target_semaphore(%233 : memref<!tpu.dma_semaphore, #tpu.memory_space<semaphore_mem>>)
      %c16_i32 = arith.constant 16 : i32
      %234 = arith.addi %57, %c16_i32 : i32
      %235 = arith.index_cast %234 : i32 to index
      %236 = memref.load %arg2[%235] : memref<256xi32, #tpu.memory_space<smem>>
      %c64_i32_78 = arith.constant 64 : i32
      %237 = arith.muli %55, %c64_i32_78 : i32
      %238 = arith.addi %237, %c16_i32 : i32
      %c0_i32_79 = arith.constant 0 : i32
      %239 = tpu.memref_slice %arg6[%236, %c0_i32_79] : memref<512x128xf32, #tpu.memory_space<any>> -> memref<1x128xf32, #tpu.memory_space<any>>
      %240 = tpu.memref_squeeze %239 : memref<1x128xf32, #tpu.memory_space<any>> -> memref<128xf32, #tpu.memory_space<any>>
      %c0_i32_80 = arith.constant 0 : i32
      %241 = tpu.memref_slice %arg8[%238, %c0_i32_80] : memref<128x128xf32, #tpu.memory_space<vmem>> -> memref<1x128xf32, #tpu.memory_space<vmem>>
      %242 = tpu.memref_squeeze %241 : memref<1x128xf32, #tpu.memory_space<vmem>> -> memref<128xf32, #tpu.memory_space<vmem>>
      %243 = tpu.memref_slice %arg9[%55] : memref<2x!tpu.dma_semaphore, #tpu.memory_space<semaphore_mem>> -> memref<1x!tpu.dma_semaphore, #tpu.memory_space<semaphore_mem>>
      %244 = tpu.memref_squeeze %243 : memref<1x!tpu.dma_semaphore, #tpu.memory_space<semaphore_mem>> -> memref<!tpu.dma_semaphore, #tpu.memory_space<semaphore_mem>>
      tpu.enqueue_dma source(%240 : memref<128xf32, #tpu.memory_space<any>>) target(%242 : memref<128xf32, #tpu.memory_space<vmem>>) target_semaphore(%244 : memref<!tpu.dma_semaphore, #tpu.memory_space<semaphore_mem>>)
      %c17_i32 = arith.constant 17 : i32
      %245 = arith.addi %57, %c17_i32 : i32
      %246 = arith.index_cast %245 : i32 to index
      %247 = memref.load %arg2[%246] : memref<256xi32, #tpu.memory_space<smem>>
      %c64_i32_81 = arith.constant 64 : i32
      %248 = arith.muli %55, %c64_i32_81 : i32
      %249 = arith.addi %248, %c17_i32 : i32
      %c0_i32_82 = arith.constant 0 : i32
      %250 = tpu.memref_slice %arg6[%247, %c0_i32_82] : memref<512x128xf32, #tpu.memory_space<any>> -> memref<1x128xf32, #tpu.memory_space<any>>
      %251 = tpu.memref_squeeze %250 : memref<1x128xf32, #tpu.memory_space<any>> -> memref<128xf32, #tpu.memory_space<any>>
      %c0_i32_83 = arith.constant 0 : i32
      %252 = tpu.memref_slice %arg8[%249, %c0_i32_83] : memref<128x128xf32, #tpu.memory_space<vmem>> -> memref<1x128xf32, #tpu.memory_space<vmem>>
      %253 = tpu.memref_squeeze %252 : memref<1x128xf32, #tpu.memory_space<vmem>> -> memref<128xf32, #tpu.memory_space<vmem>>
      %254 = tpu.memref_slice %arg9[%55] : memref<2x!tpu.dma_semaphore, #tpu.memory_space<semaphore_mem>> -> memref<1x!tpu.dma_semaphore, #tpu.memory_space<semaphore_mem>>
      %255 = tpu.memref_squeeze %254 : memref<1x!tpu.dma_semaphore, #tpu.memory_space<semaphore_mem>> -> memref<!tpu.dma_semaphore, #tpu.memory_space<semaphore_mem>>
      tpu.enqueue_dma source(%251 : memref<128xf32, #tpu.memory_space<any>>) target(%253 : memref<128xf32, #tpu.memory_space<vmem>>) target_semaphore(%255 : memref<!tpu.dma_semaphore, #tpu.memory_space<semaphore_mem>>)
      %c18_i32 = arith.constant 18 : i32
      %256 = arith.addi %57, %c18_i32 : i32
      %257 = arith.index_cast %256 : i32 to index
      %258 = memref.load %arg2[%257] : memref<256xi32, #tpu.memory_space<smem>>
      %c64_i32_84 = arith.constant 64 : i32
      %259 = arith.muli %55, %c64_i32_84 : i32
      %260 = arith.addi %259, %c18_i32 : i32
      %c0_i32_85 = arith.constant 0 : i32
      %261 = tpu.memref_slice %arg6[%258, %c0_i32_85] : memref<512x128xf32, #tpu.memory_space<any>> -> memref<1x128xf32, #tpu.memory_space<any>>
      %262 = tpu.memref_squeeze %261 : memref<1x128xf32, #tpu.memory_space<any>> -> memref<128xf32, #tpu.memory_space<any>>
      %c0_i32_86 = arith.constant 0 : i32
      %263 = tpu.memref_slice %arg8[%260, %c0_i32_86] : memref<128x128xf32, #tpu.memory_space<vmem>> -> memref<1x128xf32, #tpu.memory_space<vmem>>
      %264 = tpu.memref_squeeze %263 : memref<1x128xf32, #tpu.memory_space<vmem>> -> memref<128xf32, #tpu.memory_space<vmem>>
      %265 = tpu.memref_slice %arg9[%55] : memref<2x!tpu.dma_semaphore, #tpu.memory_space<semaphore_mem>> -> memref<1x!tpu.dma_semaphore, #tpu.memory_space<semaphore_mem>>
      %266 = tpu.memref_squeeze %265 : memref<1x!tpu.dma_semaphore, #tpu.memory_space<semaphore_mem>> -> memref<!tpu.dma_semaphore, #tpu.memory_space<semaphore_mem>>
      tpu.enqueue_dma source(%262 : memref<128xf32, #tpu.memory_space<any>>) target(%264 : memref<128xf32, #tpu.memory_space<vmem>>) target_semaphore(%266 : memref<!tpu.dma_semaphore, #tpu.memory_space<semaphore_mem>>)
      %c19_i32 = arith.constant 19 : i32
      %267 = arith.addi %57, %c19_i32 : i32
      %268 = arith.index_cast %267 : i32 to index
      %269 = memref.load %arg2[%268] : memref<256xi32, #tpu.memory_space<smem>>
      %c64_i32_87 = arith.constant 64 : i32
      %270 = arith.muli %55, %c64_i32_87 : i32
      %271 = arith.addi %270, %c19_i32 : i32
      %c0_i32_88 = arith.constant 0 : i32
      %272 = tpu.memref_slice %arg6[%269, %c0_i32_88] : memref<512x128xf32, #tpu.memory_space<any>> -> memref<1x128xf32, #tpu.memory_space<any>>
      %273 = tpu.memref_squeeze %272 : memref<1x128xf32, #tpu.memory_space<any>> -> memref<128xf32, #tpu.memory_space<any>>
      %c0_i32_89 = arith.constant 0 : i32
      %274 = tpu.memref_slice %arg8[%271, %c0_i32_89] : memref<128x128xf32, #tpu.memory_space<vmem>> -> memref<1x128xf32, #tpu.memory_space<vmem>>
      %275 = tpu.memref_squeeze %274 : memref<1x128xf32, #tpu.memory_space<vmem>> -> memref<128xf32, #tpu.memory_space<vmem>>
      %276 = tpu.memref_slice %arg9[%55] : memref<2x!tpu.dma_semaphore, #tpu.memory_space<semaphore_mem>> -> memref<1x!tpu.dma_semaphore, #tpu.memory_space<semaphore_mem>>
      %277 = tpu.memref_squeeze %276 : memref<1x!tpu.dma_semaphore, #tpu.memory_space<semaphore_mem>> -> memref<!tpu.dma_semaphore, #tpu.memory_space<semaphore_mem>>
      tpu.enqueue_dma source(%273 : memref<128xf32, #tpu.memory_space<any>>) target(%275 : memref<128xf32, #tpu.memory_space<vmem>>) target_semaphore(%277 : memref<!tpu.dma_semaphore, #tpu.memory_space<semaphore_mem>>)
      %c20_i32 = arith.constant 20 : i32
      %278 = arith.addi %57, %c20_i32 : i32
      %279 = arith.index_cast %278 : i32 to index
      %280 = memref.load %arg2[%279] : memref<256xi32, #tpu.memory_space<smem>>
      %c64_i32_90 = arith.constant 64 : i32
      %281 = arith.muli %55, %c64_i32_90 : i32
      %282 = arith.addi %281, %c20_i32 : i32
      %c0_i32_91 = arith.constant 0 : i32
      %283 = tpu.memref_slice %arg6[%280, %c0_i32_91] : memref<512x128xf32, #tpu.memory_space<any>> -> memref<1x128xf32, #tpu.memory_space<any>>
      %284 = tpu.memref_squeeze %283 : memref<1x128xf32, #tpu.memory_space<any>> -> memref<128xf32, #tpu.memory_space<any>>
      %c0_i32_92 = arith.constant 0 : i32
      %285 = tpu.memref_slice %arg8[%282, %c0_i32_92] : memref<128x128xf32, #tpu.memory_space<vmem>> -> memref<1x128xf32, #tpu.memory_space<vmem>>
      %286 = tpu.memref_squeeze %285 : memref<1x128xf32, #tpu.memory_space<vmem>> -> memref<128xf32, #tpu.memory_space<vmem>>
      %287 = tpu.memref_slice %arg9[%55] : memref<2x!tpu.dma_semaphore, #tpu.memory_space<semaphore_mem>> -> memref<1x!tpu.dma_semaphore, #tpu.memory_space<semaphore_mem>>
      %288 = tpu.memref_squeeze %287 : memref<1x!tpu.dma_semaphore, #tpu.memory_space<semaphore_mem>> -> memref<!tpu.dma_semaphore, #tpu.memory_space<semaphore_mem>>
      tpu.enqueue_dma source(%284 : memref<128xf32, #tpu.memory_space<any>>) target(%286 : memref<128xf32, #tpu.memory_space<vmem>>) target_semaphore(%288 : memref<!tpu.dma_semaphore, #tpu.memory_space<semaphore_mem>>)
      %c21_i32 = arith.constant 21 : i32
      %289 = arith.addi %57, %c21_i32 : i32
      %290 = arith.index_cast %289 : i32 to index
      %291 = memref.load %arg2[%290] : memref<256xi32, #tpu.memory_space<smem>>
      %c64_i32_93 = arith.constant 64 : i32
      %292 = arith.muli %55, %c64_i32_93 : i32
      %293 = arith.addi %292, %c21_i32 : i32
      %c0_i32_94 = arith.constant 0 : i32
      %294 = tpu.memref_slice %arg6[%291, %c0_i32_94] : memref<512x128xf32, #tpu.memory_space<any>> -> memref<1x128xf32, #tpu.memory_space<any>>
      %295 = tpu.memref_squeeze %294 : memref<1x128xf32, #tpu.memory_space<any>> -> memref<128xf32, #tpu.memory_space<any>>
      %c0_i32_95 = arith.constant 0 : i32
      %296 = tpu.memref_slice %arg8[%293, %c0_i32_95] : memref<128x128xf32, #tpu.memory_space<vmem>> -> memref<1x128xf32, #tpu.memory_space<vmem>>
      %297 = tpu.memref_squeeze %296 : memref<1x128xf32, #tpu.memory_space<vmem>> -> memref<128xf32, #tpu.memory_space<vmem>>
      %298 = tpu.memref_slice %arg9[%55] : memref<2x!tpu.dma_semaphore, #tpu.memory_space<semaphore_mem>> -> memref<1x!tpu.dma_semaphore, #tpu.memory_space<semaphore_mem>>
      %299 = tpu.memref_squeeze %298 : memref<1x!tpu.dma_semaphore, #tpu.memory_space<semaphore_mem>> -> memref<!tpu.dma_semaphore, #tpu.memory_space<semaphore_mem>>
      tpu.enqueue_dma source(%295 : memref<128xf32, #tpu.memory_space<any>>) target(%297 : memref<128xf32, #tpu.memory_space<vmem>>) target_semaphore(%299 : memref<!tpu.dma_semaphore, #tpu.memory_space<semaphore_mem>>)
      %c22_i32 = arith.constant 22 : i32
      %300 = arith.addi %57, %c22_i32 : i32
      %301 = arith.index_cast %300 : i32 to index
      %302 = memref.load %arg2[%301] : memref<256xi32, #tpu.memory_space<smem>>
      %c64_i32_96 = arith.constant 64 : i32
      %303 = arith.muli %55, %c64_i32_96 : i32
      %304 = arith.addi %303, %c22_i32 : i32
      %c0_i32_97 = arith.constant 0 : i32
      %305 = tpu.memref_slice %arg6[%302, %c0_i32_97] : memref<512x128xf32, #tpu.memory_space<any>> -> memref<1x128xf32, #tpu.memory_space<any>>
      %306 = tpu.memref_squeeze %305 : memref<1x128xf32, #tpu.memory_space<any>> -> memref<128xf32, #tpu.memory_space<any>>
      %c0_i32_98 = arith.constant 0 : i32
      %307 = tpu.memref_slice %arg8[%304, %c0_i32_98] : memref<128x128xf32, #tpu.memory_space<vmem>> -> memref<1x128xf32, #tpu.memory_space<vmem>>
      %308 = tpu.memref_squeeze %307 : memref<1x128xf32, #tpu.memory_space<vmem>> -> memref<128xf32, #tpu.memory_space<vmem>>
      %309 = tpu.memref_slice %arg9[%55] : memref<2x!tpu.dma_semaphore, #tpu.memory_space<semaphore_mem>> -> memref<1x!tpu.dma_semaphore, #tpu.memory_space<semaphore_mem>>
      %310 = tpu.memref_squeeze %309 : memref<1x!tpu.dma_semaphore, #tpu.memory_space<semaphore_mem>> -> memref<!tpu.dma_semaphore, #tpu.memory_space<semaphore_mem>>
      tpu.enqueue_dma source(%306 : memref<128xf32, #tpu.memory_space<any>>) target(%308 : memref<128xf32, #tpu.memory_space<vmem>>) target_semaphore(%310 : memref<!tpu.dma_semaphore, #tpu.memory_space<semaphore_mem>>)
      %c23_i32 = arith.constant 23 : i32
      %311 = arith.addi %57, %c23_i32 : i32
      %312 = arith.index_cast %311 : i32 to index
      %313 = memref.load %arg2[%312] : memref<256xi32, #tpu.memory_space<smem>>
      %c64_i32_99 = arith.constant 64 : i32
      %314 = arith.muli %55, %c64_i32_99 : i32
      %315 = arith.addi %314, %c23_i32 : i32
      %c0_i32_100 = arith.constant 0 : i32
      %316 = tpu.memref_slice %arg6[%313, %c0_i32_100] : memref<512x128xf32, #tpu.memory_space<any>> -> memref<1x128xf32, #tpu.memory_space<any>>
      %317 = tpu.memref_squeeze %316 : memref<1x128xf32, #tpu.memory_space<any>> -> memref<128xf32, #tpu.memory_space<any>>
      %c0_i32_101 = arith.constant 0 : i32
      %318 = tpu.memref_slice %arg8[%315, %c0_i32_101] : memref<128x128xf32, #tpu.memory_space<vmem>> -> memref<1x128xf32, #tpu.memory_space<vmem>>
      %319 = tpu.memref_squeeze %318 : memref<1x128xf32, #tpu.memory_space<vmem>> -> memref<128xf32, #tpu.memory_space<vmem>>
      %320 = tpu.memref_slice %arg9[%55] : memref<2x!tpu.dma_semaphore, #tpu.memory_space<semaphore_mem>> -> memref<1x!tpu.dma_semaphore, #tpu.memory_space<semaphore_mem>>
      %321 = tpu.memref_squeeze %320 : memref<1x!tpu.dma_semaphore, #tpu.memory_space<semaphore_mem>> -> memref<!tpu.dma_semaphore, #tpu.memory_space<semaphore_mem>>
      tpu.enqueue_dma source(%317 : memref<128xf32, #tpu.memory_space<any>>) target(%319 : memref<128xf32, #tpu.memory_space<vmem>>) target_semaphore(%321 : memref<!tpu.dma_semaphore, #tpu.memory_space<semaphore_mem>>)
      %c24_i32 = arith.constant 24 : i32
      %322 = arith.addi %57, %c24_i32 : i32
      %323 = arith.index_cast %322 : i32 to index
      %324 = memref.load %arg2[%323] : memref<256xi32, #tpu.memory_space<smem>>
      %c64_i32_102 = arith.constant 64 : i32
      %325 = arith.muli %55, %c64_i32_102 : i32
      %326 = arith.addi %325, %c24_i32 : i32
      %c0_i32_103 = arith.constant 0 : i32
      %327 = tpu.memref_slice %arg6[%324, %c0_i32_103] : memref<512x128xf32, #tpu.memory_space<any>> -> memref<1x128xf32, #tpu.memory_space<any>>
      %328 = tpu.memref_squeeze %327 : memref<1x128xf32, #tpu.memory_space<any>> -> memref<128xf32, #tpu.memory_space<any>>
      %c0_i32_104 = arith.constant 0 : i32
      %329 = tpu.memref_slice %arg8[%326, %c0_i32_104] : memref<128x128xf32, #tpu.memory_space<vmem>> -> memref<1x128xf32, #tpu.memory_space<vmem>>
      %330 = tpu.memref_squeeze %329 : memref<1x128xf32, #tpu.memory_space<vmem>> -> memref<128xf32, #tpu.memory_space<vmem>>
      %331 = tpu.memref_slice %arg9[%55] : memref<2x!tpu.dma_semaphore, #tpu.memory_space<semaphore_mem>> -> memref<1x!tpu.dma_semaphore, #tpu.memory_space<semaphore_mem>>
      %332 = tpu.memref_squeeze %331 : memref<1x!tpu.dma_semaphore, #tpu.memory_space<semaphore_mem>> -> memref<!tpu.dma_semaphore, #tpu.memory_space<semaphore_mem>>
      tpu.enqueue_dma source(%328 : memref<128xf32, #tpu.memory_space<any>>) target(%330 : memref<128xf32, #tpu.memory_space<vmem>>) target_semaphore(%332 : memref<!tpu.dma_semaphore, #tpu.memory_space<semaphore_mem>>)
      %c25_i32 = arith.constant 25 : i32
      %333 = arith.addi %57, %c25_i32 : i32
      %334 = arith.index_cast %333 : i32 to index
      %335 = memref.load %arg2[%334] : memref<256xi32, #tpu.memory_space<smem>>
      %c64_i32_105 = arith.constant 64 : i32
      %336 = arith.muli %55, %c64_i32_105 : i32
      %337 = arith.addi %336, %c25_i32 : i32
      %c0_i32_106 = arith.constant 0 : i32
      %338 = tpu.memref_slice %arg6[%335, %c0_i32_106] : memref<512x128xf32, #tpu.memory_space<any>> -> memref<1x128xf32, #tpu.memory_space<any>>
      %339 = tpu.memref_squeeze %338 : memref<1x128xf32, #tpu.memory_space<any>> -> memref<128xf32, #tpu.memory_space<any>>
      %c0_i32_107 = arith.constant 0 : i32
      %340 = tpu.memref_slice %arg8[%337, %c0_i32_107] : memref<128x128xf32, #tpu.memory_space<vmem>> -> memref<1x128xf32, #tpu.memory_space<vmem>>
      %341 = tpu.memref_squeeze %340 : memref<1x128xf32, #tpu.memory_space<vmem>> -> memref<128xf32, #tpu.memory_space<vmem>>
      %342 = tpu.memref_slice %arg9[%55] : memref<2x!tpu.dma_semaphore, #tpu.memory_space<semaphore_mem>> -> memref<1x!tpu.dma_semaphore, #tpu.memory_space<semaphore_mem>>
      %343 = tpu.memref_squeeze %342 : memref<1x!tpu.dma_semaphore, #tpu.memory_space<semaphore_mem>> -> memref<!tpu.dma_semaphore, #tpu.memory_space<semaphore_mem>>
      tpu.enqueue_dma source(%339 : memref<128xf32, #tpu.memory_space<any>>) target(%341 : memref<128xf32, #tpu.memory_space<vmem>>) target_semaphore(%343 : memref<!tpu.dma_semaphore, #tpu.memory_space<semaphore_mem>>)
      %c26_i32 = arith.constant 26 : i32
      %344 = arith.addi %57, %c26_i32 : i32
      %345 = arith.index_cast %344 : i32 to index
      %346 = memref.load %arg2[%345] : memref<256xi32, #tpu.memory_space<smem>>
      %c64_i32_108 = arith.constant 64 : i32
      %347 = arith.muli %55, %c64_i32_108 : i32
      %348 = arith.addi %347, %c26_i32 : i32
      %c0_i32_109 = arith.constant 0 : i32
      %349 = tpu.memref_slice %arg6[%346, %c0_i32_109] : memref<512x128xf32, #tpu.memory_space<any>> -> memref<1x128xf32, #tpu.memory_space<any>>
      %350 = tpu.memref_squeeze %349 : memref<1x128xf32, #tpu.memory_space<any>> -> memref<128xf32, #tpu.memory_space<any>>
      %c0_i32_110 = arith.constant 0 : i32
      %351 = tpu.memref_slice %arg8[%348, %c0_i32_110] : memref<128x128xf32, #tpu.memory_space<vmem>> -> memref<1x128xf32, #tpu.memory_space<vmem>>
      %352 = tpu.memref_squeeze %351 : memref<1x128xf32, #tpu.memory_space<vmem>> -> memref<128xf32, #tpu.memory_space<vmem>>
      %353 = tpu.memref_slice %arg9[%55] : memref<2x!tpu.dma_semaphore, #tpu.memory_space<semaphore_mem>> -> memref<1x!tpu.dma_semaphore, #tpu.memory_space<semaphore_mem>>
      %354 = tpu.memref_squeeze %353 : memref<1x!tpu.dma_semaphore, #tpu.memory_space<semaphore_mem>> -> memref<!tpu.dma_semaphore, #tpu.memory_space<semaphore_mem>>
      tpu.enqueue_dma source(%350 : memref<128xf32, #tpu.memory_space<any>>) target(%352 : memref<128xf32, #tpu.memory_space<vmem>>) target_semaphore(%354 : memref<!tpu.dma_semaphore, #tpu.memory_space<semaphore_mem>>)
      %c27_i32 = arith.constant 27 : i32
      %355 = arith.addi %57, %c27_i32 : i32
      %356 = arith.index_cast %355 : i32 to index
      %357 = memref.load %arg2[%356] : memref<256xi32, #tpu.memory_space<smem>>
      %c64_i32_111 = arith.constant 64 : i32
      %358 = arith.muli %55, %c64_i32_111 : i32
      %359 = arith.addi %358, %c27_i32 : i32
      %c0_i32_112 = arith.constant 0 : i32
      %360 = tpu.memref_slice %arg6[%357, %c0_i32_112] : memref<512x128xf32, #tpu.memory_space<any>> -> memref<1x128xf32, #tpu.memory_space<any>>
      %361 = tpu.memref_squeeze %360 : memref<1x128xf32, #tpu.memory_space<any>> -> memref<128xf32, #tpu.memory_space<any>>
      %c0_i32_113 = arith.constant 0 : i32
      %362 = tpu.memref_slice %arg8[%359, %c0_i32_113] : memref<128x128xf32, #tpu.memory_space<vmem>> -> memref<1x128xf32, #tpu.memory_space<vmem>>
      %363 = tpu.memref_squeeze %362 : memref<1x128xf32, #tpu.memory_space<vmem>> -> memref<128xf32, #tpu.memory_space<vmem>>
      %364 = tpu.memref_slice %arg9[%55] : memref<2x!tpu.dma_semaphore, #tpu.memory_space<semaphore_mem>> -> memref<1x!tpu.dma_semaphore, #tpu.memory_space<semaphore_mem>>
      %365 = tpu.memref_squeeze %364 : memref<1x!tpu.dma_semaphore, #tpu.memory_space<semaphore_mem>> -> memref<!tpu.dma_semaphore, #tpu.memory_space<semaphore_mem>>
      tpu.enqueue_dma source(%361 : memref<128xf32, #tpu.memory_space<any>>) target(%363 : memref<128xf32, #tpu.memory_space<vmem>>) target_semaphore(%365 : memref<!tpu.dma_semaphore, #tpu.memory_space<semaphore_mem>>)
      %c28_i32 = arith.constant 28 : i32
      %366 = arith.addi %57, %c28_i32 : i32
      %367 = arith.index_cast %366 : i32 to index
      %368 = memref.load %arg2[%367] : memref<256xi32, #tpu.memory_space<smem>>
      %c64_i32_114 = arith.constant 64 : i32
      %369 = arith.muli %55, %c64_i32_114 : i32
      %370 = arith.addi %369, %c28_i32 : i32
      %c0_i32_115 = arith.constant 0 : i32
      %371 = tpu.memref_slice %arg6[%368, %c0_i32_115] : memref<512x128xf32, #tpu.memory_space<any>> -> memref<1x128xf32, #tpu.memory_space<any>>
      %372 = tpu.memref_squeeze %371 : memref<1x128xf32, #tpu.memory_space<any>> -> memref<128xf32, #tpu.memory_space<any>>
      %c0_i32_116 = arith.constant 0 : i32
      %373 = tpu.memref_slice %arg8[%370, %c0_i32_116] : memref<128x128xf32, #tpu.memory_space<vmem>> -> memref<1x128xf32, #tpu.memory_space<vmem>>
      %374 = tpu.memref_squeeze %373 : memref<1x128xf32, #tpu.memory_space<vmem>> -> memref<128xf32, #tpu.memory_space<vmem>>
      %375 = tpu.memref_slice %arg9[%55] : memref<2x!tpu.dma_semaphore, #tpu.memory_space<semaphore_mem>> -> memref<1x!tpu.dma_semaphore, #tpu.memory_space<semaphore_mem>>
      %376 = tpu.memref_squeeze %375 : memref<1x!tpu.dma_semaphore, #tpu.memory_space<semaphore_mem>> -> memref<!tpu.dma_semaphore, #tpu.memory_space<semaphore_mem>>
      tpu.enqueue_dma source(%372 : memref<128xf32, #tpu.memory_space<any>>) target(%374 : memref<128xf32, #tpu.memory_space<vmem>>) target_semaphore(%376 : memref<!tpu.dma_semaphore, #tpu.memory_space<semaphore_mem>>)
      %c29_i32 = arith.constant 29 : i32
      %377 = arith.addi %57, %c29_i32 : i32
      %378 = arith.index_cast %377 : i32 to index
      %379 = memref.load %arg2[%378] : memref<256xi32, #tpu.memory_space<smem>>
      %c64_i32_117 = arith.constant 64 : i32
      %380 = arith.muli %55, %c64_i32_117 : i32
      %381 = arith.addi %380, %c29_i32 : i32
      %c0_i32_118 = arith.constant 0 : i32
      %382 = tpu.memref_slice %arg6[%379, %c0_i32_118] : memref<512x128xf32, #tpu.memory_space<any>> -> memref<1x128xf32, #tpu.memory_space<any>>
      %383 = tpu.memref_squeeze %382 : memref<1x128xf32, #tpu.memory_space<any>> -> memref<128xf32, #tpu.memory_space<any>>
      %c0_i32_119 = arith.constant 0 : i32
      %384 = tpu.memref_slice %arg8[%381, %c0_i32_119] : memref<128x128xf32, #tpu.memory_space<vmem>> -> memref<1x128xf32, #tpu.memory_space<vmem>>
      %385 = tpu.memref_squeeze %384 : memref<1x128xf32, #tpu.memory_space<vmem>> -> memref<128xf32, #tpu.memory_space<vmem>>
      %386 = tpu.memref_slice %arg9[%55] : memref<2x!tpu.dma_semaphore, #tpu.memory_space<semaphore_mem>> -> memref<1x!tpu.dma_semaphore, #tpu.memory_space<semaphore_mem>>
      %387 = tpu.memref_squeeze %386 : memref<1x!tpu.dma_semaphore, #tpu.memory_space<semaphore_mem>> -> memref<!tpu.dma_semaphore, #tpu.memory_space<semaphore_mem>>
      tpu.enqueue_dma source(%383 : memref<128xf32, #tpu.memory_space<any>>) target(%385 : memref<128xf32, #tpu.memory_space<vmem>>) target_semaphore(%387 : memref<!tpu.dma_semaphore, #tpu.memory_space<semaphore_mem>>)
      %c30_i32 = arith.constant 30 : i32
      %388 = arith.addi %57, %c30_i32 : i32
      %389 = arith.index_cast %388 : i32 to index
      %390 = memref.load %arg2[%389] : memref<256xi32, #tpu.memory_space<smem>>
      %c64_i32_120 = arith.constant 64 : i32
      %391 = arith.muli %55, %c64_i32_120 : i32
      %392 = arith.addi %391, %c30_i32 : i32
      %c0_i32_121 = arith.constant 0 : i32
      %393 = tpu.memref_slice %arg6[%390, %c0_i32_121] : memref<512x128xf32, #tpu.memory_space<any>> -> memref<1x128xf32, #tpu.memory_space<any>>
      %394 = tpu.memref_squeeze %393 : memref<1x128xf32, #tpu.memory_space<any>> -> memref<128xf32, #tpu.memory_space<any>>
      %c0_i32_122 = arith.constant 0 : i32
      %395 = tpu.memref_slice %arg8[%392, %c0_i32_122] : memref<128x128xf32, #tpu.memory_space<vmem>> -> memref<1x128xf32, #tpu.memory_space<vmem>>
      %396 = tpu.memref_squeeze %395 : memref<1x128xf32, #tpu.memory_space<vmem>> -> memref<128xf32, #tpu.memory_space<vmem>>
      %397 = tpu.memref_slice %arg9[%55] : memref<2x!tpu.dma_semaphore, #tpu.memory_space<semaphore_mem>> -> memref<1x!tpu.dma_semaphore, #tpu.memory_space<semaphore_mem>>
      %398 = tpu.memref_squeeze %397 : memref<1x!tpu.dma_semaphore, #tpu.memory_space<semaphore_mem>> -> memref<!tpu.dma_semaphore, #tpu.memory_space<semaphore_mem>>
      tpu.enqueue_dma source(%394 : memref<128xf32, #tpu.memory_space<any>>) target(%396 : memref<128xf32, #tpu.memory_space<vmem>>) target_semaphore(%398 : memref<!tpu.dma_semaphore, #tpu.memory_space<semaphore_mem>>)
      %c31_i32 = arith.constant 31 : i32
      %399 = arith.addi %57, %c31_i32 : i32
      %400 = arith.index_cast %399 : i32 to index
      %401 = memref.load %arg2[%400] : memref<256xi32, #tpu.memory_space<smem>>
      %c64_i32_123 = arith.constant 64 : i32
      %402 = arith.muli %55, %c64_i32_123 : i32
      %403 = arith.addi %402, %c31_i32 : i32
      %c0_i32_124 = arith.constant 0 : i32
      %404 = tpu.memref_slice %arg6[%401, %c0_i32_124] : memref<512x128xf32, #tpu.memory_space<any>> -> memref<1x128xf32, #tpu.memory_space<any>>
      %405 = tpu.memref_squeeze %404 : memref<1x128xf32, #tpu.memory_space<any>> -> memref<128xf32, #tpu.memory_space<any>>
      %c0_i32_125 = arith.constant 0 : i32
      %406 = tpu.memref_slice %arg8[%403, %c0_i32_125] : memref<128x128xf32, #tpu.memory_space<vmem>> -> memref<1x128xf32, #tpu.memory_space<vmem>>
      %407 = tpu.memref_squeeze %406 : memref<1x128xf32, #tpu.memory_space<vmem>> -> memref<128xf32, #tpu.memory_space<vmem>>
      %408 = tpu.memref_slice %arg9[%55] : memref<2x!tpu.dma_semaphore, #tpu.memory_space<semaphore_mem>> -> memref<1x!tpu.dma_semaphore, #tpu.memory_space<semaphore_mem>>
      %409 = tpu.memref_squeeze %408 : memref<1x!tpu.dma_semaphore, #tpu.memory_space<semaphore_mem>> -> memref<!tpu.dma_semaphore, #tpu.memory_space<semaphore_mem>>
      tpu.enqueue_dma source(%405 : memref<128xf32, #tpu.memory_space<any>>) target(%407 : memref<128xf32, #tpu.memory_space<vmem>>) target_semaphore(%409 : memref<!tpu.dma_semaphore, #tpu.memory_space<semaphore_mem>>)
      %c32_i32 = arith.constant 32 : i32
      %410 = arith.addi %57, %c32_i32 : i32
      %411 = arith.index_cast %410 : i32 to index
      %412 = memref.load %arg2[%411] : memref<256xi32, #tpu.memory_space<smem>>
      %c64_i32_126 = arith.constant 64 : i32
      %413 = arith.muli %55, %c64_i32_126 : i32
      %414 = arith.addi %413, %c32_i32 : i32
      %c0_i32_127 = arith.constant 0 : i32
      %415 = tpu.memref_slice %arg6[%412, %c0_i32_127] : memref<512x128xf32, #tpu.memory_space<any>> -> memref<1x128xf32, #tpu.memory_space<any>>
      %416 = tpu.memref_squeeze %415 : memref<1x128xf32, #tpu.memory_space<any>> -> memref<128xf32, #tpu.memory_space<any>>
      %c0_i32_128 = arith.constant 0 : i32
      %417 = tpu.memref_slice %arg8[%414, %c0_i32_128] : memref<128x128xf32, #tpu.memory_space<vmem>> -> memref<1x128xf32, #tpu.memory_space<vmem>>
      %418 = tpu.memref_squeeze %417 : memref<1x128xf32, #tpu.memory_space<vmem>> -> memref<128xf32, #tpu.memory_space<vmem>>
      %419 = tpu.memref_slice %arg9[%55] : memref<2x!tpu.dma_semaphore, #tpu.memory_space<semaphore_mem>> -> memref<1x!tpu.dma_semaphore, #tpu.memory_space<semaphore_mem>>
      %420 = tpu.memref_squeeze %419 : memref<1x!tpu.dma_semaphore, #tpu.memory_space<semaphore_mem>> -> memref<!tpu.dma_semaphore, #tpu.memory_space<semaphore_mem>>
      tpu.enqueue_dma source(%416 : memref<128xf32, #tpu.memory_space<any>>) target(%418 : memref<128xf32, #tpu.memory_space<vmem>>) target_semaphore(%420 : memref<!tpu.dma_semaphore, #tpu.memory_space<semaphore_mem>>)
      %c33_i32 = arith.constant 33 : i32
      %421 = arith.addi %57, %c33_i32 : i32
      %422 = arith.index_cast %421 : i32 to index
      %423 = memref.load %arg2[%422] : memref<256xi32, #tpu.memory_space<smem>>
      %c64_i32_129 = arith.constant 64 : i32
      %424 = arith.muli %55, %c64_i32_129 : i32
      %425 = arith.addi %424, %c33_i32 : i32
      %c0_i32_130 = arith.constant 0 : i32
      %426 = tpu.memref_slice %arg6[%423, %c0_i32_130] : memref<512x128xf32, #tpu.memory_space<any>> -> memref<1x128xf32, #tpu.memory_space<any>>
      %427 = tpu.memref_squeeze %426 : memref<1x128xf32, #tpu.memory_space<any>> -> memref<128xf32, #tpu.memory_space<any>>
      %c0_i32_131 = arith.constant 0 : i32
      %428 = tpu.memref_slice %arg8[%425, %c0_i32_131] : memref<128x128xf32, #tpu.memory_space<vmem>> -> memref<1x128xf32, #tpu.memory_space<vmem>>
      %429 = tpu.memref_squeeze %428 : memref<1x128xf32, #tpu.memory_space<vmem>> -> memref<128xf32, #tpu.memory_space<vmem>>
      %430 = tpu.memref_slice %arg9[%55] : memref<2x!tpu.dma_semaphore, #tpu.memory_space<semaphore_mem>> -> memref<1x!tpu.dma_semaphore, #tpu.memory_space<semaphore_mem>>
      %431 = tpu.memref_squeeze %430 : memref<1x!tpu.dma_semaphore, #tpu.memory_space<semaphore_mem>> -> memref<!tpu.dma_semaphore, #tpu.memory_space<semaphore_mem>>
      tpu.enqueue_dma source(%427 : memref<128xf32, #tpu.memory_space<any>>) target(%429 : memref<128xf32, #tpu.memory_space<vmem>>) target_semaphore(%431 : memref<!tpu.dma_semaphore, #tpu.memory_space<semaphore_mem>>)
      %c34_i32 = arith.constant 34 : i32
      %432 = arith.addi %57, %c34_i32 : i32
      %433 = arith.index_cast %432 : i32 to index
      %434 = memref.load %arg2[%433] : memref<256xi32, #tpu.memory_space<smem>>
      %c64_i32_132 = arith.constant 64 : i32
      %435 = arith.muli %55, %c64_i32_132 : i32
      %436 = arith.addi %435, %c34_i32 : i32
      %c0_i32_133 = arith.constant 0 : i32
      %437 = tpu.memref_slice %arg6[%434, %c0_i32_133] : memref<512x128xf32, #tpu.memory_space<any>> -> memref<1x128xf32, #tpu.memory_space<any>>
      %438 = tpu.memref_squeeze %437 : memref<1x128xf32, #tpu.memory_space<any>> -> memref<128xf32, #tpu.memory_space<any>>
      %c0_i32_134 = arith.constant 0 : i32
      %439 = tpu.memref_slice %arg8[%436, %c0_i32_134] : memref<128x128xf32, #tpu.memory_space<vmem>> -> memref<1x128xf32, #tpu.memory_space<vmem>>
      %440 = tpu.memref_squeeze %439 : memref<1x128xf32, #tpu.memory_space<vmem>> -> memref<128xf32, #tpu.memory_space<vmem>>
      %441 = tpu.memref_slice %arg9[%55] : memref<2x!tpu.dma_semaphore, #tpu.memory_space<semaphore_mem>> -> memref<1x!tpu.dma_semaphore, #tpu.memory_space<semaphore_mem>>
      %442 = tpu.memref_squeeze %441 : memref<1x!tpu.dma_semaphore, #tpu.memory_space<semaphore_mem>> -> memref<!tpu.dma_semaphore, #tpu.memory_space<semaphore_mem>>
      tpu.enqueue_dma source(%438 : memref<128xf32, #tpu.memory_space<any>>) target(%440 : memref<128xf32, #tpu.memory_space<vmem>>) target_semaphore(%442 : memref<!tpu.dma_semaphore, #tpu.memory_space<semaphore_mem>>)
      %c35_i32 = arith.constant 35 : i32
      %443 = arith.addi %57, %c35_i32 : i32
      %444 = arith.index_cast %443 : i32 to index
      %445 = memref.load %arg2[%444] : memref<256xi32, #tpu.memory_space<smem>>
      %c64_i32_135 = arith.constant 64 : i32
      %446 = arith.muli %55, %c64_i32_135 : i32
      %447 = arith.addi %446, %c35_i32 : i32
      %c0_i32_136 = arith.constant 0 : i32
      %448 = tpu.memref_slice %arg6[%445, %c0_i32_136] : memref<512x128xf32, #tpu.memory_space<any>> -> memref<1x128xf32, #tpu.memory_space<any>>
      %449 = tpu.memref_squeeze %448 : memref<1x128xf32, #tpu.memory_space<any>> -> memref<128xf32, #tpu.memory_space<any>>
      %c0_i32_137 = arith.constant 0 : i32
      %450 = tpu.memref_slice %arg8[%447, %c0_i32_137] : memref<128x128xf32, #tpu.memory_space<vmem>> -> memref<1x128xf32, #tpu.memory_space<vmem>>
      %451 = tpu.memref_squeeze %450 : memref<1x128xf32, #tpu.memory_space<vmem>> -> memref<128xf32, #tpu.memory_space<vmem>>
      %452 = tpu.memref_slice %arg9[%55] : memref<2x!tpu.dma_semaphore, #tpu.memory_space<semaphore_mem>> -> memref<1x!tpu.dma_semaphore, #tpu.memory_space<semaphore_mem>>
      %453 = tpu.memref_squeeze %452 : memref<1x!tpu.dma_semaphore, #tpu.memory_space<semaphore_mem>> -> memref<!tpu.dma_semaphore, #tpu.memory_space<semaphore_mem>>
      tpu.enqueue_dma source(%449 : memref<128xf32, #tpu.memory_space<any>>) target(%451 : memref<128xf32, #tpu.memory_space<vmem>>) target_semaphore(%453 : memref<!tpu.dma_semaphore, #tpu.memory_space<semaphore_mem>>)
      %c36_i32 = arith.constant 36 : i32
      %454 = arith.addi %57, %c36_i32 : i32
      %455 = arith.index_cast %454 : i32 to index
      %456 = memref.load %arg2[%455] : memref<256xi32, #tpu.memory_space<smem>>
      %c64_i32_138 = arith.constant 64 : i32
      %457 = arith.muli %55, %c64_i32_138 : i32
      %458 = arith.addi %457, %c36_i32 : i32
      %c0_i32_139 = arith.constant 0 : i32
      %459 = tpu.memref_slice %arg6[%456, %c0_i32_139] : memref<512x128xf32, #tpu.memory_space<any>> -> memref<1x128xf32, #tpu.memory_space<any>>
      %460 = tpu.memref_squeeze %459 : memref<1x128xf32, #tpu.memory_space<any>> -> memref<128xf32, #tpu.memory_space<any>>
      %c0_i32_140 = arith.constant 0 : i32
      %461 = tpu.memref_slice %arg8[%458, %c0_i32_140] : memref<128x128xf32, #tpu.memory_space<vmem>> -> memref<1x128xf32, #tpu.memory_space<vmem>>
      %462 = tpu.memref_squeeze %461 : memref<1x128xf32, #tpu.memory_space<vmem>> -> memref<128xf32, #tpu.memory_space<vmem>>
      %463 = tpu.memref_slice %arg9[%55] : memref<2x!tpu.dma_semaphore, #tpu.memory_space<semaphore_mem>> -> memref<1x!tpu.dma_semaphore, #tpu.memory_space<semaphore_mem>>
      %464 = tpu.memref_squeeze %463 : memref<1x!tpu.dma_semaphore, #tpu.memory_space<semaphore_mem>> -> memref<!tpu.dma_semaphore, #tpu.memory_space<semaphore_mem>>
      tpu.enqueue_dma source(%460 : memref<128xf32, #tpu.memory_space<any>>) target(%462 : memref<128xf32, #tpu.memory_space<vmem>>) target_semaphore(%464 : memref<!tpu.dma_semaphore, #tpu.memory_space<semaphore_mem>>)
      %c37_i32 = arith.constant 37 : i32
      %465 = arith.addi %57, %c37_i32 : i32
      %466 = arith.index_cast %465 : i32 to index
      %467 = memref.load %arg2[%466] : memref<256xi32, #tpu.memory_space<smem>>
      %c64_i32_141 = arith.constant 64 : i32
      %468 = arith.muli %55, %c64_i32_141 : i32
      %469 = arith.addi %468, %c37_i32 : i32
      %c0_i32_142 = arith.constant 0 : i32
      %470 = tpu.memref_slice %arg6[%467, %c0_i32_142] : memref<512x128xf32, #tpu.memory_space<any>> -> memref<1x128xf32, #tpu.memory_space<any>>
      %471 = tpu.memref_squeeze %470 : memref<1x128xf32, #tpu.memory_space<any>> -> memref<128xf32, #tpu.memory_space<any>>
      %c0_i32_143 = arith.constant 0 : i32
      %472 = tpu.memref_slice %arg8[%469, %c0_i32_143] : memref<128x128xf32, #tpu.memory_space<vmem>> -> memref<1x128xf32, #tpu.memory_space<vmem>>
      %473 = tpu.memref_squeeze %472 : memref<1x128xf32, #tpu.memory_space<vmem>> -> memref<128xf32, #tpu.memory_space<vmem>>
      %474 = tpu.memref_slice %arg9[%55] : memref<2x!tpu.dma_semaphore, #tpu.memory_space<semaphore_mem>> -> memref<1x!tpu.dma_semaphore, #tpu.memory_space<semaphore_mem>>
      %475 = tpu.memref_squeeze %474 : memref<1x!tpu.dma_semaphore, #tpu.memory_space<semaphore_mem>> -> memref<!tpu.dma_semaphore, #tpu.memory_space<semaphore_mem>>
      tpu.enqueue_dma source(%471 : memref<128xf32, #tpu.memory_space<any>>) target(%473 : memref<128xf32, #tpu.memory_space<vmem>>) target_semaphore(%475 : memref<!tpu.dma_semaphore, #tpu.memory_space<semaphore_mem>>)
      %c38_i32 = arith.constant 38 : i32
      %476 = arith.addi %57, %c38_i32 : i32
      %477 = arith.index_cast %476 : i32 to index
      %478 = memref.load %arg2[%477] : memref<256xi32, #tpu.memory_space<smem>>
      %c64_i32_144 = arith.constant 64 : i32
      %479 = arith.muli %55, %c64_i32_144 : i32
      %480 = arith.addi %479, %c38_i32 : i32
      %c0_i32_145 = arith.constant 0 : i32
      %481 = tpu.memref_slice %arg6[%478, %c0_i32_145] : memref<512x128xf32, #tpu.memory_space<any>> -> memref<1x128xf32, #tpu.memory_space<any>>
      %482 = tpu.memref_squeeze %481 : memref<1x128xf32, #tpu.memory_space<any>> -> memref<128xf32, #tpu.memory_space<any>>
      %c0_i32_146 = arith.constant 0 : i32
      %483 = tpu.memref_slice %arg8[%480, %c0_i32_146] : memref<128x128xf32, #tpu.memory_space<vmem>> -> memref<1x128xf32, #tpu.memory_space<vmem>>
      %484 = tpu.memref_squeeze %483 : memref<1x128xf32, #tpu.memory_space<vmem>> -> memref<128xf32, #tpu.memory_space<vmem>>
      %485 = tpu.memref_slice %arg9[%55] : memref<2x!tpu.dma_semaphore, #tpu.memory_space<semaphore_mem>> -> memref<1x!tpu.dma_semaphore, #tpu.memory_space<semaphore_mem>>
      %486 = tpu.memref_squeeze %485 : memref<1x!tpu.dma_semaphore, #tpu.memory_space<semaphore_mem>> -> memref<!tpu.dma_semaphore, #tpu.memory_space<semaphore_mem>>
      tpu.enqueue_dma source(%482 : memref<128xf32, #tpu.memory_space<any>>) target(%484 : memref<128xf32, #tpu.memory_space<vmem>>) target_semaphore(%486 : memref<!tpu.dma_semaphore, #tpu.memory_space<semaphore_mem>>)
      %c39_i32 = arith.constant 39 : i32
      %487 = arith.addi %57, %c39_i32 : i32
      %488 = arith.index_cast %487 : i32 to index
      %489 = memref.load %arg2[%488] : memref<256xi32, #tpu.memory_space<smem>>
      %c64_i32_147 = arith.constant 64 : i32
      %490 = arith.muli %55, %c64_i32_147 : i32
      %491 = arith.addi %490, %c39_i32 : i32
      %c0_i32_148 = arith.constant 0 : i32
      %492 = tpu.memref_slice %arg6[%489, %c0_i32_148] : memref<512x128xf32, #tpu.memory_space<any>> -> memref<1x128xf32, #tpu.memory_space<any>>
      %493 = tpu.memref_squeeze %492 : memref<1x128xf32, #tpu.memory_space<any>> -> memref<128xf32, #tpu.memory_space<any>>
      %c0_i32_149 = arith.constant 0 : i32
      %494 = tpu.memref_slice %arg8[%491, %c0_i32_149] : memref<128x128xf32, #tpu.memory_space<vmem>> -> memref<1x128xf32, #tpu.memory_space<vmem>>
      %495 = tpu.memref_squeeze %494 : memref<1x128xf32, #tpu.memory_space<vmem>> -> memref<128xf32, #tpu.memory_space<vmem>>
      %496 = tpu.memref_slice %arg9[%55] : memref<2x!tpu.dma_semaphore, #tpu.memory_space<semaphore_mem>> -> memref<1x!tpu.dma_semaphore, #tpu.memory_space<semaphore_mem>>
      %497 = tpu.memref_squeeze %496 : memref<1x!tpu.dma_semaphore, #tpu.memory_space<semaphore_mem>> -> memref<!tpu.dma_semaphore, #tpu.memory_space<semaphore_mem>>
      tpu.enqueue_dma source(%493 : memref<128xf32, #tpu.memory_space<any>>) target(%495 : memref<128xf32, #tpu.memory_space<vmem>>) target_semaphore(%497 : memref<!tpu.dma_semaphore, #tpu.memory_space<semaphore_mem>>)
      %c40_i32 = arith.constant 40 : i32
      %498 = arith.addi %57, %c40_i32 : i32
      %499 = arith.index_cast %498 : i32 to index
      %500 = memref.load %arg2[%499] : memref<256xi32, #tpu.memory_space<smem>>
      %c64_i32_150 = arith.constant 64 : i32
      %501 = arith.muli %55, %c64_i32_150 : i32
      %502 = arith.addi %501, %c40_i32 : i32
      %c0_i32_151 = arith.constant 0 : i32
      %503 = tpu.memref_slice %arg6[%500, %c0_i32_151] : memref<512x128xf32, #tpu.memory_space<any>> -> memref<1x128xf32, #tpu.memory_space<any>>
      %504 = tpu.memref_squeeze %503 : memref<1x128xf32, #tpu.memory_space<any>> -> memref<128xf32, #tpu.memory_space<any>>
      %c0_i32_152 = arith.constant 0 : i32
      %505 = tpu.memref_slice %arg8[%502, %c0_i32_152] : memref<128x128xf32, #tpu.memory_space<vmem>> -> memref<1x128xf32, #tpu.memory_space<vmem>>
      %506 = tpu.memref_squeeze %505 : memref<1x128xf32, #tpu.memory_space<vmem>> -> memref<128xf32, #tpu.memory_space<vmem>>
      %507 = tpu.memref_slice %arg9[%55] : memref<2x!tpu.dma_semaphore, #tpu.memory_space<semaphore_mem>> -> memref<1x!tpu.dma_semaphore, #tpu.memory_space<semaphore_mem>>
      %508 = tpu.memref_squeeze %507 : memref<1x!tpu.dma_semaphore, #tpu.memory_space<semaphore_mem>> -> memref<!tpu.dma_semaphore, #tpu.memory_space<semaphore_mem>>
      tpu.enqueue_dma source(%504 : memref<128xf32, #tpu.memory_space<any>>) target(%506 : memref<128xf32, #tpu.memory_space<vmem>>) target_semaphore(%508 : memref<!tpu.dma_semaphore, #tpu.memory_space<semaphore_mem>>)
      %c41_i32 = arith.constant 41 : i32
      %509 = arith.addi %57, %c41_i32 : i32
      %510 = arith.index_cast %509 : i32 to index
      %511 = memref.load %arg2[%510] : memref<256xi32, #tpu.memory_space<smem>>
      %c64_i32_153 = arith.constant 64 : i32
      %512 = arith.muli %55, %c64_i32_153 : i32
      %513 = arith.addi %512, %c41_i32 : i32
      %c0_i32_154 = arith.constant 0 : i32
      %514 = tpu.memref_slice %arg6[%511, %c0_i32_154] : memref<512x128xf32, #tpu.memory_space<any>> -> memref<1x128xf32, #tpu.memory_space<any>>
      %515 = tpu.memref_squeeze %514 : memref<1x128xf32, #tpu.memory_space<any>> -> memref<128xf32, #tpu.memory_space<any>>
      %c0_i32_155 = arith.constant 0 : i32
      %516 = tpu.memref_slice %arg8[%513, %c0_i32_155] : memref<128x128xf32, #tpu.memory_space<vmem>> -> memref<1x128xf32, #tpu.memory_space<vmem>>
      %517 = tpu.memref_squeeze %516 : memref<1x128xf32, #tpu.memory_space<vmem>> -> memref<128xf32, #tpu.memory_space<vmem>>
      %518 = tpu.memref_slice %arg9[%55] : memref<2x!tpu.dma_semaphore, #tpu.memory_space<semaphore_mem>> -> memref<1x!tpu.dma_semaphore, #tpu.memory_space<semaphore_mem>>
      %519 = tpu.memref_squeeze %518 : memref<1x!tpu.dma_semaphore, #tpu.memory_space<semaphore_mem>> -> memref<!tpu.dma_semaphore, #tpu.memory_space<semaphore_mem>>
      tpu.enqueue_dma source(%515 : memref<128xf32, #tpu.memory_space<any>>) target(%517 : memref<128xf32, #tpu.memory_space<vmem>>) target_semaphore(%519 : memref<!tpu.dma_semaphore, #tpu.memory_space<semaphore_mem>>)
      %c42_i32 = arith.constant 42 : i32
      %520 = arith.addi %57, %c42_i32 : i32
      %521 = arith.index_cast %520 : i32 to index
      %522 = memref.load %arg2[%521] : memref<256xi32, #tpu.memory_space<smem>>
      %c64_i32_156 = arith.constant 64 : i32
      %523 = arith.muli %55, %c64_i32_156 : i32
      %524 = arith.addi %523, %c42_i32 : i32
      %c0_i32_157 = arith.constant 0 : i32
      %525 = tpu.memref_slice %arg6[%522, %c0_i32_157] : memref<512x128xf32, #tpu.memory_space<any>> -> memref<1x128xf32, #tpu.memory_space<any>>
      %526 = tpu.memref_squeeze %525 : memref<1x128xf32, #tpu.memory_space<any>> -> memref<128xf32, #tpu.memory_space<any>>
      %c0_i32_158 = arith.constant 0 : i32
      %527 = tpu.memref_slice %arg8[%524, %c0_i32_158] : memref<128x128xf32, #tpu.memory_space<vmem>> -> memref<1x128xf32, #tpu.memory_space<vmem>>
      %528 = tpu.memref_squeeze %527 : memref<1x128xf32, #tpu.memory_space<vmem>> -> memref<128xf32, #tpu.memory_space<vmem>>
      %529 = tpu.memref_slice %arg9[%55] : memref<2x!tpu.dma_semaphore, #tpu.memory_space<semaphore_mem>> -> memref<1x!tpu.dma_semaphore, #tpu.memory_space<semaphore_mem>>
      %530 = tpu.memref_squeeze %529 : memref<1x!tpu.dma_semaphore, #tpu.memory_space<semaphore_mem>> -> memref<!tpu.dma_semaphore, #tpu.memory_space<semaphore_mem>>
      tpu.enqueue_dma source(%526 : memref<128xf32, #tpu.memory_space<any>>) target(%528 : memref<128xf32, #tpu.memory_space<vmem>>) target_semaphore(%530 : memref<!tpu.dma_semaphore, #tpu.memory_space<semaphore_mem>>)
      %c43_i32 = arith.constant 43 : i32
      %531 = arith.addi %57, %c43_i32 : i32
      %532 = arith.index_cast %531 : i32 to index
      %533 = memref.load %arg2[%532] : memref<256xi32, #tpu.memory_space<smem>>
      %c64_i32_159 = arith.constant 64 : i32
      %534 = arith.muli %55, %c64_i32_159 : i32
      %535 = arith.addi %534, %c43_i32 : i32
      %c0_i32_160 = arith.constant 0 : i32
      %536 = tpu.memref_slice %arg6[%533, %c0_i32_160] : memref<512x128xf32, #tpu.memory_space<any>> -> memref<1x128xf32, #tpu.memory_space<any>>
      %537 = tpu.memref_squeeze %536 : memref<1x128xf32, #tpu.memory_space<any>> -> memref<128xf32, #tpu.memory_space<any>>
      %c0_i32_161 = arith.constant 0 : i32
      %538 = tpu.memref_slice %arg8[%535, %c0_i32_161] : memref<128x128xf32, #tpu.memory_space<vmem>> -> memref<1x128xf32, #tpu.memory_space<vmem>>
      %539 = tpu.memref_squeeze %538 : memref<1x128xf32, #tpu.memory_space<vmem>> -> memref<128xf32, #tpu.memory_space<vmem>>
      %540 = tpu.memref_slice %arg9[%55] : memref<2x!tpu.dma_semaphore, #tpu.memory_space<semaphore_mem>> -> memref<1x!tpu.dma_semaphore, #tpu.memory_space<semaphore_mem>>
      %541 = tpu.memref_squeeze %540 : memref<1x!tpu.dma_semaphore, #tpu.memory_space<semaphore_mem>> -> memref<!tpu.dma_semaphore, #tpu.memory_space<semaphore_mem>>
      tpu.enqueue_dma source(%537 : memref<128xf32, #tpu.memory_space<any>>) target(%539 : memref<128xf32, #tpu.memory_space<vmem>>) target_semaphore(%541 : memref<!tpu.dma_semaphore, #tpu.memory_space<semaphore_mem>>)
      %c44_i32 = arith.constant 44 : i32
      %542 = arith.addi %57, %c44_i32 : i32
      %543 = arith.index_cast %542 : i32 to index
      %544 = memref.load %arg2[%543] : memref<256xi32, #tpu.memory_space<smem>>
      %c64_i32_162 = arith.constant 64 : i32
      %545 = arith.muli %55, %c64_i32_162 : i32
      %546 = arith.addi %545, %c44_i32 : i32
      %c0_i32_163 = arith.constant 0 : i32
      %547 = tpu.memref_slice %arg6[%544, %c0_i32_163] : memref<512x128xf32, #tpu.memory_space<any>> -> memref<1x128xf32, #tpu.memory_space<any>>
      %548 = tpu.memref_squeeze %547 : memref<1x128xf32, #tpu.memory_space<any>> -> memref<128xf32, #tpu.memory_space<any>>
      %c0_i32_164 = arith.constant 0 : i32
      %549 = tpu.memref_slice %arg8[%546, %c0_i32_164] : memref<128x128xf32, #tpu.memory_space<vmem>> -> memref<1x128xf32, #tpu.memory_space<vmem>>
      %550 = tpu.memref_squeeze %549 : memref<1x128xf32, #tpu.memory_space<vmem>> -> memref<128xf32, #tpu.memory_space<vmem>>
      %551 = tpu.memref_slice %arg9[%55] : memref<2x!tpu.dma_semaphore, #tpu.memory_space<semaphore_mem>> -> memref<1x!tpu.dma_semaphore, #tpu.memory_space<semaphore_mem>>
      %552 = tpu.memref_squeeze %551 : memref<1x!tpu.dma_semaphore, #tpu.memory_space<semaphore_mem>> -> memref<!tpu.dma_semaphore, #tpu.memory_space<semaphore_mem>>
      tpu.enqueue_dma source(%548 : memref<128xf32, #tpu.memory_space<any>>) target(%550 : memref<128xf32, #tpu.memory_space<vmem>>) target_semaphore(%552 : memref<!tpu.dma_semaphore, #tpu.memory_space<semaphore_mem>>)
      %c45_i32 = arith.constant 45 : i32
      %553 = arith.addi %57, %c45_i32 : i32
      %554 = arith.index_cast %553 : i32 to index
      %555 = memref.load %arg2[%554] : memref<256xi32, #tpu.memory_space<smem>>
      %c64_i32_165 = arith.constant 64 : i32
      %556 = arith.muli %55, %c64_i32_165 : i32
      %557 = arith.addi %556, %c45_i32 : i32
      %c0_i32_166 = arith.constant 0 : i32
      %558 = tpu.memref_slice %arg6[%555, %c0_i32_166] : memref<512x128xf32, #tpu.memory_space<any>> -> memref<1x128xf32, #tpu.memory_space<any>>
      %559 = tpu.memref_squeeze %558 : memref<1x128xf32, #tpu.memory_space<any>> -> memref<128xf32, #tpu.memory_space<any>>
      %c0_i32_167 = arith.constant 0 : i32
      %560 = tpu.memref_slice %arg8[%557, %c0_i32_167] : memref<128x128xf32, #tpu.memory_space<vmem>> -> memref<1x128xf32, #tpu.memory_space<vmem>>
      %561 = tpu.memref_squeeze %560 : memref<1x128xf32, #tpu.memory_space<vmem>> -> memref<128xf32, #tpu.memory_space<vmem>>
      %562 = tpu.memref_slice %arg9[%55] : memref<2x!tpu.dma_semaphore, #tpu.memory_space<semaphore_mem>> -> memref<1x!tpu.dma_semaphore, #tpu.memory_space<semaphore_mem>>
      %563 = tpu.memref_squeeze %562 : memref<1x!tpu.dma_semaphore, #tpu.memory_space<semaphore_mem>> -> memref<!tpu.dma_semaphore, #tpu.memory_space<semaphore_mem>>
      tpu.enqueue_dma source(%559 : memref<128xf32, #tpu.memory_space<any>>) target(%561 : memref<128xf32, #tpu.memory_space<vmem>>) target_semaphore(%563 : memref<!tpu.dma_semaphore, #tpu.memory_space<semaphore_mem>>)
      %c46_i32 = arith.constant 46 : i32
      %564 = arith.addi %57, %c46_i32 : i32
      %565 = arith.index_cast %564 : i32 to index
      %566 = memref.load %arg2[%565] : memref<256xi32, #tpu.memory_space<smem>>
      %c64_i32_168 = arith.constant 64 : i32
      %567 = arith.muli %55, %c64_i32_168 : i32
      %568 = arith.addi %567, %c46_i32 : i32
      %c0_i32_169 = arith.constant 0 : i32
      %569 = tpu.memref_slice %arg6[%566, %c0_i32_169] : memref<512x128xf32, #tpu.memory_space<any>> -> memref<1x128xf32, #tpu.memory_space<any>>
      %570 = tpu.memref_squeeze %569 : memref<1x128xf32, #tpu.memory_space<any>> -> memref<128xf32, #tpu.memory_space<any>>
      %c0_i32_170 = arith.constant 0 : i32
      %571 = tpu.memref_slice %arg8[%568, %c0_i32_170] : memref<128x128xf32, #tpu.memory_space<vmem>> -> memref<1x128xf32, #tpu.memory_space<vmem>>
      %572 = tpu.memref_squeeze %571 : memref<1x128xf32, #tpu.memory_space<vmem>> -> memref<128xf32, #tpu.memory_space<vmem>>
      %573 = tpu.memref_slice %arg9[%55] : memref<2x!tpu.dma_semaphore, #tpu.memory_space<semaphore_mem>> -> memref<1x!tpu.dma_semaphore, #tpu.memory_space<semaphore_mem>>
      %574 = tpu.memref_squeeze %573 : memref<1x!tpu.dma_semaphore, #tpu.memory_space<semaphore_mem>> -> memref<!tpu.dma_semaphore, #tpu.memory_space<semaphore_mem>>
      tpu.enqueue_dma source(%570 : memref<128xf32, #tpu.memory_space<any>>) target(%572 : memref<128xf32, #tpu.memory_space<vmem>>) target_semaphore(%574 : memref<!tpu.dma_semaphore, #tpu.memory_space<semaphore_mem>>)
      %c47_i32 = arith.constant 47 : i32
      %575 = arith.addi %57, %c47_i32 : i32
      %576 = arith.index_cast %575 : i32 to index
      %577 = memref.load %arg2[%576] : memref<256xi32, #tpu.memory_space<smem>>
      %c64_i32_171 = arith.constant 64 : i32
      %578 = arith.muli %55, %c64_i32_171 : i32
      %579 = arith.addi %578, %c47_i32 : i32
      %c0_i32_172 = arith.constant 0 : i32
      %580 = tpu.memref_slice %arg6[%577, %c0_i32_172] : memref<512x128xf32, #tpu.memory_space<any>> -> memref<1x128xf32, #tpu.memory_space<any>>
      %581 = tpu.memref_squeeze %580 : memref<1x128xf32, #tpu.memory_space<any>> -> memref<128xf32, #tpu.memory_space<any>>
      %c0_i32_173 = arith.constant 0 : i32
      %582 = tpu.memref_slice %arg8[%579, %c0_i32_173] : memref<128x128xf32, #tpu.memory_space<vmem>> -> memref<1x128xf32, #tpu.memory_space<vmem>>
      %583 = tpu.memref_squeeze %582 : memref<1x128xf32, #tpu.memory_space<vmem>> -> memref<128xf32, #tpu.memory_space<vmem>>
      %584 = tpu.memref_slice %arg9[%55] : memref<2x!tpu.dma_semaphore, #tpu.memory_space<semaphore_mem>> -> memref<1x!tpu.dma_semaphore, #tpu.memory_space<semaphore_mem>>
      %585 = tpu.memref_squeeze %584 : memref<1x!tpu.dma_semaphore, #tpu.memory_space<semaphore_mem>> -> memref<!tpu.dma_semaphore, #tpu.memory_space<semaphore_mem>>
      tpu.enqueue_dma source(%581 : memref<128xf32, #tpu.memory_space<any>>) target(%583 : memref<128xf32, #tpu.memory_space<vmem>>) target_semaphore(%585 : memref<!tpu.dma_semaphore, #tpu.memory_space<semaphore_mem>>)
      %c48_i32 = arith.constant 48 : i32
      %586 = arith.addi %57, %c48_i32 : i32
      %587 = arith.index_cast %586 : i32 to index
      %588 = memref.load %arg2[%587] : memref<256xi32, #tpu.memory_space<smem>>
      %c64_i32_174 = arith.constant 64 : i32
      %589 = arith.muli %55, %c64_i32_174 : i32
      %590 = arith.addi %589, %c48_i32 : i32
      %c0_i32_175 = arith.constant 0 : i32
      %591 = tpu.memref_slice %arg6[%588, %c0_i32_175] : memref<512x128xf32, #tpu.memory_space<any>> -> memref<1x128xf32, #tpu.memory_space<any>>
      %592 = tpu.memref_squeeze %591 : memref<1x128xf32, #tpu.memory_space<any>> -> memref<128xf32, #tpu.memory_space<any>>
      %c0_i32_176 = arith.constant 0 : i32
      %593 = tpu.memref_slice %arg8[%590, %c0_i32_176] : memref<128x128xf32, #tpu.memory_space<vmem>> -> memref<1x128xf32, #tpu.memory_space<vmem>>
      %594 = tpu.memref_squeeze %593 : memref<1x128xf32, #tpu.memory_space<vmem>> -> memref<128xf32, #tpu.memory_space<vmem>>
      %595 = tpu.memref_slice %arg9[%55] : memref<2x!tpu.dma_semaphore, #tpu.memory_space<semaphore_mem>> -> memref<1x!tpu.dma_semaphore, #tpu.memory_space<semaphore_mem>>
      %596 = tpu.memref_squeeze %595 : memref<1x!tpu.dma_semaphore, #tpu.memory_space<semaphore_mem>> -> memref<!tpu.dma_semaphore, #tpu.memory_space<semaphore_mem>>
      tpu.enqueue_dma source(%592 : memref<128xf32, #tpu.memory_space<any>>) target(%594 : memref<128xf32, #tpu.memory_space<vmem>>) target_semaphore(%596 : memref<!tpu.dma_semaphore, #tpu.memory_space<semaphore_mem>>)
      %c49_i32 = arith.constant 49 : i32
      %597 = arith.addi %57, %c49_i32 : i32
      %598 = arith.index_cast %597 : i32 to index
      %599 = memref.load %arg2[%598] : memref<256xi32, #tpu.memory_space<smem>>
      %c64_i32_177 = arith.constant 64 : i32
      %600 = arith.muli %55, %c64_i32_177 : i32
      %601 = arith.addi %600, %c49_i32 : i32
      %c0_i32_178 = arith.constant 0 : i32
      %602 = tpu.memref_slice %arg6[%599, %c0_i32_178] : memref<512x128xf32, #tpu.memory_space<any>> -> memref<1x128xf32, #tpu.memory_space<any>>
      %603 = tpu.memref_squeeze %602 : memref<1x128xf32, #tpu.memory_space<any>> -> memref<128xf32, #tpu.memory_space<any>>
      %c0_i32_179 = arith.constant 0 : i32
      %604 = tpu.memref_slice %arg8[%601, %c0_i32_179] : memref<128x128xf32, #tpu.memory_space<vmem>> -> memref<1x128xf32, #tpu.memory_space<vmem>>
      %605 = tpu.memref_squeeze %604 : memref<1x128xf32, #tpu.memory_space<vmem>> -> memref<128xf32, #tpu.memory_space<vmem>>
      %606 = tpu.memref_slice %arg9[%55] : memref<2x!tpu.dma_semaphore, #tpu.memory_space<semaphore_mem>> -> memref<1x!tpu.dma_semaphore, #tpu.memory_space<semaphore_mem>>
      %607 = tpu.memref_squeeze %606 : memref<1x!tpu.dma_semaphore, #tpu.memory_space<semaphore_mem>> -> memref<!tpu.dma_semaphore, #tpu.memory_space<semaphore_mem>>
      tpu.enqueue_dma source(%603 : memref<128xf32, #tpu.memory_space<any>>) target(%605 : memref<128xf32, #tpu.memory_space<vmem>>) target_semaphore(%607 : memref<!tpu.dma_semaphore, #tpu.memory_space<semaphore_mem>>)
      %c50_i32 = arith.constant 50 : i32
      %608 = arith.addi %57, %c50_i32 : i32
      %609 = arith.index_cast %608 : i32 to index
      %610 = memref.load %arg2[%609] : memref<256xi32, #tpu.memory_space<smem>>
      %c64_i32_180 = arith.constant 64 : i32
      %611 = arith.muli %55, %c64_i32_180 : i32
      %612 = arith.addi %611, %c50_i32 : i32
      %c0_i32_181 = arith.constant 0 : i32
      %613 = tpu.memref_slice %arg6[%610, %c0_i32_181] : memref<512x128xf32, #tpu.memory_space<any>> -> memref<1x128xf32, #tpu.memory_space<any>>
      %614 = tpu.memref_squeeze %613 : memref<1x128xf32, #tpu.memory_space<any>> -> memref<128xf32, #tpu.memory_space<any>>
      %c0_i32_182 = arith.constant 0 : i32
      %615 = tpu.memref_slice %arg8[%612, %c0_i32_182] : memref<128x128xf32, #tpu.memory_space<vmem>> -> memref<1x128xf32, #tpu.memory_space<vmem>>
      %616 = tpu.memref_squeeze %615 : memref<1x128xf32, #tpu.memory_space<vmem>> -> memref<128xf32, #tpu.memory_space<vmem>>
      %617 = tpu.memref_slice %arg9[%55] : memref<2x!tpu.dma_semaphore, #tpu.memory_space<semaphore_mem>> -> memref<1x!tpu.dma_semaphore, #tpu.memory_space<semaphore_mem>>
      %618 = tpu.memref_squeeze %617 : memref<1x!tpu.dma_semaphore, #tpu.memory_space<semaphore_mem>> -> memref<!tpu.dma_semaphore, #tpu.memory_space<semaphore_mem>>
      tpu.enqueue_dma source(%614 : memref<128xf32, #tpu.memory_space<any>>) target(%616 : memref<128xf32, #tpu.memory_space<vmem>>) target_semaphore(%618 : memref<!tpu.dma_semaphore, #tpu.memory_space<semaphore_mem>>)
      %c51_i32 = arith.constant 51 : i32
      %619 = arith.addi %57, %c51_i32 : i32
      %620 = arith.index_cast %619 : i32 to index
      %621 = memref.load %arg2[%620] : memref<256xi32, #tpu.memory_space<smem>>
      %c64_i32_183 = arith.constant 64 : i32
      %622 = arith.muli %55, %c64_i32_183 : i32
      %623 = arith.addi %622, %c51_i32 : i32
      %c0_i32_184 = arith.constant 0 : i32
      %624 = tpu.memref_slice %arg6[%621, %c0_i32_184] : memref<512x128xf32, #tpu.memory_space<any>> -> memref<1x128xf32, #tpu.memory_space<any>>
      %625 = tpu.memref_squeeze %624 : memref<1x128xf32, #tpu.memory_space<any>> -> memref<128xf32, #tpu.memory_space<any>>
      %c0_i32_185 = arith.constant 0 : i32
      %626 = tpu.memref_slice %arg8[%623, %c0_i32_185] : memref<128x128xf32, #tpu.memory_space<vmem>> -> memref<1x128xf32, #tpu.memory_space<vmem>>
      %627 = tpu.memref_squeeze %626 : memref<1x128xf32, #tpu.memory_space<vmem>> -> memref<128xf32, #tpu.memory_space<vmem>>
      %628 = tpu.memref_slice %arg9[%55] : memref<2x!tpu.dma_semaphore, #tpu.memory_space<semaphore_mem>> -> memref<1x!tpu.dma_semaphore, #tpu.memory_space<semaphore_mem>>
      %629 = tpu.memref_squeeze %628 : memref<1x!tpu.dma_semaphore, #tpu.memory_space<semaphore_mem>> -> memref<!tpu.dma_semaphore, #tpu.memory_space<semaphore_mem>>
      tpu.enqueue_dma source(%625 : memref<128xf32, #tpu.memory_space<any>>) target(%627 : memref<128xf32, #tpu.memory_space<vmem>>) target_semaphore(%629 : memref<!tpu.dma_semaphore, #tpu.memory_space<semaphore_mem>>)
      %c52_i32 = arith.constant 52 : i32
      %630 = arith.addi %57, %c52_i32 : i32
      %631 = arith.index_cast %630 : i32 to index
      %632 = memref.load %arg2[%631] : memref<256xi32, #tpu.memory_space<smem>>
      %c64_i32_186 = arith.constant 64 : i32
      %633 = arith.muli %55, %c64_i32_186 : i32
      %634 = arith.addi %633, %c52_i32 : i32
      %c0_i32_187 = arith.constant 0 : i32
      %635 = tpu.memref_slice %arg6[%632, %c0_i32_187] : memref<512x128xf32, #tpu.memory_space<any>> -> memref<1x128xf32, #tpu.memory_space<any>>
      %636 = tpu.memref_squeeze %635 : memref<1x128xf32, #tpu.memory_space<any>> -> memref<128xf32, #tpu.memory_space<any>>
      %c0_i32_188 = arith.constant 0 : i32
      %637 = tpu.memref_slice %arg8[%634, %c0_i32_188] : memref<128x128xf32, #tpu.memory_space<vmem>> -> memref<1x128xf32, #tpu.memory_space<vmem>>
      %638 = tpu.memref_squeeze %637 : memref<1x128xf32, #tpu.memory_space<vmem>> -> memref<128xf32, #tpu.memory_space<vmem>>
      %639 = tpu.memref_slice %arg9[%55] : memref<2x!tpu.dma_semaphore, #tpu.memory_space<semaphore_mem>> -> memref<1x!tpu.dma_semaphore, #tpu.memory_space<semaphore_mem>>
      %640 = tpu.memref_squeeze %639 : memref<1x!tpu.dma_semaphore, #tpu.memory_space<semaphore_mem>> -> memref<!tpu.dma_semaphore, #tpu.memory_space<semaphore_mem>>
      tpu.enqueue_dma source(%636 : memref<128xf32, #tpu.memory_space<any>>) target(%638 : memref<128xf32, #tpu.memory_space<vmem>>) target_semaphore(%640 : memref<!tpu.dma_semaphore, #tpu.memory_space<semaphore_mem>>)
      %c53_i32 = arith.constant 53 : i32
      %641 = arith.addi %57, %c53_i32 : i32
      %642 = arith.index_cast %641 : i32 to index
      %643 = memref.load %arg2[%642] : memref<256xi32, #tpu.memory_space<smem>>
      %c64_i32_189 = arith.constant 64 : i32
      %644 = arith.muli %55, %c64_i32_189 : i32
      %645 = arith.addi %644, %c53_i32 : i32
      %c0_i32_190 = arith.constant 0 : i32
      %646 = tpu.memref_slice %arg6[%643, %c0_i32_190] : memref<512x128xf32, #tpu.memory_space<any>> -> memref<1x128xf32, #tpu.memory_space<any>>
      %647 = tpu.memref_squeeze %646 : memref<1x128xf32, #tpu.memory_space<any>> -> memref<128xf32, #tpu.memory_space<any>>
      %c0_i32_191 = arith.constant 0 : i32
      %648 = tpu.memref_slice %arg8[%645, %c0_i32_191] : memref<128x128xf32, #tpu.memory_space<vmem>> -> memref<1x128xf32, #tpu.memory_space<vmem>>
      %649 = tpu.memref_squeeze %648 : memref<1x128xf32, #tpu.memory_space<vmem>> -> memref<128xf32, #tpu.memory_space<vmem>>
      %650 = tpu.memref_slice %arg9[%55] : memref<2x!tpu.dma_semaphore, #tpu.memory_space<semaphore_mem>> -> memref<1x!tpu.dma_semaphore, #tpu.memory_space<semaphore_mem>>
      %651 = tpu.memref_squeeze %650 : memref<1x!tpu.dma_semaphore, #tpu.memory_space<semaphore_mem>> -> memref<!tpu.dma_semaphore, #tpu.memory_space<semaphore_mem>>
      tpu.enqueue_dma source(%647 : memref<128xf32, #tpu.memory_space<any>>) target(%649 : memref<128xf32, #tpu.memory_space<vmem>>) target_semaphore(%651 : memref<!tpu.dma_semaphore, #tpu.memory_space<semaphore_mem>>)
      %c54_i32 = arith.constant 54 : i32
      %652 = arith.addi %57, %c54_i32 : i32
      %653 = arith.index_cast %652 : i32 to index
      %654 = memref.load %arg2[%653] : memref<256xi32, #tpu.memory_space<smem>>
      %c64_i32_192 = arith.constant 64 : i32
      %655 = arith.muli %55, %c64_i32_192 : i32
      %656 = arith.addi %655, %c54_i32 : i32
      %c0_i32_193 = arith.constant 0 : i32
      %657 = tpu.memref_slice %arg6[%654, %c0_i32_193] : memref<512x128xf32, #tpu.memory_space<any>> -> memref<1x128xf32, #tpu.memory_space<any>>
      %658 = tpu.memref_squeeze %657 : memref<1x128xf32, #tpu.memory_space<any>> -> memref<128xf32, #tpu.memory_space<any>>
      %c0_i32_194 = arith.constant 0 : i32
      %659 = tpu.memref_slice %arg8[%656, %c0_i32_194] : memref<128x128xf32, #tpu.memory_space<vmem>> -> memref<1x128xf32, #tpu.memory_space<vmem>>
      %660 = tpu.memref_squeeze %659 : memref<1x128xf32, #tpu.memory_space<vmem>> -> memref<128xf32, #tpu.memory_space<vmem>>
      %661 = tpu.memref_slice %arg9[%55] : memref<2x!tpu.dma_semaphore, #tpu.memory_space<semaphore_mem>> -> memref<1x!tpu.dma_semaphore, #tpu.memory_space<semaphore_mem>>
      %662 = tpu.memref_squeeze %661 : memref<1x!tpu.dma_semaphore, #tpu.memory_space<semaphore_mem>> -> memref<!tpu.dma_semaphore, #tpu.memory_space<semaphore_mem>>
      tpu.enqueue_dma source(%658 : memref<128xf32, #tpu.memory_space<any>>) target(%660 : memref<128xf32, #tpu.memory_space<vmem>>) target_semaphore(%662 : memref<!tpu.dma_semaphore, #tpu.memory_space<semaphore_mem>>)
      %c55_i32 = arith.constant 55 : i32
      %663 = arith.addi %57, %c55_i32 : i32
      %664 = arith.index_cast %663 : i32 to index
      %665 = memref.load %arg2[%664] : memref<256xi32, #tpu.memory_space<smem>>
      %c64_i32_195 = arith.constant 64 : i32
      %666 = arith.muli %55, %c64_i32_195 : i32
      %667 = arith.addi %666, %c55_i32 : i32
      %c0_i32_196 = arith.constant 0 : i32
      %668 = tpu.memref_slice %arg6[%665, %c0_i32_196] : memref<512x128xf32, #tpu.memory_space<any>> -> memref<1x128xf32, #tpu.memory_space<any>>
      %669 = tpu.memref_squeeze %668 : memref<1x128xf32, #tpu.memory_space<any>> -> memref<128xf32, #tpu.memory_space<any>>
      %c0_i32_197 = arith.constant 0 : i32
      %670 = tpu.memref_slice %arg8[%667, %c0_i32_197] : memref<128x128xf32, #tpu.memory_space<vmem>> -> memref<1x128xf32, #tpu.memory_space<vmem>>
      %671 = tpu.memref_squeeze %670 : memref<1x128xf32, #tpu.memory_space<vmem>> -> memref<128xf32, #tpu.memory_space<vmem>>
      %672 = tpu.memref_slice %arg9[%55] : memref<2x!tpu.dma_semaphore, #tpu.memory_space<semaphore_mem>> -> memref<1x!tpu.dma_semaphore, #tpu.memory_space<semaphore_mem>>
      %673 = tpu.memref_squeeze %672 : memref<1x!tpu.dma_semaphore, #tpu.memory_space<semaphore_mem>> -> memref<!tpu.dma_semaphore, #tpu.memory_space<semaphore_mem>>
      tpu.enqueue_dma source(%669 : memref<128xf32, #tpu.memory_space<any>>) target(%671 : memref<128xf32, #tpu.memory_space<vmem>>) target_semaphore(%673 : memref<!tpu.dma_semaphore, #tpu.memory_space<semaphore_mem>>)
      %c56_i32 = arith.constant 56 : i32
      %674 = arith.addi %57, %c56_i32 : i32
      %675 = arith.index_cast %674 : i32 to index
      %676 = memref.load %arg2[%675] : memref<256xi32, #tpu.memory_space<smem>>
      %c64_i32_198 = arith.constant 64 : i32
      %677 = arith.muli %55, %c64_i32_198 : i32
      %678 = arith.addi %677, %c56_i32 : i32
      %c0_i32_199 = arith.constant 0 : i32
      %679 = tpu.memref_slice %arg6[%676, %c0_i32_199] : memref<512x128xf32, #tpu.memory_space<any>> -> memref<1x128xf32, #tpu.memory_space<any>>
      %680 = tpu.memref_squeeze %679 : memref<1x128xf32, #tpu.memory_space<any>> -> memref<128xf32, #tpu.memory_space<any>>
      %c0_i32_200 = arith.constant 0 : i32
      %681 = tpu.memref_slice %arg8[%678, %c0_i32_200] : memref<128x128xf32, #tpu.memory_space<vmem>> -> memref<1x128xf32, #tpu.memory_space<vmem>>
      %682 = tpu.memref_squeeze %681 : memref<1x128xf32, #tpu.memory_space<vmem>> -> memref<128xf32, #tpu.memory_space<vmem>>
      %683 = tpu.memref_slice %arg9[%55] : memref<2x!tpu.dma_semaphore, #tpu.memory_space<semaphore_mem>> -> memref<1x!tpu.dma_semaphore, #tpu.memory_space<semaphore_mem>>
      %684 = tpu.memref_squeeze %683 : memref<1x!tpu.dma_semaphore, #tpu.memory_space<semaphore_mem>> -> memref<!tpu.dma_semaphore, #tpu.memory_space<semaphore_mem>>
      tpu.enqueue_dma source(%680 : memref<128xf32, #tpu.memory_space<any>>) target(%682 : memref<128xf32, #tpu.memory_space<vmem>>) target_semaphore(%684 : memref<!tpu.dma_semaphore, #tpu.memory_space<semaphore_mem>>)
      %c57_i32 = arith.constant 57 : i32
      %685 = arith.addi %57, %c57_i32 : i32
      %686 = arith.index_cast %685 : i32 to index
      %687 = memref.load %arg2[%686] : memref<256xi32, #tpu.memory_space<smem>>
      %c64_i32_201 = arith.constant 64 : i32
      %688 = arith.muli %55, %c64_i32_201 : i32
      %689 = arith.addi %688, %c57_i32 : i32
      %c0_i32_202 = arith.constant 0 : i32
      %690 = tpu.memref_slice %arg6[%687, %c0_i32_202] : memref<512x128xf32, #tpu.memory_space<any>> -> memref<1x128xf32, #tpu.memory_space<any>>
      %691 = tpu.memref_squeeze %690 : memref<1x128xf32, #tpu.memory_space<any>> -> memref<128xf32, #tpu.memory_space<any>>
      %c0_i32_203 = arith.constant 0 : i32
      %692 = tpu.memref_slice %arg8[%689, %c0_i32_203] : memref<128x128xf32, #tpu.memory_space<vmem>> -> memref<1x128xf32, #tpu.memory_space<vmem>>
      %693 = tpu.memref_squeeze %692 : memref<1x128xf32, #tpu.memory_space<vmem>> -> memref<128xf32, #tpu.memory_space<vmem>>
      %694 = tpu.memref_slice %arg9[%55] : memref<2x!tpu.dma_semaphore, #tpu.memory_space<semaphore_mem>> -> memref<1x!tpu.dma_semaphore, #tpu.memory_space<semaphore_mem>>
      %695 = tpu.memref_squeeze %694 : memref<1x!tpu.dma_semaphore, #tpu.memory_space<semaphore_mem>> -> memref<!tpu.dma_semaphore, #tpu.memory_space<semaphore_mem>>
      tpu.enqueue_dma source(%691 : memref<128xf32, #tpu.memory_space<any>>) target(%693 : memref<128xf32, #tpu.memory_space<vmem>>) target_semaphore(%695 : memref<!tpu.dma_semaphore, #tpu.memory_space<semaphore_mem>>)
      %c58_i32 = arith.constant 58 : i32
      %696 = arith.addi %57, %c58_i32 : i32
      %697 = arith.index_cast %696 : i32 to index
      %698 = memref.load %arg2[%697] : memref<256xi32, #tpu.memory_space<smem>>
      %c64_i32_204 = arith.constant 64 : i32
      %699 = arith.muli %55, %c64_i32_204 : i32
      %700 = arith.addi %699, %c58_i32 : i32
      %c0_i32_205 = arith.constant 0 : i32
      %701 = tpu.memref_slice %arg6[%698, %c0_i32_205] : memref<512x128xf32, #tpu.memory_space<any>> -> memref<1x128xf32, #tpu.memory_space<any>>
      %702 = tpu.memref_squeeze %701 : memref<1x128xf32, #tpu.memory_space<any>> -> memref<128xf32, #tpu.memory_space<any>>
      %c0_i32_206 = arith.constant 0 : i32
      %703 = tpu.memref_slice %arg8[%700, %c0_i32_206] : memref<128x128xf32, #tpu.memory_space<vmem>> -> memref<1x128xf32, #tpu.memory_space<vmem>>
      %704 = tpu.memref_squeeze %703 : memref<1x128xf32, #tpu.memory_space<vmem>> -> memref<128xf32, #tpu.memory_space<vmem>>
      %705 = tpu.memref_slice %arg9[%55] : memref<2x!tpu.dma_semaphore, #tpu.memory_space<semaphore_mem>> -> memref<1x!tpu.dma_semaphore, #tpu.memory_space<semaphore_mem>>
      %706 = tpu.memref_squeeze %705 : memref<1x!tpu.dma_semaphore, #tpu.memory_space<semaphore_mem>> -> memref<!tpu.dma_semaphore, #tpu.memory_space<semaphore_mem>>
      tpu.enqueue_dma source(%702 : memref<128xf32, #tpu.memory_space<any>>) target(%704 : memref<128xf32, #tpu.memory_space<vmem>>) target_semaphore(%706 : memref<!tpu.dma_semaphore, #tpu.memory_space<semaphore_mem>>)
      %c59_i32 = arith.constant 59 : i32
      %707 = arith.addi %57, %c59_i32 : i32
      %708 = arith.index_cast %707 : i32 to index
      %709 = memref.load %arg2[%708] : memref<256xi32, #tpu.memory_space<smem>>
      %c64_i32_207 = arith.constant 64 : i32
      %710 = arith.muli %55, %c64_i32_207 : i32
      %711 = arith.addi %710, %c59_i32 : i32
      %c0_i32_208 = arith.constant 0 : i32
      %712 = tpu.memref_slice %arg6[%709, %c0_i32_208] : memref<512x128xf32, #tpu.memory_space<any>> -> memref<1x128xf32, #tpu.memory_space<any>>
      %713 = tpu.memref_squeeze %712 : memref<1x128xf32, #tpu.memory_space<any>> -> memref<128xf32, #tpu.memory_space<any>>
      %c0_i32_209 = arith.constant 0 : i32
      %714 = tpu.memref_slice %arg8[%711, %c0_i32_209] : memref<128x128xf32, #tpu.memory_space<vmem>> -> memref<1x128xf32, #tpu.memory_space<vmem>>
      %715 = tpu.memref_squeeze %714 : memref<1x128xf32, #tpu.memory_space<vmem>> -> memref<128xf32, #tpu.memory_space<vmem>>
      %716 = tpu.memref_slice %arg9[%55] : memref<2x!tpu.dma_semaphore, #tpu.memory_space<semaphore_mem>> -> memref<1x!tpu.dma_semaphore, #tpu.memory_space<semaphore_mem>>
      %717 = tpu.memref_squeeze %716 : memref<1x!tpu.dma_semaphore, #tpu.memory_space<semaphore_mem>> -> memref<!tpu.dma_semaphore, #tpu.memory_space<semaphore_mem>>
      tpu.enqueue_dma source(%713 : memref<128xf32, #tpu.memory_space<any>>) target(%715 : memref<128xf32, #tpu.memory_space<vmem>>) target_semaphore(%717 : memref<!tpu.dma_semaphore, #tpu.memory_space<semaphore_mem>>)
      %c60_i32 = arith.constant 60 : i32
      %718 = arith.addi %57, %c60_i32 : i32
      %719 = arith.index_cast %718 : i32 to index
      %720 = memref.load %arg2[%719] : memref<256xi32, #tpu.memory_space<smem>>
      %c64_i32_210 = arith.constant 64 : i32
      %721 = arith.muli %55, %c64_i32_210 : i32
      %722 = arith.addi %721, %c60_i32 : i32
      %c0_i32_211 = arith.constant 0 : i32
      %723 = tpu.memref_slice %arg6[%720, %c0_i32_211] : memref<512x128xf32, #tpu.memory_space<any>> -> memref<1x128xf32, #tpu.memory_space<any>>
      %724 = tpu.memref_squeeze %723 : memref<1x128xf32, #tpu.memory_space<any>> -> memref<128xf32, #tpu.memory_space<any>>
      %c0_i32_212 = arith.constant 0 : i32
      %725 = tpu.memref_slice %arg8[%722, %c0_i32_212] : memref<128x128xf32, #tpu.memory_space<vmem>> -> memref<1x128xf32, #tpu.memory_space<vmem>>
      %726 = tpu.memref_squeeze %725 : memref<1x128xf32, #tpu.memory_space<vmem>> -> memref<128xf32, #tpu.memory_space<vmem>>
      %727 = tpu.memref_slice %arg9[%55] : memref<2x!tpu.dma_semaphore, #tpu.memory_space<semaphore_mem>> -> memref<1x!tpu.dma_semaphore, #tpu.memory_space<semaphore_mem>>
      %728 = tpu.memref_squeeze %727 : memref<1x!tpu.dma_semaphore, #tpu.memory_space<semaphore_mem>> -> memref<!tpu.dma_semaphore, #tpu.memory_space<semaphore_mem>>
      tpu.enqueue_dma source(%724 : memref<128xf32, #tpu.memory_space<any>>) target(%726 : memref<128xf32, #tpu.memory_space<vmem>>) target_semaphore(%728 : memref<!tpu.dma_semaphore, #tpu.memory_space<semaphore_mem>>)
      %c61_i32 = arith.constant 61 : i32
      %729 = arith.addi %57, %c61_i32 : i32
      %730 = arith.index_cast %729 : i32 to index
      %731 = memref.load %arg2[%730] : memref<256xi32, #tpu.memory_space<smem>>
      %c64_i32_213 = arith.constant 64 : i32
      %732 = arith.muli %55, %c64_i32_213 : i32
      %733 = arith.addi %732, %c61_i32 : i32
      %c0_i32_214 = arith.constant 0 : i32
      %734 = tpu.memref_slice %arg6[%731, %c0_i32_214] : memref<512x128xf32, #tpu.memory_space<any>> -> memref<1x128xf32, #tpu.memory_space<any>>
      %735 = tpu.memref_squeeze %734 : memref<1x128xf32, #tpu.memory_space<any>> -> memref<128xf32, #tpu.memory_space<any>>
      %c0_i32_215 = arith.constant 0 : i32
      %736 = tpu.memref_slice %arg8[%733, %c0_i32_215] : memref<128x128xf32, #tpu.memory_space<vmem>> -> memref<1x128xf32, #tpu.memory_space<vmem>>
      %737 = tpu.memref_squeeze %736 : memref<1x128xf32, #tpu.memory_space<vmem>> -> memref<128xf32, #tpu.memory_space<vmem>>
      %738 = tpu.memref_slice %arg9[%55] : memref<2x!tpu.dma_semaphore, #tpu.memory_space<semaphore_mem>> -> memref<1x!tpu.dma_semaphore, #tpu.memory_space<semaphore_mem>>
      %739 = tpu.memref_squeeze %738 : memref<1x!tpu.dma_semaphore, #tpu.memory_space<semaphore_mem>> -> memref<!tpu.dma_semaphore, #tpu.memory_space<semaphore_mem>>
      tpu.enqueue_dma source(%735 : memref<128xf32, #tpu.memory_space<any>>) target(%737 : memref<128xf32, #tpu.memory_space<vmem>>) target_semaphore(%739 : memref<!tpu.dma_semaphore, #tpu.memory_space<semaphore_mem>>)
      %c62_i32 = arith.constant 62 : i32
      %740 = arith.addi %57, %c62_i32 : i32
      %741 = arith.index_cast %740 : i32 to index
      %742 = memref.load %arg2[%741] : memref<256xi32, #tpu.memory_space<smem>>
      %c64_i32_216 = arith.constant 64 : i32
      %743 = arith.muli %55, %c64_i32_216 : i32
      %744 = arith.addi %743, %c62_i32 : i32
      %c0_i32_217 = arith.constant 0 : i32
      %745 = tpu.memref_slice %arg6[%742, %c0_i32_217] : memref<512x128xf32, #tpu.memory_space<any>> -> memref<1x128xf32, #tpu.memory_space<any>>
      %746 = tpu.memref_squeeze %745 : memref<1x128xf32, #tpu.memory_space<any>> -> memref<128xf32, #tpu.memory_space<any>>
      %c0_i32_218 = arith.constant 0 : i32
      %747 = tpu.memref_slice %arg8[%744, %c0_i32_218] : memref<128x128xf32, #tpu.memory_space<vmem>> -> memref<1x128xf32, #tpu.memory_space<vmem>>
      %748 = tpu.memref_squeeze %747 : memref<1x128xf32, #tpu.memory_space<vmem>> -> memref<128xf32, #tpu.memory_space<vmem>>
      %749 = tpu.memref_slice %arg9[%55] : memref<2x!tpu.dma_semaphore, #tpu.memory_space<semaphore_mem>> -> memref<1x!tpu.dma_semaphore, #tpu.memory_space<semaphore_mem>>
      %750 = tpu.memref_squeeze %749 : memref<1x!tpu.dma_semaphore, #tpu.memory_space<semaphore_mem>> -> memref<!tpu.dma_semaphore, #tpu.memory_space<semaphore_mem>>
      tpu.enqueue_dma source(%746 : memref<128xf32, #tpu.memory_space<any>>) target(%748 : memref<128xf32, #tpu.memory_space<vmem>>) target_semaphore(%750 : memref<!tpu.dma_semaphore, #tpu.memory_space<semaphore_mem>>)
      %c63_i32 = arith.constant 63 : i32
      %751 = arith.addi %57, %c63_i32 : i32
      %752 = arith.index_cast %751 : i32 to index
      %753 = memref.load %arg2[%752] : memref<256xi32, #tpu.memory_space<smem>>
      %c64_i32_219 = arith.constant 64 : i32
      %754 = arith.muli %55, %c64_i32_219 : i32
      %755 = arith.addi %754, %c63_i32 : i32
      %c0_i32_220 = arith.constant 0 : i32
      %756 = tpu.memref_slice %arg6[%753, %c0_i32_220] : memref<512x128xf32, #tpu.memory_space<any>> -> memref<1x128xf32, #tpu.memory_space<any>>
      %757 = tpu.memref_squeeze %756 : memref<1x128xf32, #tpu.memory_space<any>> -> memref<128xf32, #tpu.memory_space<any>>
      %c0_i32_221 = arith.constant 0 : i32
      %758 = tpu.memref_slice %arg8[%755, %c0_i32_221] : memref<128x128xf32, #tpu.memory_space<vmem>> -> memref<1x128xf32, #tpu.memory_space<vmem>>
      %759 = tpu.memref_squeeze %758 : memref<1x128xf32, #tpu.memory_space<vmem>> -> memref<128xf32, #tpu.memory_space<vmem>>
      %760 = tpu.memref_slice %arg9[%55] : memref<2x!tpu.dma_semaphore, #tpu.memory_space<semaphore_mem>> -> memref<1x!tpu.dma_semaphore, #tpu.memory_space<semaphore_mem>>
      %761 = tpu.memref_squeeze %760 : memref<1x!tpu.dma_semaphore, #tpu.memory_space<semaphore_mem>> -> memref<!tpu.dma_semaphore, #tpu.memory_space<semaphore_mem>>
      tpu.enqueue_dma source(%757 : memref<128xf32, #tpu.memory_space<any>>) target(%759 : memref<128xf32, #tpu.memory_space<vmem>>) target_semaphore(%761 : memref<!tpu.dma_semaphore, #tpu.memory_space<semaphore_mem>>)
      %c64_i32_222 = arith.constant 64 : i32
    } else {
    }
    %c64_i32 = arith.constant 64 : i32
    %18 = arith.muli %9, %c64_i32 : i32
    %c0_i32_8 = arith.constant 0 : i32
    %c0_i32_9 = arith.constant 0 : i32
    %19 = tpu.memref_slice %arg6[%c0_i32_8, %c0_i32_9] : memref<512x128xf32, #tpu.memory_space<any>> -> memref<64x128xf32, #tpu.memory_space<any>>
    %c0_i32_10 = arith.constant 0 : i32
    %20 = tpu.memref_slice %arg8[%18, %c0_i32_10] : memref<128x128xf32, #tpu.memory_space<vmem>> -> memref<64x128xf32, #tpu.memory_space<vmem>>
    %21 = tpu.memref_slice %arg9[%9] : memref<2x!tpu.dma_semaphore, #tpu.memory_space<semaphore_mem>> -> memref<1x!tpu.dma_semaphore, #tpu.memory_space<semaphore_mem>>
    %22 = tpu.memref_squeeze %21 : memref<1x!tpu.dma_semaphore, #tpu.memory_space<semaphore_mem>> -> memref<!tpu.dma_semaphore, #tpu.memory_space<semaphore_mem>>
    tpu.wait_dma2 semaphore(%22 : memref<!tpu.dma_semaphore, #tpu.memory_space<semaphore_mem>>) src(%19 : memref<64x128xf32, #tpu.memory_space<any>>) dst(%20 : memref<64x128xf32, #tpu.memory_space<vmem>>)
    %c64_i32_11 = arith.constant 64 : i32
    %23 = arith.muli %9, %c64_i32_11 : i32
    %24 = tpu.assume_multiple %23, 64 : i32
    %25 = arith.index_cast %24 : i32 to index
    %c0 = arith.constant 0 : index
    %26 = vector.load %arg8[%25, %c0] : memref<128x128xf32, #tpu.memory_space<vmem>>, vector<64x128xf32>
    %c0_12 = arith.constant 0 : index
    %c0_13 = arith.constant 0 : index
    %27 = vector.load %arg3[%c0_12, %c0_13] : memref<64x128xf32, #tpu.memory_space<vmem>>, vector<64x128xf32>
    %28 = arith.addf %26, %27 : vector<64x128xf32>
    %c0_14 = arith.constant 0 : index
    %c0_15 = arith.constant 0 : index
    %29 = vector.load %arg5[%c0_14, %c0_15] : memref<2x128xf32, #tpu.memory_space<vmem>>, vector<2x128xf32>
    %c0_16 = arith.constant 0 : index
    %c0_17 = arith.constant 0 : index
    %30 = vector.load %arg4[%c0_16, %c0_17] : memref<64x1xi32, #tpu.memory_space<vmem>>, vector<64x1xi32>
    %cst = arith.constant 0.000000e+00 : f32
    %31 = vector.broadcast %cst : f32 to vector<64x128xf32>
    %c0_i32_18 = arith.constant 0 : i32
    %32 = vector.broadcast %c0_i32_18 : i32 to vector<64x1xi32>
    %33 = arith.cmpi eq, %30, %32 : vector<64x1xi32>
    %34 = vector.extract_strided_slice %29 {offsets = [0, 0], sizes = [1, 128], strides = [1, 1]} : vector<2x128xf32> to vector<1x128xf32>
    %cst_19 = arith.constant 0.000000e+00 : f32
    %35 = vector.shape_cast %33 : vector<64x1xi1> to vector<64x1xi1>
    %36 = vector.broadcast %35 : vector<64x1xi1> to vector<64x128xi1>
    %37 = vector.shape_cast %34 : vector<1x128xf32> to vector<1x128xf32>
    %38 = vector.broadcast %37 : vector<1x128xf32> to vector<64x128xf32>
    %39 = vector.broadcast %cst_19 : f32 to vector<64x128xf32>
    %40 = arith.select %36, %38, %39 : vector<64x128xi1>, vector<64x128xf32>
    %41 = arith.addf %31, %40 : vector<64x128xf32>
    %c1_i32_20 = arith.constant 1 : i32
    %42 = vector.broadcast %c1_i32_20 : i32 to vector<64x1xi32>
    %43 = arith.cmpi eq, %30, %42 : vector<64x1xi32>
    %44 = vector.extract_strided_slice %29 {offsets = [1, 0], sizes = [1, 128], strides = [1, 1]} : vector<2x128xf32> to vector<1x128xf32>
    %cst_21 = arith.constant 0.000000e+00 : f32
    %45 = vector.shape_cast %43 : vector<64x1xi1> to vector<64x1xi1>
    %46 = vector.broadcast %45 : vector<64x1xi1> to vector<64x128xi1>
    %47 = vector.shape_cast %44 : vector<1x128xf32> to vector<1x128xf32>
    %48 = vector.broadcast %47 : vector<1x128xf32> to vector<64x128xf32>
    %49 = vector.broadcast %cst_21 : f32 to vector<64x128xf32>
    %50 = arith.select %46, %48, %49 : vector<64x128xi1>, vector<64x128xf32>
    %51 = arith.addf %41, %50 : vector<64x128xf32>
    %52 = arith.addf %28, %51 : vector<64x128xf32>
    %c0_22 = arith.constant 0 : index
    %c0_23 = arith.constant 0 : index
    %53 = vector.load %arg7[%c0_22, %c0_23] : memref<64x128xf32, #tpu.memory_space<vmem>>, vector<64x128xf32>
    tpu.vector_store %arg7[%c0_22, %c0_23], %52 {strides = array<i32>} : memref<64x128xf32, #tpu.memory_space<vmem>>, vector<64x128xf32>,
    return
  }
  func.func @transform_0(%arg0: i32, %arg1: i32, %arg2: memref<256xi32, #tpu.memory_space<smem>>) -> (i32, i32) {
    %c0_i32 = arith.constant 0 : i32
    %c0_i32_0 = arith.constant 0 : i32
    return %arg1, %c0_i32 : i32, i32
  }
  func.func @transform_1(%arg0: i32, %arg1: i32, %arg2: memref<256xi32, #tpu.memory_space<smem>>) -> (i32, i32) {
    %c2_i32 = arith.constant 2 : i32
    %0 = arith.muli %arg0, %c2_i32 : i32
    %1 = arith.addi %0, %arg1 : i32
    %c0_i32 = arith.constant 0 : i32
    %c0_i32_0 = arith.constant 0 : i32
    return %1, %c0_i32 : i32, i32
  }
  func.func @transform_2(%arg0: i32, %arg1: i32, %arg2: memref<256xi32, #tpu.memory_space<smem>>) -> (i32, i32) {
    %c0_i32 = arith.constant 0 : i32
    %c0_i32_0 = arith.constant 0 : i32
    %c0_i32_1 = arith.constant 0 : i32
    return %c0_i32, %c0_i32_0 : i32, i32
  }
  func.func @transform_4(%arg0: i32, %arg1: i32, %arg2: memref<256xi32, #tpu.memory_space<smem>>) -> (i32, i32) {
    %c2_i32 = arith.constant 2 : i32
    %0 = arith.muli %arg0, %c2_i32 : i32
    %1 = arith.addi %0, %arg1 : i32
    %c0_i32 = arith.constant 0 : i32
    %c0_i32_0 = arith.constant 0 : i32
    return %1, %c0_i32 : i32, i32
  }
}

</mosaic_0001>

<bundles_post_ra>
// kernel: tpu_custom_call.1
= control target key start
LH: loop header
LB: loop body
LE: loop exit
PB: predicated region body
PF: predicated region fallthrough
CT: control target
= control target key end

     0   :  { %s9421_s0 = inlined_call_operand.vmem [shape: s32[256], index: 0, kind: input, shape index: {}]   ;;  %s9422_s1 = inlined_call_operand.vmem [shape: f32[128,128], index: 1, kind: input, shape index: {}]   ;;  %s9423_s2 = inlined_call_operand.vmem [shape: s32[256,1], index: 2, kind: input, shape index: {}]   ;;  %s9424_s3 = inlined_call_operand.vmem [shape: f32[2,128], index: 3, kind: input, shape index: {}]   ;;  %s9425_s4 = inlined_call_operand.hbm [shape: f32[512,128], index: 4, kind: input, shape index: {}]   ;;  %s9426_s5 = inlined_call_operand.hbm [shape: f32[256,128], index: 5, kind: output, shape index: {}]  }
   0x1   :  { %9440 = sst [smem:[#allocation279_spill]] %s9422_s1  ;;  %s10_s20 = sshll.u32 %s9421_s0, 4  ;;  %s11_s20 = int_to_ptr.vmem [resolvable:$true] %s10_s20 }
   0x2   :  { %9441 = sst [smem:[#allocation280_spill]] %s9423_s2  ;;  %s3494_s21 = scalar_lea.vmem %s11_s20, 32 }
   0x3   :  { %9442 = sst [smem:[#allocation281_spill]] %s9426_s5  ;;  %p3495_p0 = scmp.ne.s32.totalorder %s11_s20, %s3494_s21 }
   0x4   :  { %p3499_p1 = scmp.lt.s32.totalorder %s11_s20, %s11_s20  ;;  %p3500_p2 = scmp.lt.s32.totalorder %s3494_s21, %s3494_s21 }
   0x6   :  { %p3501_p3 = por %p3500_p2, %p3499_p1 }
   0x8   :  { %p3502_p4 = pnand %p3501_p3, %p3495_p0 }
   0xa   :  { %3505 = shalt.err (!%p3502_p4)  }
   0xb   :  { %s6678_s22 = smov [#allocation5]  }
   0xc   :  { %13 = dma.vmem_to_smem %s11_s20, 32, %s6678_s22, [#allocation4] }
   0xd   :  { %6638 = dma.done.wait [#allocation4], 32 }
   0xe   :  { %6639 = vsyncadd [#allocation4], 4294967264 }
   0xf   :  { %15 = sfence }
  0x10   :  { %16 = vsyncpa [#allocation7], 0 }
  0x11   :  { %18 = vsyncpa [#allocation7 + $0x1], 0  ;;  %s6781_s23 = smov 0   ;;  %s6783_s24 = smov 0  }
  0x12   :  { %s6785_s0 = smov 0   ;;  %s6787_s25 = smov 0  }
  0x13   :  { %s6789_s26 = smov 0   ;;  %s6791_s27 = smov 0  }
  0x14   :  { %s6793_s28 = smov 0   ;;  %s6795_s29 = smov 0  }
  0x15 LB: > { %9443 = sst [smem:[#allocation269_spill]] %s6648_s23  ;;  %s3127_s30 = sadd.s32 4294967295, %s6676_s29   ;;  %s6676_s29 = sphi %s6795_s29, %s24_s29   ;;  %s6672_s28 = sphi %s6793_s28, %s9470_s28   ;;  %s6668_s27 = sphi %s6791_s27, %s9469_s27   ;;  %s6664_s26 = sphi %s6789_s26, %s9468_s26   ;;  %s6660_s25 = sphi %s6787_s25, %s9467_s25   ;;  %s6656_s0 = sphi %s6785_s0, %s9466_s0   ;;  %s6652_s24 = sphi %s6783_s24, %s9472_s24   ;;  %s6648_s23 = sphi %s6781_s23, %s9471_s23  }
  0x16   : > { %9444 = sst [smem:[#allocation270_spill]] %s6656_s0  ;;  %s33_s6 = sadd.s32 1, %s6668_s27 }
  0x17   : > { %9445 = sst [smem:[#allocation271_spill]] %s6668_s27  ;;  %s36_s7 = sadd.s32 1, %s6672_s28 }
  0x18   : > { %9446 = sst [smem:[#allocation272_spill]] %s6672_s28  ;;  %p34_p5 = scmp.ge.s32.totalorder %s33_s6, 2 }
  0x19   : > { %9447 = sst [smem:[#allocation273_spill]] %s6676_s29  ;;  %s3131_s8 = sshll.u32 %s6672_s28, 1 }
  0x1a   : > { %s3128_s9 = sadd.s32 4294967294, %s6676_s29   ;;  %s118_s10 = sadd.s32 %s6668_s27, %s3131_s8 }
  0x1b   : > { %s9474_s6 = smov (%p34_p5, %s33_s6), 0  ;;  %s9476_s7 = smov (!%p34_p5, %s36_s7), %s6672_s28 }
  0x1c   : > { %9448 = sst [smem:[#allocation274_spill]] %s9474_s6  ;;  %p134_p6 = scmp.ne.s32.totalorder %s6656_s0, %s6652_s24 }
  0x1d   : > { %p135_p7 = scmp.eq.s32.totalorder %s3127_s30, 3  ;;  %p38_p8 = scmp.ge.s32.totalorder %s9476_s7, 2 }
  0x1e   : > { %p140_p9 = scmp.ne.s32.totalorder %s6652_s24, %s6648_s23  ;;  %p141_p11 = scmp.eq.s32.totalorder %s3128_s9, 3 }
  0x1f   : > { %p6834_p10 = por %p135_p7, %p134_p6  ;;  %s9478_s7 = smov (%p38_p8, %s9476_s7), 0 }
  0x20   : > { %9451 = sst [smem:[#allocation276_spill]] %s9478_s7  ;;  %p6840_p12 = por %p141_p11, %p140_p9 }
  0x21   : > { %s9449_s11 = scalar_select %p6834_p10, 1, 0 }
  0x22   : > { %s9452_s12 = scalar_select %p6840_p12, 1, 0 }
  0x23   : > { %9450 = sst [smem:[#allocation275_spill]] %s9449_s11  ;;  %p3135_p13 = scmp.ge.s32.totalorder %s6676_s29, 1 }
  0x24   : > { %9453 = sst [smem:[#allocation277_spill]] %s9452_s12  ;;  %s3132_s13 = sshll.u32 %s9478_s7, 1 }
  0x25   : > { %p184_p0 = scmp.lt.s32.totalorder %s6676_s29, 5  ;;  %s120_s14 = sadd.s32 %s3132_s13, %s9474_s6 }
  0x26   : > { %s124_s15 = sadd.s32 1, %s6656_s0  ;;  %s121_s16 = ssub.s32 %s118_s10, %s120_s14 }
  0x27   : > { %p185_p1 = pnand %p3135_p13, %p184_p0  ;;  %p122_p2 = scmp.eq.s32.totalorder %s121_s16, 0 }
  0x28   : > { %s9427_s18 = sand.u32 (!%p185_p1), 1, %s6652_s24   ;;  %s3137_s19 = sshll.u32 (!%p185_p1), %s6660_s25, 3 }
  0x29   : > { %s6850_s17 = scalar_select %p122_p2, %s6656_s0, %s124_s15  }
  0x2a   : > { %188 = sbr.rel (%p185_p1) target bundleno = 3113 (0xc29), region = 32  ;;  %s3136_s20 = sshll.u32 (!%p185_p1), %s9427_s18, 6 }
  0x2b   : > { %9454 = sst [smem:[#allocation278_spill]] %s6850_s17  ;;  %p216_p3 = scmp.lt.s32.totalorder (!%p185_p1), %s3137_s19, 15 }
  0x2c   : > { %s3139_s21 = sshll.u32 (!%p185_p1), %s6664_s26, 1  ;;  %p234_p4 = scmp.lt.s32.totalorder (!%p185_p1), %s6660_s25, 0 }
  0x2d   : > { %s6858_s22 = sadd.s32 (!%p185_p1), %s6660_s25, %s3139_s21  ;;  %s9455_s1 = sld [smem:[#allocation279_spill]] (!%p185_p1) }
  0x2e   : > { %s3140_s8 = sshll.u32 (!%p185_p1), %s6858_s22, 3  ;;  %s235_s14 = ssub.s32 (!%p185_p1), 0, %s6660_s25 }
  0x2f   : > { %p224_p5 = scmp.lt.s32.totalorder (!%p185_p1), %s3140_s8, 31  ;;  %s6869_s15 = sshll.u32 (!%p185_p1), %s6664_s26, 7 }
  0x30   : > { %s3142_s16 = smin.u32 (!%p185_p1), %s6660_s25, %s235_s14  ;;  %s9456_s2 = sld [smem:[#allocation280_spill]] (!%p185_p1) }
  0x31   : > { %s9480_s19 = smov (!%p216_p3, %s3137_s19), 15  ;;  %s9482_s8 = smov (!%p224_p5, %s3140_s8), 31 }
  0x32   : > { %s3138_s30 = sshll.u32 %s9480_s19, 3  ;;  %s3141_s18 = sshll.u32 %s9482_s8, 3 }
  0x33   : > { %s6865_s13 = scalar_lea.vmem %s9455_s1, %s3138_s30  ;;  %s237_s7 = sand.u32 1, %s3142_s16  }
  0x34   : > { %s238_s19 = ssub.s32 0, %s237_s7  ;;  %s6879_s30 = scalar_lea.vmem [#allocation6], %s3136_s20 }
  0x35   : > { %s9484_s19 = smov (!%p234_p4, %s238_s19), %s237_s7  ;;  %p3146_p7 = scmp.ne.s32.totalorder %s6660_s25, 0 }
  0x36   : > { %s6875_s28 = scalar_lea.vmem %s9456_s2, %s3141_s18  ;;  %p3144_p6 = scmp.lt.s32.totalorder %s9484_s19, 0 }
  0x37   : > { %s244_s27 = sadd.s32 2, %s9484_s19  ;;  %250 = sbr.rel (%p3146_p7) target bundleno = 1495 (0x5d7), region = 36 }
  0x38   : > { %s9486_s27 = smov (!%p3144_p6, %s244_s27), %s9484_s19  ;;  %s251_s26 = sld [smem:[#allocation5 + %s6869_s15]] (!%p3146_p7) }
  0x39   : > { %s6679_s8 = smov (!%p3146_p7), [#allocation2]   ;;  %s265_s6 = sadd.s32 (!%p3146_p7), 1, %s6869_s15 }
  0x3a   : > { %s261_s9 = sshll.u32 (!%p3146_p7), %s6679_s8, 4  ;;  %s6886_s18 = sld [smem:[#allocation5 + %s265_s6]] (!%p3146_p7)  ;;  %s6884_s9 = int_to_ptr.vmem [resolvable:$true] %s261_s9 }
  0x3b   : > { %s281_s7 = sadd.s32 (!%p3146_p7), 2, %s6869_s15  ;;  %s6680_s10 = smov (!%p3146_p7), [#allocation2 + $0x1]  }
  0x3c   : > { %s277_s14 = sshll.u32 (!%p3146_p7), %s6680_s10, 4  ;;  %s6889_s16 = sld [smem:[#allocation5 + %s281_s7]] (!%p3146_p7)  ;;  %s6891_s14 = int_to_ptr.vmem [resolvable:$true] %s277_s14 }
  0x3d   : > { %s6681_s21 = smov (!%p3146_p7), [#allocation2 + $0x2]   ;;  %s6901_s12 = scalar_lea.hbm (!%p3146_p7), %s9425_s4, 8192 }
  0x3e   : > { %s3147_s20 = sshll.u32 %s251_s26, 4  ;;  %s293_s19 = sshll.u32 %s6681_s21, 4  ;;  %s6896_s19 = int_to_ptr.vmem [resolvable:$true] %s293_s19 }
  0x3f   : > { %s253_s17 = scalar_lea.hbm %s9425_s4, %s3147_s20 }
  0x40   : > { %s3506_s8 = scalar_lea.hbm %s253_s17, 16  ;;  %p3509_p9 = scmp.lt.u32.totalorder %s253_s17, %s9425_s4 }
  0x41   : > { %p3507_p8 = scmp.ne.s32.totalorder %s253_s17, %s3506_s8  ;;  %p3510_p11 = scmp.lt.u32.totalorder %s6901_s12, %s3506_s8 }
  0x42   : > { %p3512_p0 = scmp.lt.u32.totalorder %s3506_s8, %s253_s17 }
  0x43   : > { %p3511_p13 = por %p3510_p11, %p3509_p9 }
  0x45   : > { %p3513_p1 = por %p3512_p0, %p3511_p13 }
  0x47   : > { %p3514_p2 = pnand %p3513_p1, %p3507_p8 }
  0x49   : > { %3517 = shalt.err (!%p3514_p2)  }
  0x4a   : > { %s3518_s1 = scalar_lea.vmem %s6884_s9, 16  ;;  %s6910_s2 = scalar_lea.vmem %s6884_s9, 2048 }
  0x4b   : > { %p3519_p3 = scmp.ne.s32.totalorder %s6884_s9, %s3518_s1  ;;  %p3523_p4 = scmp.lt.s32.totalorder %s6884_s9, %s6884_s9 }
  0x4c   : > { %p3524_p5 = scmp.lt.s32.totalorder %s6910_s2, %s3518_s1 }
  0x4e   : > { %p3525_p6 = por %p3524_p5, %p3523_p4 }
  0x50   : > { %p3526_p7 = pnand %p3525_p6, %p3519_p3 }
  0x52   : > { %3529 = shalt.err (!%p3526_p7)  }
  0x53   : > { %264 = dma.hbm_to_vmem [thread:$0]  %s253_s17, 16, %s6884_s9, [#allocation3] }
  0x54   : > { %s3148_s0 = sshll.u32 %s6886_s18, 4  ;;  %s297_s26 = sadd.s32 3, %s6869_s15 }
  0x55   : > { %s268_s8 = scalar_lea.hbm %s9425_s4, %s3148_s0  ;;  %s3149_s6 = sshll.u32 %s6889_s16, 4 }
  0x56   : > { %s3530_s7 = scalar_lea.hbm %s268_s8, 16  ;;  %p3533_p9 = scmp.lt.u32.totalorder %s268_s8, %s9425_s4 }
  0x57   : > { %p3531_p8 = scmp.ne.s32.totalorder %s268_s8, %s3530_s7  ;;  %p3534_p11 = scmp.lt.u32.totalorder %s6901_s12, %s3530_s7 }
  0x58   : > { %p3536_p0 = scmp.lt.u32.totalorder %s3530_s7, %s268_s8 }
  0x59   : > { %p3535_p13 = por %p3534_p11, %p3533_p9 }
  0x5b   : > { %p3537_p1 = por %p3536_p0, %p3535_p13 }
  0x5d   : > { %p3538_p2 = pnand %p3537_p1, %p3531_p8 }
  0x5f   : > { %3541 = shalt.err (!%p3538_p2)  }
  0x60   : > { %s3542_s17 = scalar_lea.vmem %s6891_s14, 16  ;;  %p3547_p4 = scmp.lt.s32.totalorder %s6891_s14, %s6884_s9 }
  0x61   : > { %p3543_p3 = scmp.ne.s32.totalorder %s6891_s14, %s3542_s17  ;;  %p3548_p5 = scmp.lt.s32.totalorder %s6910_s2, %s3542_s17 }
  0x63   : > { %p3549_p6 = por %p3548_p5, %p3547_p4 }
  0x65   : > { %p3550_p7 = pnand %p3549_p6, %p3543_p3 }
  0x67   : > { %3553 = shalt.err (!%p3550_p7)  }
  0x68   : > { %280 = dma.hbm_to_vmem [thread:$0]  %s268_s8, 16, %s6891_s14, [#allocation3] }
  0x69   : > { %s284_s0 = scalar_lea.hbm %s9425_s4, %s3149_s6  ;;  %s6935_s20 = sld [smem:[#allocation5 + %s297_s26]] }
  0x6a   : > { %s3554_s21 = scalar_lea.hbm %s284_s0, 16  ;;  %p3557_p9 = scmp.lt.u32.totalorder %s284_s0, %s9425_s4 }
  0x6b   : > { %p3555_p8 = scmp.ne.s32.totalorder %s284_s0, %s3554_s21  ;;  %p3558_p11 = scmp.lt.u32.totalorder %s6901_s12, %s3554_s21 }
  0x6c   : > { %p3560_p0 = scmp.lt.u32.totalorder %s3554_s21, %s284_s0 }
  0x6d   : > { %p3559_p13 = por %p3558_p11, %p3557_p9 }
  0x6f   : > { %p3561_p1 = por %p3560_p0, %p3559_p13 }
  0x71   : > { %p3562_p2 = pnand %p3561_p1, %p3555_p8 }
  0x73   : > { %3565 = shalt.err (!%p3562_p2)  }
  0x74   : > { %s3566_s14 = scalar_lea.vmem %s6896_s19, 16  ;;  %p3571_p4 = scmp.lt.s32.totalorder %s6896_s19, %s6884_s9 }
  0x75   : > { %p3567_p3 = scmp.ne.s32.totalorder %s6896_s19, %s3566_s14  ;;  %p3572_p5 = scmp.lt.s32.totalorder %s6910_s2, %s3566_s14 }
  0x77   : > { %p3573_p6 = por %p3572_p5, %p3571_p4 }
  0x79   : > { %p3574_p7 = pnand %p3573_p6, %p3567_p3 }
  0x7b   : > { %3577 = shalt.err (!%p3574_p7)  }
  0x7c   : > { %296 = dma.hbm_to_vmem [thread:$0]  %s284_s0, 16, %s6896_s19, [#allocation3] }
  0x7d   : > { %s313_s26 = sadd.s32 4, %s6869_s15  ;;  %s6682_s8 = smov [#allocation2 + $0x3]  }
  0x7e   : > { %s309_s6 = sshll.u32 %s6682_s8, 4  ;;  %s314_s1 = sld [smem:[#allocation5 + %s313_s26]]  ;;  %s310_s6 = int_to_ptr.vmem [resolvable:$true] %s309_s6 }
  0x7f   : > { %s6683_s17 = smov [#allocation2 + $0x4]   ;;  %s329_s16 = sadd.s32 5, %s6869_s15 }
  0x80   : > { %s325_s18 = sshll.u32 %s6683_s17, 4  ;;  %s3150_s21 = sshll.u32 %s6935_s20, 4  ;;  %s6950_s18 = int_to_ptr.vmem [resolvable:$true] %s325_s18 }
  0x81   : > { %s300_s14 = scalar_lea.hbm %s9425_s4, %s3150_s21  ;;  %s6955_s23 = sld [smem:[#allocation5 + %s329_s16]] }
  0x82   : > { %s3578_s29 = scalar_lea.hbm %s300_s14, 16  ;;  %p3581_p9 = scmp.lt.u32.totalorder %s300_s14, %s9425_s4 }
  0x83   : > { %p3579_p8 = scmp.ne.s32.totalorder %s300_s14, %s3578_s29  ;;  %p3582_p11 = scmp.lt.u32.totalorder %s6901_s12, %s3578_s29 }
  0x84   : > { %p3584_p0 = scmp.lt.u32.totalorder %s3578_s29, %s300_s14 }
  0x85   : > { %p3583_p13 = por %p3582_p11, %p3581_p9 }
  0x87   : > { %p3585_p1 = por %p3584_p0, %p3583_p13 }
  0x89   : > { %p3586_p2 = pnand %p3585_p1, %p3579_p8 }
  0x8b   : > { %3589 = shalt.err (!%p3586_p2)  }
  0x8c   : > { %s3590_s20 = scalar_lea.vmem %s310_s6, 16  ;;  %p3595_p4 = scmp.lt.s32.totalorder %s310_s6, %s6884_s9 }
  0x8d   : > { %p3591_p3 = scmp.ne.s32.totalorder %s310_s6, %s3590_s20  ;;  %p3596_p5 = scmp.lt.s32.totalorder %s6910_s2, %s3590_s20 }
  0x8f   : > { %p3597_p6 = por %p3596_p5, %p3595_p4 }
  0x91   : > { %p3598_p7 = pnand %p3597_p6, %p3591_p3 }
  0x93   : > { %3601 = shalt.err (!%p3598_p7)  }
  0x94   : > { %312 = dma.hbm_to_vmem [thread:$0]  %s300_s14, 16, %s310_s6, [#allocation3] }
  0x95   : > { %s3151_s26 = sshll.u32 %s314_s1, 4  ;;  %s6684_s29 = smov [#allocation2 + $0x5]  }
  0x96   : > { %s316_s16 = scalar_lea.hbm %s9425_s4, %s3151_s26  ;;  %s341_s21 = sshll.u32 %s6684_s29, 4  ;;  %s342_s21 = int_to_ptr.vmem [resolvable:$true] %s341_s21 }
  0x97   : > { %s3602_s7 = scalar_lea.hbm %s316_s16, 16  ;;  %p3605_p9 = scmp.lt.u32.totalorder %s316_s16, %s9425_s4 }
  0x98   : > { %p3603_p8 = scmp.ne.s32.totalorder %s316_s16, %s3602_s7  ;;  %p3606_p11 = scmp.lt.u32.totalorder %s6901_s12, %s3602_s7 }
  0x99   : > { %p3608_p0 = scmp.lt.u32.totalorder %s3602_s7, %s316_s16 }
  0x9a   : > { %p3607_p13 = por %p3606_p11, %p3605_p9 }
  0x9c   : > { %p3609_p1 = por %p3608_p0, %p3607_p13 }
  0x9e   : > { %p3610_p2 = pnand %p3609_p1, %p3603_p8 }
  0xa0   : > { %3613 = shalt.err (!%p3610_p2)  }
  0xa1   : > { %s3614_s6 = scalar_lea.vmem %s6950_s18, 16  ;;  %p3619_p4 = scmp.lt.s32.totalorder %s6950_s18, %s6884_s9 }
  0xa2   : > { %p3615_p3 = scmp.ne.s32.totalorder %s6950_s18, %s3614_s6  ;;  %p3620_p5 = scmp.lt.s32.totalorder %s6910_s2, %s3614_s6 }
  0xa4   : > { %p3621_p6 = por %p3620_p5, %p3619_p4 }
  0xa6   : > { %p3622_p7 = pnand %p3621_p6, %p3615_p3 }
  0xa8   : > { %3625 = shalt.err (!%p3622_p7)  }
  0xa9   : > { %328 = dma.hbm_to_vmem [thread:$0]  %s316_s16, 16, %s6950_s18, [#allocation3] }
  0xaa   : > { %s345_s1 = sadd.s32 6, %s6869_s15  ;;  %s3152_s14 = sshll.u32 %s6955_s23, 4 }
  0xab   : > { %s6978_s0 = sld [smem:[#allocation5 + %s345_s1]]  ;;  %s332_s8 = scalar_lea.hbm %s9425_s4, %s3152_s14 }
  0xac   : > { %s3626_s17 = scalar_lea.hbm %s332_s8, 16  ;;  %p3629_p9 = scmp.lt.u32.totalorder %s332_s8, %s9425_s4 }
  0xad   : > { %p3627_p8 = scmp.ne.s32.totalorder %s332_s8, %s3626_s17  ;;  %p3630_p11 = scmp.lt.u32.totalorder %s6901_s12, %s3626_s17 }
  0xae   : > { %p3632_p0 = scmp.lt.u32.totalorder %s3626_s17, %s332_s8 }
  0xaf   : > { %p3631_p13 = por %p3630_p11, %p3629_p9 }
  0xb1   : > { %p3633_p1 = por %p3632_p0, %p3631_p13 }
  0xb3   : > { %p3634_p2 = pnand %p3633_p1, %p3627_p8 }
  0xb5   : > { %3637 = shalt.err (!%p3634_p2)  }
  0xb6   : > { %s3638_s18 = scalar_lea.vmem %s342_s21, 16  ;;  %p3643_p4 = scmp.lt.s32.totalorder %s342_s21, %s6884_s9 }
  0xb7   : > { %p3639_p3 = scmp.ne.s32.totalorder %s342_s21, %s3638_s18  ;;  %p3644_p5 = scmp.lt.s32.totalorder %s6910_s2, %s3638_s18 }
  0xb9   : > { %p3645_p6 = por %p3644_p5, %p3643_p4 }
  0xbb   : > { %p3646_p7 = pnand %p3645_p6, %p3639_p3 }
  0xbd   : > { %3649 = shalt.err (!%p3646_p7)  }
  0xbe   : > { %344 = dma.hbm_to_vmem [thread:$0]  %s332_s8, 16, %s342_s21, [#allocation3] }
  0xbf   : > { %s6685_s23 = smov [#allocation2 + $0x6]   ;;  %s361_s10 = sadd.s32 7, %s6869_s15 }
  0xc0   : > { %s357_s16 = sshll.u32 %s6685_s23, 4  ;;  %s6990_s19 = sld [smem:[#allocation5 + %s361_s10]]  ;;  %s358_s16 = int_to_ptr.vmem [resolvable:$true] %s357_s16 }
  0xc1   : > { %s377_s6 = sadd.s32 8, %s6869_s15  ;;  %s3153_s1 = sshll.u32 %s6978_s0, 4 }
  0xc2   : > { %s6686_s14 = smov [#allocation2 + $0x7]   ;;  %s348_s29 = scalar_lea.hbm %s9425_s4, %s3153_s1 }
  0xc3   : > { %s373_s20 = sshll.u32 %s6686_s14, 4  ;;  %s3650_s21 = scalar_lea.hbm %s348_s29, 16  ;;  %s6997_s20 = int_to_ptr.vmem [resolvable:$true] %s373_s20 }
  0xc4   : > { %p3651_p8 = scmp.ne.s32.totalorder %s348_s29, %s3650_s21  ;;  %p3653_p9 = scmp.lt.u32.totalorder %s348_s29, %s9425_s4 }
  0xc5   : > { %p3654_p11 = scmp.lt.u32.totalorder %s6901_s12, %s3650_s21  ;;  %p3656_p0 = scmp.lt.u32.totalorder %s3650_s21, %s348_s29 }
  0xc7   : > { %p3655_p13 = por %p3654_p11, %p3653_p9 }
  0xc9   : > { %p3657_p1 = por %p3656_p0, %p3655_p13 }
  0xcb   : > { %p3658_p2 = pnand %p3657_p1, %p3651_p8 }
  0xcd   : > { %3661 = shalt.err (!%p3658_p2)  }
  0xce   : > { %s3662_s0 = scalar_lea.vmem %s358_s16, 16  ;;  %p3667_p4 = scmp.lt.s32.totalorder %s358_s16, %s6884_s9 }
  0xcf   : > { %p3663_p3 = scmp.ne.s32.totalorder %s358_s16, %s3662_s0  ;;  %p3668_p5 = scmp.lt.s32.totalorder %s6910_s2, %s3662_s0 }
  0xd1   : > { %p3669_p6 = por %p3668_p5, %p3667_p4 }
  0xd3   : > { %p3670_p7 = pnand %p3669_p6, %p3663_p3 }
  0xd5   : > { %3673 = shalt.err (!%p3670_p7)  }
  0xd6   : > { %360 = dma.hbm_to_vmem [thread:$0]  %s348_s29, 16, %s358_s16, [#allocation3] }
  0xd7   : > { %s7005_s18 = sld [smem:[#allocation5 + %s377_s6]]  ;;  %s3154_s23 = sshll.u32 %s6990_s19, 4 }
  0xd8   : > { %s6687_s10 = smov [#allocation2 + $0x8]   ;;  %s364_s17 = scalar_lea.hbm %s9425_s4, %s3154_s23 }
  0xd9   : > { %s389_s1 = sshll.u32 %s6687_s10, 4  ;;  %s3674_s21 = scalar_lea.hbm %s364_s17, 16  ;;  %s7011_s1 = int_to_ptr.vmem [resolvable:$true] %s389_s1 }
  0xda   : > { %p3675_p8 = scmp.ne.s32.totalorder %s364_s17, %s3674_s21  ;;  %p3677_p9 = scmp.lt.u32.totalorder %s364_s17, %s9425_s4 }
  0xdb   : > { %p3678_p11 = scmp.lt.u32.totalorder %s6901_s12, %s3674_s21  ;;  %p3680_p0 = scmp.lt.u32.totalorder %s3674_s21, %s364_s17 }
  0xdd   : > { %p3679_p13 = por %p3678_p11, %p3677_p9 }
  0xdf   : > { %p3681_p1 = por %p3680_p0, %p3679_p13 }
  0xe1   : > { %p3682_p2 = pnand %p3681_p1, %p3675_p8 }
  0xe3   : > { %3685 = shalt.err (!%p3682_p2)  }
  0xe4   : > { %s3686_s16 = scalar_lea.vmem %s6997_s20, 16  ;;  %p3691_p4 = scmp.lt.s32.totalorder %s6997_s20, %s6884_s9 }
  0xe5   : > { %p3687_p3 = scmp.ne.s32.totalorder %s6997_s20, %s3686_s16  ;;  %p3692_p5 = scmp.lt.s32.totalorder %s6910_s2, %s3686_s16 }
  0xe7   : > { %p3693_p6 = por %p3692_p5, %p3691_p4 }
  0xe9   : > { %p3694_p7 = pnand %p3693_p6, %p3687_p3 }
  0xeb   : > { %3697 = shalt.err (!%p3694_p7)  }
  0xec   : > { %376 = dma.hbm_to_vmem [thread:$0]  %s364_s17, 16, %s6997_s20, [#allocation3] }
  0xed   : > { %s393_s19 = sadd.s32 9, %s6869_s15  ;;  %s6688_s29 = smov [#allocation2 + $0x9]  }
  0xee   : > { %s7024_s6 = sld [smem:[#allocation5 + %s393_s19]]  ;;  %s405_s0 = sshll.u32 %s6688_s29, 4  ;;  %s7027_s0 = int_to_ptr.vmem [resolvable:$true] %s405_s0 }
  0xef   : > { %s3155_s23 = sshll.u32 %s7005_s18, 4  ;;  %s409_s21 = sadd.s32 10, %s6869_s15 }
  0xf0   : > { %s380_s26 = scalar_lea.hbm %s9425_s4, %s3155_s23 }
  0xf1   : > { %s3698_s8 = scalar_lea.hbm %s380_s26, 16  ;;  %p3701_p9 = scmp.lt.u32.totalorder %s380_s26, %s9425_s4 }
  0xf2   : > { %p3699_p8 = scmp.ne.s32.totalorder %s380_s26, %s3698_s8  ;;  %p3702_p11 = scmp.lt.u32.totalorder %s6901_s12, %s3698_s8 }
  0xf3   : > { %p3704_p0 = scmp.lt.u32.totalorder %s3698_s8, %s380_s26 }
  0xf4   : > { %p3703_p13 = por %p3702_p11, %p3701_p9 }
  0xf6   : > { %p3705_p1 = por %p3704_p0, %p3703_p13 }
  0xf8   : > { %p3706_p2 = pnand %p3705_p1, %p3699_p8 }
  0xfa   : > { %3709 = shalt.err (!%p3706_p2)  }
  0xfb   : > { %s3710_s20 = scalar_lea.vmem %s7011_s1, 16  ;;  %p3715_p4 = scmp.lt.s32.totalorder %s7011_s1, %s6884_s9 }
  0xfc   : > { %p3711_p3 = scmp.ne.s32.totalorder %s7011_s1, %s3710_s20  ;;  %p3716_p5 = scmp.lt.s32.totalorder %s6910_s2, %s3710_s20 }
  0xfe   : > { %p3717_p6 = por %p3716_p5, %p3715_p4 }
 0x100   : > { %p3718_p7 = pnand %p3717_p6, %p3711_p3 }
 0x102   : > { %3721 = shalt.err (!%p3718_p7)  }
 0x103   : > { %392 = dma.hbm_to_vmem [thread:$0]  %s380_s26, 16, %s7011_s1, [#allocation3] }
 0x104   : > { %s7043_s18 = sld [smem:[#allocation5 + %s409_s21]]  ;;  %s6689_s17 = smov [#allocation2 + $0xa]  }
 0x105   : > { %s421_s19 = sshll.u32 %s6689_s17, 4  ;;  %s425_s29 = sadd.s32 11, %s6869_s15  ;;  %s7047_s19 = int_to_ptr.vmem [resolvable:$true] %s421_s19 }
 0x106   : > { %s3156_s23 = sshll.u32 %s7024_s6, 4  ;;  %s7052_s7 = sld [smem:[#allocation5 + %s425_s29]] }
 0x107   : > { %s396_s8 = scalar_lea.hbm %s9425_s4, %s3156_s23 }
 0x108   : > { %s3722_s16 = scalar_lea.hbm %s396_s8, 16  ;;  %p3725_p9 = scmp.lt.u32.totalorder %s396_s8, %s9425_s4 }
 0x109   : > { %p3723_p8 = scmp.ne.s32.totalorder %s396_s8, %s3722_s16  ;;  %p3726_p11 = scmp.lt.u32.totalorder %s6901_s12, %s3722_s16 }
 0x10a   : > { %p3728_p0 = scmp.lt.u32.totalorder %s3722_s16, %s396_s8 }
 0x10b   : > { %p3727_p13 = por %p3726_p11, %p3725_p9 }
 0x10d   : > { %p3729_p1 = por %p3728_p0, %p3727_p13 }
 0x10f   : > { %p3730_p2 = pnand %p3729_p1, %p3723_p8 }
 0x111   : > { %3733 = shalt.err (!%p3730_p2)  }
 0x112   : > { %s3734_s1 = scalar_lea.vmem %s7027_s0, 16  ;;  %p3739_p4 = scmp.lt.s32.totalorder %s7027_s0, %s6884_s9 }
 0x113   : > { %p3735_p3 = scmp.ne.s32.totalorder %s7027_s0, %s3734_s1  ;;  %p3740_p5 = scmp.lt.s32.totalorder %s6910_s2, %s3734_s1 }
 0x115   : > { %p3741_p6 = por %p3740_p5, %p3739_p4 }
 0x117   : > { %p3742_p7 = pnand %p3741_p6, %p3735_p3 }
 0x119   : > { %3745 = shalt.err (!%p3742_p7)  }
 0x11a   : > { %408 = dma.hbm_to_vmem [thread:$0]  %s396_s8, 16, %s7027_s0, [#allocation3] }
 0x11b   : > { %s441_s5 = sadd.s32 12, %s6869_s15  ;;  %s3157_s6 = sshll.u32 %s7043_s18, 4 }
 0x11c   : > { %s6690_s26 = smov [#allocation2 + $0xb]   ;;  %s412_s23 = scalar_lea.hbm %s9425_s4, %s3157_s6 }
 0x11d   : > { %s437_s21 = sshll.u32 %s6690_s26, 4  ;;  %s3746_s10 = scalar_lea.hbm %s412_s23, 16  ;;  %s7069_s21 = int_to_ptr.vmem [resolvable:$true] %s437_s21 }
 0x11e   : > { %p3747_p8 = scmp.ne.s32.totalorder %s412_s23, %s3746_s10  ;;  %p3749_p9 = scmp.lt.u32.totalorder %s412_s23, %s9425_s4 }
 0x11f   : > { %p3750_p11 = scmp.lt.u32.totalorder %s6901_s12, %s3746_s10  ;;  %p3752_p0 = scmp.lt.u32.totalorder %s3746_s10, %s412_s23 }
 0x121   : > { %p3751_p13 = por %p3750_p11, %p3749_p9 }
 0x123   : > { %p3753_p1 = por %p3752_p0, %p3751_p13 }
 0x125   : > { %p3754_p2 = pnand %p3753_p1, %p3747_p8 }
 0x127   : > { %3757 = shalt.err (!%p3754_p2)  }
 0x128   : > { %s3758_s0 = scalar_lea.vmem %s7047_s19, 16  ;;  %p3763_p4 = scmp.lt.s32.totalorder %s7047_s19, %s6884_s9 }
 0x129   : > { %p3759_p3 = scmp.ne.s32.totalorder %s7047_s19, %s3758_s0  ;;  %p3764_p5 = scmp.lt.s32.totalorder %s6910_s2, %s3758_s0 }
 0x12b   : > { %p3765_p6 = por %p3764_p5, %p3763_p4 }
 0x12d   : > { %p3766_p7 = pnand %p3765_p6, %p3759_p3 }
 0x12f   : > { %3769 = shalt.err (!%p3766_p7)  }
 0x130   : > { %424 = dma.hbm_to_vmem [thread:$0]  %s412_s23, 16, %s7047_s19, [#allocation3] }
 0x131   : > { %s3158_s18 = sshll.u32 %s7052_s7, 4  ;;  %s7082_s8 = sld [smem:[#allocation5 + %s441_s5]] }
 0x132   : > { %s428_s6 = scalar_lea.hbm %s9425_s4, %s3158_s18 }
 0x133   : > { %s3770_s26 = scalar_lea.hbm %s428_s6, 16  ;;  %p3773_p9 = scmp.lt.u32.totalorder %s428_s6, %s9425_s4 }
 0x134   : > { %p3771_p8 = scmp.ne.s32.totalorder %s428_s6, %s3770_s26  ;;  %p3774_p11 = scmp.lt.u32.totalorder %s6901_s12, %s3770_s26 }
 0x135   : > { %p3776_p0 = scmp.lt.u32.totalorder %s3770_s26, %s428_s6 }
 0x136   : > { %p3775_p13 = por %p3774_p11, %p3773_p9 }
 0x138   : > { %p3777_p1 = por %p3776_p0, %p3775_p13 }
 0x13a   : > { %p3778_p2 = pnand %p3777_p1, %p3771_p8 }
 0x13c   : > { %3781 = shalt.err (!%p3778_p2)  }
 0x13d   : > { %s3782_s19 = scalar_lea.vmem %s7069_s21, 16  ;;  %p3787_p4 = scmp.lt.s32.totalorder %s7069_s21, %s6884_s9 }
 0x13e   : > { %p3783_p3 = scmp.ne.s32.totalorder %s7069_s21, %s3782_s19  ;;  %p3788_p5 = scmp.lt.s32.totalorder %s6910_s2, %s3782_s19 }
 0x140   : > { %p3789_p6 = por %p3788_p5, %p3787_p4 }
 0x142   : > { %p3790_p7 = pnand %p3789_p6, %p3783_p3 }
 0x144   : > { %3793 = shalt.err (!%p3790_p7)  }
 0x145   : > { %440 = dma.hbm_to_vmem [thread:$0]  %s428_s6, 16, %s7069_s21, [#allocation3] }
 0x146   : > { %s6691_s7 = smov [#allocation2 + $0xc]   ;;  %s457_s23 = sadd.s32 13, %s6869_s15 }
 0x147   : > { %s453_s5 = sshll.u32 %s6691_s7, 4  ;;  %s7098_s10 = sld [smem:[#allocation5 + %s457_s23]]  ;;  %s454_s5 = int_to_ptr.vmem [resolvable:$true] %s453_s5 }
 0x148   : > { %s473_s14 = sadd.s32 14, %s6869_s15  ;;  %s3159_s16 = sshll.u32 %s7082_s8, 4 }
 0x149   : > { %s6692_s0 = smov [#allocation2 + $0xd]   ;;  %s444_s26 = scalar_lea.hbm %s9425_s4, %s3159_s16 }
 0x14a   : > { %s469_s18 = sshll.u32 %s6692_s0, 4  ;;  %s3794_s17 = scalar_lea.hbm %s444_s26, 16  ;;  %s7105_s18 = int_to_ptr.vmem [resolvable:$true] %s469_s18 }
 0x14b   : > { %p3795_p8 = scmp.ne.s32.totalorder %s444_s26, %s3794_s17  ;;  %p3797_p9 = scmp.lt.u32.totalorder %s444_s26, %s9425_s4 }
 0x14c   : > { %p3798_p11 = scmp.lt.u32.totalorder %s6901_s12, %s3794_s17  ;;  %p3800_p0 = scmp.lt.u32.totalorder %s3794_s17, %s444_s26 }
 0x14e   : > { %p3799_p13 = por %p3798_p11, %p3797_p9 }
 0x150   : > { %p3801_p1 = por %p3800_p0, %p3799_p13 }
 0x152   : > { %p3802_p2 = pnand %p3801_p1, %p3795_p8 }
 0x154   : > { %3805 = shalt.err (!%p3802_p2)  }
 0x155   : > { %s3806_s8 = scalar_lea.vmem %s454_s5, 16  ;;  %p3811_p4 = scmp.lt.s32.totalorder %s454_s5, %s6884_s9 }
 0x156   : > { %p3807_p3 = scmp.ne.s32.totalorder %s454_s5, %s3806_s8  ;;  %p3812_p5 = scmp.lt.s32.totalorder %s6910_s2, %s3806_s8 }
 0x158   : > { %p3813_p6 = por %p3812_p5, %p3811_p4 }
 0x15a   : > { %p3814_p7 = pnand %p3813_p6, %p3807_p3 }
 0x15c   : > { %3817 = shalt.err (!%p3814_p7)  }
 0x15d   : > { %456 = dma.hbm_to_vmem [thread:$0]  %s444_s26, 16, %s454_s5, [#allocation3] }
 0x15e   : > { %s7113_s6 = sld [smem:[#allocation5 + %s473_s14]]  ;;  %s3160_s19 = sshll.u32 %s7098_s10, 4 }
 0x15f   : > { %s6693_s7 = smov [#allocation2 + $0xe]   ;;  %s460_s20 = scalar_lea.hbm %s9425_s4, %s3160_s19 }
 0x160   : > { %s485_s23 = sshll.u32 %s6693_s7, 4  ;;  %s3818_s1 = scalar_lea.hbm %s460_s20, 16  ;;  %s7119_s23 = int_to_ptr.vmem [resolvable:$true] %s485_s23 }
 0x161   : > { %p3819_p8 = scmp.ne.s32.totalorder %s460_s20, %s3818_s1  ;;  %p3821_p9 = scmp.lt.u32.totalorder %s460_s20, %s9425_s4 }
 0x162   : > { %p3822_p11 = scmp.lt.u32.totalorder %s6901_s12, %s3818_s1  ;;  %p3824_p0 = scmp.lt.u32.totalorder %s3818_s1, %s460_s20 }
 0x164   : > { %p3823_p13 = por %p3822_p11, %p3821_p9 }
 0x166   : > { %p3825_p1 = por %p3824_p0, %p3823_p13 }
 0x168   : > { %p3826_p2 = pnand %p3825_p1, %p3819_p8 }
 0x16a   : > { %3829 = shalt.err (!%p3826_p2)  }
 0x16b   : > { %s3830_s5 = scalar_lea.vmem %s7105_s18, 16  ;;  %p3835_p4 = scmp.lt.s32.totalorder %s7105_s18, %s6884_s9 }
 0x16c   : > { %p3831_p3 = scmp.ne.s32.totalorder %s7105_s18, %s3830_s5  ;;  %p3836_p5 = scmp.lt.s32.totalorder %s6910_s2, %s3830_s5 }
 0x16e   : > { %p3837_p6 = por %p3836_p5, %p3835_p4 }
 0x170   : > { %p3838_p7 = pnand %p3837_p6, %p3831_p3 }
 0x172   : > { %3841 = shalt.err (!%p3838_p7)  }
 0x173   : > { %472 = dma.hbm_to_vmem [thread:$0]  %s460_s20, 16, %s7105_s18, [#allocation3] }
 0x174   : > { %s489_s10 = sadd.s32 15, %s6869_s15  ;;  %s6694_s26 = smov [#allocation2 + $0xf]  }
 0x175   : > { %s7132_s14 = sld [smem:[#allocation5 + %s489_s10]]  ;;  %s501_s21 = sshll.u32 %s6694_s26, 4  ;;  %s7135_s21 = int_to_ptr.vmem [resolvable:$true] %s501_s21 }
 0x176   : > { %s3161_s8 = sshll.u32 %s7113_s6, 4  ;;  %s505_s0 = sadd.s32 16, %s6869_s15 }
 0x177   : > { %s476_s16 = scalar_lea.hbm %s9425_s4, %s3161_s8 }
 0x178   : > { %s3842_s1 = scalar_lea.hbm %s476_s16, 16  ;;  %p3845_p9 = scmp.lt.u32.totalorder %s476_s16, %s9425_s4 }
 0x179   : > { %p3843_p8 = scmp.ne.s32.totalorder %s476_s16, %s3842_s1  ;;  %p3846_p11 = scmp.lt.u32.totalorder %s6901_s12, %s3842_s1 }
 0x17a   : > { %p3848_p0 = scmp.lt.u32.totalorder %s3842_s1, %s476_s16 }
 0x17b   : > { %p3847_p13 = por %p3846_p11, %p3845_p9 }
 0x17d   : > { %p3849_p1 = por %p3848_p0, %p3847_p13 }
 0x17f   : > { %p3850_p2 = pnand %p3849_p1, %p3843_p8 }
 0x181   : > { %3853 = shalt.err (!%p3850_p2)  }
 0x182   : > { %s3854_s18 = scalar_lea.vmem %s7119_s23, 16  ;;  %p3859_p4 = scmp.lt.s32.totalorder %s7119_s23, %s6884_s9 }
 0x183   : > { %p3855_p3 = scmp.ne.s32.totalorder %s7119_s23, %s3854_s18  ;;  %p3860_p5 = scmp.lt.s32.totalorder %s6910_s2, %s3854_s18 }
 0x185   : > { %p3861_p6 = por %p3860_p5, %p3859_p4 }
 0x187   : > { %p3862_p7 = pnand %p3861_p6, %p3855_p3 }
 0x189   : > { %3865 = shalt.err (!%p3862_p7)  }
 0x18a   : > { %488 = dma.hbm_to_vmem [thread:$0]  %s476_s16, 16, %s7119_s23, [#allocation3] }
 0x18b   : > { %s7151_s6 = sld [smem:[#allocation5 + %s505_s0]]  ;;  %s6695_s20 = smov [#allocation2 + $0x10]  }
 0x18c   : > { %s517_s5 = sshll.u32 %s6695_s20, 4  ;;  %s521_s10 = sadd.s32 17, %s6869_s15  ;;  %s7155_s5 = int_to_ptr.vmem [resolvable:$true] %s517_s5 }
 0x18d   : > { %s3162_s26 = sshll.u32 %s7132_s14, 4  ;;  %s7160_s1 = sld [smem:[#allocation5 + %s521_s10]] }
 0x18e   : > { %s492_s7 = scalar_lea.hbm %s9425_s4, %s3162_s26 }
 0x18f   : > { %s3866_s17 = scalar_lea.hbm %s492_s7, 16  ;;  %p3869_p9 = scmp.lt.u32.totalorder %s492_s7, %s9425_s4 }
 0x190   : > { %p3867_p8 = scmp.ne.s32.totalorder %s492_s7, %s3866_s17  ;;  %p3870_p11 = scmp.lt.u32.totalorder %s6901_s12, %s3866_s17 }
 0x191   : > { %p3872_p0 = scmp.lt.u32.totalorder %s3866_s17, %s492_s7 }
 0x192   : > { %p3871_p13 = por %p3870_p11, %p3869_p9 }
 0x194   : > { %p3873_p1 = por %p3872_p0, %p3871_p13 }
 0x196   : > { %p3874_p2 = pnand %p3873_p1, %p3867_p8 }
 0x198   : > { %3877 = shalt.err (!%p3874_p2)  }
 0x199   : > { %s3878_s23 = scalar_lea.vmem %s7135_s21, 16  ;;  %p3883_p4 = scmp.lt.s32.totalorder %s7135_s21, %s6884_s9 }
 0x19a   : > { %p3879_p3 = scmp.ne.s32.totalorder %s7135_s21, %s3878_s23  ;;  %p3884_p5 = scmp.lt.s32.totalorder %s6910_s2, %s3878_s23 }
 0x19c   : > { %p3885_p6 = por %p3884_p5, %p3883_p4 }
 0x19e   : > { %p3886_p7 = pnand %p3885_p6, %p3879_p3 }
 0x1a0   : > { %3889 = shalt.err (!%p3886_p7)  }
 0x1a1   : > { %504 = dma.hbm_to_vmem [thread:$0]  %s492_s7, 16, %s7135_s21, [#allocation3] }
 0x1a2   : > { %s537_s14 = sadd.s32 18, %s6869_s15  ;;  %s3163_s16 = sshll.u32 %s7151_s6, 4 }
 0x1a3   : > { %s6696_s0 = smov [#allocation2 + $0x11]   ;;  %s508_s8 = scalar_lea.hbm %s9425_s4, %s3163_s16 }
 0x1a4   : > { %s533_s20 = sshll.u32 %s6696_s0, 4  ;;  %s3890_s19 = scalar_lea.hbm %s508_s8, 16  ;;  %s7177_s20 = int_to_ptr.vmem [resolvable:$true] %s533_s20 }
 0x1a5   : > { %p3891_p8 = scmp.ne.s32.totalorder %s508_s8, %s3890_s19  ;;  %p3893_p9 = scmp.lt.u32.totalorder %s508_s8, %s9425_s4 }
 0x1a6   : > { %p3894_p11 = scmp.lt.u32.totalorder %s6901_s12, %s3890_s19  ;;  %p3896_p0 = scmp.lt.u32.totalorder %s3890_s19, %s508_s8 }
 0x1a8   : > { %p3895_p13 = por %p3894_p11, %p3893_p9 }
 0x1aa   : > { %p3897_p1 = por %p3896_p0, %p3895_p13 }
 0x1ac   : > { %p3898_p2 = pnand %p3897_p1, %p3891_p8 }
 0x1ae   : > { %3901 = shalt.err (!%p3898_p2)  }
 0x1af   : > { %s3902_s21 = scalar_lea.vmem %s7155_s5, 16  ;;  %p3907_p4 = scmp.lt.s32.totalorder %s7155_s5, %s6884_s9 }
 0x1b0   : > { %p3903_p3 = scmp.ne.s32.totalorder %s7155_s5, %s3902_s21  ;;  %p3908_p5 = scmp.lt.s32.totalorder %s6910_s2, %s3902_s21 }
 0x1b2   : > { %p3909_p6 = por %p3908_p5, %p3907_p4 }
 0x1b4   : > { %p3910_p7 = pnand %p3909_p6, %p3903_p3 }
 0x1b6   : > { %3913 = shalt.err (!%p3910_p7)  }
 0x1b7   : > { %520 = dma.hbm_to_vmem [thread:$0]  %s508_s8, 16, %s7155_s5, [#allocation3] }
 0x1b8   : > { %s3164_s6 = sshll.u32 %s7160_s1, 4  ;;  %s7190_s7 = sld [smem:[#allocation5 + %s537_s14]] }
 0x1b9   : > { %s524_s16 = scalar_lea.hbm %s9425_s4, %s3164_s6 }
 0x1ba   : > { %s3914_s0 = scalar_lea.hbm %s524_s16, 16  ;;  %p3917_p9 = scmp.lt.u32.totalorder %s524_s16, %s9425_s4 }
 0x1bb   : > { %p3915_p8 = scmp.ne.s32.totalorder %s524_s16, %s3914_s0  ;;  %p3918_p11 = scmp.lt.u32.totalorder %s6901_s12, %s3914_s0 }
 0x1bc   : > { %p3920_p0 = scmp.lt.u32.totalorder %s3914_s0, %s524_s16 }
 0x1bd   : > { %p3919_p13 = por %p3918_p11, %p3917_p9 }
 0x1bf   : > { %p3921_p1 = por %p3920_p0, %p3919_p13 }
 0x1c1   : > { %p3922_p2 = pnand %p3921_p1, %p3915_p8 }
 0x1c3   : > { %3925 = shalt.err (!%p3922_p2)  }
 0x1c4   : > { %s3926_s5 = scalar_lea.vmem %s7177_s20, 16  ;;  %p3931_p4 = scmp.lt.s32.totalorder %s7177_s20, %s6884_s9 }
 0x1c5   : > { %p3927_p3 = scmp.ne.s32.totalorder %s7177_s20, %s3926_s5  ;;  %p3932_p5 = scmp.lt.s32.totalorder %s6910_s2, %s3926_s5 }
 0x1c7   : > { %p3933_p6 = por %p3932_p5, %p3931_p4 }
 0x1c9   : > { %p3934_p7 = pnand %p3933_p6, %p3927_p3 }
 0x1cb   : > { %3937 = shalt.err (!%p3934_p7)  }
 0x1cc   : > { %536 = dma.hbm_to_vmem [thread:$0]  %s524_s16, 16, %s7177_s20, [#allocation3] }
 0x1cd   : > { %s6697_s1 = smov [#allocation2 + $0x12]   ;;  %s553_s8 = sadd.s32 19, %s6869_s15 }
 0x1ce   : > { %s549_s14 = sshll.u32 %s6697_s1, 4  ;;  %s7206_s19 = sld [smem:[#allocation5 + %s553_s8]]  ;;  %s550_s14 = int_to_ptr.vmem [resolvable:$true] %s549_s14 }
 0x1cf   : > { %s569_s17 = sadd.s32 20, %s6869_s15  ;;  %s3165_s29 = sshll.u32 %s7190_s7, 4 }
 0x1d0   : > { %s6698_s21 = smov [#allocation2 + $0x13]   ;;  %s540_s0 = scalar_lea.hbm %s9425_s4, %s3165_s29 }
 0x1d1   : > { %s565_s6 = sshll.u32 %s6698_s21, 4  ;;  %s3938_s10 = scalar_lea.hbm %s540_s0, 16  ;;  %s7213_s6 = int_to_ptr.vmem [resolvable:$true] %s565_s6 }
 0x1d2   : > { %p3939_p8 = scmp.ne.s32.totalorder %s540_s0, %s3938_s10  ;;  %p3941_p9 = scmp.lt.u32.totalorder %s540_s0, %s9425_s4 }
 0x1d3   : > { %p3942_p11 = scmp.lt.u32.totalorder %s6901_s12, %s3938_s10  ;;  %p3944_p0 = scmp.lt.u32.totalorder %s3938_s10, %s540_s0 }
 0x1d5   : > { %p3943_p13 = por %p3942_p11, %p3941_p9 }
 0x1d7   : > { %p3945_p1 = por %p3944_p0, %p3943_p13 }
 0x1d9   : > { %p3946_p2 = pnand %p3945_p1, %p3939_p8 }
 0x1db   : > { %3949 = shalt.err (!%p3946_p2)  }
 0x1dc   : > { %s3950_s7 = scalar_lea.vmem %s550_s14, 16  ;;  %p3955_p4 = scmp.lt.s32.totalorder %s550_s14, %s6884_s9 }
 0x1dd   : > { %p3951_p3 = scmp.ne.s32.totalorder %s550_s14, %s3950_s7  ;;  %p3956_p5 = scmp.lt.s32.totalorder %s6910_s2, %s3950_s7 }
 0x1df   : > { %p3957_p6 = por %p3956_p5, %p3955_p4 }
 0x1e1   : > { %p3958_p7 = pnand %p3957_p6, %p3951_p3 }
 0x1e3   : > { %3961 = shalt.err (!%p3958_p7)  }
 0x1e4   : > { %552 = dma.hbm_to_vmem [thread:$0]  %s540_s0, 16, %s550_s14, [#allocation3] }
 0x1e5   : > { %s7221_s16 = sld [smem:[#allocation5 + %s569_s17]]  ;;  %s3166_s5 = sshll.u32 %s7206_s19, 4 }
 0x1e6   : > { %s6699_s1 = smov [#allocation2 + $0x14]   ;;  %s556_s18 = scalar_lea.hbm %s9425_s4, %s3166_s5 }
 0x1e7   : > { %s581_s8 = sshll.u32 %s6699_s1, 4  ;;  %s3962_s23 = scalar_lea.hbm %s556_s18, 16  ;;  %s7227_s8 = int_to_ptr.vmem [resolvable:$true] %s581_s8 }
 0x1e8   : > { %p3963_p8 = scmp.ne.s32.totalorder %s556_s18, %s3962_s23  ;;  %p3965_p9 = scmp.lt.u32.totalorder %s556_s18, %s9425_s4 }
 0x1e9   : > { %p3966_p11 = scmp.lt.u32.totalorder %s6901_s12, %s3962_s23  ;;  %p3968_p0 = scmp.lt.u32.totalorder %s3962_s23, %s556_s18 }
 0x1eb   : > { %p3967_p13 = por %p3966_p11, %p3965_p9 }
 0x1ed   : > { %p3969_p1 = por %p3968_p0, %p3967_p13 }
 0x1ef   : > { %p3970_p2 = pnand %p3969_p1, %p3963_p8 }
 0x1f1   : > { %3973 = shalt.err (!%p3970_p2)  }
 0x1f2   : > { %s3974_s14 = scalar_lea.vmem %s7213_s6, 16  ;;  %p3979_p4 = scmp.lt.s32.totalorder %s7213_s6, %s6884_s9 }
 0x1f3   : > { %p3975_p3 = scmp.ne.s32.totalorder %s7213_s6, %s3974_s14  ;;  %p3980_p5 = scmp.lt.s32.totalorder %s6910_s2, %s3974_s14 }
 0x1f5   : > { %p3981_p6 = por %p3980_p5, %p3979_p4 }
 0x1f7   : > { %p3982_p7 = pnand %p3981_p6, %p3975_p3 }
 0x1f9   : > { %3985 = shalt.err (!%p3982_p7)  }
 0x1fa   : > { %568 = dma.hbm_to_vmem [thread:$0]  %s556_s18, 16, %s7213_s6, [#allocation3] }
 0x1fb   : > { %s585_s19 = sadd.s32 21, %s6869_s15  ;;  %s6700_s0 = smov [#allocation2 + $0x15]  }
 0x1fc   : > { %s7240_s17 = sld [smem:[#allocation5 + %s585_s19]]  ;;  %s597_s20 = sshll.u32 %s6700_s0, 4  ;;  %s7243_s20 = int_to_ptr.vmem [resolvable:$true] %s597_s20 }
 0x1fd   : > { %s3167_s7 = sshll.u32 %s7221_s16, 4  ;;  %s601_s21 = sadd.s32 22, %s6869_s15 }
 0x1fe   : > { %s572_s29 = scalar_lea.hbm %s9425_s4, %s3167_s7 }
 0x1ff   : > { %s3986_s23 = scalar_lea.hbm %s572_s29, 16  ;;  %p3989_p9 = scmp.lt.u32.totalorder %s572_s29, %s9425_s4 }
 0x200   : > { %p3987_p8 = scmp.ne.s32.totalorder %s572_s29, %s3986_s23  ;;  %p3990_p11 = scmp.lt.u32.totalorder %s6901_s12, %s3986_s23 }
 0x201   : > { %p3992_p0 = scmp.lt.u32.totalorder %s3986_s23, %s572_s29 }
 0x202   : > { %p3991_p13 = por %p3990_p11, %p3989_p9 }
 0x204   : > { %p3993_p1 = por %p3992_p0, %p3991_p13 }
 0x206   : > { %p3994_p2 = pnand %p3993_p1, %p3987_p8 }
 0x208   : > { %3997 = shalt.err (!%p3994_p2)  }
 0x209   : > { %s3998_s6 = scalar_lea.vmem %s7227_s8, 16  ;;  %p4003_p4 = scmp.lt.s32.totalorder %s7227_s8, %s6884_s9 }
 0x20a   : > { %p3999_p3 = scmp.ne.s32.totalorder %s7227_s8, %s3998_s6  ;;  %p4004_p5 = scmp.lt.s32.totalorder %s6910_s2, %s3998_s6 }
 0x20c   : > { %p4005_p6 = por %p4004_p5, %p4003_p4 }
 0x20e   : > { %p4006_p7 = pnand %p4005_p6, %p3999_p3 }
 0x210   : > { %4009 = shalt.err (!%p4006_p7)  }
 0x211   : > { %584 = dma.hbm_to_vmem [thread:$0]  %s572_s29, 16, %s7227_s8, [#allocation3] }
 0x212   : > { %s7259_s16 = sld [smem:[#allocation5 + %s601_s21]]  ;;  %s6701_s18 = smov [#allocation2 + $0x16]  }
 0x213   : > { %s613_s14 = sshll.u32 %s6701_s18, 4  ;;  %s617_s19 = sadd.s32 23, %s6869_s15  ;;  %s7263_s14 = int_to_ptr.vmem [resolvable:$true] %s613_s14 }
 0x214   : > { %s3168_s0 = sshll.u32 %s7240_s17, 4  ;;  %s7268_s23 = sld [smem:[#allocation5 + %s617_s19]] }
 0x215   : > { %s588_s1 = scalar_lea.hbm %s9425_s4, %s3168_s0 }
 0x216   : > { %s4010_s10 = scalar_lea.hbm %s588_s1, 16  ;;  %p4013_p9 = scmp.lt.u32.totalorder %s588_s1, %s9425_s4 }
 0x217   : > { %p4011_p8 = scmp.ne.s32.totalorder %s588_s1, %s4010_s10  ;;  %p4014_p11 = scmp.lt.u32.totalorder %s6901_s12, %s4010_s10 }
 0x218   : > { %p4016_p0 = scmp.lt.u32.totalorder %s4010_s10, %s588_s1 }
 0x219   : > { %p4015_p13 = por %p4014_p11, %p4013_p9 }
 0x21b   : > { %p4017_p1 = por %p4016_p0, %p4015_p13 }
 0x21d   : > { %p4018_p2 = pnand %p4017_p1, %p4011_p8 }
 0x21f   : > { %4021 = shalt.err (!%p4018_p2)  }
 0x220   : > { %s4022_s8 = scalar_lea.vmem %s7243_s20, 16  ;;  %p4027_p4 = scmp.lt.s32.totalorder %s7243_s20, %s6884_s9 }
 0x221   : > { %p4023_p3 = scmp.ne.s32.totalorder %s7243_s20, %s4022_s8  ;;  %p4028_p5 = scmp.lt.s32.totalorder %s6910_s2, %s4022_s8 }
 0x223   : > { %p4029_p6 = por %p4028_p5, %p4027_p4 }
 0x225   : > { %p4030_p7 = pnand %p4029_p6, %p4023_p3 }
 0x227   : > { %4033 = shalt.err (!%p4030_p7)  }
 0x228   : > { %600 = dma.hbm_to_vmem [thread:$0]  %s588_s1, 16, %s7243_s20, [#allocation3] }
 0x229   : > { %s633_s17 = sadd.s32 24, %s6869_s15  ;;  %s3169_s29 = sshll.u32 %s7259_s16, 4 }
 0x22a   : > { %s6702_s21 = smov [#allocation2 + $0x17]   ;;  %s604_s7 = scalar_lea.hbm %s9425_s4, %s3169_s29 }
 0x22b   : > { %s629_s18 = sshll.u32 %s6702_s21, 4  ;;  %s4034_s5 = scalar_lea.hbm %s604_s7, 16  ;;  %s7285_s18 = int_to_ptr.vmem [resolvable:$true] %s629_s18 }
 0x22c   : > { %p4035_p8 = scmp.ne.s32.totalorder %s604_s7, %s4034_s5  ;;  %p4037_p9 = scmp.lt.u32.totalorder %s604_s7, %s9425_s4 }
 0x22d   : > { %p4038_p11 = scmp.lt.u32.totalorder %s6901_s12, %s4034_s5  ;;  %p4040_p0 = scmp.lt.u32.totalorder %s4034_s5, %s604_s7 }
 0x22f   : > { %p4039_p13 = por %p4038_p11, %p4037_p9 }
 0x231   : > { %p4041_p1 = por %p4040_p0, %p4039_p13 }
 0x233   : > { %p4042_p2 = pnand %p4041_p1, %p4035_p8 }
 0x235   : > { %4045 = shalt.err (!%p4042_p2)  }
 0x236   : > { %s4046_s20 = scalar_lea.vmem %s7263_s14, 16  ;;  %p4051_p4 = scmp.lt.s32.totalorder %s7263_s14, %s6884_s9 }
 0x237   : > { %p4047_p3 = scmp.ne.s32.totalorder %s7263_s14, %s4046_s20  ;;  %p4052_p5 = scmp.lt.s32.totalorder %s6910_s2, %s4046_s20 }
 0x239   : > { %p4053_p6 = por %p4052_p5, %p4051_p4 }
 0x23b   : > { %p4054_p7 = pnand %p4053_p6, %p4047_p3 }
 0x23d   : > { %4057 = shalt.err (!%p4054_p7)  }
 0x23e   : > { %616 = dma.hbm_to_vmem [thread:$0]  %s604_s7, 16, %s7263_s14, [#allocation3] }
 0x23f   : > { %s3170_s16 = sshll.u32 %s7268_s23, 4  ;;  %s7298_s1 = sld [smem:[#allocation5 + %s633_s17]] }
 0x240   : > { %s620_s29 = scalar_lea.hbm %s9425_s4, %s3170_s16 }
 0x241   : > { %s4058_s21 = scalar_lea.hbm %s620_s29, 16  ;;  %p4061_p9 = scmp.lt.u32.totalorder %s620_s29, %s9425_s4 }
 0x242   : > { %p4059_p8 = scmp.ne.s32.totalorder %s620_s29, %s4058_s21  ;;  %p4062_p11 = scmp.lt.u32.totalorder %s6901_s12, %s4058_s21 }
 0x243   : > { %p4064_p0 = scmp.lt.u32.totalorder %s4058_s21, %s620_s29 }
 0x244   : > { %p4063_p13 = por %p4062_p11, %p4061_p9 }
 0x246   : > { %p4065_p1 = por %p4064_p0, %p4063_p13 }
 0x248   : > { %p4066_p2 = pnand %p4065_p1, %p4059_p8 }
 0x24a   : > { %4069 = shalt.err (!%p4066_p2)  }
 0x24b   : > { %s4070_s14 = scalar_lea.vmem %s7285_s18, 16  ;;  %p4075_p4 = scmp.lt.s32.totalorder %s7285_s18, %s6884_s9 }
 0x24c   : > { %p4071_p3 = scmp.ne.s32.totalorder %s7285_s18, %s4070_s14  ;;  %p4076_p5 = scmp.lt.s32.totalorder %s6910_s2, %s4070_s14 }
 0x24e   : > { %p4077_p6 = por %p4076_p5, %p4075_p4 }
 0x250   : > { %p4078_p7 = pnand %p4077_p6, %p4071_p3 }
 0x252   : > { %4081 = shalt.err (!%p4078_p7)  }
 0x253   : > { %632 = dma.hbm_to_vmem [thread:$0]  %s620_s29, 16, %s7285_s18, [#allocation3] }
 0x254   : > { %s6703_s23 = smov [#allocation2 + $0x18]   ;;  %s649_s7 = sadd.s32 25, %s6869_s15 }
 0x255   : > { %s645_s17 = sshll.u32 %s6703_s23, 4  ;;  %s7314_s5 = sld [smem:[#allocation5 + %s649_s7]]  ;;  %s646_s17 = int_to_ptr.vmem [resolvable:$true] %s645_s17 }
 0x256   : > { %s665_s10 = sadd.s32 26, %s6869_s15  ;;  %s3171_s26 = sshll.u32 %s7298_s1, 4 }
 0x257   : > { %s6704_s20 = smov [#allocation2 + $0x19]   ;;  %s636_s21 = scalar_lea.hbm %s9425_s4, %s3171_s26 }
 0x258   : > { %s661_s16 = sshll.u32 %s6704_s20, 4  ;;  %s4082_s19 = scalar_lea.hbm %s636_s21, 16  ;;  %s7321_s16 = int_to_ptr.vmem [resolvable:$true] %s661_s16 }
 0x259   : > { %p4083_p8 = scmp.ne.s32.totalorder %s636_s21, %s4082_s19  ;;  %p4085_p9 = scmp.lt.u32.totalorder %s636_s21, %s9425_s4 }
 0x25a   : > { %p4086_p11 = scmp.lt.u32.totalorder %s6901_s12, %s4082_s19  ;;  %p4088_p0 = scmp.lt.u32.totalorder %s4082_s19, %s636_s21 }
 0x25c   : > { %p4087_p13 = por %p4086_p11, %p4085_p9 }
 0x25e   : > { %p4089_p1 = por %p4088_p0, %p4087_p13 }
 0x260   : > { %p4090_p2 = pnand %p4089_p1, %p4083_p8 }
 0x262   : > { %4093 = shalt.err (!%p4090_p2)  }
 0x263   : > { %s4094_s1 = scalar_lea.vmem %s646_s17, 16  ;;  %p4099_p4 = scmp.lt.s32.totalorder %s646_s17, %s6884_s9 }
 0x264   : > { %p4095_p3 = scmp.ne.s32.totalorder %s646_s17, %s4094_s1  ;;  %p4100_p5 = scmp.lt.s32.totalorder %s6910_s2, %s4094_s1 }
 0x266   : > { %p4101_p6 = por %p4100_p5, %p4099_p4 }
 0x268   : > { %p4102_p7 = pnand %p4101_p6, %p4095_p3 }
 0x26a   : > { %4105 = shalt.err (!%p4102_p7)  }
 0x26b   : > { %648 = dma.hbm_to_vmem [thread:$0]  %s636_s21, 16, %s646_s17, [#allocation3] }
 0x26c   : > { %s7329_s29 = sld [smem:[#allocation5 + %s665_s10]]  ;;  %s3172_s14 = sshll.u32 %s7314_s5, 4 }
 0x26d   : > { %s6705_s23 = smov [#allocation2 + $0x1a]   ;;  %s652_s6 = scalar_lea.hbm %s9425_s4, %s3172_s14 }
 0x26e   : > { %s677_s7 = sshll.u32 %s6705_s23, 4  ;;  %s4106_s8 = scalar_lea.hbm %s652_s6, 16  ;;  %s7335_s7 = int_to_ptr.vmem [resolvable:$true] %s677_s7 }
 0x26f   : > { %p4107_p8 = scmp.ne.s32.totalorder %s652_s6, %s4106_s8  ;;  %p4109_p9 = scmp.lt.u32.totalorder %s652_s6, %s9425_s4 }
 0x270   : > { %p4110_p11 = scmp.lt.u32.totalorder %s6901_s12, %s4106_s8  ;;  %p4112_p0 = scmp.lt.u32.totalorder %s4106_s8, %s652_s6 }
 0x272   : > { %p4111_p13 = por %p4110_p11, %p4109_p9 }
 0x274   : > { %p4113_p1 = por %p4112_p0, %p4111_p13 }
 0x276   : > { %p4114_p2 = pnand %p4113_p1, %p4107_p8 }
 0x278   : > { %4117 = shalt.err (!%p4114_p2)  }
 0x279   : > { %s4118_s17 = scalar_lea.vmem %s7321_s16, 16  ;;  %p4123_p4 = scmp.lt.s32.totalorder %s7321_s16, %s6884_s9 }
 0x27a   : > { %p4119_p3 = scmp.ne.s32.totalorder %s7321_s16, %s4118_s17  ;;  %p4124_p5 = scmp.lt.s32.totalorder %s6910_s2, %s4118_s17 }
 0x27c   : > { %p4125_p6 = por %p4124_p5, %p4123_p4 }
 0x27e   : > { %p4126_p7 = pnand %p4125_p6, %p4119_p3 }
 0x280   : > { %4129 = shalt.err (!%p4126_p7)  }
 0x281   : > { %664 = dma.hbm_to_vmem [thread:$0]  %s652_s6, 16, %s7321_s16, [#allocation3] }
 0x282   : > { %s681_s5 = sadd.s32 27, %s6869_s15  ;;  %s6706_s21 = smov [#allocation2 + $0x1b]  }
 0x283   : > { %s7348_s10 = sld [smem:[#allocation5 + %s681_s5]]  ;;  %s693_s18 = sshll.u32 %s6706_s21, 4  ;;  %s7351_s18 = int_to_ptr.vmem [resolvable:$true] %s693_s18 }
 0x284   : > { %s3173_s1 = sshll.u32 %s7329_s29, 4  ;;  %s697_s20 = sadd.s32 28, %s6869_s15 }
 0x285   : > { %s668_s26 = scalar_lea.hbm %s9425_s4, %s3173_s1 }
 0x286   : > { %s4130_s8 = scalar_lea.hbm %s668_s26, 16  ;;  %p4133_p9 = scmp.lt.u32.totalorder %s668_s26, %s9425_s4 }
 0x287   : > { %p4131_p8 = scmp.ne.s32.totalorder %s668_s26, %s4130_s8  ;;  %p4134_p11 = scmp.lt.u32.totalorder %s6901_s12, %s4130_s8 }
 0x288   : > { %p4136_p0 = scmp.lt.u32.totalorder %s4130_s8, %s668_s26 }
 0x289   : > { %p4135_p13 = por %p4134_p11, %p4133_p9 }
 0x28b   : > { %p4137_p1 = por %p4136_p0, %p4135_p13 }
 0x28d   : > { %p4138_p2 = pnand %p4137_p1, %p4131_p8 }
 0x28f   : > { %4141 = shalt.err (!%p4138_p2)  }
 0x290   : > { %s4142_s16 = scalar_lea.vmem %s7335_s7, 16  ;;  %p4147_p4 = scmp.lt.s32.totalorder %s7335_s7, %s6884_s9 }
 0x291   : > { %p4143_p3 = scmp.ne.s32.totalorder %s7335_s7, %s4142_s16  ;;  %p4148_p5 = scmp.lt.s32.totalorder %s6910_s2, %s4142_s16 }
 0x293   : > { %p4149_p6 = por %p4148_p5, %p4147_p4 }
 0x295   : > { %p4150_p7 = pnand %p4149_p6, %p4143_p3 }
 0x297   : > { %4153 = shalt.err (!%p4150_p7)  }
 0x298   : > { %680 = dma.hbm_to_vmem [thread:$0]  %s668_s26, 16, %s7335_s7, [#allocation3] }
 0x299   : > { %s7367_s29 = sld [smem:[#allocation5 + %s697_s20]]  ;;  %s6707_s6 = smov [#allocation2 + $0x1c]  }
 0x29a   : > { %s709_s17 = sshll.u32 %s6707_s6, 4  ;;  %s713_s5 = sadd.s32 29, %s6869_s15  ;;  %s7371_s17 = int_to_ptr.vmem [resolvable:$true] %s709_s17 }
 0x29b   : > { %s3174_s21 = sshll.u32 %s7348_s10, 4  ;;  %s7376_s8 = sld [smem:[#allocation5 + %s713_s5]] }
 0x29c   : > { %s684_s23 = scalar_lea.hbm %s9425_s4, %s3174_s21 }
 0x29d   : > { %s4154_s19 = scalar_lea.hbm %s684_s23, 16  ;;  %p4157_p9 = scmp.lt.u32.totalorder %s684_s23, %s9425_s4 }
 0x29e   : > { %p4155_p8 = scmp.ne.s32.totalorder %s684_s23, %s4154_s19  ;;  %p4158_p11 = scmp.lt.u32.totalorder %s6901_s12, %s4154_s19 }
 0x29f   : > { %p4160_p0 = scmp.lt.u32.totalorder %s4154_s19, %s684_s23 }
 0x2a0   : > { %p4159_p13 = por %p4158_p11, %p4157_p9 }
 0x2a2   : > { %p4161_p1 = por %p4160_p0, %p4159_p13 }
 0x2a4   : > { %p4162_p2 = pnand %p4161_p1, %p4155_p8 }
 0x2a6   : > { %4165 = shalt.err (!%p4162_p2)  }
 0x2a7   : > { %s4166_s7 = scalar_lea.vmem %s7351_s18, 16  ;;  %p4171_p4 = scmp.lt.s32.totalorder %s7351_s18, %s6884_s9 }
 0x2a8   : > { %p4167_p3 = scmp.ne.s32.totalorder %s7351_s18, %s4166_s7  ;;  %p4172_p5 = scmp.lt.s32.totalorder %s6910_s2, %s4166_s7 }
 0x2aa   : > { %p4173_p6 = por %p4172_p5, %p4171_p4 }
 0x2ac   : > { %p4174_p7 = pnand %p4173_p6, %p4167_p3 }
 0x2ae   : > { %4177 = shalt.err (!%p4174_p7)  }
 0x2af   : > { %696 = dma.hbm_to_vmem [thread:$0]  %s684_s23, 16, %s7351_s18, [#allocation3] }
 0x2b0   : > { %s729_s10 = sadd.s32 30, %s6869_s15  ;;  %s3175_s26 = sshll.u32 %s7367_s29, 4 }
 0x2b1   : > { %s6708_s20 = smov [#allocation2 + $0x1d]   ;;  %s700_s1 = scalar_lea.hbm %s9425_s4, %s3175_s26 }
 0x2b2   : > { %s725_s6 = sshll.u32 %s6708_s20, 4  ;;  %s4178_s14 = scalar_lea.hbm %s700_s1, 16  ;;  %s7393_s6 = int_to_ptr.vmem [resolvable:$true] %s725_s6 }
 0x2b3   : > { %p4179_p8 = scmp.ne.s32.totalorder %s700_s1, %s4178_s14  ;;  %p4181_p9 = scmp.lt.u32.totalorder %s700_s1, %s9425_s4 }
 0x2b4   : > { %p4182_p11 = scmp.lt.u32.totalorder %s6901_s12, %s4178_s14  ;;  %p4184_p0 = scmp.lt.u32.totalorder %s4178_s14, %s700_s1 }
 0x2b6   : > { %p4183_p13 = por %p4182_p11, %p4181_p9 }
 0x2b8   : > { %p4185_p1 = por %p4184_p0, %p4183_p13 }
 0x2ba   : > { %p4186_p2 = pnand %p4185_p1, %p4179_p8 }
 0x2bc   : > { %4189 = shalt.err (!%p4186_p2)  }
 0x2bd   : > { %s4190_s18 = scalar_lea.vmem %s7371_s17, 16  ;;  %p4195_p4 = scmp.lt.s32.totalorder %s7371_s17, %s6884_s9 }
 0x2be   : > { %p4191_p3 = scmp.ne.s32.totalorder %s7371_s17, %s4190_s18  ;;  %p4196_p5 = scmp.lt.s32.totalorder %s6910_s2, %s4190_s18 }
 0x2c0   : > { %p4197_p6 = por %p4196_p5, %p4195_p4 }
 0x2c2   : > { %p4198_p7 = pnand %p4197_p6, %p4191_p3 }
 0x2c4   : > { %4201 = shalt.err (!%p4198_p7)  }
 0x2c5   : > { %712 = dma.hbm_to_vmem [thread:$0]  %s700_s1, 16, %s7371_s17, [#allocation3] }
 0x2c6   : > { %s3176_s29 = sshll.u32 %s7376_s8, 4  ;;  %s7406_s23 = sld [smem:[#allocation5 + %s729_s10]] }
 0x2c7   : > { %s716_s26 = scalar_lea.hbm %s9425_s4, %s3176_s29 }
 0x2c8   : > { %s4202_s20 = scalar_lea.hbm %s716_s26, 16  ;;  %p4205_p9 = scmp.lt.u32.totalorder %s716_s26, %s9425_s4 }
 0x2c9   : > { %p4203_p8 = scmp.ne.s32.totalorder %s716_s26, %s4202_s20  ;;  %p4206_p11 = scmp.lt.u32.totalorder %s6901_s12, %s4202_s20 }
 0x2ca   : > { %p4208_p0 = scmp.lt.u32.totalorder %s4202_s20, %s716_s26 }
 0x2cb   : > { %p4207_p13 = por %p4206_p11, %p4205_p9 }
 0x2cd   : > { %p4209_p1 = por %p4208_p0, %p4207_p13 }
 0x2cf   : > { %p4210_p2 = pnand %p4209_p1, %p4203_p8 }
 0x2d1   : > { %4213 = shalt.err (!%p4210_p2)  }
 0x2d2   : > { %s4214_s17 = scalar_lea.vmem %s7393_s6, 16  ;;  %p4219_p4 = scmp.lt.s32.totalorder %s7393_s6, %s6884_s9 }
 0x2d3   : > { %p4215_p3 = scmp.ne.s32.totalorder %s7393_s6, %s4214_s17  ;;  %p4220_p5 = scmp.lt.s32.totalorder %s6910_s2, %s4214_s17 }
 0x2d5   : > { %p4221_p6 = por %p4220_p5, %p4219_p4 }
 0x2d7   : > { %p4222_p7 = pnand %p4221_p6, %p4215_p3 }
 0x2d9   : > { %4225 = shalt.err (!%p4222_p7)  }
 0x2da   : > { %728 = dma.hbm_to_vmem [thread:$0]  %s716_s26, 16, %s7393_s6, [#allocation3] }
 0x2db   : > { %s6709_s8 = smov [#allocation2 + $0x1e]   ;;  %s745_s1 = sadd.s32 31, %s6869_s15 }
 0x2dc   : > { %s741_s10 = sshll.u32 %s6709_s8, 4  ;;  %s7422_s14 = sld [smem:[#allocation5 + %s745_s1]]  ;;  %s742_s10 = int_to_ptr.vmem [resolvable:$true] %s741_s10 }
 0x2dd   : > { %s761_s19 = sadd.s32 32, %s6869_s15  ;;  %s3177_s0 = sshll.u32 %s7406_s23, 4 }
 0x2de   : > { %s6710_s18 = smov [#allocation2 + $0x1f]   ;;  %s732_s20 = scalar_lea.hbm %s9425_s4, %s3177_s0 }
 0x2df   : > { %s757_s29 = sshll.u32 %s6710_s18, 4  ;;  %s4226_s5 = scalar_lea.hbm %s732_s20, 16  ;;  %s7429_s29 = int_to_ptr.vmem [resolvable:$true] %s757_s29 }
 0x2e0   : > { %p4227_p8 = scmp.ne.s32.totalorder %s732_s20, %s4226_s5  ;;  %p4229_p9 = scmp.lt.u32.totalorder %s732_s20, %s9425_s4 }
 0x2e1   : > { %p4230_p11 = scmp.lt.u32.totalorder %s6901_s12, %s4226_s5  ;;  %p4232_p0 = scmp.lt.u32.totalorder %s4226_s5, %s732_s20 }
 0x2e3   : > { %p4231_p13 = por %p4230_p11, %p4229_p9 }
 0x2e5   : > { %p4233_p1 = por %p4232_p0, %p4231_p13 }
 0x2e7   : > { %p4234_p2 = pnand %p4233_p1, %p4227_p8 }
 0x2e9   : > { %4237 = shalt.err (!%p4234_p2)  }
 0x2ea   : > { %s4238_s23 = scalar_lea.vmem %s742_s10, 16  ;;  %p4243_p4 = scmp.lt.s32.totalorder %s742_s10, %s6884_s9 }
 0x2eb   : > { %p4239_p3 = scmp.ne.s32.totalorder %s742_s10, %s4238_s23  ;;  %p4244_p5 = scmp.lt.s32.totalorder %s6910_s2, %s4238_s23 }
 0x2ed   : > { %p4245_p6 = por %p4244_p5, %p4243_p4 }
 0x2ef   : > { %p4246_p7 = pnand %p4245_p6, %p4239_p3 }
 0x2f1   : > { %4249 = shalt.err (!%p4246_p7)  }
 0x2f2   : > { %744 = dma.hbm_to_vmem [thread:$0]  %s732_s20, 16, %s742_s10, [#allocation3] }
 0x2f3   : > { %s7437_s26 = sld [smem:[#allocation5 + %s761_s19]]  ;;  %s3178_s17 = sshll.u32 %s7422_s14, 4 }
 0x2f4   : > { %s6711_s8 = smov [#allocation2 + $0x20]   ;;  %s748_s16 = scalar_lea.hbm %s9425_s4, %s3178_s17 }
 0x2f5   : > { %s773_s1 = sshll.u32 %s6711_s8, 4  ;;  %s4250_s7 = scalar_lea.hbm %s748_s16, 16  ;;  %s7443_s1 = int_to_ptr.vmem [resolvable:$true] %s773_s1 }
 0x2f6   : > { %p4251_p8 = scmp.ne.s32.totalorder %s748_s16, %s4250_s7  ;;  %p4253_p9 = scmp.lt.u32.totalorder %s748_s16, %s9425_s4 }
 0x2f7   : > { %p4254_p11 = scmp.lt.u32.totalorder %s6901_s12, %s4250_s7  ;;  %p4256_p0 = scmp.lt.u32.totalorder %s4250_s7, %s748_s16 }
 0x2f9   : > { %p4255_p13 = por %p4254_p11, %p4253_p9 }
 0x2fb   : > { %p4257_p1 = por %p4256_p0, %p4255_p13 }
 0x2fd   : > { %p4258_p2 = pnand %p4257_p1, %p4251_p8 }
 0x2ff   : > { %4261 = shalt.err (!%p4258_p2)  }
 0x300   : > { %s4262_s10 = scalar_lea.vmem %s7429_s29, 16  ;;  %p4267_p4 = scmp.lt.s32.totalorder %s7429_s29, %s6884_s9 }
 0x301   : > { %p4263_p3 = scmp.ne.s32.totalorder %s7429_s29, %s4262_s10  ;;  %p4268_p5 = scmp.lt.s32.totalorder %s6910_s2, %s4262_s10 }
 0x303   : > { %p4269_p6 = por %p4268_p5, %p4267_p4 }
 0x305   : > { %p4270_p7 = pnand %p4269_p6, %p4263_p3 }
 0x307   : > { %4273 = shalt.err (!%p4270_p7)  }
 0x308   : > { %760 = dma.hbm_to_vmem [thread:$0]  %s748_s16, 16, %s7429_s29, [#allocation3] }
 0x309   : > { %s777_s14 = sadd.s32 33, %s6869_s15  ;;  %s6712_s20 = smov [#allocation2 + $0x21]  }
 0x30a   : > { %s7456_s19 = sld [smem:[#allocation5 + %s777_s14]]  ;;  %s789_s6 = sshll.u32 %s6712_s20, 4  ;;  %s7459_s6 = int_to_ptr.vmem [resolvable:$true] %s789_s6 }
 0x30b   : > { %s3179_s23 = sshll.u32 %s7437_s26, 4  ;;  %s793_s18 = sadd.s32 34, %s6869_s15 }
 0x30c   : > { %s764_s0 = scalar_lea.hbm %s9425_s4, %s3179_s23 }
 0x30d   : > { %s4274_s7 = scalar_lea.hbm %s764_s0, 16  ;;  %p4277_p9 = scmp.lt.u32.totalorder %s764_s0, %s9425_s4 }
 0x30e   : > { %p4275_p8 = scmp.ne.s32.totalorder %s764_s0, %s4274_s7  ;;  %p4278_p11 = scmp.lt.u32.totalorder %s6901_s12, %s4274_s7 }
 0x30f   : > { %p4280_p0 = scmp.lt.u32.totalorder %s4274_s7, %s764_s0 }
 0x310   : > { %p4279_p13 = por %p4278_p11, %p4277_p9 }
 0x312   : > { %p4281_p1 = por %p4280_p0, %p4279_p13 }
 0x314   : > { %p4282_p2 = pnand %p4281_p1, %p4275_p8 }
 0x316   : > { %4285 = shalt.err (!%p4282_p2)  }
 0x317   : > { %s4286_s29 = scalar_lea.vmem %s7443_s1, 16  ;;  %p4291_p4 = scmp.lt.s32.totalorder %s7443_s1, %s6884_s9 }
 0x318   : > { %p4287_p3 = scmp.ne.s32.totalorder %s7443_s1, %s4286_s29  ;;  %p4292_p5 = scmp.lt.s32.totalorder %s6910_s2, %s4286_s29 }
 0x31a   : > { %p4293_p6 = por %p4292_p5, %p4291_p4 }
 0x31c   : > { %p4294_p7 = pnand %p4293_p6, %p4287_p3 }
 0x31e   : > { %4297 = shalt.err (!%p4294_p7)  }
 0x31f   : > { %776 = dma.hbm_to_vmem [thread:$0]  %s764_s0, 16, %s7443_s1, [#allocation3] }
 0x320   : > { %s7475_s26 = sld [smem:[#allocation5 + %s793_s18]]  ;;  %s6713_s16 = smov [#allocation2 + $0x22]  }
 0x321   : > { %s805_s10 = sshll.u32 %s6713_s16, 4  ;;  %s809_s14 = sadd.s32 35, %s6869_s15  ;;  %s7479_s10 = int_to_ptr.vmem [resolvable:$true] %s805_s10 }
 0x322   : > { %s3180_s20 = sshll.u32 %s7456_s19, 4  ;;  %s7484_s7 = sld [smem:[#allocation5 + %s809_s14]] }
 0x323   : > { %s780_s8 = scalar_lea.hbm %s9425_s4, %s3180_s20 }
 0x324   : > { %s4298_s5 = scalar_lea.hbm %s780_s8, 16  ;;  %p4301_p9 = scmp.lt.u32.totalorder %s780_s8, %s9425_s4 }
 0x325   : > { %p4299_p8 = scmp.ne.s32.totalorder %s780_s8, %s4298_s5  ;;  %p4302_p11 = scmp.lt.u32.totalorder %s6901_s12, %s4298_s5 }
 0x326   : > { %p4304_p0 = scmp.lt.u32.totalorder %s4298_s5, %s780_s8 }
 0x327   : > { %p4303_p13 = por %p4302_p11, %p4301_p9 }
 0x329   : > { %p4305_p1 = por %p4304_p0, %p4303_p13 }
 0x32b   : > { %p4306_p2 = pnand %p4305_p1, %p4299_p8 }
 0x32d   : > { %4309 = shalt.err (!%p4306_p2)  }
 0x32e   : > { %s4310_s1 = scalar_lea.vmem %s7459_s6, 16  ;;  %p4315_p4 = scmp.lt.s32.totalorder %s7459_s6, %s6884_s9 }
 0x32f   : > { %p4311_p3 = scmp.ne.s32.totalorder %s7459_s6, %s4310_s1  ;;  %p4316_p5 = scmp.lt.s32.totalorder %s6910_s2, %s4310_s1 }
 0x331   : > { %p4317_p6 = por %p4316_p5, %p4315_p4 }
 0x333   : > { %p4318_p7 = pnand %p4317_p6, %p4311_p3 }
 0x335   : > { %4321 = shalt.err (!%p4318_p7)  }
 0x336   : > { %792 = dma.hbm_to_vmem [thread:$0]  %s780_s8, 16, %s7459_s6, [#allocation3] }
 0x337   : > { %s825_s19 = sadd.s32 36, %s6869_s15  ;;  %s3181_s0 = sshll.u32 %s7475_s26, 4 }
 0x338   : > { %s6714_s18 = smov [#allocation2 + $0x23]   ;;  %s796_s23 = scalar_lea.hbm %s9425_s4, %s3181_s0 }
 0x339   : > { %s821_s16 = sshll.u32 %s6714_s18, 4  ;;  %s4322_s17 = scalar_lea.hbm %s796_s23, 16  ;;  %s7501_s16 = int_to_ptr.vmem [resolvable:$true] %s821_s16 }
 0x33a   : > { %p4323_p8 = scmp.ne.s32.totalorder %s796_s23, %s4322_s17  ;;  %p4325_p9 = scmp.lt.u32.totalorder %s796_s23, %s9425_s4 }
 0x33b   : > { %p4326_p11 = scmp.lt.u32.totalorder %s6901_s12, %s4322_s17  ;;  %p4328_p0 = scmp.lt.u32.totalorder %s4322_s17, %s796_s23 }
 0x33d   : > { %p4327_p13 = por %p4326_p11, %p4325_p9 }
 0x33f   : > { %p4329_p1 = por %p4328_p0, %p4327_p13 }
 0x341   : > { %p4330_p2 = pnand %p4329_p1, %p4323_p8 }
 0x343   : > { %4333 = shalt.err (!%p4330_p2)  }
 0x344   : > { %s4334_s6 = scalar_lea.vmem %s7479_s10, 16  ;;  %p4339_p4 = scmp.lt.s32.totalorder %s7479_s10, %s6884_s9 }
 0x345   : > { %p4335_p3 = scmp.ne.s32.totalorder %s7479_s10, %s4334_s6  ;;  %p4340_p5 = scmp.lt.s32.totalorder %s6910_s2, %s4334_s6 }
 0x347   : > { %p4341_p6 = por %p4340_p5, %p4339_p4 }
 0x349   : > { %p4342_p7 = pnand %p4341_p6, %p4335_p3 }
 0x34b   : > { %4345 = shalt.err (!%p4342_p7)  }
 0x34c   : > { %808 = dma.hbm_to_vmem [thread:$0]  %s796_s23, 16, %s7479_s10, [#allocation3] }
 0x34d   : > { %s3182_s26 = sshll.u32 %s7484_s7, 4  ;;  %s7514_s8 = sld [smem:[#allocation5 + %s825_s19]] }
 0x34e   : > { %s812_s0 = scalar_lea.hbm %s9425_s4, %s3182_s26 }
 0x34f   : > { %s4346_s18 = scalar_lea.hbm %s812_s0, 16  ;;  %p4349_p9 = scmp.lt.u32.totalorder %s812_s0, %s9425_s4 }
 0x350   : > { %p4347_p8 = scmp.ne.s32.totalorder %s812_s0, %s4346_s18  ;;  %p4350_p11 = scmp.lt.u32.totalorder %s6901_s12, %s4346_s18 }
 0x351   : > { %p4352_p0 = scmp.lt.u32.totalorder %s4346_s18, %s812_s0 }
 0x352   : > { %p4351_p13 = por %p4350_p11, %p4349_p9 }
 0x354   : > { %p4353_p1 = por %p4352_p0, %p4351_p13 }
 0x356   : > { %p4354_p2 = pnand %p4353_p1, %p4347_p8 }
 0x358   : > { %4357 = shalt.err (!%p4354_p2)  }
 0x359   : > { %s4358_s10 = scalar_lea.vmem %s7501_s16, 16  ;;  %p4363_p4 = scmp.lt.s32.totalorder %s7501_s16, %s6884_s9 }
 0x35a   : > { %p4359_p3 = scmp.ne.s32.totalorder %s7501_s16, %s4358_s10  ;;  %p4364_p5 = scmp.lt.s32.totalorder %s6910_s2, %s4358_s10 }
 0x35c   : > { %p4365_p6 = por %p4364_p5, %p4363_p4 }
 0x35e   : > { %p4366_p7 = pnand %p4365_p6, %p4359_p3 }
 0x360   : > { %4369 = shalt.err (!%p4366_p7)  }
 0x361   : > { %824 = dma.hbm_to_vmem [thread:$0]  %s812_s0, 16, %s7501_s16, [#allocation3] }
 0x362   : > { %s6715_s7 = smov [#allocation2 + $0x24]   ;;  %s841_s23 = sadd.s32 37, %s6869_s15 }
 0x363   : > { %s837_s19 = sshll.u32 %s6715_s7, 4  ;;  %s7530_s17 = sld [smem:[#allocation5 + %s841_s23]]  ;;  %s838_s19 = int_to_ptr.vmem [resolvable:$true] %s837_s19 }
 0x364   : > { %s857_s5 = sadd.s32 38, %s6869_s15  ;;  %s3183_s21 = sshll.u32 %s7514_s8, 4 }
 0x365   : > { %s6716_s6 = smov [#allocation2 + $0x25]   ;;  %s828_s18 = scalar_lea.hbm %s9425_s4, %s3183_s21 }
 0x366   : > { %s853_s26 = sshll.u32 %s6716_s6, 4  ;;  %s4370_s14 = scalar_lea.hbm %s828_s18, 16  ;;  %s7537_s26 = int_to_ptr.vmem [resolvable:$true] %s853_s26 }
 0x367   : > { %p4371_p8 = scmp.ne.s32.totalorder %s828_s18, %s4370_s14  ;;  %p4373_p9 = scmp.lt.u32.totalorder %s828_s18, %s9425_s4 }
 0x368   : > { %p4374_p11 = scmp.lt.u32.totalorder %s6901_s12, %s4370_s14  ;;  %p4376_p0 = scmp.lt.u32.totalorder %s4370_s14, %s828_s18 }
 0x36a   : > { %p4375_p13 = por %p4374_p11, %p4373_p9 }
 0x36c   : > { %p4377_p1 = por %p4376_p0, %p4375_p13 }
 0x36e   : > { %p4378_p2 = pnand %p4377_p1, %p4371_p8 }
 0x370   : > { %4381 = shalt.err (!%p4378_p2)  }
 0x371   : > { %s4382_s8 = scalar_lea.vmem %s838_s19, 16  ;;  %p4387_p4 = scmp.lt.s32.totalorder %s838_s19, %s6884_s9 }
 0x372   : > { %p4383_p3 = scmp.ne.s32.totalorder %s838_s19, %s4382_s8  ;;  %p4388_p5 = scmp.lt.s32.totalorder %s6910_s2, %s4382_s8 }
 0x374   : > { %p4389_p6 = por %p4388_p5, %p4387_p4 }
 0x376   : > { %p4390_p7 = pnand %p4389_p6, %p4383_p3 }
 0x378   : > { %4393 = shalt.err (!%p4390_p7)  }
 0x379   : > { %840 = dma.hbm_to_vmem [thread:$0]  %s828_s18, 16, %s838_s19, [#allocation3] }
 0x37a   : > { %s7545_s0 = sld [smem:[#allocation5 + %s857_s5]]  ;;  %s3184_s10 = sshll.u32 %s7530_s17, 4 }
 0x37b   : > { %s6717_s7 = smov [#allocation2 + $0x26]   ;;  %s844_s29 = scalar_lea.hbm %s9425_s4, %s3184_s10 }
 0x37c   : > { %s869_s23 = sshll.u32 %s6717_s7, 4  ;;  %s4394_s1 = scalar_lea.hbm %s844_s29, 16  ;;  %s7551_s23 = int_to_ptr.vmem [resolvable:$true] %s869_s23 }
 0x37d   : > { %p4395_p8 = scmp.ne.s32.totalorder %s844_s29, %s4394_s1  ;;  %p4397_p9 = scmp.lt.u32.totalorder %s844_s29, %s9425_s4 }
 0x37e   : > { %p4398_p11 = scmp.lt.u32.totalorder %s6901_s12, %s4394_s1  ;;  %p4400_p0 = scmp.lt.u32.totalorder %s4394_s1, %s844_s29 }
 0x380   : > { %p4399_p13 = por %p4398_p11, %p4397_p9 }
 0x382   : > { %p4401_p1 = por %p4400_p0, %p4399_p13 }
 0x384   : > { %p4402_p2 = pnand %p4401_p1, %p4395_p8 }
 0x386   : > { %4405 = shalt.err (!%p4402_p2)  }
 0x387   : > { %s4406_s19 = scalar_lea.vmem %s7537_s26, 16  ;;  %p4411_p4 = scmp.lt.s32.totalorder %s7537_s26, %s6884_s9 }
 0x388   : > { %p4407_p3 = scmp.ne.s32.totalorder %s7537_s26, %s4406_s19  ;;  %p4412_p5 = scmp.lt.s32.totalorder %s6910_s2, %s4406_s19 }
 0x38a   : > { %p4413_p6 = por %p4412_p5, %p4411_p4 }
 0x38c   : > { %p4414_p7 = pnand %p4413_p6, %p4407_p3 }
 0x38e   : > { %4417 = shalt.err (!%p4414_p7)  }
 0x38f   : > { %856 = dma.hbm_to_vmem [thread:$0]  %s844_s29, 16, %s7537_s26, [#allocation3] }
 0x390   : > { %s873_s17 = sadd.s32 39, %s6869_s15  ;;  %s6718_s18 = smov [#allocation2 + $0x27]  }
 0x391   : > { %s7564_s5 = sld [smem:[#allocation5 + %s873_s17]]  ;;  %s885_s16 = sshll.u32 %s6718_s18, 4  ;;  %s7567_s16 = int_to_ptr.vmem [resolvable:$true] %s885_s16 }
 0x392   : > { %s3185_s8 = sshll.u32 %s7545_s0, 4  ;;  %s889_s6 = sadd.s32 40, %s6869_s15 }
 0x393   : > { %s860_s21 = scalar_lea.hbm %s9425_s4, %s3185_s8 }
 0x394   : > { %s4418_s1 = scalar_lea.hbm %s860_s21, 16  ;;  %p4421_p9 = scmp.lt.u32.totalorder %s860_s21, %s9425_s4 }
 0x395   : > { %p4419_p8 = scmp.ne.s32.totalorder %s860_s21, %s4418_s1  ;;  %p4422_p11 = scmp.lt.u32.totalorder %s6901_s12, %s4418_s1 }
 0x396   : > { %p4424_p0 = scmp.lt.u32.totalorder %s4418_s1, %s860_s21 }
 0x397   : > { %p4423_p13 = por %p4422_p11, %p4421_p9 }
 0x399   : > { %p4425_p1 = por %p4424_p0, %p4423_p13 }
 0x39b   : > { %p4426_p2 = pnand %p4425_p1, %p4419_p8 }
 0x39d   : > { %4429 = shalt.err (!%p4426_p2)  }
 0x39e   : > { %s4430_s26 = scalar_lea.vmem %s7551_s23, 16  ;;  %p4435_p4 = scmp.lt.s32.totalorder %s7551_s23, %s6884_s9 }
 0x39f   : > { %p4431_p3 = scmp.ne.s32.totalorder %s7551_s23, %s4430_s26  ;;  %p4436_p5 = scmp.lt.s32.totalorder %s6910_s2, %s4430_s26 }
 0x3a1   : > { %p4437_p6 = por %p4436_p5, %p4435_p4 }
 0x3a3   : > { %p4438_p7 = pnand %p4437_p6, %p4431_p3 }
 0x3a5   : > { %4441 = shalt.err (!%p4438_p7)  }
 0x3a6   : > { %872 = dma.hbm_to_vmem [thread:$0]  %s860_s21, 16, %s7551_s23, [#allocation3] }
 0x3a7   : > { %s7583_s0 = sld [smem:[#allocation5 + %s889_s6]]  ;;  %s6719_s29 = smov [#allocation2 + $0x28]  }
 0x3a8   : > { %s901_s19 = sshll.u32 %s6719_s29, 4  ;;  %s905_s17 = sadd.s32 41, %s6869_s15  ;;  %s7587_s19 = int_to_ptr.vmem [resolvable:$true] %s901_s19 }
 0x3a9   : > { %s3186_s18 = sshll.u32 %s7564_s5, 4  ;;  %s7592_s1 = sld [smem:[#allocation5 + %s905_s17]] }
 0x3aa   : > { %s876_s7 = scalar_lea.hbm %s9425_s4, %s3186_s18 }
 0x3ab   : > { %s4442_s14 = scalar_lea.hbm %s876_s7, 16  ;;  %p4445_p9 = scmp.lt.u32.totalorder %s876_s7, %s9425_s4 }
 0x3ac   : > { %p4443_p8 = scmp.ne.s32.totalorder %s876_s7, %s4442_s14  ;;  %p4446_p11 = scmp.lt.u32.totalorder %s6901_s12, %s4442_s14 }
 0x3ad   : > { %p4448_p0 = scmp.lt.u32.totalorder %s4442_s14, %s876_s7 }
 0x3ae   : > { %p4447_p13 = por %p4446_p11, %p4445_p9 }
 0x3b0   : > { %p4449_p1 = por %p4448_p0, %p4447_p13 }
 0x3b2   : > { %p4450_p2 = pnand %p4449_p1, %p4443_p8 }
 0x3b4   : > { %4453 = shalt.err (!%p4450_p2)  }
 0x3b5   : > { %s4454_s23 = scalar_lea.vmem %s7567_s16, 16  ;;  %p4459_p4 = scmp.lt.s32.totalorder %s7567_s16, %s6884_s9 }
 0x3b6   : > { %p4455_p3 = scmp.ne.s32.totalorder %s7567_s16, %s4454_s23  ;;  %p4460_p5 = scmp.lt.s32.totalorder %s6910_s2, %s4454_s23 }
 0x3b8   : > { %p4461_p6 = por %p4460_p5, %p4459_p4 }
 0x3ba   : > { %p4462_p7 = pnand %p4461_p6, %p4455_p3 }
 0x3bc   : > { %4465 = shalt.err (!%p4462_p7)  }
 0x3bd   : > { %888 = dma.hbm_to_vmem [thread:$0]  %s876_s7, 16, %s7567_s16, [#allocation3] }
 0x3be   : > { %s921_s5 = sadd.s32 42, %s6869_s15  ;;  %s3187_s21 = sshll.u32 %s7583_s0, 4 }
 0x3bf   : > { %s6720_s6 = smov [#allocation2 + $0x29]   ;;  %s892_s8 = scalar_lea.hbm %s9425_s4, %s3187_s21 }
 0x3c0   : > { %s917_s29 = sshll.u32 %s6720_s6, 4  ;;  %s4466_s10 = scalar_lea.hbm %s892_s8, 16  ;;  %s7609_s29 = int_to_ptr.vmem [resolvable:$true] %s917_s29 }
 0x3c1   : > { %p4467_p8 = scmp.ne.s32.totalorder %s892_s8, %s4466_s10  ;;  %p4469_p9 = scmp.lt.u32.totalorder %s892_s8, %s9425_s4 }
 0x3c2   : > { %p4470_p11 = scmp.lt.u32.totalorder %s6901_s12, %s4466_s10  ;;  %p4472_p0 = scmp.lt.u32.totalorder %s4466_s10, %s892_s8 }
 0x3c4   : > { %p4471_p13 = por %p4470_p11, %p4469_p9 }
 0x3c6   : > { %p4473_p1 = por %p4472_p0, %p4471_p13 }
 0x3c8   : > { %p4474_p2 = pnand %p4473_p1, %p4467_p8 }
 0x3ca   : > { %4477 = shalt.err (!%p4474_p2)  }
 0x3cb   : > { %s4478_s16 = scalar_lea.vmem %s7587_s19, 16  ;;  %p4483_p4 = scmp.lt.s32.totalorder %s7587_s19, %s6884_s9 }
 0x3cc   : > { %p4479_p3 = scmp.ne.s32.totalorder %s7587_s19, %s4478_s16  ;;  %p4484_p5 = scmp.lt.s32.totalorder %s6910_s2, %s4478_s16 }
 0x3ce   : > { %p4485_p6 = por %p4484_p5, %p4483_p4 }
 0x3d0   : > { %p4486_p7 = pnand %p4485_p6, %p4479_p3 }
 0x3d2   : > { %4489 = shalt.err (!%p4486_p7)  }
 0x3d3   : > { %904 = dma.hbm_to_vmem [thread:$0]  %s892_s8, 16, %s7587_s19, [#allocation3] }
 0x3d4   : > { %s3188_s0 = sshll.u32 %s7592_s1, 4  ;;  %s7622_s7 = sld [smem:[#allocation5 + %s921_s5]] }
 0x3d5   : > { %s908_s21 = scalar_lea.hbm %s9425_s4, %s3188_s0 }
 0x3d6   : > { %s4490_s6 = scalar_lea.hbm %s908_s21, 16  ;;  %p4493_p9 = scmp.lt.u32.totalorder %s908_s21, %s9425_s4 }
 0x3d7   : > { %p4491_p8 = scmp.ne.s32.totalorder %s908_s21, %s4490_s6  ;;  %p4494_p11 = scmp.lt.u32.totalorder %s6901_s12, %s4490_s6 }
 0x3d8   : > { %p4496_p0 = scmp.lt.u32.totalorder %s4490_s6, %s908_s21 }
 0x3d9   : > { %p4495_p13 = por %p4494_p11, %p4493_p9 }
 0x3db   : > { %p4497_p1 = por %p4496_p0, %p4495_p13 }
 0x3dd   : > { %p4498_p2 = pnand %p4497_p1, %p4491_p8 }
 0x3df   : > { %4501 = shalt.err (!%p4498_p2)  }
 0x3e0   : > { %s4502_s19 = scalar_lea.vmem %s7609_s29, 16  ;;  %p4507_p4 = scmp.lt.s32.totalorder %s7609_s29, %s6884_s9 }
 0x3e1   : > { %p4503_p3 = scmp.ne.s32.totalorder %s7609_s29, %s4502_s19  ;;  %p4508_p5 = scmp.lt.s32.totalorder %s6910_s2, %s4502_s19 }
 0x3e3   : > { %p4509_p6 = por %p4508_p5, %p4507_p4 }
 0x3e5   : > { %p4510_p7 = pnand %p4509_p6, %p4503_p3 }
 0x3e7   : > { %4513 = shalt.err (!%p4510_p7)  }
 0x3e8   : > { %920 = dma.hbm_to_vmem [thread:$0]  %s908_s21, 16, %s7609_s29, [#allocation3] }
 0x3e9   : > { %s6721_s1 = smov [#allocation2 + $0x2a]   ;;  %s937_s8 = sadd.s32 43, %s6869_s15 }
 0x3ea   : > { %s933_s5 = sshll.u32 %s6721_s1, 4  ;;  %s7638_s10 = sld [smem:[#allocation5 + %s937_s8]]  ;;  %s934_s5 = int_to_ptr.vmem [resolvable:$true] %s933_s5 }
 0x3eb   : > { %s953_s14 = sadd.s32 44, %s6869_s15  ;;  %s3189_s20 = sshll.u32 %s7622_s7, 4 }
 0x3ec   : > { %s6722_s16 = smov [#allocation2 + $0x2b]   ;;  %s924_s6 = scalar_lea.hbm %s9425_s4, %s3189_s20 }
 0x3ed   : > { %s949_s0 = sshll.u32 %s6722_s16, 4  ;;  %s4514_s17 = scalar_lea.hbm %s924_s6, 16  ;;  %s7645_s0 = int_to_ptr.vmem [resolvable:$true] %s949_s0 }
 0x3ee   : > { %p4515_p8 = scmp.ne.s32.totalorder %s924_s6, %s4514_s17  ;;  %p4517_p9 = scmp.lt.u32.totalorder %s924_s6, %s9425_s4 }
 0x3ef   : > { %p4518_p11 = scmp.lt.u32.totalorder %s6901_s12, %s4514_s17  ;;  %p4520_p0 = scmp.lt.u32.totalorder %s4514_s17, %s924_s6 }
 0x3f1   : > { %p4519_p13 = por %p4518_p11, %p4517_p9 }
 0x3f3   : > { %p4521_p1 = por %p4520_p0, %p4519_p13 }
 0x3f5   : > { %p4522_p2 = pnand %p4521_p1, %p4515_p8 }
 0x3f7   : > { %4525 = shalt.err (!%p4522_p2)  }
 0x3f8   : > { %s4526_s7 = scalar_lea.vmem %s934_s5, 16  ;;  %p4531_p4 = scmp.lt.s32.totalorder %s934_s5, %s6884_s9 }
 0x3f9   : > { %p4527_p3 = scmp.ne.s32.totalorder %s934_s5, %s4526_s7  ;;  %p4532_p5 = scmp.lt.s32.totalorder %s6910_s2, %s4526_s7 }
 0x3fb   : > { %p4533_p6 = por %p4532_p5, %p4531_p4 }
 0x3fd   : > { %p4534_p7 = pnand %p4533_p6, %p4527_p3 }
 0x3ff   : > { %4537 = shalt.err (!%p4534_p7)  }
 0x400   : > { %936 = dma.hbm_to_vmem [thread:$0]  %s924_s6, 16, %s934_s5, [#allocation3] }
 0x401   : > { %s7653_s21 = sld [smem:[#allocation5 + %s953_s14]]  ;;  %s3190_s19 = sshll.u32 %s7638_s10, 4 }
 0x402   : > { %s6723_s1 = smov [#allocation2 + $0x2c]   ;;  %s940_s26 = scalar_lea.hbm %s9425_s4, %s3190_s19 }
 0x403   : > { %s965_s8 = sshll.u32 %s6723_s1, 4  ;;  %s4538_s23 = scalar_lea.hbm %s940_s26, 16  ;;  %s7659_s8 = int_to_ptr.vmem [resolvable:$true] %s965_s8 }
 0x404   : > { %p4539_p8 = scmp.ne.s32.totalorder %s940_s26, %s4538_s23  ;;  %p4541_p9 = scmp.lt.u32.totalorder %s940_s26, %s9425_s4 }
 0x405   : > { %p4542_p11 = scmp.lt.u32.totalorder %s6901_s12, %s4538_s23  ;;  %p4544_p0 = scmp.lt.u32.totalorder %s4538_s23, %s940_s26 }
 0x407   : > { %p4543_p13 = por %p4542_p11, %p4541_p9 }
 0x409   : > { %p4545_p1 = por %p4544_p0, %p4543_p13 }
 0x40b   : > { %p4546_p2 = pnand %p4545_p1, %p4539_p8 }
 0x40d   : > { %4549 = shalt.err (!%p4546_p2)  }
 0x40e   : > { %s4550_s5 = scalar_lea.vmem %s7645_s0, 16  ;;  %p4555_p4 = scmp.lt.s32.totalorder %s7645_s0, %s6884_s9 }
 0x40f   : > { %p4551_p3 = scmp.ne.s32.totalorder %s7645_s0, %s4550_s5  ;;  %p4556_p5 = scmp.lt.s32.totalorder %s6910_s2, %s4550_s5 }
 0x411   : > { %p4557_p6 = por %p4556_p5, %p4555_p4 }
 0x413   : > { %p4558_p7 = pnand %p4557_p6, %p4551_p3 }
 0x415   : > { %4561 = shalt.err (!%p4558_p7)  }
 0x416   : > { %952 = dma.hbm_to_vmem [thread:$0]  %s940_s26, 16, %s7645_s0, [#allocation3] }
 0x417   : > { %s969_s10 = sadd.s32 45, %s6869_s15  ;;  %s6724_s6 = smov [#allocation2 + $0x2d]  }
 0x418   : > { %s7672_s14 = sld [smem:[#allocation5 + %s969_s10]]  ;;  %s981_s29 = sshll.u32 %s6724_s6, 4  ;;  %s7675_s29 = int_to_ptr.vmem [resolvable:$true] %s981_s29 }
 0x419   : > { %s3191_s7 = sshll.u32 %s7653_s21, 4  ;;  %s985_s16 = sadd.s32 46, %s6869_s15 }
 0x41a   : > { %s956_s20 = scalar_lea.hbm %s9425_s4, %s3191_s7 }
 0x41b   : > { %s4562_s23 = scalar_lea.hbm %s956_s20, 16  ;;  %p4565_p9 = scmp.lt.u32.totalorder %s956_s20, %s9425_s4 }
 0x41c   : > { %p4563_p8 = scmp.ne.s32.totalorder %s956_s20, %s4562_s23  ;;  %p4566_p11 = scmp.lt.u32.totalorder %s6901_s12, %s4562_s23 }
 0x41d   : > { %p4568_p0 = scmp.lt.u32.totalorder %s4562_s23, %s956_s20 }
 0x41e   : > { %p4567_p13 = por %p4566_p11, %p4565_p9 }
 0x420   : > { %p4569_p1 = por %p4568_p0, %p4567_p13 }
 0x422   : > { %p4570_p2 = pnand %p4569_p1, %p4563_p8 }
 0x424   : > { %4573 = shalt.err (!%p4570_p2)  }
 0x425   : > { %s4574_s0 = scalar_lea.vmem %s7659_s8, 16  ;;  %p4579_p4 = scmp.lt.s32.totalorder %s7659_s8, %s6884_s9 }
 0x426   : > { %p4575_p3 = scmp.ne.s32.totalorder %s7659_s8, %s4574_s0  ;;  %p4580_p5 = scmp.lt.s32.totalorder %s6910_s2, %s4574_s0 }
 0x428   : > { %p4581_p6 = por %p4580_p5, %p4579_p4 }
 0x42a   : > { %p4582_p7 = pnand %p4581_p6, %p4575_p3 }
 0x42c   : > { %4585 = shalt.err (!%p4582_p7)  }
 0x42d   : > { %968 = dma.hbm_to_vmem [thread:$0]  %s956_s20, 16, %s7659_s8, [#allocation3] }
 0x42e   : > { %s7691_s21 = sld [smem:[#allocation5 + %s985_s16]]  ;;  %s6725_s26 = smov [#allocation2 + $0x2e]  }
 0x42f   : > { %s997_s5 = sshll.u32 %s6725_s26, 4  ;;  %s1001_s10 = sadd.s32 47, %s6869_s15  ;;  %s7695_s5 = int_to_ptr.vmem [resolvable:$true] %s997_s5 }
 0x430   : > { %s3192_s6 = sshll.u32 %s7672_s14, 4  ;;  %s7700_s23 = sld [smem:[#allocation5 + %s1001_s10]] }
 0x431   : > { %s972_s1 = scalar_lea.hbm %s9425_s4, %s3192_s6 }
 0x432   : > { %s4586_s17 = scalar_lea.hbm %s972_s1, 16  ;;  %p4589_p9 = scmp.lt.u32.totalorder %s972_s1, %s9425_s4 }
 0x433   : > { %p4587_p8 = scmp.ne.s32.totalorder %s972_s1, %s4586_s17  ;;  %p4590_p11 = scmp.lt.u32.totalorder %s6901_s12, %s4586_s17 }
 0x434   : > { %p4592_p0 = scmp.lt.u32.totalorder %s4586_s17, %s972_s1 }
 0x435   : > { %p4591_p13 = por %p4590_p11, %p4589_p9 }
 0x437   : > { %p4593_p1 = por %p4592_p0, %p4591_p13 }
 0x439   : > { %p4594_p2 = pnand %p4593_p1, %p4587_p8 }
 0x43b   : > { %4597 = shalt.err (!%p4594_p2)  }
 0x43c   : > { %s4598_s8 = scalar_lea.vmem %s7675_s29, 16  ;;  %p4603_p4 = scmp.lt.s32.totalorder %s7675_s29, %s6884_s9 }
 0x43d   : > { %p4599_p3 = scmp.ne.s32.totalorder %s7675_s29, %s4598_s8  ;;  %p4604_p5 = scmp.lt.s32.totalorder %s6910_s2, %s4598_s8 }
 0x43f   : > { %p4605_p6 = por %p4604_p5, %p4603_p4 }
 0x441   : > { %p4606_p7 = pnand %p4605_p6, %p4599_p3 }
 0x443   : > { %4609 = shalt.err (!%p4606_p7)  }
 0x444   : > { %984 = dma.hbm_to_vmem [thread:$0]  %s972_s1, 16, %s7675_s29, [#allocation3] }
 0x445   : > { %s1017_s14 = sadd.s32 48, %s6869_s15  ;;  %s3193_s20 = sshll.u32 %s7691_s21, 4 }
 0x446   : > { %s6726_s16 = smov [#allocation2 + $0x2f]   ;;  %s988_s7 = scalar_lea.hbm %s9425_s4, %s3193_s20 }
 0x447   : > { %s1013_s26 = sshll.u32 %s6726_s16, 4  ;;  %s4610_s19 = scalar_lea.hbm %s988_s7, 16  ;;  %s7717_s26 = int_to_ptr.vmem [resolvable:$true] %s1013_s26 }
 0x448   : > { %p4611_p8 = scmp.ne.s32.totalorder %s988_s7, %s4610_s19  ;;  %p4613_p9 = scmp.lt.u32.totalorder %s988_s7, %s9425_s4 }
 0x449   : > { %p4614_p11 = scmp.lt.u32.totalorder %s6901_s12, %s4610_s19  ;;  %p4616_p0 = scmp.lt.u32.totalorder %s4610_s19, %s988_s7 }
 0x44b   : > { %p4615_p13 = por %p4614_p11, %p4613_p9 }
 0x44d   : > { %p4617_p1 = por %p4616_p0, %p4615_p13 }
 0x44f   : > { %p4618_p2 = pnand %p4617_p1, %p4611_p8 }
 0x451   : > { %4621 = shalt.err (!%p4618_p2)  }
 0x452   : > { %s4622_s29 = scalar_lea.vmem %s7695_s5, 16  ;;  %p4627_p4 = scmp.lt.s32.totalorder %s7695_s5, %s6884_s9 }
 0x453   : > { %p4623_p3 = scmp.ne.s32.totalorder %s7695_s5, %s4622_s29  ;;  %p4628_p5 = scmp.lt.s32.totalorder %s6910_s2, %s4622_s29 }
 0x455   : > { %p4629_p6 = por %p4628_p5, %p4627_p4 }
 0x457   : > { %p4630_p7 = pnand %p4629_p6, %p4623_p3 }
 0x459   : > { %4633 = shalt.err (!%p4630_p7)  }
 0x45a   : > { %1000 = dma.hbm_to_vmem [thread:$0]  %s988_s7, 16, %s7695_s5, [#allocation3] }
 0x45b   : > { %s3194_s21 = sshll.u32 %s7700_s23, 4  ;;  %s7730_s1 = sld [smem:[#allocation5 + %s1017_s14]] }
 0x45c   : > { %s1004_s20 = scalar_lea.hbm %s9425_s4, %s3194_s21 }
 0x45d   : > { %s4634_s16 = scalar_lea.hbm %s1004_s20, 16  ;;  %p4637_p9 = scmp.lt.u32.totalorder %s1004_s20, %s9425_s4 }
 0x45e   : > { %p4635_p8 = scmp.ne.s32.totalorder %s1004_s20, %s4634_s16  ;;  %p4638_p11 = scmp.lt.u32.totalorder %s6901_s12, %s4634_s16 }
 0x45f   : > { %p4640_p0 = scmp.lt.u32.totalorder %s4634_s16, %s1004_s20 }
 0x460   : > { %p4639_p13 = por %p4638_p11, %p4637_p9 }
 0x462   : > { %p4641_p1 = por %p4640_p0, %p4639_p13 }
 0x464   : > { %p4642_p2 = pnand %p4641_p1, %p4635_p8 }
 0x466   : > { %4645 = shalt.err (!%p4642_p2)  }
 0x467   : > { %s4646_s5 = scalar_lea.vmem %s7717_s26, 16  ;;  %p4651_p4 = scmp.lt.s32.totalorder %s7717_s26, %s6884_s9 }
 0x468   : > { %p4647_p3 = scmp.ne.s32.totalorder %s7717_s26, %s4646_s5  ;;  %p4652_p5 = scmp.lt.s32.totalorder %s6910_s2, %s4646_s5 }
 0x46a   : > { %p4653_p6 = por %p4652_p5, %p4651_p4 }
 0x46c   : > { %p4654_p7 = pnand %p4653_p6, %p4647_p3 }
 0x46e   : > { %4657 = shalt.err (!%p4654_p7)  }
 0x46f   : > { %1016 = dma.hbm_to_vmem [thread:$0]  %s1004_s20, 16, %s7717_s26, [#allocation3] }
 0x470   : > { %s6727_s23 = smov [#allocation2 + $0x30]   ;;  %s1033_s7 = sadd.s32 49, %s6869_s15 }
 0x471   : > { %s1029_s14 = sshll.u32 %s6727_s23, 4  ;;  %s7746_s19 = sld [smem:[#allocation5 + %s1033_s7]]  ;;  %s1030_s14 = int_to_ptr.vmem [resolvable:$true] %s1029_s14 }
 0x472   : > { %s1049_s17 = sadd.s32 50, %s6869_s15  ;;  %s3195_s18 = sshll.u32 %s7730_s1, 4 }
 0x473   : > { %s6728_s29 = smov [#allocation2 + $0x31]   ;;  %s1020_s16 = scalar_lea.hbm %s9425_s4, %s3195_s18 }
 0x474   : > { %s1045_s21 = sshll.u32 %s6728_s29, 4  ;;  %s4658_s10 = scalar_lea.hbm %s1020_s16, 16  ;;  %s7753_s21 = int_to_ptr.vmem [resolvable:$true] %s1045_s21 }
 0x475   : > { %p4659_p8 = scmp.ne.s32.totalorder %s1020_s16, %s4658_s10  ;;  %p4661_p9 = scmp.lt.u32.totalorder %s1020_s16, %s9425_s4 }
 0x476   : > { %p4662_p11 = scmp.lt.u32.totalorder %s6901_s12, %s4658_s10  ;;  %p4664_p0 = scmp.lt.u32.totalorder %s4658_s10, %s1020_s16 }
 0x478   : > { %p4663_p13 = por %p4662_p11, %p4661_p9 }
 0x47a   : > { %p4665_p1 = por %p4664_p0, %p4663_p13 }
 0x47c   : > { %p4666_p2 = pnand %p4665_p1, %p4659_p8 }
 0x47e   : > { %4669 = shalt.err (!%p4666_p2)  }
 0x47f   : > { %s4670_s1 = scalar_lea.vmem %s1030_s14, 16  ;;  %p4675_p4 = scmp.lt.s32.totalorder %s1030_s14, %s6884_s9 }
 0x480   : > { %p4671_p3 = scmp.ne.s32.totalorder %s1030_s14, %s4670_s1  ;;  %p4676_p5 = scmp.lt.s32.totalorder %s6910_s2, %s4670_s1 }
 0x482   : > { %p4677_p6 = por %p4676_p5, %p4675_p4 }
 0x484   : > { %p4678_p7 = pnand %p4677_p6, %p4671_p3 }
 0x486   : > { %4681 = shalt.err (!%p4678_p7)  }
 0x487   : > { %1032 = dma.hbm_to_vmem [thread:$0]  %s1020_s16, 16, %s1030_s14, [#allocation3] }
 0x488   : > { %s7761_s20 = sld [smem:[#allocation5 + %s1049_s17]]  ;;  %s3196_s5 = sshll.u32 %s7746_s19, 4 }
 0x489   : > { %s6729_s23 = smov [#allocation2 + $0x32]   ;;  %s1036_s0 = scalar_lea.hbm %s9425_s4, %s3196_s5 }
 0x48a   : > { %s1061_s7 = sshll.u32 %s6729_s23, 4  ;;  %s4682_s8 = scalar_lea.hbm %s1036_s0, 16  ;;  %s7767_s7 = int_to_ptr.vmem [resolvable:$true] %s1061_s7 }
 0x48b   : > { %p4683_p8 = scmp.ne.s32.totalorder %s1036_s0, %s4682_s8  ;;  %p4685_p9 = scmp.lt.u32.totalorder %s1036_s0, %s9425_s4 }
 0x48c   : > { %p4686_p11 = scmp.lt.u32.totalorder %s6901_s12, %s4682_s8  ;;  %p4688_p0 = scmp.lt.u32.totalorder %s4682_s8, %s1036_s0 }
 0x48e   : > { %p4687_p13 = por %p4686_p11, %p4685_p9 }
 0x490   : > { %p4689_p1 = por %p4688_p0, %p4687_p13 }
 0x492   : > { %p4690_p2 = pnand %p4689_p1, %p4683_p8 }
 0x494   : > { %4693 = shalt.err (!%p4690_p2)  }
 0x495   : > { %s4694_s14 = scalar_lea.vmem %s7753_s21, 16  ;;  %p4699_p4 = scmp.lt.s32.totalorder %s7753_s21, %s6884_s9 }
 0x496   : > { %p4695_p3 = scmp.ne.s32.totalorder %s7753_s21, %s4694_s14  ;;  %p4700_p5 = scmp.lt.s32.totalorder %s6910_s2, %s4694_s14 }
 0x498   : > { %p4701_p6 = por %p4700_p5, %p4699_p4 }
 0x49a   : > { %p4702_p7 = pnand %p4701_p6, %p4695_p3 }
 0x49c   : > { %4705 = shalt.err (!%p4702_p7)  }
 0x49d   : > { %1048 = dma.hbm_to_vmem [thread:$0]  %s1036_s0, 16, %s7753_s21, [#allocation3] }
 0x49e   : > { %s1065_s19 = sadd.s32 51, %s6869_s15  ;;  %s6730_s16 = smov [#allocation2 + $0x33]  }
 0x49f   : > { %s7780_s17 = sld [smem:[#allocation5 + %s1065_s19]]  ;;  %s1077_s26 = sshll.u32 %s6730_s16, 4  ;;  %s7783_s26 = int_to_ptr.vmem [resolvable:$true] %s1077_s26 }
 0x4a0   : > { %s3197_s1 = sshll.u32 %s7761_s20, 4  ;;  %s1081_s29 = sadd.s32 52, %s6869_s15 }
 0x4a1   : > { %s1052_s18 = scalar_lea.hbm %s9425_s4, %s3197_s1 }
 0x4a2   : > { %s4706_s8 = scalar_lea.hbm %s1052_s18, 16  ;;  %p4709_p9 = scmp.lt.u32.totalorder %s1052_s18, %s9425_s4 }
 0x4a3   : > { %p4707_p8 = scmp.ne.s32.totalorder %s1052_s18, %s4706_s8  ;;  %p4710_p11 = scmp.lt.u32.totalorder %s6901_s12, %s4706_s8 }
 0x4a4   : > { %p4712_p0 = scmp.lt.u32.totalorder %s4706_s8, %s1052_s18 }
 0x4a5   : > { %p4711_p13 = por %p4710_p11, %p4709_p9 }
 0x4a7   : > { %p4713_p1 = por %p4712_p0, %p4711_p13 }
 0x4a9   : > { %p4714_p2 = pnand %p4713_p1, %p4707_p8 }
 0x4ab   : > { %4717 = shalt.err (!%p4714_p2)  }
 0x4ac   : > { %s4718_s21 = scalar_lea.vmem %s7767_s7, 16  ;;  %p4723_p4 = scmp.lt.s32.totalorder %s7767_s7, %s6884_s9 }
 0x4ad   : > { %p4719_p3 = scmp.ne.s32.totalorder %s7767_s7, %s4718_s21  ;;  %p4724_p5 = scmp.lt.s32.totalorder %s6910_s2, %s4718_s21 }
 0x4af   : > { %p4725_p6 = por %p4724_p5, %p4723_p4 }
 0x4b1   : > { %p4726_p7 = pnand %p4725_p6, %p4719_p3 }
 0x4b3   : > { %4729 = shalt.err (!%p4726_p7)  }
 0x4b4   : > { %1064 = dma.hbm_to_vmem [thread:$0]  %s1052_s18, 16, %s7767_s7, [#allocation3] }
 0x4b5   : > { %s7799_s20 = sld [smem:[#allocation5 + %s1081_s29]]  ;;  %s6731_s0 = smov [#allocation2 + $0x34]  }
 0x4b6   : > { %s1093_s14 = sshll.u32 %s6731_s0, 4  ;;  %s1097_s19 = sadd.s32 53, %s6869_s15  ;;  %s7803_s14 = int_to_ptr.vmem [resolvable:$true] %s1093_s14 }
 0x4b7   : > { %s3198_s16 = sshll.u32 %s7780_s17, 4  ;;  %s7808_s8 = sld [smem:[#allocation5 + %s1097_s19]] }
 0x4b8   : > { %s1068_s23 = scalar_lea.hbm %s9425_s4, %s3198_s16 }
 0x4b9   : > { %s4730_s10 = scalar_lea.hbm %s1068_s23, 16  ;;  %p4733_p9 = scmp.lt.u32.totalorder %s1068_s23, %s9425_s4 }
 0x4ba   : > { %p4731_p8 = scmp.ne.s32.totalorder %s1068_s23, %s4730_s10  ;;  %p4734_p11 = scmp.lt.u32.totalorder %s6901_s12, %s4730_s10 }
 0x4bb   : > { %p4736_p0 = scmp.lt.u32.totalorder %s4730_s10, %s1068_s23 }
 0x4bc   : > { %p4735_p13 = por %p4734_p11, %p4733_p9 }
 0x4be   : > { %p4737_p1 = por %p4736_p0, %p4735_p13 }
 0x4c0   : > { %p4738_p2 = pnand %p4737_p1, %p4731_p8 }
 0x4c2   : > { %4741 = shalt.err (!%p4738_p2)  }
 0x4c3   : > { %s4742_s7 = scalar_lea.vmem %s7783_s26, 16  ;;  %p4747_p4 = scmp.lt.s32.totalorder %s7783_s26, %s6884_s9 }
 0x4c4   : > { %p4743_p3 = scmp.ne.s32.totalorder %s7783_s26, %s4742_s7  ;;  %p4748_p5 = scmp.lt.s32.totalorder %s6910_s2, %s4742_s7 }
 0x4c6   : > { %p4749_p6 = por %p4748_p5, %p4747_p4 }
 0x4c8   : > { %p4750_p7 = pnand %p4749_p6, %p4743_p3 }
 0x4ca   : > { %4753 = shalt.err (!%p4750_p7)  }
 0x4cb   : > { %1080 = dma.hbm_to_vmem [thread:$0]  %s1068_s23, 16, %s7783_s26, [#allocation3] }
 0x4cc   : > { %s1113_s17 = sadd.s32 54, %s6869_s15  ;;  %s3199_s18 = sshll.u32 %s7799_s20, 4 }
 0x4cd   : > { %s6732_s29 = smov [#allocation2 + $0x35]   ;;  %s1084_s1 = scalar_lea.hbm %s9425_s4, %s3199_s18 }
 0x4ce   : > { %s1109_s0 = sshll.u32 %s6732_s29, 4  ;;  %s4754_s5 = scalar_lea.hbm %s1084_s1, 16  ;;  %s7825_s0 = int_to_ptr.vmem [resolvable:$true] %s1109_s0 }
 0x4cf   : > { %p4755_p8 = scmp.ne.s32.totalorder %s1084_s1, %s4754_s5  ;;  %p4757_p9 = scmp.lt.u32.totalorder %s1084_s1, %s9425_s4 }
 0x4d0   : > { %p4758_p11 = scmp.lt.u32.totalorder %s6901_s12, %s4754_s5  ;;  %p4760_p0 = scmp.lt.u32.totalorder %s4754_s5, %s1084_s1 }
 0x4d2   : > { %p4759_p13 = por %p4758_p11, %p4757_p9 }
 0x4d4   : > { %p4761_p1 = por %p4760_p0, %p4759_p13 }
 0x4d6   : > { %p4762_p2 = pnand %p4761_p1, %p4755_p8 }
 0x4d8   : > { %4765 = shalt.err (!%p4762_p2)  }
 0x4d9   : > { %s4766_s26 = scalar_lea.vmem %s7803_s14, 16  ;;  %p4771_p4 = scmp.lt.s32.totalorder %s7803_s14, %s6884_s9 }
 0x4da   : > { %p4767_p3 = scmp.ne.s32.totalorder %s7803_s14, %s4766_s26  ;;  %p4772_p5 = scmp.lt.s32.totalorder %s6910_s2, %s4766_s26 }
 0x4dc   : > { %p4773_p6 = por %p4772_p5, %p4771_p4 }
 0x4de   : > { %p4774_p7 = pnand %p4773_p6, %p4767_p3 }
 0x4e0   : > { %4777 = shalt.err (!%p4774_p7)  }
 0x4e1   : > { %1096 = dma.hbm_to_vmem [thread:$0]  %s1084_s1, 16, %s7803_s14, [#allocation3] }
 0x4e2   : > { %s3200_s20 = sshll.u32 %s7808_s8, 4  ;;  %s7838_s23 = sld [smem:[#allocation5 + %s1113_s17]] }
 0x4e3   : > { %s1100_s18 = scalar_lea.hbm %s9425_s4, %s3200_s20 }
 0x4e4   : > { %s4778_s29 = scalar_lea.hbm %s1100_s18, 16  ;;  %p4781_p9 = scmp.lt.u32.totalorder %s1100_s18, %s9425_s4 }
 0x4e5   : > { %p4779_p8 = scmp.ne.s32.totalorder %s1100_s18, %s4778_s29  ;;  %p4782_p11 = scmp.lt.u32.totalorder %s6901_s12, %s4778_s29 }
 0x4e6   : > { %p4784_p0 = scmp.lt.u32.totalorder %s4778_s29, %s1100_s18 }
 0x4e7   : > { %p4783_p13 = por %p4782_p11, %p4781_p9 }
 0x4e9   : > { %p4785_p1 = por %p4784_p0, %p4783_p13 }
 0x4eb   : > { %p4786_p2 = pnand %p4785_p1, %p4779_p8 }
 0x4ed   : > { %4789 = shalt.err (!%p4786_p2)  }
 0x4ee   : > { %s4790_s14 = scalar_lea.vmem %s7825_s0, 16  ;;  %p4795_p4 = scmp.lt.s32.totalorder %s7825_s0, %s6884_s9 }
 0x4ef   : > { %p4791_p3 = scmp.ne.s32.totalorder %s7825_s0, %s4790_s14  ;;  %p4796_p5 = scmp.lt.s32.totalorder %s6910_s2, %s4790_s14 }
 0x4f1   : > { %p4797_p6 = por %p4796_p5, %p4795_p4 }
 0x4f3   : > { %p4798_p7 = pnand %p4797_p6, %p4791_p3 }
 0x4f5   : > { %4801 = shalt.err (!%p4798_p7)  }
 0x4f6   : > { %1112 = dma.hbm_to_vmem [thread:$0]  %s1100_s18, 16, %s7825_s0, [#allocation3] }
 0x4f7   : > { %s6733_s8 = smov [#allocation2 + $0x36]   ;;  %s1129_s1 = sadd.s32 55, %s6869_s15 }
 0x4f8   : > { %s1125_s17 = sshll.u32 %s6733_s8, 4  ;;  %s7854_s5 = sld [smem:[#allocation5 + %s1129_s1]]  ;;  %s1126_s17 = int_to_ptr.vmem [resolvable:$true] %s1125_s17 }
 0x4f9   : > { %s1145_s10 = sadd.s32 56, %s6869_s15  ;;  %s3201_s6 = sshll.u32 %s7838_s23, 4 }
 0x4fa   : > { %s6734_s26 = smov [#allocation2 + $0x37]   ;;  %s1116_s29 = scalar_lea.hbm %s9425_s4, %s3201_s6 }
 0x4fb   : > { %s1141_s20 = sshll.u32 %s6734_s26, 4  ;;  %s4802_s19 = scalar_lea.hbm %s1116_s29, 16  ;;  %s7861_s20 = int_to_ptr.vmem [resolvable:$true] %s1141_s20 }
 0x4fc   : > { %p4803_p8 = scmp.ne.s32.totalorder %s1116_s29, %s4802_s19  ;;  %p4805_p9 = scmp.lt.u32.totalorder %s1116_s29, %s9425_s4 }
 0x4fd   : > { %p4806_p11 = scmp.lt.u32.totalorder %s6901_s12, %s4802_s19  ;;  %p4808_p0 = scmp.lt.u32.totalorder %s4802_s19, %s1116_s29 }
 0x4ff   : > { %p4807_p13 = por %p4806_p11, %p4805_p9 }
 0x501   : > { %p4809_p1 = por %p4808_p0, %p4807_p13 }
 0x503   : > { %p4810_p2 = pnand %p4809_p1, %p4803_p8 }
 0x505   : > { %4813 = shalt.err (!%p4810_p2)  }
 0x506   : > { %s4814_s23 = scalar_lea.vmem %s1126_s17, 16  ;;  %p4819_p4 = scmp.lt.s32.totalorder %s1126_s17, %s6884_s9 }
 0x507   : > { %p4815_p3 = scmp.ne.s32.totalorder %s1126_s17, %s4814_s23  ;;  %p4820_p5 = scmp.lt.s32.totalorder %s6910_s2, %s4814_s23 }
 0x509   : > { %p4821_p6 = por %p4820_p5, %p4819_p4 }
 0x50b   : > { %p4822_p7 = pnand %p4821_p6, %p4815_p3 }
 0x50d   : > { %4825 = shalt.err (!%p4822_p7)  }
 0x50e   : > { %1128 = dma.hbm_to_vmem [thread:$0]  %s1116_s29, 16, %s1126_s17, [#allocation3] }
 0x50f   : > { %s7869_s18 = sld [smem:[#allocation5 + %s1145_s10]]  ;;  %s3202_s14 = sshll.u32 %s7854_s5, 4 }
 0x510   : > { %s6735_s8 = smov [#allocation2 + $0x38]   ;;  %s1132_s21 = scalar_lea.hbm %s9425_s4, %s3202_s14 }
 0x511   : > { %s1157_s1 = sshll.u32 %s6735_s8, 4  ;;  %s4826_s7 = scalar_lea.hbm %s1132_s21, 16  ;;  %s7875_s1 = int_to_ptr.vmem [resolvable:$true] %s1157_s1 }
 0x512   : > { %p4827_p8 = scmp.ne.s32.totalorder %s1132_s21, %s4826_s7  ;;  %p4829_p9 = scmp.lt.u32.totalorder %s1132_s21, %s9425_s4 }
 0x513   : > { %p4830_p11 = scmp.lt.u32.totalorder %s6901_s12, %s4826_s7  ;;  %p4832_p0 = scmp.lt.u32.totalorder %s4826_s7, %s1132_s21 }
 0x515   : > { %p4831_p13 = por %p4830_p11, %p4829_p9 }
 0x517   : > { %p4833_p1 = por %p4832_p0, %p4831_p13 }
 0x519   : > { %p4834_p2 = pnand %p4833_p1, %p4827_p8 }
 0x51b   : > { %4837 = shalt.err (!%p4834_p2)  }
 0x51c   : > { %s4838_s17 = scalar_lea.vmem %s7861_s20, 16  ;;  %p4843_p4 = scmp.lt.s32.totalorder %s7861_s20, %s6884_s9 }
 0x51d   : > { %p4839_p3 = scmp.ne.s32.totalorder %s7861_s20, %s4838_s17  ;;  %p4844_p5 = scmp.lt.s32.totalorder %s6910_s2, %s4838_s17 }
 0x51f   : > { %p4845_p6 = por %p4844_p5, %p4843_p4 }
 0x521   : > { %p4846_p7 = pnand %p4845_p6, %p4839_p3 }
 0x523   : > { %4849 = shalt.err (!%p4846_p7)  }
 0x524   : > { %1144 = dma.hbm_to_vmem [thread:$0]  %s1132_s21, 16, %s7861_s20, [#allocation3] }
 0x525   : > { %s1161_s5 = sadd.s32 57, %s6869_s15  ;;  %s6736_s29 = smov [#allocation2 + $0x39]  }
 0x526   : > { %s7888_s10 = sld [smem:[#allocation5 + %s1161_s5]]  ;;  %s1173_s0 = sshll.u32 %s6736_s29, 4  ;;  %s7891_s0 = int_to_ptr.vmem [resolvable:$true] %s1173_s0 }
 0x527   : > { %s3203_s23 = sshll.u32 %s7869_s18, 4  ;;  %s1177_s26 = sadd.s32 58, %s6869_s15 }
 0x528   : > { %s1148_s6 = scalar_lea.hbm %s9425_s4, %s3203_s23 }
 0x529   : > { %s4850_s7 = scalar_lea.hbm %s1148_s6, 16  ;;  %p4853_p9 = scmp.lt.u32.totalorder %s1148_s6, %s9425_s4 }
 0x52a   : > { %p4851_p8 = scmp.ne.s32.totalorder %s1148_s6, %s4850_s7  ;;  %p4854_p11 = scmp.lt.u32.totalorder %s6901_s12, %s4850_s7 }
 0x52b   : > { %p4856_p0 = scmp.lt.u32.totalorder %s4850_s7, %s1148_s6 }
 0x52c   : > { %p4855_p13 = por %p4854_p11, %p4853_p9 }
 0x52e   : > { %p4857_p1 = por %p4856_p0, %p4855_p13 }
 0x530   : > { %p4858_p2 = pnand %p4857_p1, %p4851_p8 }
 0x532   : > { %4861 = shalt.err (!%p4858_p2)  }
 0x533   : > { %s4862_s20 = scalar_lea.vmem %s7875_s1, 16  ;;  %p4867_p4 = scmp.lt.s32.totalorder %s7875_s1, %s6884_s9 }
 0x534   : > { %p4863_p3 = scmp.ne.s32.totalorder %s7875_s1, %s4862_s20  ;;  %p4868_p5 = scmp.lt.s32.totalorder %s6910_s2, %s4862_s20 }
 0x536   : > { %p4869_p6 = por %p4868_p5, %p4867_p4 }
 0x538   : > { %p4870_p7 = pnand %p4869_p6, %p4863_p3 }
 0x53a   : > { %4873 = shalt.err (!%p4870_p7)  }
 0x53b   : > { %1160 = dma.hbm_to_vmem [thread:$0]  %s1148_s6, 16, %s7875_s1, [#allocation3] }
 0x53c   : > { %s7907_s18 = sld [smem:[#allocation5 + %s1177_s26]]  ;;  %s6737_s21 = smov [#allocation2 + $0x3a]  }
 0x53d   : > { %s1189_s17 = sshll.u32 %s6737_s21, 4  ;;  %s1193_s5 = sadd.s32 59, %s6869_s15  ;;  %s7911_s17 = int_to_ptr.vmem [resolvable:$true] %s1189_s17 }
 0x53e   : > { %s3204_s29 = sshll.u32 %s7888_s10, 4  ;;  %s7916_s7 = sld [smem:[#allocation5 + %s1193_s5]] }
 0x53f   : > { %s1164_s8 = scalar_lea.hbm %s9425_s4, %s3204_s29 }
 0x540   : > { %s4874_s19 = scalar_lea.hbm %s1164_s8, 16  ;;  %p4877_p9 = scmp.lt.u32.totalorder %s1164_s8, %s9425_s4 }
 0x541   : > { %p4875_p8 = scmp.ne.s32.totalorder %s1164_s8, %s4874_s19  ;;  %p4878_p11 = scmp.lt.u32.totalorder %s6901_s12, %s4874_s19 }
 0x542   : > { %p4880_p0 = scmp.lt.u32.totalorder %s4874_s19, %s1164_s8 }
 0x543   : > { %p4879_p13 = por %p4878_p11, %p4877_p9 }
 0x545   : > { %p4881_p1 = por %p4880_p0, %p4879_p13 }
 0x547   : > { %p4882_p2 = pnand %p4881_p1, %p4875_p8 }
 0x549   : > { %4885 = shalt.err (!%p4882_p2)  }
 0x54a   : > { %s4886_s1 = scalar_lea.vmem %s7891_s0, 16  ;;  %p4891_p4 = scmp.lt.s32.totalorder %s7891_s0, %s6884_s9 }
 0x54b   : > { %p4887_p3 = scmp.ne.s32.totalorder %s7891_s0, %s4886_s1  ;;  %p4892_p5 = scmp.lt.s32.totalorder %s6910_s2, %s4886_s1 }
 0x54d   : > { %p4893_p6 = por %p4892_p5, %p4891_p4 }
 0x54f   : > { %p4894_p7 = pnand %p4893_p6, %p4887_p3 }
 0x551   : > { %4897 = shalt.err (!%p4894_p7)  }
 0x552   : > { %1176 = dma.hbm_to_vmem [thread:$0]  %s1164_s8, 16, %s7891_s0, [#allocation3] }
 0x553   : > { %s1209_s10 = sadd.s32 60, %s6869_s15  ;;  %s3205_s6 = sshll.u32 %s7907_s18, 4 }
 0x554   : > { %s6738_s26 = smov [#allocation2 + $0x3b]   ;;  %s1180_s23 = scalar_lea.hbm %s9425_s4, %s3205_s6 }
 0x555   : > { %s1205_s21 = sshll.u32 %s6738_s26, 4  ;;  %s4898_s14 = scalar_lea.hbm %s1180_s23, 16  ;;  %s7933_s21 = int_to_ptr.vmem [resolvable:$true] %s1205_s21 }
 0x556   : > { %p4899_p8 = scmp.ne.s32.totalorder %s1180_s23, %s4898_s14  ;;  %p4901_p9 = scmp.lt.u32.totalorder %s1180_s23, %s9425_s4 }
 0x557   : > { %p4902_p11 = scmp.lt.u32.totalorder %s6901_s12, %s4898_s14  ;;  %p4904_p0 = scmp.lt.u32.totalorder %s4898_s14, %s1180_s23 }
 0x559   : > { %p4903_p13 = por %p4902_p11, %p4901_p9 }
 0x55b   : > { %p4905_p1 = por %p4904_p0, %p4903_p13 }
 0x55d   : > { %p4906_p2 = pnand %p4905_p1, %p4899_p8 }
 0x55f   : > { %4909 = shalt.err (!%p4906_p2)  }
 0x560   : > { %s4910_s0 = scalar_lea.vmem %s7911_s17, 16  ;;  %p4915_p4 = scmp.lt.s32.totalorder %s7911_s17, %s6884_s9 }
 0x561   : > { %p4911_p3 = scmp.ne.s32.totalorder %s7911_s17, %s4910_s0  ;;  %p4916_p5 = scmp.lt.s32.totalorder %s6910_s2, %s4910_s0 }
 0x563   : > { %p4917_p6 = por %p4916_p5, %p4915_p4 }
 0x565   : > { %p4918_p7 = pnand %p4917_p6, %p4911_p3 }
 0x567   : > { %4921 = shalt.err (!%p4918_p7)  }
 0x568   : > { %1192 = dma.hbm_to_vmem [thread:$0]  %s1180_s23, 16, %s7911_s17, [#allocation3] }
 0x569   : > { %s3206_s18 = sshll.u32 %s7916_s7, 4  ;;  %s7946_s8 = sld [smem:[#allocation5 + %s1209_s10]] }
 0x56a   : > { %s1196_s6 = scalar_lea.hbm %s9425_s4, %s3206_s18 }
 0x56b   : > { %s4922_s26 = scalar_lea.hbm %s1196_s6, 16  ;;  %p4925_p9 = scmp.lt.u32.totalorder %s1196_s6, %s9425_s4 }
 0x56c   : > { %p4923_p8 = scmp.ne.s32.totalorder %s1196_s6, %s4922_s26  ;;  %p4926_p11 = scmp.lt.u32.totalorder %s6901_s12, %s4922_s26 }
 0x56d   : > { %p4928_p0 = scmp.lt.u32.totalorder %s4922_s26, %s1196_s6 }
 0x56e   : > { %p4927_p13 = por %p4926_p11, %p4925_p9 }
 0x570   : > { %p4929_p1 = por %p4928_p0, %p4927_p13 }
 0x572   : > { %p4930_p2 = pnand %p4929_p1, %p4923_p8 }
 0x574   : > { %4933 = shalt.err (!%p4930_p2)  }
 0x575   : > { %s4934_s17 = scalar_lea.vmem %s7933_s21, 16  ;;  %p4939_p4 = scmp.lt.s32.totalorder %s7933_s21, %s6884_s9 }
 0x576   : > { %p4935_p3 = scmp.ne.s32.totalorder %s7933_s21, %s4934_s17  ;;  %p4940_p5 = scmp.lt.s32.totalorder %s6910_s2, %s4934_s17 }
 0x578   : > { %p4941_p6 = por %p4940_p5, %p4939_p4 }
 0x57a   : > { %p4942_p7 = pnand %p4941_p6, %p4935_p3 }
 0x57c   : > { %4945 = shalt.err (!%p4942_p7)  }
 0x57d   : > { %1208 = dma.hbm_to_vmem [thread:$0]  %s1196_s6, 16, %s7933_s21, [#allocation3] }
 0x57e   : > { %s6739_s7 = smov [#allocation2 + $0x3c]   ;;  %s1225_s23 = sadd.s32 61, %s6869_s15 }
 0x57f   : > { %s1221_s10 = sshll.u32 %s6739_s7, 4  ;;  %s1226_s14 = sld [smem:[#allocation5 + %s1225_s23]]  ;;  %s1222_s10 = int_to_ptr.vmem [resolvable:$true] %s1221_s10 }
 0x580   : > { %s1241_s19 = sadd.s32 62, %s6869_s15  ;;  %s3207_s16 = sshll.u32 %s7946_s8, 4 }
 0x581   : > { %s6740_s0 = smov [#allocation2 + $0x3d]   ;;  %s1212_s26 = scalar_lea.hbm %s9425_s4, %s3207_s16 }
 0x582   : > { %s1237_s18 = sshll.u32 %s6740_s0, 4  ;;  %s4946_s5 = scalar_lea.hbm %s1212_s26, 16  ;;  %s7967_s18 = int_to_ptr.vmem [resolvable:$true] %s1237_s18 }
 0x583   : > { %p4947_p8 = scmp.ne.s32.totalorder %s1212_s26, %s4946_s5  ;;  %p4949_p9 = scmp.lt.u32.totalorder %s1212_s26, %s9425_s4 }
 0x584   : > { %p4950_p11 = scmp.lt.u32.totalorder %s6901_s12, %s4946_s5  ;;  %p4952_p0 = scmp.lt.u32.totalorder %s4946_s5, %s1212_s26 }
 0x586   : > { %p4951_p13 = por %p4950_p11, %p4949_p9 }
 0x588   : > { %p4953_p1 = por %p4952_p0, %p4951_p13 }
 0x58a   : > { %p4954_p2 = pnand %p4953_p1, %p4947_p8 }
 0x58c   : > { %4957 = shalt.err (!%p4954_p2)  }
 0x58d   : > { %s4958_s21 = scalar_lea.vmem %s1222_s10, 16  ;;  %p4963_p4 = scmp.lt.s32.totalorder %s1222_s10, %s6884_s9 }
 0x58e   : > { %p4959_p3 = scmp.ne.s32.totalorder %s1222_s10, %s4958_s21  ;;  %p4964_p5 = scmp.lt.s32.totalorder %s6910_s2, %s4958_s21 }
 0x590   : > { %p4965_p6 = por %p4964_p5, %p4963_p4 }
 0x592   : > { %p4966_p7 = pnand %p4965_p6, %p4959_p3 }
 0x594   : > { %4969 = shalt.err (!%p4966_p7)  }
 0x595   : > { %1224 = dma.hbm_to_vmem [thread:$0]  %s1212_s26, 16, %s1222_s10, [#allocation3] }
 0x596   : > { %s1242_s8 = sld [smem:[#allocation5 + %s1241_s19]]  ;;  %s3208_s6 = sshll.u32 %s1226_s14, 4 }
 0x597   : > { %s1228_s16 = scalar_lea.hbm %s9425_s4, %s3208_s6  ;;  %s6741_s0 = smov [#allocation2 + $0x3e]  }
 0x598   : > { %s1253_s20 = sshll.u32 %s6741_s0, 4  ;;  %s4970_s1 = scalar_lea.hbm %s1228_s16, 16  ;;  %s1254_s20 = int_to_ptr.vmem [resolvable:$true] %s1253_s20 }
 0x599   : > { %p4971_p8 = scmp.ne.s32.totalorder %s1228_s16, %s4970_s1  ;;  %p4973_p9 = scmp.lt.u32.totalorder %s1228_s16, %s9425_s4 }
 0x59a   : > { %p4974_p11 = scmp.lt.u32.totalorder %s6901_s12, %s4970_s1  ;;  %p4976_p0 = scmp.lt.u32.totalorder %s4970_s1, %s1228_s16 }
 0x59c   : > { %p4975_p13 = por %p4974_p11, %p4973_p9 }
 0x59e   : > { %p4977_p1 = por %p4976_p0, %p4975_p13 }
 0x5a0   : > { %p4978_p2 = pnand %p4977_p1, %p4971_p8 }
 0x5a2   : > { %4981 = shalt.err (!%p4978_p2)  }
 0x5a3   : > { %s4982_s10 = scalar_lea.vmem %s7967_s18, 16  ;;  %p4987_p4 = scmp.lt.s32.totalorder %s7967_s18, %s6884_s9 }
 0x5a4   : > { %p4983_p3 = scmp.ne.s32.totalorder %s7967_s18, %s4982_s10  ;;  %p4988_p5 = scmp.lt.s32.totalorder %s6910_s2, %s4982_s10 }
 0x5a6   : > { %p4989_p6 = por %p4988_p5, %p4987_p4 }
 0x5a8   : > { %p4990_p7 = pnand %p4989_p6, %p4983_p3 }
 0x5aa   : > { %4993 = shalt.err (!%p4990_p7)  }
 0x5ab   : > { %1240 = dma.hbm_to_vmem [thread:$0]  %s1228_s16, 16, %s7967_s18, [#allocation3] }
 0x5ac   : > { %s1257_s14 = sadd.s32 63, %s6869_s15  ;;  %s3209_s26 = sshll.u32 %s1242_s8, 4 }
 0x5ad   : > { %s1258_s19 = sld [smem:[#allocation5 + %s1257_s14]]  ;;  %s1244_s6 = scalar_lea.hbm %s9425_s4, %s3209_s26 }
 0x5ae   : > { %s6742_s7 = smov [#allocation2 + $0x3f]   ;;  %s4994_s0 = scalar_lea.hbm %s1244_s6, 16 }
 0x5af   : > { %s1269_s23 = sshll.u32 %s6742_s7, 4  ;;  %p4995_p8 = scmp.ne.s32.totalorder %s1244_s6, %s4994_s0  ;;  %s1270_s23 = int_to_ptr.vmem [resolvable:$true] %s1269_s23 }
 0x5b0   : > { %p4997_p9 = scmp.lt.u32.totalorder %s1244_s6, %s9425_s4  ;;  %p4998_p11 = scmp.lt.u32.totalorder %s6901_s12, %s4994_s0 }
 0x5b1   : > { %p5000_p0 = scmp.lt.u32.totalorder %s4994_s0, %s1244_s6 }
 0x5b2   : > { %p4999_p13 = por %p4998_p11, %p4997_p9 }
 0x5b4   : > { %p5001_p1 = por %p5000_p0, %p4999_p13 }
 0x5b6   : > { %p5002_p2 = pnand %p5001_p1, %p4995_p8 }
 0x5b8   : > { %5005 = shalt.err (!%p5002_p2)  }
 0x5b9   : > { %s5006_s18 = scalar_lea.vmem %s1254_s20, 16  ;;  %p5011_p4 = scmp.lt.s32.totalorder %s1254_s20, %s6884_s9 }
 0x5ba   : > { %p5007_p3 = scmp.ne.s32.totalorder %s1254_s20, %s5006_s18  ;;  %p5012_p5 = scmp.lt.s32.totalorder %s6910_s2, %s5006_s18 }
 0x5bc   : > { %p5013_p6 = por %p5012_p5, %p5011_p4 }
 0x5be   : > { %p5014_p7 = pnand %p5013_p6, %p5007_p3 }
 0x5c0   : > { %5017 = shalt.err (!%p5014_p7)  }
 0x5c1   : > { %1256 = dma.hbm_to_vmem [thread:$0]  %s1244_s6, 16, %s1254_s20, [#allocation3] }
 0x5c2   : > { %s3210_s8 = sshll.u32 %s1258_s19, 4 }
 0x5c3   : > { %s1260_s10 = scalar_lea.hbm %s9425_s4, %s3210_s8 }
 0x5c4   : > { %s5018_s14 = scalar_lea.hbm %s1260_s10, 16  ;;  %p5021_p9 = scmp.lt.u32.totalorder %s1260_s10, %s9425_s4 }
 0x5c5   : > { %p5019_p8 = scmp.ne.s32.totalorder %s1260_s10, %s5018_s14  ;;  %p5022_p11 = scmp.lt.u32.totalorder %s6901_s12, %s5018_s14 }
 0x5c6   : > { %p5024_p0 = scmp.lt.u32.totalorder %s5018_s14, %s1260_s10 }
 0x5c7   : > { %p5023_p13 = por %p5022_p11, %p5021_p9 }
 0x5c9   : > { %p5025_p1 = por %p5024_p0, %p5023_p13 }
 0x5cb   : > { %p5026_p2 = pnand %p5025_p1, %p5019_p8 }
 0x5cd   : > { %5029 = shalt.err (!%p5026_p2)  }
 0x5ce   : > { %s5030_s20 = scalar_lea.vmem %s1270_s23, 16  ;;  %p5035_p4 = scmp.lt.s32.totalorder %s1270_s23, %s6884_s9 }
 0x5cf   : > { %p5031_p3 = scmp.ne.s32.totalorder %s1270_s23, %s5030_s20  ;;  %p5036_p5 = scmp.lt.s32.totalorder %s6910_s2, %s5030_s20 }
 0x5d1   : > { %p5037_p6 = por %p5036_p5, %p5035_p4 }
 0x5d3   : > { %p5038_p7 = pnand %p5037_p6, %p5031_p3 }
 0x5d5   : > { %5041 = shalt.err (!%p5038_p7)  }
 0x5d6   : > { %1272 = dma.hbm_to_vmem [thread:$0]  %s1260_s10, 16, %s1270_s23, [#allocation3] }
 0x5d7 PF: > { %s1273_s19 = sadd.s32 1, %s6660_s25 }
 0x5d8   : > { %p3211_p12 = scmp.ge.s32.totalorder %s1273_s19, 2 }
 0x5d9   : > { %s1278_s12 = ssub.s32 (!%p3211_p12), 1, %s9486_s27  ;;  %s3350_s21 = sshll.u32 (!%p3211_p12), %s6660_s25, 6 }
 0x5da   : > { %1277 = sbr.rel (%p3211_p12) target bundleno = 2931 (0xb73), region = 296  ;;  %s3351_s6 = sadd.s32 (!%p3211_p12), 64, %s3350_s21 }
 0x5db   : > { %s3213_s7 = sshll.u32 (!%p3211_p12), %s1278_s12, 6  ;;  %s8011_s0 = sadd.s32 (!%p3211_p12), %s3351_s6, %s6869_s15 }
 0x5dc   : > { %s1281_s9 = sld [smem:[#allocation5 + %s8011_s0]] (!%p3211_p12)  ;;  %s8014_s2 = scalar_lea.vmem (!%p3211_p12), [#allocation2], %s3213_s7 }
 0x5dd   : > { %s1294_s23 = sshll.u32 (!%p3211_p12), %s8014_s2, 4  ;;  %s1298_s1 = sadd.s32 (!%p3211_p12), 1, %s8011_s0  ;;  %s8018_s23 = int_to_ptr.vmem [resolvable:$true] %s1294_s23 }
 0x5de   : > { %s8020_s5 = sld [smem:[#allocation5 + %s1298_s1]] (!%p3211_p12)  ;;  %s2765_s25 = scalar_lea.vmem (!%p3211_p12), %s8014_s2, 1 [#allocation2] }
 0x5df   : > { %s1315_s18 = sadd.s32 (!%p3211_p12), 2, %s8011_s0  ;;  %s1311_s8 = sshll.u32 (!%p3211_p12), %s2765_s25, 4  ;;  %s8026_s8 = int_to_ptr.vmem [resolvable:$true] %s1311_s8 }
 0x5e0   : > { %s8024_s15 = sld [smem:[#allocation5 + %s1315_s18]] (!%p3211_p12)  ;;  %s2770_s16 = scalar_lea.vmem (!%p3211_p12), %s8014_s2, 2 [#allocation2] }
 0x5e1   : > { %s1328_s10 = sshll.u32 %s2770_s16, 4  ;;  %s8034_s20 = scalar_lea.sflag [#allocation3], %s1278_s12  ;;  %s8032_s10 = int_to_ptr.vmem [resolvable:$true] %s1328_s10 }
 0x5e2   : > { %s3214_s29 = sshll.u32 %s1281_s9, 4  ;;  %s8039_s7 = scalar_lea.hbm %s9425_s4, 8192 }
 0x5e3   : > { %s1284_s17 = scalar_lea.hbm %s9425_s4, %s3214_s29 }
 0x5e4   : > { %s5042_s19 = scalar_lea.hbm %s1284_s17, 16  ;;  %p5045_p8 = scmp.lt.u32.totalorder %s1284_s17, %s9425_s4 }
 0x5e5   : > { %p5043_p12 = scmp.ne.s32.totalorder %s1284_s17, %s5042_s19  ;;  %p5046_p9 = scmp.lt.u32.totalorder %s8039_s7, %s5042_s19 }
 0x5e6   : > { %p5048_p13 = scmp.lt.u32.totalorder %s5042_s19, %s1284_s17 }
 0x5e7   : > { %p5047_p11 = por %p5046_p9, %p5045_p8 }
 0x5e9   : > { %p5049_p0 = por %p5048_p13, %p5047_p11 }
 0x5eb   : > { %p5050_p1 = pnand %p5049_p0, %p5043_p12 }
 0x5ed   : > { %5053 = shalt.err (!%p5050_p1)  }
 0x5ee   : > { %s5054_s12 = scalar_lea.vmem %s8018_s23, 16  ;;  %s6743_s9 = smov [#allocation2]  }
 0x5ef   : > { %p5055_p2 = scmp.ne.s32.totalorder %s8018_s23, %s5054_s12  ;;  %s5056_s18 = sshll.u32 %s6743_s9, 4  ;;  %s8047_s18 = int_to_ptr.vmem [resolvable:$false] %s5056_s18 }
 0x5f0   : > { %s8050_s16 = scalar_lea.vmem %s8047_s18, 2048  ;;  %p5059_p3 = scmp.lt.s32.totalorder %s8018_s23, %s8047_s18 }
 0x5f1   : > { %p5060_p4 = scmp.lt.s32.totalorder %s8050_s16, %s5054_s12 }
 0x5f3   : > { %p5061_p5 = por %p5060_p4, %p5059_p3 }
 0x5f5   : > { %p5062_p6 = pnand %p5061_p5, %p5055_p2 }
 0x5f7   : > { %5065 = shalt.err (!%p5062_p6)  }
 0x5f8   : > { %1297 = dma.hbm_to_vmem [thread:$0]  %s1284_s17, 16, %s8018_s23, %s8034_s20 }
 0x5f9   : > { %s3215_s29 = sshll.u32 %s8020_s5, 4  ;;  %s1332_s14 = sadd.s32 3, %s8011_s0 }
 0x5fa   : > { %s1302_s21 = scalar_lea.hbm %s9425_s4, %s3215_s29  ;;  %s3217_s6 = sshll.u32 %s8024_s15, 4 }
 0x5fb   : > { %s5066_s1 = scalar_lea.hbm %s1302_s21, 16  ;;  %p5069_p12 = scmp.lt.u32.totalorder %s1302_s21, %s9425_s4 }
 0x5fc   : > { %p5067_p7 = scmp.ne.s32.totalorder %s1302_s21, %s5066_s1  ;;  %p5070_p8 = scmp.lt.u32.totalorder %s8039_s7, %s5066_s1 }
 0x5fd   : > { %p5072_p11 = scmp.lt.u32.totalorder %s5066_s1, %s1302_s21 }
 0x5fe   : > { %p5071_p9 = por %p5070_p8, %p5069_p12 }
 0x600   : > { %p5073_p13 = por %p5072_p11, %p5071_p9 }
 0x602   : > { %p5074_p0 = pnand %p5073_p13, %p5067_p7 }
 0x604   : > { %5077 = shalt.err (!%p5074_p0)  }
 0x605   : > { %s5078_s23 = scalar_lea.vmem %s8026_s8, 16  ;;  %p5083_p2 = scmp.lt.s32.totalorder %s8026_s8, %s8047_s18 }
 0x606   : > { %p5079_p1 = scmp.ne.s32.totalorder %s8026_s8, %s5078_s23  ;;  %p5084_p3 = scmp.lt.s32.totalorder %s8050_s16, %s5078_s23 }
 0x608   : > { %p5085_p4 = por %p5084_p3, %p5083_p2 }
 0x60a   : > { %p5086_p5 = pnand %p5085_p4, %p5079_p1 }
 0x60c   : > { %5089 = shalt.err (!%p5086_p5)  }
 0x60d   : > { %1314 = dma.hbm_to_vmem [thread:$0]  %s1302_s21, 16, %s8026_s8, %s8034_s20 }
 0x60e   : > { %s1319_s17 = scalar_lea.hbm %s9425_s4, %s3217_s6  ;;  %s8077_s9 = sld [smem:[#allocation5 + %s1332_s14]] }
 0x60f   : > { %s5090_s29 = scalar_lea.hbm %s1319_s17, 16  ;;  %p5093_p7 = scmp.lt.u32.totalorder %s1319_s17, %s9425_s4 }
 0x610   : > { %p5091_p6 = scmp.ne.s32.totalorder %s1319_s17, %s5090_s29  ;;  %p5094_p12 = scmp.lt.u32.totalorder %s8039_s7, %s5090_s29 }
 0x611   : > { %p5096_p9 = scmp.lt.u32.totalorder %s5090_s29, %s1319_s17 }
 0x612   : > { %p5095_p8 = por %p5094_p12, %p5093_p7 }
 0x614   : > { %p5097_p11 = por %p5096_p9, %p5095_p8 }
 0x616   : > { %p5098_p13 = pnand %p5097_p11, %p5091_p6 }
 0x618   : > { %5101 = shalt.err (!%p5098_p13)  }
 0x619   : > { %s5102_s8 = scalar_lea.vmem %s8032_s10, 16  ;;  %p5107_p1 = scmp.lt.s32.totalorder %s8032_s10, %s8047_s18 }
 0x61a   : > { %p5103_p0 = scmp.ne.s32.totalorder %s8032_s10, %s5102_s8  ;;  %p5108_p2 = scmp.lt.s32.totalorder %s8050_s16, %s5102_s8 }
 0x61c   : > { %p5109_p3 = por %p5108_p2, %p5107_p1 }
 0x61e   : > { %p5110_p4 = pnand %p5109_p3, %p5103_p0 }
 0x620   : > { %5113 = shalt.err (!%p5110_p4)  }
 0x621   : > { %1331 = dma.hbm_to_vmem [thread:$0]  %s1319_s17, 16, %s8032_s10, %s8034_s20 }
 0x622   : > { %s2775_s14 = scalar_lea.vmem %s8014_s2, 3 [#allocation2]  ;;  %s1349_s21 = sadd.s32 4, %s8011_s0 }
 0x623   : > { %s1345_s6 = sshll.u32 %s2775_s14, 4  ;;  %s8092_s1 = sld [smem:[#allocation5 + %s1349_s21]]  ;;  %s1346_s6 = int_to_ptr.vmem [resolvable:$true] %s1345_s6 }
 0x624   : > { %s2780_s25 = scalar_lea.vmem %s8014_s2, 4 [#allocation2]  ;;  %s1366_s23 = sadd.s32 5, %s8011_s0 }
 0x625   : > { %s1362_s12 = sshll.u32 %s2780_s25, 4  ;;  %s3219_s5 = sshll.u32 %s8077_s9, 4  ;;  %s8097_s12 = int_to_ptr.vmem [resolvable:$true] %s1362_s12 }
 0x626   : > { %s1336_s26 = scalar_lea.hbm %s9425_s4, %s3219_s5  ;;  %s8102_s19 = sld [smem:[#allocation5 + %s1366_s23]] }
 0x627   : > { %s5114_s10 = scalar_lea.hbm %s1336_s26, 16  ;;  %p5117_p6 = scmp.lt.u32.totalorder %s1336_s26, %s9425_s4 }
 0x628   : > { %p5115_p5 = scmp.ne.s32.totalorder %s1336_s26, %s5114_s10  ;;  %p5118_p7 = scmp.lt.u32.totalorder %s8039_s7, %s5114_s10 }
 0x629   : > { %p5120_p8 = scmp.lt.u32.totalorder %s5114_s10, %s1336_s26 }
 0x62a   : > { %p5119_p12 = por %p5118_p7, %p5117_p6 }
 0x62c   : > { %p5121_p9 = por %p5120_p8, %p5119_p12 }
 0x62e   : > { %p5122_p11 = pnand %p5121_p9, %p5115_p5 }
 0x630   : > { %5125 = shalt.err (!%p5122_p11)  }
 0x631   : > { %s5126_s9 = scalar_lea.vmem %s1346_s6, 16  ;;  %p5131_p0 = scmp.lt.s32.totalorder %s1346_s6, %s8047_s18 }
 0x632   : > { %p5127_p13 = scmp.ne.s32.totalorder %s1346_s6, %s5126_s9  ;;  %p5132_p1 = scmp.lt.s32.totalorder %s8050_s16, %s5126_s9 }
 0x634   : > { %p5133_p2 = por %p5132_p1, %p5131_p0 }
 0x636   : > { %p5134_p3 = pnand %p5133_p2, %p5127_p13 }
 0x638   : > { %5137 = shalt.err (!%p5134_p3)  }
 0x639   : > { %1348 = dma.hbm_to_vmem [thread:$0]  %s1336_s26, 16, %s1346_s6, %s8034_s20 }
 0x63a   : > { %s3221_s14 = sshll.u32 %s8092_s1, 4  ;;  %s2785_s21 = scalar_lea.vmem %s8014_s2, 5 [#allocation2] }
 0x63b   : > { %s1353_s5 = scalar_lea.hbm %s9425_s4, %s3221_s14  ;;  %s1379_s15 = sshll.u32 %s2785_s21, 4  ;;  %s1380_s15 = int_to_ptr.vmem [resolvable:$true] %s1379_s15 }
 0x63c   : > { %s5138_s29 = scalar_lea.hbm %s1353_s5, 16  ;;  %p5141_p5 = scmp.lt.u32.totalorder %s1353_s5, %s9425_s4 }
 0x63d   : > { %p5139_p4 = scmp.ne.s32.totalorder %s1353_s5, %s5138_s29  ;;  %p5142_p6 = scmp.lt.u32.totalorder %s8039_s7, %s5138_s29 }
 0x63e   : > { %p5144_p12 = scmp.lt.u32.totalorder %s5138_s29, %s1353_s5 }
 0x63f   : > { %p5143_p7 = por %p5142_p6, %p5141_p5 }
 0x641   : > { %p5145_p8 = por %p5144_p12, %p5143_p7 }
 0x643   : > { %p5146_p9 = pnand %p5145_p8, %p5139_p4 }
 0x645   : > { %5149 = shalt.err (!%p5146_p9)  }
 0x646   : > { %s5150_s6 = scalar_lea.vmem %s8097_s12, 16  ;;  %p5155_p13 = scmp.lt.s32.totalorder %s8097_s12, %s8047_s18 }
 0x647   : > { %p5151_p11 = scmp.ne.s32.totalorder %s8097_s12, %s5150_s6  ;;  %p5156_p0 = scmp.lt.s32.totalorder %s8050_s16, %s5150_s6 }
 0x649   : > { %p5157_p1 = por %p5156_p0, %p5155_p13 }
 0x64b   : > { %p5158_p2 = pnand %p5157_p1, %p5151_p11 }
 0x64d   : > { %5161 = shalt.err (!%p5158_p2)  }
 0x64e   : > { %1365 = dma.hbm_to_vmem [thread:$0]  %s1353_s5, 16, %s8097_s12, %s8034_s20 }
 0x64f   : > { %s1383_s1 = sadd.s32 6, %s8011_s0  ;;  %s3223_s26 = sshll.u32 %s8102_s19, 4 }
 0x650   : > { %s8129_s8 = sld [smem:[#allocation5 + %s1383_s1]]  ;;  %s1370_s21 = scalar_lea.hbm %s9425_s4, %s3223_s26 }
 0x651   : > { %s2790_s25 = scalar_lea.vmem %s8014_s2, 6 [#allocation2]  ;;  %s5162_s23 = scalar_lea.hbm %s1370_s21, 16 }
 0x652   : > { %p5163_p3 = scmp.ne.s32.totalorder %s1370_s21, %s5162_s23  ;;  %p5165_p4 = scmp.lt.u32.totalorder %s1370_s21, %s9425_s4 }
 0x653   : > { %p5166_p5 = scmp.lt.u32.totalorder %s8039_s7, %s5162_s23  ;;  %p5168_p7 = scmp.lt.u32.totalorder %s5162_s23, %s1370_s21 }
 0x655   : > { %p5167_p6 = por %p5166_p5, %p5165_p4 }
 0x657   : > { %p5169_p12 = por %p5168_p7, %p5167_p6 }
 0x659   : > { %p5170_p8 = pnand %p5169_p12, %p5163_p3 }
 0x65b   : > { %5173 = shalt.err (!%p5170_p8)  }
 0x65c   : > { %s5174_s12 = scalar_lea.vmem %s1380_s15, 16  ;;  %p5179_p11 = scmp.lt.s32.totalorder %s1380_s15, %s8047_s18 }
 0x65d   : > { %p5175_p9 = scmp.ne.s32.totalorder %s1380_s15, %s5174_s12  ;;  %p5180_p13 = scmp.lt.s32.totalorder %s8050_s16, %s5174_s12 }
 0x65f   : > { %p5181_p0 = por %p5180_p13, %p5179_p11 }
 0x661   : > { %p5182_p1 = pnand %p5181_p0, %p5175_p9 }
 0x663   : > { %5185 = shalt.err (!%p5182_p1)  }
 0x664   : > { %1382 = dma.hbm_to_vmem [thread:$0]  %s1370_s21, 16, %s1380_s15, %s8034_s20 }
 0x665   : > { %s1396_s19 = sshll.u32 %s2790_s25, 4  ;;  %s1400_s5 = sadd.s32 7, %s8011_s0  ;;  %s1397_s19 = int_to_ptr.vmem [resolvable:$true] %s1396_s19 }
 0x666   : > { %s8143_s17 = sld [smem:[#allocation5 + %s1400_s5]]  ;;  %s2795_s6 = scalar_lea.vmem %s8014_s2, 7 [#allocation2] }
 0x667   : > { %s1417_s1 = sadd.s32 8, %s8011_s0  ;;  %s3225_s26 = sshll.u32 %s8129_s8, 4 }
 0x668   : > { %s1413_s9 = sshll.u32 %s2795_s6, 4  ;;  %s1387_s29 = scalar_lea.hbm %s9425_s4, %s3225_s26  ;;  %s8151_s9 = int_to_ptr.vmem [resolvable:$true] %s1413_s9 }
 0x669   : > { %s5186_s10 = scalar_lea.hbm %s1387_s29, 16  ;;  %p5189_p3 = scmp.lt.u32.totalorder %s1387_s29, %s9425_s4 }
 0x66a   : > { %p5187_p2 = scmp.ne.s32.totalorder %s1387_s29, %s5186_s10  ;;  %p5190_p4 = scmp.lt.u32.totalorder %s8039_s7, %s5186_s10 }
 0x66b   : > { %p5192_p6 = scmp.lt.u32.totalorder %s5186_s10, %s1387_s29 }
 0x66c   : > { %p5191_p5 = por %p5190_p4, %p5189_p3 }
 0x66e   : > { %p5193_p7 = por %p5192_p6, %p5191_p5 }
 0x670   : > { %p5194_p12 = pnand %p5193_p7, %p5187_p2 }
 0x672   : > { %5197 = shalt.err (!%p5194_p12)  }
 0x673   : > { %s5198_s15 = scalar_lea.vmem %s1397_s19, 16  ;;  %p5203_p9 = scmp.lt.s32.totalorder %s1397_s19, %s8047_s18 }
 0x674   : > { %p5199_p8 = scmp.ne.s32.totalorder %s1397_s19, %s5198_s15  ;;  %p5204_p11 = scmp.lt.s32.totalorder %s8050_s16, %s5198_s15 }
 0x676   : > { %p5205_p13 = por %p5204_p11, %p5203_p9 }
 0x678   : > { %p5206_p0 = pnand %p5205_p13, %p5199_p8 }
 0x67a   : > { %5209 = shalt.err (!%p5206_p0)  }
 0x67b   : > { %1399 = dma.hbm_to_vmem [thread:$0]  %s1387_s29, 16, %s1397_s19, %s8034_s20 }
 0x67c   : > { %s8160_s11 = sld [smem:[#allocation5 + %s1417_s1]]  ;;  %s2800_s8 = scalar_lea.vmem %s8014_s2, 8 [#allocation2] }
 0x67d   : > { %s3227_s21 = sshll.u32 %s8143_s17, 4  ;;  %s1430_s25 = sshll.u32 %s2800_s8, 4  ;;  %s8167_s25 = int_to_ptr.vmem [resolvable:$true] %s1430_s25 }
 0x67e   : > { %s1404_s26 = scalar_lea.hbm %s9425_s4, %s3227_s21 }
 0x67f   : > { %s5210_s14 = scalar_lea.hbm %s1404_s26, 16  ;;  %p5213_p2 = scmp.lt.u32.totalorder %s1404_s26, %s9425_s4 }
 0x680   : > { %p5211_p1 = scmp.ne.s32.totalorder %s1404_s26, %s5210_s14  ;;  %p5214_p3 = scmp.lt.u32.totalorder %s8039_s7, %s5210_s14 }
 0x681   : > { %p5216_p5 = scmp.lt.u32.totalorder %s5210_s14, %s1404_s26 }
 0x682   : > { %p5215_p4 = por %p5214_p3, %p5213_p2 }
 0x684   : > { %p5217_p6 = por %p5216_p5, %p5215_p4 }
 0x686   : > { %p5218_p7 = pnand %p5217_p6, %p5211_p1 }
 0x688   : > { %5221 = shalt.err (!%p5218_p7)  }
 0x689   : > { %s5222_s19 = scalar_lea.vmem %s8151_s9, 16  ;;  %p5227_p8 = scmp.lt.s32.totalorder %s8151_s9, %s8047_s18 }
 0x68a   : > { %p5223_p12 = scmp.ne.s32.totalorder %s8151_s9, %s5222_s19  ;;  %p5228_p9 = scmp.lt.s32.totalorder %s8050_s16, %s5222_s19 }
 0x68c   : > { %p5229_p11 = por %p5228_p9, %p5227_p8 }
 0x68e   : > { %p5230_p13 = pnand %p5229_p11, %p5223_p12 }
 0x690   : > { %5233 = shalt.err (!%p5230_p13)  }
 0x691   : > { %1416 = dma.hbm_to_vmem [thread:$0]  %s1404_s26, 16, %s8151_s9, %s8034_s20 }
 0x692   : > { %s1434_s17 = sadd.s32 9, %s8011_s0  ;;  %s2805_s1 = scalar_lea.vmem %s8014_s2, 9 [#allocation2] }
 0x693   : > { %s8182_s29 = sld [smem:[#allocation5 + %s1434_s17]]  ;;  %s1447_s12 = sshll.u32 %s2805_s1, 4  ;;  %s8185_s12 = int_to_ptr.vmem [resolvable:$true] %s1447_s12 }
 0x694   : > { %s3229_s15 = sshll.u32 %s8160_s11, 4  ;;  %s1451_s6 = sadd.s32 10, %s8011_s0 }
 0x695   : > { %s1421_s5 = scalar_lea.hbm %s9425_s4, %s3229_s15 }
 0x696   : > { %s5234_s14 = scalar_lea.hbm %s1421_s5, 16  ;;  %p5237_p1 = scmp.lt.u32.totalorder %s1421_s5, %s9425_s4 }
 0x697   : > { %p5235_p0 = scmp.ne.s32.totalorder %s1421_s5, %s5234_s14  ;;  %p5238_p2 = scmp.lt.u32.totalorder %s8039_s7, %s5234_s14 }
 0x698   : > { %p5240_p4 = scmp.lt.u32.totalorder %s5234_s14, %s1421_s5 }
 0x699   : > { %p5239_p3 = por %p5238_p2, %p5237_p1 }
 0x69b   : > { %p5241_p5 = por %p5240_p4, %p5239_p3 }
 0x69d   : > { %p5242_p6 = pnand %p5241_p5, %p5235_p0 }
 0x69f   : > { %5245 = shalt.err (!%p5242_p6)  }
 0x6a0   : > { %s5246_s9 = scalar_lea.vmem %s8167_s25, 16  ;;  %p5251_p12 = scmp.lt.s32.totalorder %s8167_s25, %s8047_s18 }
 0x6a1   : > { %p5247_p7 = scmp.ne.s32.totalorder %s8167_s25, %s5246_s9  ;;  %p5252_p8 = scmp.lt.s32.totalorder %s8050_s16, %s5246_s9 }
 0x6a3   : > { %p5253_p9 = por %p5252_p8, %p5251_p12 }
 0x6a5   : > { %p5254_p11 = pnand %p5253_p9, %p5247_p7 }
 0x6a7   : > { %5257 = shalt.err (!%p5254_p11)  }
 0x6a8   : > { %1433 = dma.hbm_to_vmem [thread:$0]  %s1421_s5, 16, %s8167_s25, %s8034_s20 }
 0x6a9   : > { %s8202_s11 = sld [smem:[#allocation5 + %s1451_s6]]  ;;  %s2810_s26 = scalar_lea.vmem %s8014_s2, 10 [#allocation2] }
 0x6aa   : > { %s1464_s19 = sshll.u32 %s2810_s26, 4  ;;  %s1468_s17 = sadd.s32 11, %s8011_s0  ;;  %s8207_s19 = int_to_ptr.vmem [resolvable:$true] %s1464_s19 }
 0x6ab   : > { %s3231_s1 = sshll.u32 %s8182_s29, 4  ;;  %s8212_s14 = sld [smem:[#allocation5 + %s1468_s17]] }
 0x6ac   : > { %s1438_s21 = scalar_lea.hbm %s9425_s4, %s3231_s1 }
 0x6ad   : > { %s5258_s23 = scalar_lea.hbm %s1438_s21, 16  ;;  %p5261_p0 = scmp.lt.u32.totalorder %s1438_s21, %s9425_s4 }
 0x6ae   : > { %p5259_p13 = scmp.ne.s32.totalorder %s1438_s21, %s5258_s23  ;;  %p5262_p1 = scmp.lt.u32.totalorder %s8039_s7, %s5258_s23 }
 0x6af   : > { %p5264_p3 = scmp.lt.u32.totalorder %s5258_s23, %s1438_s21 }
 0x6b0   : > { %p5263_p2 = por %p5262_p1, %p5261_p0 }
 0x6b2   : > { %p5265_p4 = por %p5264_p3, %p5263_p2 }
 0x6b4   : > { %p5266_p5 = pnand %p5265_p4, %p5259_p13 }
 0x6b6   : > { %5269 = shalt.err (!%p5266_p5)  }
 0x6b7   : > { %s5270_s25 = scalar_lea.vmem %s8185_s12, 16  ;;  %p5275_p7 = scmp.lt.s32.totalorder %s8185_s12, %s8047_s18 }
 0x6b8   : > { %p5271_p6 = scmp.ne.s32.totalorder %s8185_s12, %s5270_s25  ;;  %p5276_p12 = scmp.lt.s32.totalorder %s8050_s16, %s5270_s25 }
 0x6ba   : > { %p5277_p8 = por %p5276_p12, %p5275_p7 }
 0x6bc   : > { %p5278_p9 = pnand %p5277_p8, %p5271_p6 }
 0x6be   : > { %5281 = shalt.err (!%p5278_p9)  }
 0x6bf   : > { %1450 = dma.hbm_to_vmem [thread:$0]  %s1438_s21, 16, %s8185_s12, %s8034_s20 }
 0x6c0   : > { %s2815_s29 = scalar_lea.vmem %s8014_s2, 11 [#allocation2]  ;;  %s1485_s5 = sadd.s32 12, %s8011_s0 }
 0x6c1   : > { %s3233_s6 = sshll.u32 %s8202_s11, 4  ;;  %s1481_s26 = sshll.u32 %s2815_s29, 4  ;;  %s8231_s26 = int_to_ptr.vmem [resolvable:$true] %s1481_s26 }
 0x6c2   : > { %s1455_s15 = scalar_lea.hbm %s9425_s4, %s3233_s6 }
 0x6c3   : > { %s5282_s8 = scalar_lea.hbm %s1455_s15, 16  ;;  %p5285_p13 = scmp.lt.u32.totalorder %s1455_s15, %s9425_s4 }
 0x6c4   : > { %p5283_p11 = scmp.ne.s32.totalorder %s1455_s15, %s5282_s8  ;;  %p5286_p0 = scmp.lt.u32.totalorder %s8039_s7, %s5282_s8 }
 0x6c5   : > { %p5288_p2 = scmp.lt.u32.totalorder %s5282_s8, %s1455_s15 }
 0x6c6   : > { %p5287_p1 = por %p5286_p0, %p5285_p13 }
 0x6c8   : > { %p5289_p3 = por %p5288_p2, %p5287_p1 }
 0x6ca   : > { %p5290_p4 = pnand %p5289_p3, %p5283_p11 }
 0x6cc   : > { %5293 = shalt.err (!%p5290_p4)  }
 0x6cd   : > { %s5294_s12 = scalar_lea.vmem %s8207_s19, 16  ;;  %p5299_p6 = scmp.lt.s32.totalorder %s8207_s19, %s8047_s18 }
 0x6ce   : > { %p5295_p5 = scmp.ne.s32.totalorder %s8207_s19, %s5294_s12  ;;  %p5300_p7 = scmp.lt.s32.totalorder %s8050_s16, %s5294_s12 }
 0x6d0   : > { %p5301_p12 = por %p5300_p7, %p5299_p6 }
 0x6d2   : > { %p5302_p8 = pnand %p5301_p12, %p5295_p5 }
 0x6d4   : > { %5305 = shalt.err (!%p5302_p8)  }
 0x6d5   : > { %1467 = dma.hbm_to_vmem [thread:$0]  %s1455_s15, 16, %s8207_s19, %s8034_s20 }
 0x6d6   : > { %s3235_s11 = sshll.u32 %s8212_s14, 4  ;;  %s8245_s21 = sld [smem:[#allocation5 + %s1485_s5]] }
 0x6d7   : > { %s1472_s29 = scalar_lea.hbm %s9425_s4, %s3235_s11  ;;  %s2820_s6 = scalar_lea.vmem %s8014_s2, 12 [#allocation2] }
 0x6d8   : > { %s5306_s17 = scalar_lea.hbm %s1472_s29, 16  ;;  %p5309_p11 = scmp.lt.u32.totalorder %s1472_s29, %s9425_s4 }
 0x6d9   : > { %p5307_p9 = scmp.ne.s32.totalorder %s1472_s29, %s5306_s17  ;;  %p5310_p13 = scmp.lt.u32.totalorder %s8039_s7, %s5306_s17 }
 0x6da   : > { %p5312_p1 = scmp.lt.u32.totalorder %s5306_s17, %s1472_s29 }
 0x6db   : > { %p5311_p0 = por %p5310_p13, %p5309_p11 }
 0x6dd   : > { %p5313_p2 = por %p5312_p1, %p5311_p0 }
 0x6df   : > { %p5314_p3 = pnand %p5313_p2, %p5307_p9 }
 0x6e1   : > { %5317 = shalt.err (!%p5314_p3)  }
 0x6e2   : > { %s5318_s19 = scalar_lea.vmem %s8231_s26, 16  ;;  %p5323_p5 = scmp.lt.s32.totalorder %s8231_s26, %s8047_s18 }
 0x6e3   : > { %p5319_p4 = scmp.ne.s32.totalorder %s8231_s26, %s5318_s19  ;;  %p5324_p6 = scmp.lt.s32.totalorder %s8050_s16, %s5318_s19 }
 0x6e5   : > { %p5325_p7 = por %p5324_p6, %p5323_p5 }
 0x6e7   : > { %p5326_p12 = pnand %p5325_p7, %p5319_p4 }
 0x6e9   : > { %5329 = shalt.err (!%p5326_p12)  }
 0x6ea   : > { %1484 = dma.hbm_to_vmem [thread:$0]  %s1472_s29, 16, %s8231_s26, %s8034_s20 }
 0x6eb   : > { %s1498_s14 = sshll.u32 %s2820_s6, 4  ;;  %s1502_s5 = sadd.s32 13, %s8011_s0  ;;  %s1499_s14 = int_to_ptr.vmem [resolvable:$true] %s1498_s14 }
 0x6ec   : > { %s8263_s15 = sld [smem:[#allocation5 + %s1502_s5]]  ;;  %s2825_s23 = scalar_lea.vmem %s8014_s2, 13 [#allocation2] }
 0x6ed   : > { %s1519_s10 = sadd.s32 14, %s8011_s0  ;;  %s3237_s12 = sshll.u32 %s8245_s21, 4 }
 0x6ee   : > { %s1515_s11 = sshll.u32 %s2825_s23, 4  ;;  %s1489_s17 = scalar_lea.hbm %s9425_s4, %s3237_s12  ;;  %s8271_s11 = int_to_ptr.vmem [resolvable:$true] %s1515_s11 }
 0x6ef   : > { %s5330_s1 = scalar_lea.hbm %s1489_s17, 16  ;;  %p5333_p9 = scmp.lt.u32.totalorder %s1489_s17, %s9425_s4 }
 0x6f0   : > { %p5331_p8 = scmp.ne.s32.totalorder %s1489_s17, %s5330_s1  ;;  %p5334_p11 = scmp.lt.u32.totalorder %s8039_s7, %s5330_s1 }
 0x6f1   : > { %p5336_p0 = scmp.lt.u32.totalorder %s5330_s1, %s1489_s17 }
 0x6f2   : > { %p5335_p13 = por %p5334_p11, %p5333_p9 }
 0x6f4   : > { %p5337_p1 = por %p5336_p0, %p5335_p13 }
 0x6f6   : > { %p5338_p2 = pnand %p5337_p1, %p5331_p8 }
 0x6f8   : > { %5341 = shalt.err (!%p5338_p2)  }
 0x6f9   : > { %s5342_s26 = scalar_lea.vmem %s1499_s14, 16  ;;  %p5347_p4 = scmp.lt.s32.totalorder %s1499_s14, %s8047_s18 }
 0x6fa   : > { %p5343_p3 = scmp.ne.s32.totalorder %s1499_s14, %s5342_s26  ;;  %p5348_p5 = scmp.lt.s32.totalorder %s8050_s16, %s5342_s26 }
 0x6fc   : > { %p5349_p6 = por %p5348_p5, %p5347_p4 }
 0x6fe   : > { %p5350_p7 = pnand %p5349_p6, %p5343_p3 }
 0x700   : > { %5353 = shalt.err (!%p5350_p7)  }
 0x701   : > { %1501 = dma.hbm_to_vmem [thread:$0]  %s1489_s17, 16, %s1499_s14, %s8034_s20 }
 0x702   : > { %s8280_s21 = sld [smem:[#allocation5 + %s1519_s10]]  ;;  %s2830_s29 = scalar_lea.vmem %s8014_s2, 14 [#allocation2] }
 0x703   : > { %s3239_s6 = sshll.u32 %s8263_s15, 4  ;;  %s1532_s5 = sshll.u32 %s2830_s29, 4  ;;  %s8287_s5 = int_to_ptr.vmem [resolvable:$true] %s1532_s5 }
 0x704   : > { %s1506_s9 = scalar_lea.hbm %s9425_s4, %s3239_s6 }
 0x705   : > { %s5354_s25 = scalar_lea.hbm %s1506_s9, 16  ;;  %p5357_p8 = scmp.lt.u32.totalorder %s1506_s9, %s9425_s4 }
 0x706   : > { %p5355_p12 = scmp.ne.s32.totalorder %s1506_s9, %s5354_s25  ;;  %p5358_p9 = scmp.lt.u32.totalorder %s8039_s7, %s5354_s25 }
 0x707   : > { %p5360_p13 = scmp.lt.u32.totalorder %s5354_s25, %s1506_s9 }
 0x708   : > { %p5359_p11 = por %p5358_p9, %p5357_p8 }
 0x70a   : > { %p5361_p0 = por %p5360_p13, %p5359_p11 }
 0x70c   : > { %p5362_p1 = pnand %p5361_p0, %p5355_p12 }
 0x70e   : > { %5365 = shalt.err (!%p5362_p1)  }
 0x70f   : > { %s5366_s14 = scalar_lea.vmem %s8271_s11, 16  ;;  %p5371_p3 = scmp.lt.s32.totalorder %s8271_s11, %s8047_s18 }
 0x710   : > { %p5367_p2 = scmp.ne.s32.totalorder %s8271_s11, %s5366_s14  ;;  %p5372_p4 = scmp.lt.s32.totalorder %s8050_s16, %s5366_s14 }
 0x712   : > { %p5373_p5 = por %p5372_p4, %p5371_p3 }
 0x714   : > { %p5374_p6 = pnand %p5373_p5, %p5367_p2 }
 0x716   : > { %5377 = shalt.err (!%p5374_p6)  }
 0x717   : > { %1518 = dma.hbm_to_vmem [thread:$0]  %s1506_s9, 16, %s8271_s11, %s8034_s20 }
 0x718   : > { %s1536_s15 = sadd.s32 15, %s8011_s0  ;;  %s2835_s10 = scalar_lea.vmem %s8014_s2, 15 [#allocation2] }
 0x719   : > { %s8302_s17 = sld [smem:[#allocation5 + %s1536_s15]]  ;;  %s1549_s19 = sshll.u32 %s2835_s10, 4  ;;  %s8305_s19 = int_to_ptr.vmem [resolvable:$true] %s1549_s19 }
 0x71a   : > { %s3241_s26 = sshll.u32 %s8280_s21, 4  ;;  %s1553_s12 = sadd.s32 16, %s8011_s0 }
 0x71b   : > { %s1523_s23 = scalar_lea.hbm %s9425_s4, %s3241_s26 }
 0x71c   : > { %s5378_s25 = scalar_lea.hbm %s1523_s23, 16  ;;  %p5381_p12 = scmp.lt.u32.totalorder %s1523_s23, %s9425_s4 }
 0x71d   : > { %p5379_p7 = scmp.ne.s32.totalorder %s1523_s23, %s5378_s25  ;;  %p5382_p8 = scmp.lt.u32.totalorder %s8039_s7, %s5378_s25 }
 0x71e   : > { %p5384_p11 = scmp.lt.u32.totalorder %s5378_s25, %s1523_s23 }
 0x71f   : > { %p5383_p9 = por %p5382_p8, %p5381_p12 }
 0x721   : > { %p5385_p13 = por %p5384_p11, %p5383_p9 }
 0x723   : > { %p5386_p0 = pnand %p5385_p13, %p5379_p7 }
 0x725   : > { %5389 = shalt.err (!%p5386_p0)  }
 0x726   : > { %s5390_s11 = scalar_lea.vmem %s8287_s5, 16  ;;  %p5395_p2 = scmp.lt.s32.totalorder %s8287_s5, %s8047_s18 }
 0x727   : > { %p5391_p1 = scmp.ne.s32.totalorder %s8287_s5, %s5390_s11  ;;  %p5396_p3 = scmp.lt.s32.totalorder %s8050_s16, %s5390_s11 }
 0x729   : > { %p5397_p4 = por %p5396_p3, %p5395_p2 }
 0x72b   : > { %p5398_p5 = pnand %p5397_p4, %p5391_p1 }
 0x72d   : > { %5401 = shalt.err (!%p5398_p5)  }
 0x72e   : > { %1535 = dma.hbm_to_vmem [thread:$0]  %s1523_s23, 16, %s8287_s5, %s8034_s20 }
 0x72f   : > { %s8322_s21 = sld [smem:[#allocation5 + %s1553_s12]]  ;;  %s2840_s9 = scalar_lea.vmem %s8014_s2, 16 [#allocation2] }
 0x730   : > { %s1566_s14 = sshll.u32 %s2840_s9, 4  ;;  %s1570_s15 = sadd.s32 17, %s8011_s0  ;;  %s8327_s14 = int_to_ptr.vmem [resolvable:$true] %s1566_s14 }
 0x731   : > { %s3243_s10 = sshll.u32 %s8302_s17, 4  ;;  %s8332_s25 = sld [smem:[#allocation5 + %s1570_s15]] }
 0x732   : > { %s1540_s6 = scalar_lea.hbm %s9425_s4, %s3243_s10 }
 0x733   : > { %s5402_s1 = scalar_lea.hbm %s1540_s6, 16  ;;  %p5405_p7 = scmp.lt.u32.totalorder %s1540_s6, %s9425_s4 }
 0x734   : > { %p5403_p6 = scmp.ne.s32.totalorder %s1540_s6, %s5402_s1  ;;  %p5406_p12 = scmp.lt.u32.totalorder %s8039_s7, %s5402_s1 }
 0x735   : > { %p5408_p9 = scmp.lt.u32.totalorder %s5402_s1, %s1540_s6 }
 0x736   : > { %p5407_p8 = por %p5406_p12, %p5405_p7 }
 0x738   : > { %p5409_p11 = por %p5408_p9, %p5407_p8 }
 0x73a   : > { %p5410_p13 = pnand %p5409_p11, %p5403_p6 }
 0x73c   : > { %5413 = shalt.err (!%p5410_p13)  }
 0x73d   : > { %s5414_s5 = scalar_lea.vmem %s8305_s19, 16  ;;  %p5419_p1 = scmp.lt.s32.totalorder %s8305_s19, %s8047_s18 }
 0x73e   : > { %p5415_p0 = scmp.ne.s32.totalorder %s8305_s19, %s5414_s5  ;;  %p5420_p2 = scmp.lt.s32.totalorder %s8050_s16, %s5414_s5 }
 0x740   : > { %p5421_p3 = por %p5420_p2, %p5419_p1 }
 0x742   : > { %p5422_p4 = pnand %p5421_p3, %p5415_p0 }
 0x744   : > { %5425 = shalt.err (!%p5422_p4)  }
 0x745   : > { %1552 = dma.hbm_to_vmem [thread:$0]  %s1540_s6, 16, %s8305_s19, %s8034_s20 }
 0x746   : > { %s2845_s17 = scalar_lea.vmem %s8014_s2, 17 [#allocation2]  ;;  %s1587_s23 = sadd.s32 18, %s8011_s0 }
 0x747   : > { %s3245_s12 = sshll.u32 %s8322_s21, 4  ;;  %s1583_s9 = sshll.u32 %s2845_s17, 4  ;;  %s8351_s9 = int_to_ptr.vmem [resolvable:$true] %s1583_s9 }
 0x748   : > { %s1557_s26 = scalar_lea.hbm %s9425_s4, %s3245_s12 }
 0x749   : > { %s5426_s29 = scalar_lea.hbm %s1557_s26, 16  ;;  %p5429_p6 = scmp.lt.u32.totalorder %s1557_s26, %s9425_s4 }
 0x74a   : > { %p5427_p5 = scmp.ne.s32.totalorder %s1557_s26, %s5426_s29  ;;  %p5430_p7 = scmp.lt.u32.totalorder %s8039_s7, %s5426_s29 }
 0x74b   : > { %p5432_p8 = scmp.lt.u32.totalorder %s5426_s29, %s1557_s26 }
 0x74c   : > { %p5431_p12 = por %p5430_p7, %p5429_p6 }
 0x74e   : > { %p5433_p9 = por %p5432_p8, %p5431_p12 }
 0x750   : > { %p5434_p11 = pnand %p5433_p9, %p5427_p5 }
 0x752   : > { %5437 = shalt.err (!%p5434_p11)  }
 0x753   : > { %s5438_s19 = scalar_lea.vmem %s8327_s14, 16  ;;  %p5443_p0 = scmp.lt.s32.totalorder %s8327_s14, %s8047_s18 }
 0x754   : > { %p5439_p13 = scmp.ne.s32.totalorder %s8327_s14, %s5438_s19  ;;  %p5444_p1 = scmp.lt.s32.totalorder %s8050_s16, %s5438_s19 }
 0x756   : > { %p5445_p2 = por %p5444_p1, %p5443_p0 }
 0x758   : > { %p5446_p3 = pnand %p5445_p2, %p5439_p13 }
 0x75a   : > { %5449 = shalt.err (!%p5446_p3)  }
 0x75b   : > { %1569 = dma.hbm_to_vmem [thread:$0]  %s1557_s26, 16, %s8327_s14, %s8034_s20 }
 0x75c   : > { %s3247_s21 = sshll.u32 %s8332_s25, 4  ;;  %s8365_s6 = sld [smem:[#allocation5 + %s1587_s23]] }
 0x75d   : > { %s1574_s17 = scalar_lea.hbm %s9425_s4, %s3247_s21  ;;  %s2850_s12 = scalar_lea.vmem %s8014_s2, 18 [#allocation2] }
 0x75e   : > { %s5450_s15 = scalar_lea.hbm %s1574_s17, 16  ;;  %p5453_p5 = scmp.lt.u32.totalorder %s1574_s17, %s9425_s4 }
 0x75f   : > { %p5451_p4 = scmp.ne.s32.totalorder %s1574_s17, %s5450_s15  ;;  %p5454_p6 = scmp.lt.u32.totalorder %s8039_s7, %s5450_s15 }
 0x760   : > { %p5456_p12 = scmp.lt.u32.totalorder %s5450_s15, %s1574_s17 }
 0x761   : > { %p5455_p7 = por %p5454_p6, %p5453_p5 }
 0x763   : > { %p5457_p8 = por %p5456_p12, %p5455_p7 }
 0x765   : > { %p5458_p9 = pnand %p5457_p8, %p5451_p4 }
 0x767   : > { %5461 = shalt.err (!%p5458_p9)  }
 0x768   : > { %s5462_s14 = scalar_lea.vmem %s8351_s9, 16  ;;  %p5467_p13 = scmp.lt.s32.totalorder %s8351_s9, %s8047_s18 }
 0x769   : > { %p5463_p11 = scmp.ne.s32.totalorder %s8351_s9, %s5462_s14  ;;  %p5468_p0 = scmp.lt.s32.totalorder %s8050_s16, %s5462_s14 }
 0x76b   : > { %p5469_p1 = por %p5468_p0, %p5467_p13 }
 0x76d   : > { %p5470_p2 = pnand %p5469_p1, %p5463_p11 }
 0x76f   : > { %5473 = shalt.err (!%p5470_p2)  }
 0x770   : > { %1586 = dma.hbm_to_vmem [thread:$0]  %s1574_s17, 16, %s8351_s9, %s8034_s20 }
 0x771   : > { %s1600_s25 = sshll.u32 %s2850_s12, 4  ;;  %s1604_s23 = sadd.s32 19, %s8011_s0  ;;  %s1601_s25 = int_to_ptr.vmem [resolvable:$true] %s1600_s25 }
 0x772   : > { %s8383_s26 = sld [smem:[#allocation5 + %s1604_s23]]  ;;  %s2855_s1 = scalar_lea.vmem %s8014_s2, 19 [#allocation2] }
 0x773   : > { %s1621_s8 = sadd.s32 20, %s8011_s0  ;;  %s3249_s19 = sshll.u32 %s8365_s6, 4 }
 0x774   : > { %s1617_s21 = sshll.u32 %s2855_s1, 4  ;;  %s1591_s15 = scalar_lea.hbm %s9425_s4, %s3249_s19  ;;  %s8391_s21 = int_to_ptr.vmem [resolvable:$true] %s1617_s21 }
 0x775   : > { %s5474_s10 = scalar_lea.hbm %s1591_s15, 16  ;;  %p5477_p4 = scmp.lt.u32.totalorder %s1591_s15, %s9425_s4 }
 0x776   : > { %p5475_p3 = scmp.ne.s32.totalorder %s1591_s15, %s5474_s10  ;;  %p5478_p5 = scmp.lt.u32.totalorder %s8039_s7, %s5474_s10 }
 0x777   : > { %p5480_p7 = scmp.lt.u32.totalorder %s5474_s10, %s1591_s15 }
 0x778   : > { %p5479_p6 = por %p5478_p5, %p5477_p4 }
 0x77a   : > { %p5481_p12 = por %p5480_p7, %p5479_p6 }
 0x77c   : > { %p5482_p8 = pnand %p5481_p12, %p5475_p3 }
 0x77e   : > { %5485 = shalt.err (!%p5482_p8)  }
 0x77f   : > { %s5486_s9 = scalar_lea.vmem %s1601_s25, 16  ;;  %p5491_p11 = scmp.lt.s32.totalorder %s1601_s25, %s8047_s18 }
 0x780   : > { %p5487_p9 = scmp.ne.s32.totalorder %s1601_s25, %s5486_s9  ;;  %p5492_p13 = scmp.lt.s32.totalorder %s8050_s16, %s5486_s9 }
 0x782   : > { %p5493_p0 = por %p5492_p13, %p5491_p11 }
 0x784   : > { %p5494_p1 = pnand %p5493_p0, %p5487_p9 }
 0x786   : > { %5497 = shalt.err (!%p5494_p1)  }
 0x787   : > { %1603 = dma.hbm_to_vmem [thread:$0]  %s1591_s15, 16, %s1601_s25, %s8034_s20 }
 0x788   : > { %s8400_s6 = sld [smem:[#allocation5 + %s1621_s8]]  ;;  %s2860_s17 = scalar_lea.vmem %s8014_s2, 20 [#allocation2] }
 0x789   : > { %s3251_s12 = sshll.u32 %s8383_s26, 4  ;;  %s1634_s23 = sshll.u32 %s2860_s17, 4  ;;  %s8407_s23 = int_to_ptr.vmem [resolvable:$true] %s1634_s23 }
 0x78a   : > { %s1608_s11 = scalar_lea.hbm %s9425_s4, %s3251_s12 }
 0x78b   : > { %s5498_s5 = scalar_lea.hbm %s1608_s11, 16  ;;  %p5501_p3 = scmp.lt.u32.totalorder %s1608_s11, %s9425_s4 }
 0x78c   : > { %p5499_p2 = scmp.ne.s32.totalorder %s1608_s11, %s5498_s5  ;;  %p5502_p4 = scmp.lt.u32.totalorder %s8039_s7, %s5498_s5 }
 0x78d   : > { %p5504_p6 = scmp.lt.u32.totalorder %s5498_s5, %s1608_s11 }
 0x78e   : > { %p5503_p5 = por %p5502_p4, %p5501_p3 }
 0x790   : > { %p5505_p7 = por %p5504_p6, %p5503_p5 }
 0x792   : > { %p5506_p12 = pnand %p5505_p7, %p5499_p2 }
 0x794   : > { %5509 = shalt.err (!%p5506_p12)  }
 0x795   : > { %s5510_s25 = scalar_lea.vmem %s8391_s21, 16  ;;  %p5515_p9 = scmp.lt.s32.totalorder %s8391_s21, %s8047_s18 }
 0x796   : > { %p5511_p8 = scmp.ne.s32.totalorder %s8391_s21, %s5510_s25  ;;  %p5516_p11 = scmp.lt.s32.totalorder %s8050_s16, %s5510_s25 }
 0x798   : > { %p5517_p13 = por %p5516_p11, %p5515_p9 }
 0x79a   : > { %p5518_p0 = pnand %p5517_p13, %p5511_p8 }
 0x79c   : > { %5521 = shalt.err (!%p5518_p0)  }
 0x79d   : > { %1620 = dma.hbm_to_vmem [thread:$0]  %s1608_s11, 16, %s8391_s21, %s8034_s20 }
 0x79e   : > { %s1638_s26 = sadd.s32 21, %s8011_s0  ;;  %s2865_s8 = scalar_lea.vmem %s8014_s2, 21 [#allocation2] }
 0x79f   : > { %s8422_s15 = sld [smem:[#allocation5 + %s1638_s26]]  ;;  %s1651_s14 = sshll.u32 %s2865_s8, 4  ;;  %s8425_s14 = int_to_ptr.vmem [resolvable:$true] %s1651_s14 }
 0x7a0   : > { %s3253_s9 = sshll.u32 %s8400_s6, 4  ;;  %s1655_s19 = sadd.s32 22, %s8011_s0 }
 0x7a1   : > { %s1625_s1 = scalar_lea.hbm %s9425_s4, %s3253_s9 }
 0x7a2   : > { %s5522_s5 = scalar_lea.hbm %s1625_s1, 16  ;;  %p5525_p2 = scmp.lt.u32.totalorder %s1625_s1, %s9425_s4 }
 0x7a3   : > { %p5523_p1 = scmp.ne.s32.totalorder %s1625_s1, %s5522_s5  ;;  %p5526_p3 = scmp.lt.u32.totalorder %s8039_s7, %s5522_s5 }
 0x7a4   : > { %p5528_p5 = scmp.lt.u32.totalorder %s5522_s5, %s1625_s1 }
 0x7a5   : > { %p5527_p4 = por %p5526_p3, %p5525_p2 }
 0x7a7   : > { %p5529_p6 = por %p5528_p5, %p5527_p4 }
 0x7a9   : > { %p5530_p7 = pnand %p5529_p6, %p5523_p1 }
 0x7ab   : > { %5533 = shalt.err (!%p5530_p7)  }
 0x7ac   : > { %s5534_s21 = scalar_lea.vmem %s8407_s23, 16  ;;  %p5539_p8 = scmp.lt.s32.totalorder %s8407_s23, %s8047_s18 }
 0x7ad   : > { %p5535_p12 = scmp.ne.s32.totalorder %s8407_s23, %s5534_s21  ;;  %p5540_p9 = scmp.lt.s32.totalorder %s8050_s16, %s5534_s21 }
 0x7af   : > { %p5541_p11 = por %p5540_p9, %p5539_p8 }
 0x7b1   : > { %p5542_p13 = pnand %p5541_p11, %p5535_p12 }
 0x7b3   : > { %5545 = shalt.err (!%p5542_p13)  }
 0x7b4   : > { %1637 = dma.hbm_to_vmem [thread:$0]  %s1625_s1, 16, %s8407_s23, %s8034_s20 }
 0x7b5   : > { %s8442_s6 = sld [smem:[#allocation5 + %s1655_s19]]  ;;  %s2870_s11 = scalar_lea.vmem %s8014_s2, 22 [#allocation2] }
 0x7b6   : > { %s1668_s25 = sshll.u32 %s2870_s11, 4  ;;  %s1672_s26 = sadd.s32 23, %s8011_s0  ;;  %s8447_s25 = int_to_ptr.vmem [resolvable:$true] %s1668_s25 }
 0x7b7   : > { %s3255_s8 = sshll.u32 %s8422_s15, 4  ;;  %s8452_s5 = sld [smem:[#allocation5 + %s1672_s26]] }
 0x7b8   : > { %s1642_s12 = scalar_lea.hbm %s9425_s4, %s3255_s8 }
 0x7b9   : > { %s5546_s10 = scalar_lea.hbm %s1642_s12, 16  ;;  %p5549_p1 = scmp.lt.u32.totalorder %s1642_s12, %s9425_s4 }
 0x7ba   : > { %p5547_p0 = scmp.ne.s32.totalorder %s1642_s12, %s5546_s10  ;;  %p5550_p2 = scmp.lt.u32.totalorder %s8039_s7, %s5546_s10 }
 0x7bb   : > { %p5552_p4 = scmp.lt.u32.totalorder %s5546_s10, %s1642_s12 }
 0x7bc   : > { %p5551_p3 = por %p5550_p2, %p5549_p1 }
 0x7be   : > { %p5553_p5 = por %p5552_p4, %p5551_p3 }
 0x7c0   : > { %p5554_p6 = pnand %p5553_p5, %p5547_p0 }
 0x7c2   : > { %5557 = shalt.err (!%p5554_p6)  }
 0x7c3   : > { %s5558_s23 = scalar_lea.vmem %s8425_s14, 16  ;;  %p5563_p12 = scmp.lt.s32.totalorder %s8425_s14, %s8047_s18 }
 0x7c4   : > { %p5559_p7 = scmp.ne.s32.totalorder %s8425_s14, %s5558_s23  ;;  %p5564_p8 = scmp.lt.s32.totalorder %s8050_s16, %s5558_s23 }
 0x7c6   : > { %p5565_p9 = por %p5564_p8, %p5563_p12 }
 0x7c8   : > { %p5566_p11 = pnand %p5565_p9, %p5559_p7 }
 0x7ca   : > { %5569 = shalt.err (!%p5566_p11)  }
 0x7cb   : > { %1654 = dma.hbm_to_vmem [thread:$0]  %s1642_s12, 16, %s8425_s14, %s8034_s20 }
 0x7cc   : > { %s2875_s15 = scalar_lea.vmem %s8014_s2, 23 [#allocation2]  ;;  %s1689_s1 = sadd.s32 24, %s8011_s0 }
 0x7cd   : > { %s3257_s19 = sshll.u32 %s8442_s6, 4  ;;  %s1685_s11 = sshll.u32 %s2875_s15, 4  ;;  %s8471_s11 = int_to_ptr.vmem [resolvable:$true] %s1685_s11 }
 0x7ce   : > { %s1659_s9 = scalar_lea.hbm %s9425_s4, %s3257_s19 }
 0x7cf   : > { %s5570_s17 = scalar_lea.hbm %s1659_s9, 16  ;;  %p5573_p0 = scmp.lt.u32.totalorder %s1659_s9, %s9425_s4 }
 0x7d0   : > { %p5571_p13 = scmp.ne.s32.totalorder %s1659_s9, %s5570_s17  ;;  %p5574_p1 = scmp.lt.u32.totalorder %s8039_s7, %s5570_s17 }
 0x7d1   : > { %p5576_p3 = scmp.lt.u32.totalorder %s5570_s17, %s1659_s9 }
 0x7d2   : > { %p5575_p2 = por %p5574_p1, %p5573_p0 }
 0x7d4   : > { %p5577_p4 = por %p5576_p3, %p5575_p2 }
 0x7d6   : > { %p5578_p5 = pnand %p5577_p4, %p5571_p13 }
 0x7d8   : > { %5581 = shalt.err (!%p5578_p5)  }
 0x7d9   : > { %s5582_s14 = scalar_lea.vmem %s8447_s25, 16  ;;  %p5587_p7 = scmp.lt.s32.totalorder %s8447_s25, %s8047_s18 }
 0x7da   : > { %p5583_p6 = scmp.ne.s32.totalorder %s8447_s25, %s5582_s14  ;;  %p5588_p12 = scmp.lt.s32.totalorder %s8050_s16, %s5582_s14 }
 0x7dc   : > { %p5589_p8 = por %p5588_p12, %p5587_p7 }
 0x7de   : > { %p5590_p9 = pnand %p5589_p8, %p5583_p6 }
 0x7e0   : > { %5593 = shalt.err (!%p5590_p9)  }
 0x7e1   : > { %1671 = dma.hbm_to_vmem [thread:$0]  %s1659_s9, 16, %s8447_s25, %s8034_s20 }
 0x7e2   : > { %s3259_s6 = sshll.u32 %s8452_s5, 4  ;;  %s8485_s12 = sld [smem:[#allocation5 + %s1689_s1]] }
 0x7e3   : > { %s1676_s15 = scalar_lea.hbm %s9425_s4, %s3259_s6  ;;  %s2880_s19 = scalar_lea.vmem %s8014_s2, 24 [#allocation2] }
 0x7e4   : > { %s5594_s26 = scalar_lea.hbm %s1676_s15, 16  ;;  %p5597_p13 = scmp.lt.u32.totalorder %s1676_s15, %s9425_s4 }
 0x7e5   : > { %p5595_p11 = scmp.ne.s32.totalorder %s1676_s15, %s5594_s26  ;;  %p5598_p0 = scmp.lt.u32.totalorder %s8039_s7, %s5594_s26 }
 0x7e6   : > { %p5600_p2 = scmp.lt.u32.totalorder %s5594_s26, %s1676_s15 }
 0x7e7   : > { %p5599_p1 = por %p5598_p0, %p5597_p13 }
 0x7e9   : > { %p5601_p3 = por %p5600_p2, %p5599_p1 }
 0x7eb   : > { %p5602_p4 = pnand %p5601_p3, %p5595_p11 }
 0x7ed   : > { %5605 = shalt.err (!%p5602_p4)  }
 0x7ee   : > { %s5606_s25 = scalar_lea.vmem %s8471_s11, 16  ;;  %p5611_p6 = scmp.lt.s32.totalorder %s8471_s11, %s8047_s18 }
 0x7ef   : > { %p5607_p5 = scmp.ne.s32.totalorder %s8471_s11, %s5606_s25  ;;  %p5612_p7 = scmp.lt.s32.totalorder %s8050_s16, %s5606_s25 }
 0x7f1   : > { %p5613_p12 = por %p5612_p7, %p5611_p6 }
 0x7f3   : > { %p5614_p8 = pnand %p5613_p12, %p5607_p5 }
 0x7f5   : > { %5617 = shalt.err (!%p5614_p8)  }
 0x7f6   : > { %1688 = dma.hbm_to_vmem [thread:$0]  %s1676_s15, 16, %s8471_s11, %s8034_s20 }
 0x7f7   : > { %s1702_s5 = sshll.u32 %s2880_s19, 4  ;;  %s1706_s1 = sadd.s32 25, %s8011_s0  ;;  %s1703_s5 = int_to_ptr.vmem [resolvable:$true] %s1702_s5 }
 0x7f8   : > { %s8503_s9 = sld [smem:[#allocation5 + %s1706_s1]]  ;;  %s2885_s10 = scalar_lea.vmem %s8014_s2, 25 [#allocation2] }
 0x7f9   : > { %s1723_s29 = sadd.s32 26, %s8011_s0  ;;  %s3261_s14 = sshll.u32 %s8485_s12, 4 }
 0x7fa   : > { %s1719_s6 = sshll.u32 %s2885_s10, 4  ;;  %s1693_s26 = scalar_lea.hbm %s9425_s4, %s3261_s14  ;;  %s8511_s6 = int_to_ptr.vmem [resolvable:$true] %s1719_s6 }
 0x7fb   : > { %s5618_s8 = scalar_lea.hbm %s1693_s26, 16  ;;  %p5621_p11 = scmp.lt.u32.totalorder %s1693_s26, %s9425_s4 }
 0x7fc   : > { %p5619_p9 = scmp.ne.s32.totalorder %s1693_s26, %s5618_s8  ;;  %p5622_p13 = scmp.lt.u32.totalorder %s8039_s7, %s5618_s8 }
 0x7fd   : > { %p5624_p1 = scmp.lt.u32.totalorder %s5618_s8, %s1693_s26 }
 0x7fe   : > { %p5623_p0 = por %p5622_p13, %p5621_p11 }
 0x800   : > { %p5625_p2 = por %p5624_p1, %p5623_p0 }
 0x802   : > { %p5626_p3 = pnand %p5625_p2, %p5619_p9 }
 0x804   : > { %5629 = shalt.err (!%p5626_p3)  }
 0x805   : > { %s5630_s11 = scalar_lea.vmem %s1703_s5, 16  ;;  %p5635_p5 = scmp.lt.s32.totalorder %s1703_s5, %s8047_s18 }
 0x806   : > { %p5631_p4 = scmp.ne.s32.totalorder %s1703_s5, %s5630_s11  ;;  %p5636_p6 = scmp.lt.s32.totalorder %s8050_s16, %s5630_s11 }
 0x808   : > { %p5637_p7 = por %p5636_p6, %p5635_p5 }
 0x80a   : > { %p5638_p12 = pnand %p5637_p7, %p5631_p4 }
 0x80c   : > { %5641 = shalt.err (!%p5638_p12)  }
 0x80d   : > { %1705 = dma.hbm_to_vmem [thread:$0]  %s1693_s26, 16, %s1703_s5, %s8034_s20 }
 0x80e   : > { %s8520_s12 = sld [smem:[#allocation5 + %s1723_s29]]  ;;  %s2890_s15 = scalar_lea.vmem %s8014_s2, 26 [#allocation2] }
 0x80f   : > { %s3263_s19 = sshll.u32 %s8503_s9, 4  ;;  %s1736_s1 = sshll.u32 %s2890_s15, 4  ;;  %s8527_s1 = int_to_ptr.vmem [resolvable:$true] %s1736_s1 }
 0x810   : > { %s1710_s21 = scalar_lea.hbm %s9425_s4, %s3263_s19 }
 0x811   : > { %s5642_s23 = scalar_lea.hbm %s1710_s21, 16  ;;  %p5645_p9 = scmp.lt.u32.totalorder %s1710_s21, %s9425_s4 }
 0x812   : > { %p5643_p8 = scmp.ne.s32.totalorder %s1710_s21, %s5642_s23  ;;  %p5646_p11 = scmp.lt.u32.totalorder %s8039_s7, %s5642_s23 }
 0x813   : > { %p5648_p0 = scmp.lt.u32.totalorder %s5642_s23, %s1710_s21 }
 0x814   : > { %p5647_p13 = por %p5646_p11, %p5645_p9 }
 0x816   : > { %p5649_p1 = por %p5648_p0, %p5647_p13 }
 0x818   : > { %p5650_p2 = pnand %p5649_p1, %p5643_p8 }
 0x81a   : > { %5653 = shalt.err (!%p5650_p2)  }
 0x81b   : > { %s5654_s5 = scalar_lea.vmem %s8511_s6, 16  ;;  %p5659_p4 = scmp.lt.s32.totalorder %s8511_s6, %s8047_s18 }
 0x81c   : > { %p5655_p3 = scmp.ne.s32.totalorder %s8511_s6, %s5654_s5  ;;  %p5660_p5 = scmp.lt.s32.totalorder %s8050_s16, %s5654_s5 }
 0x81e   : > { %p5661_p6 = por %p5660_p5, %p5659_p4 }
 0x820   : > { %p5662_p7 = pnand %p5661_p6, %p5655_p3 }
 0x822   : > { %5665 = shalt.err (!%p5662_p7)  }
 0x823   : > { %1722 = dma.hbm_to_vmem [thread:$0]  %s1710_s21, 16, %s8511_s6, %s8034_s20 }
 0x824   : > { %s1740_s9 = sadd.s32 27, %s8011_s0  ;;  %s2895_s29 = scalar_lea.vmem %s8014_s2, 27 [#allocation2] }
 0x825   : > { %s8542_s26 = sld [smem:[#allocation5 + %s1740_s9]]  ;;  %s1753_s25 = sshll.u32 %s2895_s29, 4  ;;  %s8545_s25 = int_to_ptr.vmem [resolvable:$true] %s1753_s25 }
 0x826   : > { %s3265_s11 = sshll.u32 %s8520_s12, 4  ;;  %s1757_s14 = sadd.s32 28, %s8011_s0 }
 0x827   : > { %s1727_s10 = scalar_lea.hbm %s9425_s4, %s3265_s11 }
 0x828   : > { %s5666_s23 = scalar_lea.hbm %s1727_s10, 16  ;;  %p5669_p8 = scmp.lt.u32.totalorder %s1727_s10, %s9425_s4 }
 0x829   : > { %p5667_p12 = scmp.ne.s32.totalorder %s1727_s10, %s5666_s23  ;;  %p5670_p9 = scmp.lt.u32.totalorder %s8039_s7, %s5666_s23 }
 0x82a   : > { %p5672_p13 = scmp.lt.u32.totalorder %s5666_s23, %s1727_s10 }
 0x82b   : > { %p5671_p11 = por %p5670_p9, %p5669_p8 }
 0x82d   : > { %p5673_p0 = por %p5672_p13, %p5671_p11 }
 0x82f   : > { %p5674_p1 = pnand %p5673_p0, %p5667_p12 }
 0x831   : > { %5677 = shalt.err (!%p5674_p1)  }
 0x832   : > { %s5678_s6 = scalar_lea.vmem %s8527_s1, 16  ;;  %p5683_p3 = scmp.lt.s32.totalorder %s8527_s1, %s8047_s18 }
 0x833   : > { %p5679_p2 = scmp.ne.s32.totalorder %s8527_s1, %s5678_s6  ;;  %p5684_p4 = scmp.lt.s32.totalorder %s8050_s16, %s5678_s6 }
 0x835   : > { %p5685_p5 = por %p5684_p4, %p5683_p3 }
 0x837   : > { %p5686_p6 = pnand %p5685_p5, %p5679_p2 }
 0x839   : > { %5689 = shalt.err (!%p5686_p6)  }
 0x83a   : > { %1739 = dma.hbm_to_vmem [thread:$0]  %s1727_s10, 16, %s8527_s1, %s8034_s20 }
 0x83b   : > { %s8562_s12 = sld [smem:[#allocation5 + %s1757_s14]]  ;;  %s2900_s21 = scalar_lea.vmem %s8014_s2, 28 [#allocation2] }
 0x83c   : > { %s1770_s5 = sshll.u32 %s2900_s21, 4  ;;  %s1774_s9 = sadd.s32 29, %s8011_s0  ;;  %s8567_s5 = int_to_ptr.vmem [resolvable:$true] %s1770_s5 }
 0x83d   : > { %s3267_s29 = sshll.u32 %s8542_s26, 4  ;;  %s8572_s23 = sld [smem:[#allocation5 + %s1774_s9]] }
 0x83e   : > { %s1744_s19 = scalar_lea.hbm %s9425_s4, %s3267_s29 }
 0x83f   : > { %s5690_s8 = scalar_lea.hbm %s1744_s19, 16  ;;  %p5693_p12 = scmp.lt.u32.totalorder %s1744_s19, %s9425_s4 }
 0x840   : > { %p5691_p7 = scmp.ne.s32.totalorder %s1744_s19, %s5690_s8  ;;  %p5694_p8 = scmp.lt.u32.totalorder %s8039_s7, %s5690_s8 }
 0x841   : > { %p5696_p11 = scmp.lt.u32.totalorder %s5690_s8, %s1744_s19 }
 0x842   : > { %p5695_p9 = por %p5694_p8, %p5693_p12 }
 0x844   : > { %p5697_p13 = por %p5696_p11, %p5695_p9 }
 0x846   : > { %p5698_p0 = pnand %p5697_p13, %p5691_p7 }
 0x848   : > { %5701 = shalt.err (!%p5698_p0)  }
 0x849   : > { %s5702_s1 = scalar_lea.vmem %s8545_s25, 16  ;;  %p5707_p2 = scmp.lt.s32.totalorder %s8545_s25, %s8047_s18 }
 0x84a   : > { %p5703_p1 = scmp.ne.s32.totalorder %s8545_s25, %s5702_s1  ;;  %p5708_p3 = scmp.lt.s32.totalorder %s8050_s16, %s5702_s1 }
 0x84c   : > { %p5709_p4 = por %p5708_p3, %p5707_p2 }
 0x84e   : > { %p5710_p5 = pnand %p5709_p4, %p5703_p1 }
 0x850   : > { %5713 = shalt.err (!%p5710_p5)  }
 0x851   : > { %1756 = dma.hbm_to_vmem [thread:$0]  %s1744_s19, 16, %s8545_s25, %s8034_s20 }
 0x852   : > { %s2905_s26 = scalar_lea.vmem %s8014_s2, 29 [#allocation2]  ;;  %s1791_s10 = sadd.s32 30, %s8011_s0 }
 0x853   : > { %s3269_s14 = sshll.u32 %s8562_s12, 4  ;;  %s1787_s21 = sshll.u32 %s2905_s26, 4  ;;  %s8591_s21 = int_to_ptr.vmem [resolvable:$true] %s1787_s21 }
 0x854   : > { %s1761_s11 = scalar_lea.hbm %s9425_s4, %s3269_s14 }
 0x855   : > { %s5714_s15 = scalar_lea.hbm %s1761_s11, 16  ;;  %p5717_p7 = scmp.lt.u32.totalorder %s1761_s11, %s9425_s4 }
 0x856   : > { %p5715_p6 = scmp.ne.s32.totalorder %s1761_s11, %s5714_s15  ;;  %p5718_p12 = scmp.lt.u32.totalorder %s8039_s7, %s5714_s15 }
 0x857   : > { %p5720_p9 = scmp.lt.u32.totalorder %s5714_s15, %s1761_s11 }
 0x858   : > { %p5719_p8 = por %p5718_p12, %p5717_p7 }
 0x85a   : > { %p5721_p11 = por %p5720_p9, %p5719_p8 }
 0x85c   : > { %p5722_p13 = pnand %p5721_p11, %p5715_p6 }
 0x85e   : > { %5725 = shalt.err (!%p5722_p13)  }
 0x85f   : > { %s5726_s25 = scalar_lea.vmem %s8567_s5, 16  ;;  %p5731_p1 = scmp.lt.s32.totalorder %s8567_s5, %s8047_s18 }
 0x860   : > { %p5727_p0 = scmp.ne.s32.totalorder %s8567_s5, %s5726_s25  ;;  %p5732_p2 = scmp.lt.s32.totalorder %s8050_s16, %s5726_s25 }
 0x862   : > { %p5733_p3 = por %p5732_p2, %p5731_p1 }
 0x864   : > { %p5734_p4 = pnand %p5733_p3, %p5727_p0 }
 0x866   : > { %5737 = shalt.err (!%p5734_p4)  }
 0x867   : > { %1773 = dma.hbm_to_vmem [thread:$0]  %s1761_s11, 16, %s8567_s5, %s8034_s20 }
 0x868   : > { %s3271_s12 = sshll.u32 %s8572_s23, 4  ;;  %s8605_s19 = sld [smem:[#allocation5 + %s1791_s10]] }
 0x869   : > { %s1778_s26 = scalar_lea.hbm %s9425_s4, %s3271_s12  ;;  %s2910_s14 = scalar_lea.vmem %s8014_s2, 30 [#allocation2] }
 0x86a   : > { %s5738_s9 = scalar_lea.hbm %s1778_s26, 16  ;;  %p5741_p6 = scmp.lt.u32.totalorder %s1778_s26, %s9425_s4 }
 0x86b   : > { %p5739_p5 = scmp.ne.s32.totalorder %s1778_s26, %s5738_s9  ;;  %p5742_p7 = scmp.lt.u32.totalorder %s8039_s7, %s5738_s9 }
 0x86c   : > { %p5744_p8 = scmp.lt.u32.totalorder %s5738_s9, %s1778_s26 }
 0x86d   : > { %p5743_p12 = por %p5742_p7, %p5741_p6 }
 0x86f   : > { %p5745_p9 = por %p5744_p8, %p5743_p12 }
 0x871   : > { %p5746_p11 = pnand %p5745_p9, %p5739_p5 }
 0x873   : > { %5749 = shalt.err (!%p5746_p11)  }
 0x874   : > { %s5750_s5 = scalar_lea.vmem %s8591_s21, 16  ;;  %p5755_p0 = scmp.lt.s32.totalorder %s8591_s21, %s8047_s18 }
 0x875   : > { %p5751_p13 = scmp.ne.s32.totalorder %s8591_s21, %s5750_s5  ;;  %p5756_p1 = scmp.lt.s32.totalorder %s8050_s16, %s5750_s5 }
 0x877   : > { %p5757_p2 = por %p5756_p1, %p5755_p0 }
 0x879   : > { %p5758_p3 = pnand %p5757_p2, %p5751_p13 }
 0x87b   : > { %5761 = shalt.err (!%p5758_p3)  }
 0x87c   : > { %1790 = dma.hbm_to_vmem [thread:$0]  %s1778_s26, 16, %s8591_s21, %s8034_s20 }
 0x87d   : > { %s1804_s23 = sshll.u32 %s2910_s14, 4  ;;  %s1808_s10 = sadd.s32 31, %s8011_s0  ;;  %s1805_s23 = int_to_ptr.vmem [resolvable:$true] %s1804_s23 }
 0x87e   : > { %s8623_s11 = sld [smem:[#allocation5 + %s1808_s10]]  ;;  %s2915_s8 = scalar_lea.vmem %s8014_s2, 31 [#allocation2] }
 0x87f   : > { %s1825_s17 = sadd.s32 32, %s8011_s0  ;;  %s3273_s25 = sshll.u32 %s8605_s19, 4 }
 0x880   : > { %s1821_s12 = sshll.u32 %s2915_s8, 4  ;;  %s1795_s9 = scalar_lea.hbm %s9425_s4, %s3273_s25  ;;  %s8631_s12 = int_to_ptr.vmem [resolvable:$true] %s1821_s12 }
 0x881   : > { %s5762_s29 = scalar_lea.hbm %s1795_s9, 16  ;;  %p5765_p5 = scmp.lt.u32.totalorder %s1795_s9, %s9425_s4 }
 0x882   : > { %p5763_p4 = scmp.ne.s32.totalorder %s1795_s9, %s5762_s29  ;;  %p5766_p6 = scmp.lt.u32.totalorder %s8039_s7, %s5762_s29 }
 0x883   : > { %p5768_p12 = scmp.lt.u32.totalorder %s5762_s29, %s1795_s9 }
 0x884   : > { %p5767_p7 = por %p5766_p6, %p5765_p5 }
 0x886   : > { %p5769_p8 = por %p5768_p12, %p5767_p7 }
 0x888   : > { %p5770_p9 = pnand %p5769_p8, %p5763_p4 }
 0x88a   : > { %5773 = shalt.err (!%p5770_p9)  }
 0x88b   : > { %s5774_s21 = scalar_lea.vmem %s1805_s23, 16  ;;  %p5779_p13 = scmp.lt.s32.totalorder %s1805_s23, %s8047_s18 }
 0x88c   : > { %p5775_p11 = scmp.ne.s32.totalorder %s1805_s23, %s5774_s21  ;;  %p5780_p0 = scmp.lt.s32.totalorder %s8050_s16, %s5774_s21 }
 0x88e   : > { %p5781_p1 = por %p5780_p0, %p5779_p13 }
 0x890   : > { %p5782_p2 = pnand %p5781_p1, %p5775_p11 }
 0x892   : > { %5785 = shalt.err (!%p5782_p2)  }
 0x893   : > { %1807 = dma.hbm_to_vmem [thread:$0]  %s1795_s9, 16, %s1805_s23, %s8034_s20 }
 0x894   : > { %s8640_s19 = sld [smem:[#allocation5 + %s1825_s17]]  ;;  %s2920_s26 = scalar_lea.vmem %s8014_s2, 32 [#allocation2] }
 0x895   : > { %s3275_s14 = sshll.u32 %s8623_s11, 4  ;;  %s1838_s10 = sshll.u32 %s2920_s26, 4  ;;  %s8647_s10 = int_to_ptr.vmem [resolvable:$true] %s1838_s10 }
 0x896   : > { %s1812_s6 = scalar_lea.hbm %s9425_s4, %s3275_s14 }
 0x897   : > { %s5786_s1 = scalar_lea.hbm %s1812_s6, 16  ;;  %p5789_p4 = scmp.lt.u32.totalorder %s1812_s6, %s9425_s4 }
 0x898   : > { %p5787_p3 = scmp.ne.s32.totalorder %s1812_s6, %s5786_s1  ;;  %p5790_p5 = scmp.lt.u32.totalorder %s8039_s7, %s5786_s1 }
 0x899   : > { %p5792_p7 = scmp.lt.u32.totalorder %s5786_s1, %s1812_s6 }
 0x89a   : > { %p5791_p6 = por %p5790_p5, %p5789_p4 }
 0x89c   : > { %p5793_p12 = por %p5792_p7, %p5791_p6 }
 0x89e   : > { %p5794_p8 = pnand %p5793_p12, %p5787_p3 }
 0x8a0   : > { %5797 = shalt.err (!%p5794_p8)  }
 0x8a1   : > { %s5798_s23 = scalar_lea.vmem %s8631_s12, 16  ;;  %p5803_p11 = scmp.lt.s32.totalorder %s8631_s12, %s8047_s18 }
 0x8a2   : > { %p5799_p9 = scmp.ne.s32.totalorder %s8631_s12, %s5798_s23  ;;  %p5804_p13 = scmp.lt.s32.totalorder %s8050_s16, %s5798_s23 }
 0x8a4   : > { %p5805_p0 = por %p5804_p13, %p5803_p11 }
 0x8a6   : > { %p5806_p1 = pnand %p5805_p0, %p5799_p9 }
 0x8a8   : > { %5809 = shalt.err (!%p5806_p1)  }
 0x8a9   : > { %1824 = dma.hbm_to_vmem [thread:$0]  %s1812_s6, 16, %s8631_s12, %s8034_s20 }
 0x8aa   : > { %s1842_s11 = sadd.s32 33, %s8011_s0  ;;  %s2925_s17 = scalar_lea.vmem %s8014_s2, 33 [#allocation2] }
 0x8ab   : > { %s8662_s9 = sld [smem:[#allocation5 + %s1842_s11]]  ;;  %s1855_s5 = sshll.u32 %s2925_s17, 4  ;;  %s8665_s5 = int_to_ptr.vmem [resolvable:$true] %s1855_s5 }
 0x8ac   : > { %s3277_s21 = sshll.u32 %s8640_s19, 4  ;;  %s1859_s25 = sadd.s32 34, %s8011_s0 }
 0x8ad   : > { %s1829_s8 = scalar_lea.hbm %s9425_s4, %s3277_s21 }
 0x8ae   : > { %s5810_s1 = scalar_lea.hbm %s1829_s8, 16  ;;  %p5813_p3 = scmp.lt.u32.totalorder %s1829_s8, %s9425_s4 }
 0x8af   : > { %p5811_p2 = scmp.ne.s32.totalorder %s1829_s8, %s5810_s1  ;;  %p5814_p4 = scmp.lt.u32.totalorder %s8039_s7, %s5810_s1 }
 0x8b0   : > { %p5816_p6 = scmp.lt.u32.totalorder %s5810_s1, %s1829_s8 }
 0x8b1   : > { %p5815_p5 = por %p5814_p4, %p5813_p3 }
 0x8b3   : > { %p5817_p7 = por %p5816_p6, %p5815_p5 }
 0x8b5   : > { %p5818_p12 = pnand %p5817_p7, %p5811_p2 }
 0x8b7   : > { %5821 = shalt.err (!%p5818_p12)  }
 0x8b8   : > { %s5822_s12 = scalar_lea.vmem %s8647_s10, 16  ;;  %p5827_p9 = scmp.lt.s32.totalorder %s8647_s10, %s8047_s18 }
 0x8b9   : > { %p5823_p8 = scmp.ne.s32.totalorder %s8647_s10, %s5822_s12  ;;  %p5828_p11 = scmp.lt.s32.totalorder %s8050_s16, %s5822_s12 }
 0x8bb   : > { %p5829_p13 = por %p5828_p11, %p5827_p9 }
 0x8bd   : > { %p5830_p0 = pnand %p5829_p13, %p5823_p8 }
 0x8bf   : > { %5833 = shalt.err (!%p5830_p0)  }
 0x8c0   : > { %1841 = dma.hbm_to_vmem [thread:$0]  %s1829_s8, 16, %s8647_s10, %s8034_s20 }
 0x8c1   : > { %s8682_s19 = sld [smem:[#allocation5 + %s1859_s25]]  ;;  %s2930_s6 = scalar_lea.vmem %s8014_s2, 34 [#allocation2] }
 0x8c2   : > { %s1872_s23 = sshll.u32 %s2930_s6, 4  ;;  %s1876_s11 = sadd.s32 35, %s8011_s0  ;;  %s8687_s23 = int_to_ptr.vmem [resolvable:$true] %s1872_s23 }
 0x8c3   : > { %s3279_s17 = sshll.u32 %s8662_s9, 4  ;;  %s8692_s1 = sld [smem:[#allocation5 + %s1876_s11]] }
 0x8c4   : > { %s1846_s14 = scalar_lea.hbm %s9425_s4, %s3279_s17 }
 0x8c5   : > { %s5834_s29 = scalar_lea.hbm %s1846_s14, 16  ;;  %p5837_p2 = scmp.lt.u32.totalorder %s1846_s14, %s9425_s4 }
 0x8c6   : > { %p5835_p1 = scmp.ne.s32.totalorder %s1846_s14, %s5834_s29  ;;  %p5838_p3 = scmp.lt.u32.totalorder %s8039_s7, %s5834_s29 }
 0x8c7   : > { %p5840_p5 = scmp.lt.u32.totalorder %s5834_s29, %s1846_s14 }
 0x8c8   : > { %p5839_p4 = por %p5838_p3, %p5837_p2 }
 0x8ca   : > { %p5841_p6 = por %p5840_p5, %p5839_p4 }
 0x8cc   : > { %p5842_p7 = pnand %p5841_p6, %p5835_p1 }
 0x8ce   : > { %5845 = shalt.err (!%p5842_p7)  }
 0x8cf   : > { %s5846_s10 = scalar_lea.vmem %s8665_s5, 16  ;;  %p5851_p8 = scmp.lt.s32.totalorder %s8665_s5, %s8047_s18 }
 0x8d0   : > { %p5847_p12 = scmp.ne.s32.totalorder %s8665_s5, %s5846_s10  ;;  %p5852_p9 = scmp.lt.s32.totalorder %s8050_s16, %s5846_s10 }
 0x8d2   : > { %p5853_p11 = por %p5852_p9, %p5851_p8 }
 0x8d4   : > { %p5854_p13 = pnand %p5853_p11, %p5847_p12 }
 0x8d6   : > { %5857 = shalt.err (!%p5854_p13)  }
 0x8d7   : > { %1858 = dma.hbm_to_vmem [thread:$0]  %s1846_s14, 16, %s8665_s5, %s8034_s20 }
 0x8d8   : > { %s2935_s9 = scalar_lea.vmem %s8014_s2, 35 [#allocation2]  ;;  %s1893_s8 = sadd.s32 36, %s8011_s0 }
 0x8d9   : > { %s3281_s25 = sshll.u32 %s8682_s19, 4  ;;  %s1889_s6 = sshll.u32 %s2935_s9, 4  ;;  %s8711_s6 = int_to_ptr.vmem [resolvable:$true] %s1889_s6 }
 0x8da   : > { %s1863_s21 = scalar_lea.hbm %s9425_s4, %s3281_s25 }
 0x8db   : > { %s5858_s26 = scalar_lea.hbm %s1863_s21, 16  ;;  %p5861_p1 = scmp.lt.u32.totalorder %s1863_s21, %s9425_s4 }
 0x8dc   : > { %p5859_p0 = scmp.ne.s32.totalorder %s1863_s21, %s5858_s26  ;;  %p5862_p2 = scmp.lt.u32.totalorder %s8039_s7, %s5858_s26 }
 0x8dd   : > { %p5864_p4 = scmp.lt.u32.totalorder %s5858_s26, %s1863_s21 }
 0x8de   : > { %p5863_p3 = por %p5862_p2, %p5861_p1 }
 0x8e0   : > { %p5865_p5 = por %p5864_p4, %p5863_p3 }
 0x8e2   : > { %p5866_p6 = pnand %p5865_p5, %p5859_p0 }
 0x8e4   : > { %5869 = shalt.err (!%p5866_p6)  }
 0x8e5   : > { %s5870_s5 = scalar_lea.vmem %s8687_s23, 16  ;;  %p5875_p12 = scmp.lt.s32.totalorder %s8687_s23, %s8047_s18 }
 0x8e6   : > { %p5871_p7 = scmp.ne.s32.totalorder %s8687_s23, %s5870_s5  ;;  %p5876_p8 = scmp.lt.s32.totalorder %s8050_s16, %s5870_s5 }
 0x8e8   : > { %p5877_p9 = por %p5876_p8, %p5875_p12 }
 0x8ea   : > { %p5878_p11 = pnand %p5877_p9, %p5871_p7 }
 0x8ec   : > { %5881 = shalt.err (!%p5878_p11)  }
 0x8ed   : > { %1875 = dma.hbm_to_vmem [thread:$0]  %s1863_s21, 16, %s8687_s23, %s8034_s20 }
 0x8ee   : > { %s3283_s19 = sshll.u32 %s8692_s1, 4  ;;  %s8725_s14 = sld [smem:[#allocation5 + %s1893_s8]] }
 0x8ef   : > { %s1880_s9 = scalar_lea.hbm %s9425_s4, %s3283_s19  ;;  %s2940_s25 = scalar_lea.vmem %s8014_s2, 36 [#allocation2] }
 0x8f0   : > { %s5882_s11 = scalar_lea.hbm %s1880_s9, 16  ;;  %p5885_p0 = scmp.lt.u32.totalorder %s1880_s9, %s9425_s4 }
 0x8f1   : > { %p5883_p13 = scmp.ne.s32.totalorder %s1880_s9, %s5882_s11  ;;  %p5886_p1 = scmp.lt.u32.totalorder %s8039_s7, %s5882_s11 }
 0x8f2   : > { %p5888_p3 = scmp.lt.u32.totalorder %s5882_s11, %s1880_s9 }
 0x8f3   : > { %p5887_p2 = por %p5886_p1, %p5885_p0 }
 0x8f5   : > { %p5889_p4 = por %p5888_p3, %p5887_p2 }
 0x8f7   : > { %p5890_p5 = pnand %p5889_p4, %p5883_p13 }
 0x8f9   : > { %5893 = shalt.err (!%p5890_p5)  }
 0x8fa   : > { %s5894_s23 = scalar_lea.vmem %s8711_s6, 16  ;;  %p5899_p7 = scmp.lt.s32.totalorder %s8711_s6, %s8047_s18 }
 0x8fb   : > { %p5895_p6 = scmp.ne.s32.totalorder %s8711_s6, %s5894_s23  ;;  %p5900_p12 = scmp.lt.s32.totalorder %s8050_s16, %s5894_s23 }
 0x8fd   : > { %p5901_p8 = por %p5900_p12, %p5899_p7 }
 0x8ff   : > { %p5902_p9 = pnand %p5901_p8, %p5895_p6 }
 0x901   : > { %5905 = shalt.err (!%p5902_p9)  }
 0x902   : > { %1892 = dma.hbm_to_vmem [thread:$0]  %s1880_s9, 16, %s8711_s6, %s8034_s20 }
 0x903   : > { %s1906_s1 = sshll.u32 %s2940_s25, 4  ;;  %s1910_s8 = sadd.s32 37, %s8011_s0  ;;  %s1907_s1 = int_to_ptr.vmem [resolvable:$true] %s1906_s1 }
 0x904   : > { %s8743_s21 = sld [smem:[#allocation5 + %s1910_s8]]  ;;  %s2945_s29 = scalar_lea.vmem %s8014_s2, 37 [#allocation2] }
 0x905   : > { %s1927_s15 = sadd.s32 38, %s8011_s0  ;;  %s3285_s5 = sshll.u32 %s8725_s14, 4 }
 0x906   : > { %s1923_s19 = sshll.u32 %s2945_s29, 4  ;;  %s1897_s11 = scalar_lea.hbm %s9425_s4, %s3285_s5  ;;  %s8751_s19 = int_to_ptr.vmem [resolvable:$true] %s1923_s19 }
 0x907   : > { %s5906_s17 = scalar_lea.hbm %s1897_s11, 16  ;;  %p5909_p13 = scmp.lt.u32.totalorder %s1897_s11, %s9425_s4 }
 0x908   : > { %p5907_p11 = scmp.ne.s32.totalorder %s1897_s11, %s5906_s17  ;;  %p5910_p0 = scmp.lt.u32.totalorder %s8039_s7, %s5906_s17 }
 0x909   : > { %p5912_p2 = scmp.lt.u32.totalorder %s5906_s17, %s1897_s11 }
 0x90a   : > { %p5911_p1 = por %p5910_p0, %p5909_p13 }
 0x90c   : > { %p5913_p3 = por %p5912_p2, %p5911_p1 }
 0x90e   : > { %p5914_p4 = pnand %p5913_p3, %p5907_p11 }
 0x910   : > { %5917 = shalt.err (!%p5914_p4)  }
 0x911   : > { %s5918_s6 = scalar_lea.vmem %s1907_s1, 16  ;;  %p5923_p6 = scmp.lt.s32.totalorder %s1907_s1, %s8047_s18 }
 0x912   : > { %p5919_p5 = scmp.ne.s32.totalorder %s1907_s1, %s5918_s6  ;;  %p5924_p7 = scmp.lt.s32.totalorder %s8050_s16, %s5918_s6 }
 0x914   : > { %p5925_p12 = por %p5924_p7, %p5923_p6 }
 0x916   : > { %p5926_p8 = pnand %p5925_p12, %p5919_p5 }
 0x918   : > { %5929 = shalt.err (!%p5926_p8)  }
 0x919   : > { %1909 = dma.hbm_to_vmem [thread:$0]  %s1897_s11, 16, %s1907_s1, %s8034_s20 }
 0x91a   : > { %s8760_s14 = sld [smem:[#allocation5 + %s1927_s15]]  ;;  %s2950_s9 = scalar_lea.vmem %s8014_s2, 38 [#allocation2] }
 0x91b   : > { %s3287_s25 = sshll.u32 %s8743_s21, 4  ;;  %s1940_s8 = sshll.u32 %s2950_s9, 4  ;;  %s8767_s8 = int_to_ptr.vmem [resolvable:$true] %s1940_s8 }
 0x91c   : > { %s1914_s12 = scalar_lea.hbm %s9425_s4, %s3287_s25 }
 0x91d   : > { %s5930_s10 = scalar_lea.hbm %s1914_s12, 16  ;;  %p5933_p11 = scmp.lt.u32.totalorder %s1914_s12, %s9425_s4 }
 0x91e   : > { %p5931_p9 = scmp.ne.s32.totalorder %s1914_s12, %s5930_s10  ;;  %p5934_p13 = scmp.lt.u32.totalorder %s8039_s7, %s5930_s10 }
 0x91f   : > { %p5936_p1 = scmp.lt.u32.totalorder %s5930_s10, %s1914_s12 }
 0x920   : > { %p5935_p0 = por %p5934_p13, %p5933_p11 }
 0x922   : > { %p5937_p2 = por %p5936_p1, %p5935_p0 }
 0x924   : > { %p5938_p3 = pnand %p5937_p2, %p5931_p9 }
 0x926   : > { %5941 = shalt.err (!%p5938_p3)  }
 0x927   : > { %s5942_s1 = scalar_lea.vmem %s8751_s19, 16  ;;  %p5947_p5 = scmp.lt.s32.totalorder %s8751_s19, %s8047_s18 }
 0x928   : > { %p5943_p4 = scmp.ne.s32.totalorder %s8751_s19, %s5942_s1  ;;  %p5948_p6 = scmp.lt.s32.totalorder %s8050_s16, %s5942_s1 }
 0x92a   : > { %p5949_p7 = por %p5948_p6, %p5947_p5 }
 0x92c   : > { %p5950_p12 = pnand %p5949_p7, %p5943_p4 }
 0x92e   : > { %5953 = shalt.err (!%p5950_p12)  }
 0x92f   : > { %1926 = dma.hbm_to_vmem [thread:$0]  %s1914_s12, 16, %s8751_s19, %s8034_s20 }
 0x930   : > { %s1944_s21 = sadd.s32 39, %s8011_s0  ;;  %s2955_s15 = scalar_lea.vmem %s8014_s2, 39 [#allocation2] }
 0x931   : > { %s8782_s11 = sld [smem:[#allocation5 + %s1944_s21]]  ;;  %s1957_s23 = sshll.u32 %s2955_s15, 4  ;;  %s8785_s23 = int_to_ptr.vmem [resolvable:$true] %s1957_s23 }
 0x932   : > { %s3289_s6 = sshll.u32 %s8760_s14, 4  ;;  %s1961_s5 = sadd.s32 40, %s8011_s0 }
 0x933   : > { %s1931_s29 = scalar_lea.hbm %s9425_s4, %s3289_s6 }
 0x934   : > { %s5954_s10 = scalar_lea.hbm %s1931_s29, 16  ;;  %p5957_p9 = scmp.lt.u32.totalorder %s1931_s29, %s9425_s4 }
 0x935   : > { %p5955_p8 = scmp.ne.s32.totalorder %s1931_s29, %s5954_s10  ;;  %p5958_p11 = scmp.lt.u32.totalorder %s8039_s7, %s5954_s10 }
 0x936   : > { %p5960_p0 = scmp.lt.u32.totalorder %s5954_s10, %s1931_s29 }
 0x937   : > { %p5959_p13 = por %p5958_p11, %p5957_p9 }
 0x939   : > { %p5961_p1 = por %p5960_p0, %p5959_p13 }
 0x93b   : > { %p5962_p2 = pnand %p5961_p1, %p5955_p8 }
 0x93d   : > { %5965 = shalt.err (!%p5962_p2)  }
 0x93e   : > { %s5966_s19 = scalar_lea.vmem %s8767_s8, 16  ;;  %p5971_p4 = scmp.lt.s32.totalorder %s8767_s8, %s8047_s18 }
 0x93f   : > { %p5967_p3 = scmp.ne.s32.totalorder %s8767_s8, %s5966_s19  ;;  %p5972_p5 = scmp.lt.s32.totalorder %s8050_s16, %s5966_s19 }
 0x941   : > { %p5973_p6 = por %p5972_p5, %p5971_p4 }
 0x943   : > { %p5974_p7 = pnand %p5973_p6, %p5967_p3 }
 0x945   : > { %5977 = shalt.err (!%p5974_p7)  }
 0x946   : > { %1943 = dma.hbm_to_vmem [thread:$0]  %s1931_s29, 16, %s8767_s8, %s8034_s20 }
 0x947   : > { %s8802_s14 = sld [smem:[#allocation5 + %s1961_s5]]  ;;  %s2960_s12 = scalar_lea.vmem %s8014_s2, 40 [#allocation2] }
 0x948   : > { %s1974_s1 = sshll.u32 %s2960_s12, 4  ;;  %s1978_s21 = sadd.s32 41, %s8011_s0  ;;  %s8807_s1 = int_to_ptr.vmem [resolvable:$true] %s1974_s1 }
 0x949   : > { %s3291_s15 = sshll.u32 %s8782_s11, 4  ;;  %s8812_s10 = sld [smem:[#allocation5 + %s1978_s21]] }
 0x94a   : > { %s1948_s25 = scalar_lea.hbm %s9425_s4, %s3291_s15 }
 0x94b   : > { %s5978_s17 = scalar_lea.hbm %s1948_s25, 16  ;;  %p5981_p8 = scmp.lt.u32.totalorder %s1948_s25, %s9425_s4 }
 0x94c   : > { %p5979_p12 = scmp.ne.s32.totalorder %s1948_s25, %s5978_s17  ;;  %p5982_p9 = scmp.lt.u32.totalorder %s8039_s7, %s5978_s17 }
 0x94d   : > { %p5984_p13 = scmp.lt.u32.totalorder %s5978_s17, %s1948_s25 }
 0x94e   : > { %p5983_p11 = por %p5982_p9, %p5981_p8 }
 0x950   : > { %p5985_p0 = por %p5984_p13, %p5983_p11 }
 0x952   : > { %p5986_p1 = pnand %p5985_p0, %p5979_p12 }
 0x954   : > { %5989 = shalt.err (!%p5986_p1)  }
 0x955   : > { %s5990_s8 = scalar_lea.vmem %s8785_s23, 16  ;;  %p5995_p3 = scmp.lt.s32.totalorder %s8785_s23, %s8047_s18 }
 0x956   : > { %p5991_p2 = scmp.ne.s32.totalorder %s8785_s23, %s5990_s8  ;;  %p5996_p4 = scmp.lt.s32.totalorder %s8050_s16, %s5990_s8 }
 0x958   : > { %p5997_p5 = por %p5996_p4, %p5995_p3 }
 0x95a   : > { %p5998_p6 = pnand %p5997_p5, %p5991_p2 }
 0x95c   : > { %6001 = shalt.err (!%p5998_p6)  }
 0x95d   : > { %1960 = dma.hbm_to_vmem [thread:$0]  %s1948_s25, 16, %s8785_s23, %s8034_s20 }
 0x95e   : > { %s2965_s11 = scalar_lea.vmem %s8014_s2, 41 [#allocation2]  ;;  %s1995_s29 = sadd.s32 42, %s8011_s0 }
 0x95f   : > { %s3293_s5 = sshll.u32 %s8802_s14, 4  ;;  %s1991_s12 = sshll.u32 %s2965_s11, 4  ;;  %s8831_s12 = int_to_ptr.vmem [resolvable:$true] %s1991_s12 }
 0x960   : > { %s1965_s6 = scalar_lea.hbm %s9425_s4, %s3293_s5 }
 0x961   : > { %s6002_s9 = scalar_lea.hbm %s1965_s6, 16  ;;  %p6005_p12 = scmp.lt.u32.totalorder %s1965_s6, %s9425_s4 }
 0x962   : > { %p6003_p7 = scmp.ne.s32.totalorder %s1965_s6, %s6002_s9  ;;  %p6006_p8 = scmp.lt.u32.totalorder %s8039_s7, %s6002_s9 }
 0x963   : > { %p6008_p11 = scmp.lt.u32.totalorder %s6002_s9, %s1965_s6 }
 0x964   : > { %p6007_p9 = por %p6006_p8, %p6005_p12 }
 0x966   : > { %p6009_p13 = por %p6008_p11, %p6007_p9 }
 0x968   : > { %p6010_p0 = pnand %p6009_p13, %p6003_p7 }
 0x96a   : > { %6013 = shalt.err (!%p6010_p0)  }
 0x96b   : > { %s6014_s23 = scalar_lea.vmem %s8807_s1, 16  ;;  %p6019_p2 = scmp.lt.s32.totalorder %s8807_s1, %s8047_s18 }
 0x96c   : > { %p6015_p1 = scmp.ne.s32.totalorder %s8807_s1, %s6014_s23  ;;  %p6020_p3 = scmp.lt.s32.totalorder %s8050_s16, %s6014_s23 }
 0x96e   : > { %p6021_p4 = por %p6020_p3, %p6019_p2 }
 0x970   : > { %p6022_p5 = pnand %p6021_p4, %p6015_p1 }
 0x972   : > { %6025 = shalt.err (!%p6022_p5)  }
 0x973   : > { %1977 = dma.hbm_to_vmem [thread:$0]  %s1965_s6, 16, %s8807_s1, %s8034_s20 }
 0x974   : > { %s3295_s14 = sshll.u32 %s8812_s10, 4  ;;  %s8845_s25 = sld [smem:[#allocation5 + %s1995_s29]] }
 0x975   : > { %s1982_s11 = scalar_lea.hbm %s9425_s4, %s3295_s14  ;;  %s2970_s5 = scalar_lea.vmem %s8014_s2, 42 [#allocation2] }
 0x976   : > { %s6026_s21 = scalar_lea.hbm %s1982_s11, 16  ;;  %p6029_p7 = scmp.lt.u32.totalorder %s1982_s11, %s9425_s4 }
 0x977   : > { %p6027_p6 = scmp.ne.s32.totalorder %s1982_s11, %s6026_s21  ;;  %p6030_p12 = scmp.lt.u32.totalorder %s8039_s7, %s6026_s21 }
 0x978   : > { %p6032_p9 = scmp.lt.u32.totalorder %s6026_s21, %s1982_s11 }
 0x979   : > { %p6031_p8 = por %p6030_p12, %p6029_p7 }
 0x97b   : > { %p6033_p11 = por %p6032_p9, %p6031_p8 }
 0x97d   : > { %p6034_p13 = pnand %p6033_p11, %p6027_p6 }
 0x97f   : > { %6037 = shalt.err (!%p6034_p13)  }
 0x980   : > { %s6038_s1 = scalar_lea.vmem %s8831_s12, 16  ;;  %p6043_p1 = scmp.lt.s32.totalorder %s8831_s12, %s8047_s18 }
 0x981   : > { %p6039_p0 = scmp.ne.s32.totalorder %s8831_s12, %s6038_s1  ;;  %p6044_p2 = scmp.lt.s32.totalorder %s8050_s16, %s6038_s1 }
 0x983   : > { %p6045_p3 = por %p6044_p2, %p6043_p1 }
 0x985   : > { %p6046_p4 = pnand %p6045_p3, %p6039_p0 }
 0x987   : > { %6049 = shalt.err (!%p6046_p4)  }
 0x988   : > { %1994 = dma.hbm_to_vmem [thread:$0]  %s1982_s11, 16, %s8831_s12, %s8034_s20 }
 0x989   : > { %s2008_s10 = sshll.u32 %s2970_s5, 4  ;;  %s2012_s29 = sadd.s32 43, %s8011_s0  ;;  %s2009_s10 = int_to_ptr.vmem [resolvable:$true] %s2008_s10 }
 0x98a   : > { %s8863_s6 = sld [smem:[#allocation5 + %s2012_s29]]  ;;  %s2975_s17 = scalar_lea.vmem %s8014_s2, 43 [#allocation2] }
 0x98b   : > { %s2029_s26 = sadd.s32 44, %s8011_s0  ;;  %s3297_s23 = sshll.u32 %s8845_s25, 4 }
 0x98c   : > { %s2025_s14 = sshll.u32 %s2975_s17, 4  ;;  %s1999_s21 = scalar_lea.hbm %s9425_s4, %s3297_s23  ;;  %s8871_s14 = int_to_ptr.vmem [resolvable:$true] %s2025_s14 }
 0x98d   : > { %s6050_s15 = scalar_lea.hbm %s1999_s21, 16  ;;  %p6053_p6 = scmp.lt.u32.totalorder %s1999_s21, %s9425_s4 }
 0x98e   : > { %p6051_p5 = scmp.ne.s32.totalorder %s1999_s21, %s6050_s15  ;;  %p6054_p7 = scmp.lt.u32.totalorder %s8039_s7, %s6050_s15 }
 0x98f   : > { %p6056_p8 = scmp.lt.u32.totalorder %s6050_s15, %s1999_s21 }
 0x990   : > { %p6055_p12 = por %p6054_p7, %p6053_p6 }
 0x992   : > { %p6057_p9 = por %p6056_p8, %p6055_p12 }
 0x994   : > { %p6058_p11 = pnand %p6057_p9, %p6051_p5 }
 0x996   : > { %6061 = shalt.err (!%p6058_p11)  }
 0x997   : > { %s6062_s12 = scalar_lea.vmem %s2009_s10, 16  ;;  %p6067_p0 = scmp.lt.s32.totalorder %s2009_s10, %s8047_s18 }
 0x998   : > { %p6063_p13 = scmp.ne.s32.totalorder %s2009_s10, %s6062_s12  ;;  %p6068_p1 = scmp.lt.s32.totalorder %s8050_s16, %s6062_s12 }
 0x99a   : > { %p6069_p2 = por %p6068_p1, %p6067_p0 }
 0x99c   : > { %p6070_p3 = pnand %p6069_p2, %p6063_p13 }
 0x99e   : > { %6073 = shalt.err (!%p6070_p3)  }
 0x99f   : > { %2011 = dma.hbm_to_vmem [thread:$0]  %s1999_s21, 16, %s2009_s10, %s8034_s20 }
 0x9a0   : > { %s8880_s25 = sld [smem:[#allocation5 + %s2029_s26]]  ;;  %s2980_s11 = scalar_lea.vmem %s8014_s2, 44 [#allocation2] }
 0x9a1   : > { %s3299_s5 = sshll.u32 %s8863_s6, 4  ;;  %s2042_s29 = sshll.u32 %s2980_s11, 4  ;;  %s8887_s29 = int_to_ptr.vmem [resolvable:$true] %s2042_s29 }
 0x9a2   : > { %s2016_s19 = scalar_lea.hbm %s9425_s4, %s3299_s5 }
 0x9a3   : > { %s6074_s8 = scalar_lea.hbm %s2016_s19, 16  ;;  %p6077_p5 = scmp.lt.u32.totalorder %s2016_s19, %s9425_s4 }
 0x9a4   : > { %p6075_p4 = scmp.ne.s32.totalorder %s2016_s19, %s6074_s8  ;;  %p6078_p6 = scmp.lt.u32.totalorder %s8039_s7, %s6074_s8 }
 0x9a5   : > { %p6080_p12 = scmp.lt.u32.totalorder %s6074_s8, %s2016_s19 }
 0x9a6   : > { %p6079_p7 = por %p6078_p6, %p6077_p5 }
 0x9a8   : > { %p6081_p8 = por %p6080_p12, %p6079_p7 }
 0x9aa   : > { %p6082_p9 = pnand %p6081_p8, %p6075_p4 }
 0x9ac   : > { %6085 = shalt.err (!%p6082_p9)  }
 0x9ad   : > { %s6086_s10 = scalar_lea.vmem %s8871_s14, 16  ;;  %p6091_p13 = scmp.lt.s32.totalorder %s8871_s14, %s8047_s18 }
 0x9ae   : > { %p6087_p11 = scmp.ne.s32.totalorder %s8871_s14, %s6086_s10  ;;  %p6092_p0 = scmp.lt.s32.totalorder %s8050_s16, %s6086_s10 }
 0x9b0   : > { %p6093_p1 = por %p6092_p0, %p6091_p13 }
 0x9b2   : > { %p6094_p2 = pnand %p6093_p1, %p6087_p11 }
 0x9b4   : > { %6097 = shalt.err (!%p6094_p2)  }
 0x9b5   : > { %2028 = dma.hbm_to_vmem [thread:$0]  %s2016_s19, 16, %s8871_s14, %s8034_s20 }
 0x9b6   : > { %s2046_s6 = sadd.s32 45, %s8011_s0  ;;  %s2985_s26 = scalar_lea.vmem %s8014_s2, 45 [#allocation2] }
 0x9b7   : > { %s8902_s21 = sld [smem:[#allocation5 + %s2046_s6]]  ;;  %s2059_s1 = sshll.u32 %s2985_s26, 4  ;;  %s8905_s1 = int_to_ptr.vmem [resolvable:$true] %s2059_s1 }
 0x9b8   : > { %s3301_s12 = sshll.u32 %s8880_s25, 4  ;;  %s2063_s23 = sadd.s32 46, %s8011_s0 }
 0x9b9   : > { %s2033_s17 = scalar_lea.hbm %s9425_s4, %s3301_s12 }
 0x9ba   : > { %s6098_s8 = scalar_lea.hbm %s2033_s17, 16  ;;  %p6101_p4 = scmp.lt.u32.totalorder %s2033_s17, %s9425_s4 }
 0x9bb   : > { %p6099_p3 = scmp.ne.s32.totalorder %s2033_s17, %s6098_s8  ;;  %p6102_p5 = scmp.lt.u32.totalorder %s8039_s7, %s6098_s8 }
 0x9bc   : > { %p6104_p7 = scmp.lt.u32.totalorder %s6098_s8, %s2033_s17 }
 0x9bd   : > { %p6103_p6 = por %p6102_p5, %p6101_p4 }
 0x9bf   : > { %p6105_p12 = por %p6104_p7, %p6103_p6 }
 0x9c1   : > { %p6106_p8 = pnand %p6105_p12, %p6099_p3 }
 0x9c3   : > { %6109 = shalt.err (!%p6106_p8)  }
 0x9c4   : > { %s6110_s14 = scalar_lea.vmem %s8887_s29, 16  ;;  %p6115_p11 = scmp.lt.s32.totalorder %s8887_s29, %s8047_s18 }
 0x9c5   : > { %p6111_p9 = scmp.ne.s32.totalorder %s8887_s29, %s6110_s14  ;;  %p6116_p13 = scmp.lt.s32.totalorder %s8050_s16, %s6110_s14 }
 0x9c7   : > { %p6117_p0 = por %p6116_p13, %p6115_p11 }
 0x9c9   : > { %p6118_p1 = pnand %p6117_p0, %p6111_p9 }
 0x9cb   : > { %6121 = shalt.err (!%p6118_p1)  }
 0x9cc   : > { %2045 = dma.hbm_to_vmem [thread:$0]  %s2033_s17, 16, %s8887_s29, %s8034_s20 }
 0x9cd   : > { %s8922_s25 = sld [smem:[#allocation5 + %s2063_s23]]  ;;  %s2990_s19 = scalar_lea.vmem %s8014_s2, 46 [#allocation2] }
 0x9ce   : > { %s2076_s10 = sshll.u32 %s2990_s19, 4  ;;  %s2080_s6 = sadd.s32 47, %s8011_s0  ;;  %s8927_s10 = int_to_ptr.vmem [resolvable:$true] %s2076_s10 }
 0x9cf   : > { %s3303_s26 = sshll.u32 %s8902_s21, 4  ;;  %s8932_s8 = sld [smem:[#allocation5 + %s2080_s6]] }
 0x9d0   : > { %s2050_s5 = scalar_lea.hbm %s9425_s4, %s3303_s26 }
 0x9d1   : > { %s6122_s15 = scalar_lea.hbm %s2050_s5, 16  ;;  %p6125_p3 = scmp.lt.u32.totalorder %s2050_s5, %s9425_s4 }
 0x9d2   : > { %p6123_p2 = scmp.ne.s32.totalorder %s2050_s5, %s6122_s15  ;;  %p6126_p4 = scmp.lt.u32.totalorder %s8039_s7, %s6122_s15 }
 0x9d3   : > { %p6128_p6 = scmp.lt.u32.totalorder %s6122_s15, %s2050_s5 }
 0x9d4   : > { %p6127_p5 = por %p6126_p4, %p6125_p3 }
 0x9d6   : > { %p6129_p7 = por %p6128_p6, %p6127_p5 }
 0x9d8   : > { %p6130_p12 = pnand %p6129_p7, %p6123_p2 }
 0x9da   : > { %6133 = shalt.err (!%p6130_p12)  }
 0x9db   : > { %s6134_s29 = scalar_lea.vmem %s8905_s1, 16  ;;  %p6139_p9 = scmp.lt.s32.totalorder %s8905_s1, %s8047_s18 }
 0x9dc   : > { %p6135_p8 = scmp.ne.s32.totalorder %s8905_s1, %s6134_s29  ;;  %p6140_p11 = scmp.lt.s32.totalorder %s8050_s16, %s6134_s29 }
 0x9de   : > { %p6141_p13 = por %p6140_p11, %p6139_p9 }
 0x9e0   : > { %p6142_p0 = pnand %p6141_p13, %p6135_p8 }
 0x9e2   : > { %6145 = shalt.err (!%p6142_p0)  }
 0x9e3   : > { %2062 = dma.hbm_to_vmem [thread:$0]  %s2050_s5, 16, %s8905_s1, %s8034_s20 }
 0x9e4   : > { %s2995_s21 = scalar_lea.vmem %s8014_s2, 47 [#allocation2]  ;;  %s2097_s17 = sadd.s32 48, %s8011_s0 }
 0x9e5   : > { %s3305_s23 = sshll.u32 %s8922_s25, 4  ;;  %s2093_s19 = sshll.u32 %s2995_s21, 4  ;;  %s8951_s19 = int_to_ptr.vmem [resolvable:$true] %s2093_s19 }
 0x9e6   : > { %s2067_s12 = scalar_lea.hbm %s9425_s4, %s3305_s23 }
 0x9e7   : > { %s6146_s11 = scalar_lea.hbm %s2067_s12, 16  ;;  %p6149_p2 = scmp.lt.u32.totalorder %s2067_s12, %s9425_s4 }
 0x9e8   : > { %p6147_p1 = scmp.ne.s32.totalorder %s2067_s12, %s6146_s11  ;;  %p6150_p3 = scmp.lt.u32.totalorder %s8039_s7, %s6146_s11 }
 0x9e9   : > { %p6152_p5 = scmp.lt.u32.totalorder %s6146_s11, %s2067_s12 }
 0x9ea   : > { %p6151_p4 = por %p6150_p3, %p6149_p2 }
 0x9ec   : > { %p6153_p6 = por %p6152_p5, %p6151_p4 }
 0x9ee   : > { %p6154_p7 = pnand %p6153_p6, %p6147_p1 }
 0x9f0   : > { %6157 = shalt.err (!%p6154_p7)  }
 0x9f1   : > { %s6158_s1 = scalar_lea.vmem %s8927_s10, 16  ;;  %p6163_p8 = scmp.lt.s32.totalorder %s8927_s10, %s8047_s18 }
 0x9f2   : > { %p6159_p12 = scmp.ne.s32.totalorder %s8927_s10, %s6158_s1  ;;  %p6164_p9 = scmp.lt.s32.totalorder %s8050_s16, %s6158_s1 }
 0x9f4   : > { %p6165_p11 = por %p6164_p9, %p6163_p8 }
 0x9f6   : > { %p6166_p13 = pnand %p6165_p11, %p6159_p12 }
 0x9f8   : > { %6169 = shalt.err (!%p6166_p13)  }
 0x9f9   : > { %2079 = dma.hbm_to_vmem [thread:$0]  %s2067_s12, 16, %s8927_s10, %s8034_s20 }
 0x9fa   : > { %s3307_s25 = sshll.u32 %s8932_s8, 4  ;;  %s8965_s5 = sld [smem:[#allocation5 + %s2097_s17]] }
 0x9fb   : > { %s2084_s21 = scalar_lea.hbm %s9425_s4, %s3307_s25  ;;  %s3000_s23 = scalar_lea.vmem %s8014_s2, 48 [#allocation2] }
 0x9fc   : > { %s6170_s6 = scalar_lea.hbm %s2084_s21, 16  ;;  %p6173_p1 = scmp.lt.u32.totalorder %s2084_s21, %s9425_s4 }
 0x9fd   : > { %p6171_p0 = scmp.ne.s32.totalorder %s2084_s21, %s6170_s6  ;;  %p6174_p2 = scmp.lt.u32.totalorder %s8039_s7, %s6170_s6 }
 0x9fe   : > { %p6176_p4 = scmp.lt.u32.totalorder %s6170_s6, %s2084_s21 }
 0x9ff   : > { %p6175_p3 = por %p6174_p2, %p6173_p1 }
 0xa01   : > { %p6177_p5 = por %p6176_p4, %p6175_p3 }
 0xa03   : > { %p6178_p6 = pnand %p6177_p5, %p6171_p0 }
 0xa05   : > { %6181 = shalt.err (!%p6178_p6)  }
 0xa06   : > { %s6182_s10 = scalar_lea.vmem %s8951_s19, 16  ;;  %p6187_p12 = scmp.lt.s32.totalorder %s8951_s19, %s8047_s18 }
 0xa07   : > { %p6183_p7 = scmp.ne.s32.totalorder %s8951_s19, %s6182_s10  ;;  %p6188_p8 = scmp.lt.s32.totalorder %s8050_s16, %s6182_s10 }
 0xa09   : > { %p6189_p9 = por %p6188_p8, %p6187_p12 }
 0xa0b   : > { %p6190_p11 = pnand %p6189_p9, %p6183_p7 }
 0xa0d   : > { %6193 = shalt.err (!%p6190_p11)  }
 0xa0e   : > { %2096 = dma.hbm_to_vmem [thread:$0]  %s2084_s21, 16, %s8951_s19, %s8034_s20 }
 0xa0f   : > { %s2110_s8 = sshll.u32 %s3000_s23, 4  ;;  %s2114_s17 = sadd.s32 49, %s8011_s0  ;;  %s2111_s8 = int_to_ptr.vmem [resolvable:$true] %s2110_s8 }
 0xa10   : > { %s8983_s12 = sld [smem:[#allocation5 + %s2114_s17]]  ;;  %s3005_s15 = scalar_lea.vmem %s8014_s2, 49 [#allocation2] }
 0xa11   : > { %s2131_s9 = sadd.s32 50, %s8011_s0  ;;  %s3309_s1 = sshll.u32 %s8965_s5, 4 }
 0xa12   : > { %s2127_s25 = sshll.u32 %s3005_s15, 4  ;;  %s2101_s6 = scalar_lea.hbm %s9425_s4, %s3309_s1  ;;  %s8991_s25 = int_to_ptr.vmem [resolvable:$true] %s2127_s25 }
 0xa13   : > { %s6194_s26 = scalar_lea.hbm %s2101_s6, 16  ;;  %p6197_p0 = scmp.lt.u32.totalorder %s2101_s6, %s9425_s4 }
 0xa14   : > { %p6195_p13 = scmp.ne.s32.totalorder %s2101_s6, %s6194_s26  ;;  %p6198_p1 = scmp.lt.u32.totalorder %s8039_s7, %s6194_s26 }
 0xa15   : > { %p6200_p3 = scmp.lt.u32.totalorder %s6194_s26, %s2101_s6 }
 0xa16   : > { %p6199_p2 = por %p6198_p1, %p6197_p0 }
 0xa18   : > { %p6201_p4 = por %p6200_p3, %p6199_p2 }
 0xa1a   : > { %p6202_p5 = pnand %p6201_p4, %p6195_p13 }
 0xa1c   : > { %6205 = shalt.err (!%p6202_p5)  }
 0xa1d   : > { %s6206_s19 = scalar_lea.vmem %s2111_s8, 16  ;;  %p6211_p7 = scmp.lt.s32.totalorder %s2111_s8, %s8047_s18 }
 0xa1e   : > { %p6207_p6 = scmp.ne.s32.totalorder %s2111_s8, %s6206_s19  ;;  %p6212_p12 = scmp.lt.s32.totalorder %s8050_s16, %s6206_s19 }
 0xa20   : > { %p6213_p8 = por %p6212_p12, %p6211_p7 }
 0xa22   : > { %p6214_p9 = pnand %p6213_p8, %p6207_p6 }
 0xa24   : > { %6217 = shalt.err (!%p6214_p9)  }
 0xa25   : > { %2113 = dma.hbm_to_vmem [thread:$0]  %s2101_s6, 16, %s2111_s8, %s8034_s20 }
 0xa26   : > { %s9000_s5 = sld [smem:[#allocation5 + %s2131_s9]]  ;;  %s3010_s21 = scalar_lea.vmem %s8014_s2, 50 [#allocation2] }
 0xa27   : > { %s3311_s23 = sshll.u32 %s8983_s12, 4  ;;  %s2144_s17 = sshll.u32 %s3010_s21, 4  ;;  %s9007_s17 = int_to_ptr.vmem [resolvable:$true] %s2144_s17 }
 0xa28   : > { %s2118_s14 = scalar_lea.hbm %s9425_s4, %s3311_s23 }
 0xa29   : > { %s6218_s29 = scalar_lea.hbm %s2118_s14, 16  ;;  %p6221_p13 = scmp.lt.u32.totalorder %s2118_s14, %s9425_s4 }
 0xa2a   : > { %p6219_p11 = scmp.ne.s32.totalorder %s2118_s14, %s6218_s29  ;;  %p6222_p0 = scmp.lt.u32.totalorder %s8039_s7, %s6218_s29 }
 0xa2b   : > { %p6224_p2 = scmp.lt.u32.totalorder %s6218_s29, %s2118_s14 }
 0xa2c   : > { %p6223_p1 = por %p6222_p0, %p6221_p13 }
 0xa2e   : > { %p6225_p3 = por %p6224_p2, %p6223_p1 }
 0xa30   : > { %p6226_p4 = pnand %p6225_p3, %p6219_p11 }
 0xa32   : > { %6229 = shalt.err (!%p6226_p4)  }
 0xa33   : > { %s6230_s8 = scalar_lea.vmem %s8991_s25, 16  ;;  %p6235_p6 = scmp.lt.s32.totalorder %s8991_s25, %s8047_s18 }
 0xa34   : > { %p6231_p5 = scmp.ne.s32.totalorder %s8991_s25, %s6230_s8  ;;  %p6236_p7 = scmp.lt.s32.totalorder %s8050_s16, %s6230_s8 }
 0xa36   : > { %p6237_p12 = por %p6236_p7, %p6235_p6 }
 0xa38   : > { %p6238_p8 = pnand %p6237_p12, %p6231_p5 }
 0xa3a   : > { %6241 = shalt.err (!%p6238_p8)  }
 0xa3b   : > { %2130 = dma.hbm_to_vmem [thread:$0]  %s2118_s14, 16, %s8991_s25, %s8034_s20 }
 0xa3c   : > { %s2148_s12 = sadd.s32 51, %s8011_s0  ;;  %s3015_s9 = scalar_lea.vmem %s8014_s2, 51 [#allocation2] }
 0xa3d   : > { %s9022_s6 = sld [smem:[#allocation5 + %s2148_s12]]  ;;  %s2161_s10 = sshll.u32 %s3015_s9, 4  ;;  %s9025_s10 = int_to_ptr.vmem [resolvable:$true] %s2161_s10 }
 0xa3e   : > { %s3313_s19 = sshll.u32 %s9000_s5, 4  ;;  %s2165_s1 = sadd.s32 52, %s8011_s0 }
 0xa3f   : > { %s2135_s15 = scalar_lea.hbm %s9425_s4, %s3313_s19 }
 0xa40   : > { %s6242_s29 = scalar_lea.hbm %s2135_s15, 16  ;;  %p6245_p11 = scmp.lt.u32.totalorder %s2135_s15, %s9425_s4 }
 0xa41   : > { %p6243_p9 = scmp.ne.s32.totalorder %s2135_s15, %s6242_s29  ;;  %p6246_p13 = scmp.lt.u32.totalorder %s8039_s7, %s6242_s29 }
 0xa42   : > { %p6248_p1 = scmp.lt.u32.totalorder %s6242_s29, %s2135_s15 }
 0xa43   : > { %p6247_p0 = por %p6246_p13, %p6245_p11 }
 0xa45   : > { %p6249_p2 = por %p6248_p1, %p6247_p0 }
 0xa47   : > { %p6250_p3 = pnand %p6249_p2, %p6243_p9 }
 0xa49   : > { %6253 = shalt.err (!%p6250_p3)  }
 0xa4a   : > { %s6254_s25 = scalar_lea.vmem %s9007_s17, 16  ;;  %p6259_p5 = scmp.lt.s32.totalorder %s9007_s17, %s8047_s18 }
 0xa4b   : > { %p6255_p4 = scmp.ne.s32.totalorder %s9007_s17, %s6254_s25  ;;  %p6260_p6 = scmp.lt.s32.totalorder %s8050_s16, %s6254_s25 }
 0xa4d   : > { %p6261_p7 = por %p6260_p6, %p6259_p5 }
 0xa4f   : > { %p6262_p12 = pnand %p6261_p7, %p6255_p4 }
 0xa51   : > { %6265 = shalt.err (!%p6262_p12)  }
 0xa52   : > { %2147 = dma.hbm_to_vmem [thread:$0]  %s2135_s15, 16, %s9007_s17, %s8034_s20 }
 0xa53   : > { %s9042_s5 = sld [smem:[#allocation5 + %s2165_s1]]  ;;  %s3020_s14 = scalar_lea.vmem %s8014_s2, 52 [#allocation2] }
 0xa54   : > { %s2178_s8 = sshll.u32 %s3020_s14, 4  ;;  %s2182_s12 = sadd.s32 53, %s8011_s0  ;;  %s9047_s8 = int_to_ptr.vmem [resolvable:$true] %s2178_s8 }
 0xa55   : > { %s3315_s9 = sshll.u32 %s9022_s6, 4  ;;  %s9052_s29 = sld [smem:[#allocation5 + %s2182_s12]] }
 0xa56   : > { %s2152_s23 = scalar_lea.hbm %s9425_s4, %s3315_s9 }
 0xa57   : > { %s6266_s26 = scalar_lea.hbm %s2152_s23, 16  ;;  %p6269_p9 = scmp.lt.u32.totalorder %s2152_s23, %s9425_s4 }
 0xa58   : > { %p6267_p8 = scmp.ne.s32.totalorder %s2152_s23, %s6266_s26  ;;  %p6270_p11 = scmp.lt.u32.totalorder %s8039_s7, %s6266_s26 }
 0xa59   : > { %p6272_p0 = scmp.lt.u32.totalorder %s6266_s26, %s2152_s23 }
 0xa5a   : > { %p6271_p13 = por %p6270_p11, %p6269_p9 }
 0xa5c   : > { %p6273_p1 = por %p6272_p0, %p6271_p13 }
 0xa5e   : > { %p6274_p2 = pnand %p6273_p1, %p6267_p8 }
 0xa60   : > { %6277 = shalt.err (!%p6274_p2)  }
 0xa61   : > { %s6278_s17 = scalar_lea.vmem %s9025_s10, 16  ;;  %p6283_p4 = scmp.lt.s32.totalorder %s9025_s10, %s8047_s18 }
 0xa62   : > { %p6279_p3 = scmp.ne.s32.totalorder %s9025_s10, %s6278_s17  ;;  %p6284_p5 = scmp.lt.s32.totalorder %s8050_s16, %s6278_s17 }
 0xa64   : > { %p6285_p6 = por %p6284_p5, %p6283_p4 }
 0xa66   : > { %p6286_p7 = pnand %p6285_p6, %p6279_p3 }
 0xa68   : > { %6289 = shalt.err (!%p6286_p7)  }
 0xa69   : > { %2164 = dma.hbm_to_vmem [thread:$0]  %s2152_s23, 16, %s9025_s10, %s8034_s20 }
 0xa6a   : > { %s3025_s6 = scalar_lea.vmem %s8014_s2, 53 [#allocation2]  ;;  %s2199_s15 = sadd.s32 54, %s8011_s0 }
 0xa6b   : > { %s3317_s1 = sshll.u32 %s9042_s5, 4  ;;  %s2195_s14 = sshll.u32 %s3025_s6, 4  ;;  %s9071_s14 = int_to_ptr.vmem [resolvable:$true] %s2195_s14 }
 0xa6c   : > { %s2169_s19 = scalar_lea.hbm %s9425_s4, %s3317_s1 }
 0xa6d   : > { %s6290_s21 = scalar_lea.hbm %s2169_s19, 16  ;;  %p6293_p8 = scmp.lt.u32.totalorder %s2169_s19, %s9425_s4 }
 0xa6e   : > { %p6291_p12 = scmp.ne.s32.totalorder %s2169_s19, %s6290_s21  ;;  %p6294_p9 = scmp.lt.u32.totalorder %s8039_s7, %s6290_s21 }
 0xa6f   : > { %p6296_p13 = scmp.lt.u32.totalorder %s6290_s21, %s2169_s19 }
 0xa70   : > { %p6295_p11 = por %p6294_p9, %p6293_p8 }
 0xa72   : > { %p6297_p0 = por %p6296_p13, %p6295_p11 }
 0xa74   : > { %p6298_p1 = pnand %p6297_p0, %p6291_p12 }
 0xa76   : > { %6301 = shalt.err (!%p6298_p1)  }
 0xa77   : > { %s6302_s10 = scalar_lea.vmem %s9047_s8, 16  ;;  %p6307_p3 = scmp.lt.s32.totalorder %s9047_s8, %s8047_s18 }
 0xa78   : > { %p6303_p2 = scmp.ne.s32.totalorder %s9047_s8, %s6302_s10  ;;  %p6308_p4 = scmp.lt.s32.totalorder %s8050_s16, %s6302_s10 }
 0xa7a   : > { %p6309_p5 = por %p6308_p4, %p6307_p3 }
 0xa7c   : > { %p6310_p6 = pnand %p6309_p5, %p6303_p2 }
 0xa7e   : > { %6313 = shalt.err (!%p6310_p6)  }
 0xa7f   : > { %2181 = dma.hbm_to_vmem [thread:$0]  %s2169_s19, 16, %s9047_s8, %s8034_s20 }
 0xa80   : > { %s3319_s5 = sshll.u32 %s9052_s29, 4  ;;  %s9085_s23 = sld [smem:[#allocation5 + %s2199_s15]] }
 0xa81   : > { %s2186_s6 = scalar_lea.hbm %s9425_s4, %s3319_s5  ;;  %s3030_s1 = scalar_lea.vmem %s8014_s2, 54 [#allocation2] }
 0xa82   : > { %s6314_s12 = scalar_lea.hbm %s2186_s6, 16  ;;  %p6317_p12 = scmp.lt.u32.totalorder %s2186_s6, %s9425_s4 }
 0xa83   : > { %p6315_p7 = scmp.ne.s32.totalorder %s2186_s6, %s6314_s12  ;;  %p6318_p8 = scmp.lt.u32.totalorder %s8039_s7, %s6314_s12 }
 0xa84   : > { %p6320_p11 = scmp.lt.u32.totalorder %s6314_s12, %s2186_s6 }
 0xa85   : > { %p6319_p9 = por %p6318_p8, %p6317_p12 }
 0xa87   : > { %p6321_p13 = por %p6320_p11, %p6319_p9 }
 0xa89   : > { %p6322_p0 = pnand %p6321_p13, %p6315_p7 }
 0xa8b   : > { %6325 = shalt.err (!%p6322_p0)  }
 0xa8c   : > { %s6326_s8 = scalar_lea.vmem %s9071_s14, 16  ;;  %p6331_p2 = scmp.lt.s32.totalorder %s9071_s14, %s8047_s18 }
 0xa8d   : > { %p6327_p1 = scmp.ne.s32.totalorder %s9071_s14, %s6326_s8  ;;  %p6332_p3 = scmp.lt.s32.totalorder %s8050_s16, %s6326_s8 }
 0xa8f   : > { %p6333_p4 = por %p6332_p3, %p6331_p2 }
 0xa91   : > { %p6334_p5 = pnand %p6333_p4, %p6327_p1 }
 0xa93   : > { %6337 = shalt.err (!%p6334_p5)  }
 0xa94   : > { %2198 = dma.hbm_to_vmem [thread:$0]  %s2186_s6, 16, %s9071_s14, %s8034_s20 }
 0xa95   : > { %s2212_s29 = sshll.u32 %s3030_s1, 4  ;;  %s2216_s15 = sadd.s32 55, %s8011_s0  ;;  %s2213_s29 = int_to_ptr.vmem [resolvable:$true] %s2212_s29 }
 0xa96   : > { %s9103_s19 = sld [smem:[#allocation5 + %s2216_s15]]  ;;  %s3035_s26 = scalar_lea.vmem %s8014_s2, 55 [#allocation2] }
 0xa97   : > { %s2233_s11 = sadd.s32 56, %s8011_s0  ;;  %s3321_s10 = sshll.u32 %s9085_s23, 4 }
 0xa98   : > { %s2229_s5 = sshll.u32 %s3035_s26, 4  ;;  %s2203_s12 = scalar_lea.hbm %s9425_s4, %s3321_s10  ;;  %s9111_s5 = int_to_ptr.vmem [resolvable:$true] %s2229_s5 }
 0xa99   : > { %s6338_s9 = scalar_lea.hbm %s2203_s12, 16  ;;  %p6341_p7 = scmp.lt.u32.totalorder %s2203_s12, %s9425_s4 }
 0xa9a   : > { %p6339_p6 = scmp.ne.s32.totalorder %s2203_s12, %s6338_s9  ;;  %p6342_p12 = scmp.lt.u32.totalorder %s8039_s7, %s6338_s9 }
 0xa9b   : > { %p6344_p9 = scmp.lt.u32.totalorder %s6338_s9, %s2203_s12 }
 0xa9c   : > { %p6343_p8 = por %p6342_p12, %p6341_p7 }
 0xa9e   : > { %p6345_p11 = por %p6344_p9, %p6343_p8 }
 0xaa0   : > { %p6346_p13 = pnand %p6345_p11, %p6339_p6 }
 0xaa2   : > { %6349 = shalt.err (!%p6346_p13)  }
 0xaa3   : > { %s6350_s14 = scalar_lea.vmem %s2213_s29, 16  ;;  %p6355_p1 = scmp.lt.s32.totalorder %s2213_s29, %s8047_s18 }
 0xaa4   : > { %p6351_p0 = scmp.ne.s32.totalorder %s2213_s29, %s6350_s14  ;;  %p6356_p2 = scmp.lt.s32.totalorder %s8050_s16, %s6350_s14 }
 0xaa6   : > { %p6357_p3 = por %p6356_p2, %p6355_p1 }
 0xaa8   : > { %p6358_p4 = pnand %p6357_p3, %p6351_p0 }
 0xaaa   : > { %6361 = shalt.err (!%p6358_p4)  }
 0xaab   : > { %2215 = dma.hbm_to_vmem [thread:$0]  %s2203_s12, 16, %s2213_s29, %s8034_s20 }
 0xaac   : > { %s9120_s23 = sld [smem:[#allocation5 + %s2233_s11]]  ;;  %s3040_s6 = scalar_lea.vmem %s8014_s2, 56 [#allocation2] }
 0xaad   : > { %s3323_s1 = sshll.u32 %s9103_s19, 4  ;;  %s2246_s15 = sshll.u32 %s3040_s6, 4  ;;  %s9127_s15 = int_to_ptr.vmem [resolvable:$true] %s2246_s15 }
 0xaae   : > { %s2220_s25 = scalar_lea.hbm %s9425_s4, %s3323_s1 }
 0xaaf   : > { %s6362_s17 = scalar_lea.hbm %s2220_s25, 16  ;;  %p6365_p6 = scmp.lt.u32.totalorder %s2220_s25, %s9425_s4 }
 0xab0   : > { %p6363_p5 = scmp.ne.s32.totalorder %s2220_s25, %s6362_s17  ;;  %p6366_p7 = scmp.lt.u32.totalorder %s8039_s7, %s6362_s17 }
 0xab1   : > { %p6368_p8 = scmp.lt.u32.totalorder %s6362_s17, %s2220_s25 }
 0xab2   : > { %p6367_p12 = por %p6366_p7, %p6365_p6 }
 0xab4   : > { %p6369_p9 = por %p6368_p8, %p6367_p12 }
 0xab6   : > { %p6370_p11 = pnand %p6369_p9, %p6363_p5 }
 0xab8   : > { %6373 = shalt.err (!%p6370_p11)  }
 0xab9   : > { %s6374_s29 = scalar_lea.vmem %s9111_s5, 16  ;;  %p6379_p0 = scmp.lt.s32.totalorder %s9111_s5, %s8047_s18 }
 0xaba   : > { %p6375_p13 = scmp.ne.s32.totalorder %s9111_s5, %s6374_s29  ;;  %p6380_p1 = scmp.lt.s32.totalorder %s8050_s16, %s6374_s29 }
 0xabc   : > { %p6381_p2 = por %p6380_p1, %p6379_p0 }
 0xabe   : > { %p6382_p3 = pnand %p6381_p2, %p6375_p13 }
 0xac0   : > { %6385 = shalt.err (!%p6382_p3)  }
 0xac1   : > { %2232 = dma.hbm_to_vmem [thread:$0]  %s2220_s25, 16, %s9111_s5, %s8034_s20 }
 0xac2   : > { %s2250_s19 = sadd.s32 57, %s8011_s0  ;;  %s3045_s11 = scalar_lea.vmem %s8014_s2, 57 [#allocation2] }
 0xac3   : > { %s9142_s12 = sld [smem:[#allocation5 + %s2250_s19]]  ;;  %s2263_s8 = sshll.u32 %s3045_s11, 4  ;;  %s9145_s8 = int_to_ptr.vmem [resolvable:$true] %s2263_s8 }
 0xac4   : > { %s3325_s14 = sshll.u32 %s9120_s23, 4  ;;  %s2267_s10 = sadd.s32 58, %s8011_s0 }
 0xac5   : > { %s2237_s26 = scalar_lea.hbm %s9425_s4, %s3325_s14 }
 0xac6   : > { %s6386_s17 = scalar_lea.hbm %s2237_s26, 16  ;;  %p6389_p5 = scmp.lt.u32.totalorder %s2237_s26, %s9425_s4 }
 0xac7   : > { %p6387_p4 = scmp.ne.s32.totalorder %s2237_s26, %s6386_s17  ;;  %p6390_p6 = scmp.lt.u32.totalorder %s8039_s7, %s6386_s17 }
 0xac8   : > { %p6392_p12 = scmp.lt.u32.totalorder %s6386_s17, %s2237_s26 }
 0xac9   : > { %p6391_p7 = por %p6390_p6, %p6389_p5 }
 0xacb   : > { %p6393_p8 = por %p6392_p12, %p6391_p7 }
 0xacd   : > { %p6394_p9 = pnand %p6393_p8, %p6387_p4 }
 0xacf   : > { %6397 = shalt.err (!%p6394_p9)  }
 0xad0   : > { %s6398_s5 = scalar_lea.vmem %s9127_s15, 16  ;;  %p6403_p13 = scmp.lt.s32.totalorder %s9127_s15, %s8047_s18 }
 0xad1   : > { %p6399_p11 = scmp.ne.s32.totalorder %s9127_s15, %s6398_s5  ;;  %p6404_p0 = scmp.lt.s32.totalorder %s8050_s16, %s6398_s5 }
 0xad3   : > { %p6405_p1 = por %p6404_p0, %p6403_p13 }
 0xad5   : > { %p6406_p2 = pnand %p6405_p1, %p6399_p11 }
 0xad7   : > { %6409 = shalt.err (!%p6406_p2)  }
 0xad8   : > { %2249 = dma.hbm_to_vmem [thread:$0]  %s2237_s26, 16, %s9127_s15, %s8034_s20 }
 0xad9   : > { %s9162_s23 = sld [smem:[#allocation5 + %s2267_s10]]  ;;  %s3050_s25 = scalar_lea.vmem %s8014_s2, 58 [#allocation2] }
 0xada   : > { %s2280_s29 = sshll.u32 %s3050_s25, 4  ;;  %s2284_s19 = sadd.s32 59, %s8011_s0  ;;  %s9167_s29 = int_to_ptr.vmem [resolvable:$true] %s2280_s29 }
 0xadb   : > { %s3327_s11 = sshll.u32 %s9142_s12, 4  ;;  %s9172_s17 = sld [smem:[#allocation5 + %s2284_s19]] }
 0xadc   : > { %s2254_s1 = scalar_lea.hbm %s9425_s4, %s3327_s11 }
 0xadd   : > { %s6410_s9 = scalar_lea.hbm %s2254_s1, 16  ;;  %p6413_p4 = scmp.lt.u32.totalorder %s2254_s1, %s9425_s4 }
 0xade   : > { %p6411_p3 = scmp.ne.s32.totalorder %s2254_s1, %s6410_s9  ;;  %p6414_p5 = scmp.lt.u32.totalorder %s8039_s7, %s6410_s9 }
 0xadf   : > { %p6416_p7 = scmp.lt.u32.totalorder %s6410_s9, %s2254_s1 }
 0xae0   : > { %p6415_p6 = por %p6414_p5, %p6413_p4 }
 0xae2   : > { %p6417_p12 = por %p6416_p7, %p6415_p6 }
 0xae4   : > { %p6418_p8 = pnand %p6417_p12, %p6411_p3 }
 0xae6   : > { %6421 = shalt.err (!%p6418_p8)  }
 0xae7   : > { %s6422_s15 = scalar_lea.vmem %s9145_s8, 16  ;;  %p6427_p11 = scmp.lt.s32.totalorder %s9145_s8, %s8047_s18 }
 0xae8   : > { %p6423_p9 = scmp.ne.s32.totalorder %s9145_s8, %s6422_s15  ;;  %p6428_p13 = scmp.lt.s32.totalorder %s8050_s16, %s6422_s15 }
 0xaea   : > { %p6429_p0 = por %p6428_p13, %p6427_p11 }
 0xaec   : > { %p6430_p1 = pnand %p6429_p0, %p6423_p9 }
 0xaee   : > { %6433 = shalt.err (!%p6430_p1)  }
 0xaef   : > { %2266 = dma.hbm_to_vmem [thread:$0]  %s2254_s1, 16, %s9145_s8, %s8034_s20 }
 0xaf0   : > { %s3055_s12 = scalar_lea.vmem %s8014_s2, 59 [#allocation2]  ;;  %s2301_s26 = sadd.s32 60, %s8011_s0 }
 0xaf1   : > { %s3329_s10 = sshll.u32 %s9162_s23, 4  ;;  %s2297_s25 = sshll.u32 %s3055_s12, 4  ;;  %s9191_s25 = int_to_ptr.vmem [resolvable:$true] %s2297_s25 }
 0xaf2   : > { %s2271_s14 = scalar_lea.hbm %s9425_s4, %s3329_s10 }
 0xaf3   : > { %s6434_s6 = scalar_lea.hbm %s2271_s14, 16  ;;  %p6437_p3 = scmp.lt.u32.totalorder %s2271_s14, %s9425_s4 }
 0xaf4   : > { %p6435_p2 = scmp.ne.s32.totalorder %s2271_s14, %s6434_s6  ;;  %p6438_p4 = scmp.lt.u32.totalorder %s8039_s7, %s6434_s6 }
 0xaf5   : > { %p6440_p6 = scmp.lt.u32.totalorder %s6434_s6, %s2271_s14 }
 0xaf6   : > { %p6439_p5 = por %p6438_p4, %p6437_p3 }
 0xaf8   : > { %p6441_p7 = por %p6440_p6, %p6439_p5 }
 0xafa   : > { %p6442_p12 = pnand %p6441_p7, %p6435_p2 }
 0xafc   : > { %6445 = shalt.err (!%p6442_p12)  }
 0xafd   : > { %s6446_s8 = scalar_lea.vmem %s9167_s29, 16  ;;  %p6451_p9 = scmp.lt.s32.totalorder %s9167_s29, %s8047_s18 }
 0xafe   : > { %p6447_p8 = scmp.ne.s32.totalorder %s9167_s29, %s6446_s8  ;;  %p6452_p11 = scmp.lt.s32.totalorder %s8050_s16, %s6446_s8 }
 0xb00   : > { %p6453_p13 = por %p6452_p11, %p6451_p9 }
 0xb02   : > { %p6454_p0 = pnand %p6453_p13, %p6447_p8 }
 0xb04   : > { %6457 = shalt.err (!%p6454_p0)  }
 0xb05   : > { %2283 = dma.hbm_to_vmem [thread:$0]  %s2271_s14, 16, %s9167_s29, %s8034_s20 }
 0xb06   : > { %s3331_s23 = sshll.u32 %s9172_s17, 4  ;;  %s9205_s1 = sld [smem:[#allocation5 + %s2301_s26]] }
 0xb07   : > { %s2288_s12 = scalar_lea.hbm %s9425_s4, %s3331_s23  ;;  %s3060_s10 = scalar_lea.vmem %s8014_s2, 60 [#allocation2] }
 0xb08   : > { %s6458_s19 = scalar_lea.hbm %s2288_s12, 16  ;;  %p6461_p2 = scmp.lt.u32.totalorder %s2288_s12, %s9425_s4 }
 0xb09   : > { %p6459_p1 = scmp.ne.s32.totalorder %s2288_s12, %s6458_s19  ;;  %p6462_p3 = scmp.lt.u32.totalorder %s8039_s7, %s6458_s19 }
 0xb0a   : > { %p6464_p5 = scmp.lt.u32.totalorder %s6458_s19, %s2288_s12 }
 0xb0b   : > { %p6463_p4 = por %p6462_p3, %p6461_p2 }
 0xb0d   : > { %p6465_p6 = por %p6464_p5, %p6463_p4 }
 0xb0f   : > { %p6466_p7 = pnand %p6465_p6, %p6459_p1 }
 0xb11   : > { %6469 = shalt.err (!%p6466_p7)  }
 0xb12   : > { %s6470_s29 = scalar_lea.vmem %s9191_s25, 16  ;;  %p6475_p8 = scmp.lt.s32.totalorder %s9191_s25, %s8047_s18 }
 0xb13   : > { %p6471_p12 = scmp.ne.s32.totalorder %s9191_s25, %s6470_s29  ;;  %p6476_p9 = scmp.lt.s32.totalorder %s8050_s16, %s6470_s29 }
 0xb15   : > { %p6477_p11 = por %p6476_p9, %p6475_p8 }
 0xb17   : > { %p6478_p13 = pnand %p6477_p11, %p6471_p12 }
 0xb19   : > { %6481 = shalt.err (!%p6478_p13)  }
 0xb1a   : > { %2300 = dma.hbm_to_vmem [thread:$0]  %s2288_s12, 16, %s9191_s25, %s8034_s20 }
 0xb1b   : > { %s2314_s17 = sshll.u32 %s3060_s10, 4  ;;  %s2318_s26 = sadd.s32 61, %s8011_s0  ;;  %s2315_s17 = int_to_ptr.vmem [resolvable:$true] %s2314_s17 }
 0xb1c   : > { %s2319_s14 = sld [smem:[#allocation5 + %s2318_s26]]  ;;  %s3065_s9 = scalar_lea.vmem %s8014_s2, 61 [#allocation2] }
 0xb1d   : > { %s2335_s21 = sadd.s32 62, %s8011_s0  ;;  %s3333_s8 = sshll.u32 %s9205_s1, 4 }
 0xb1e   : > { %s2331_s23 = sshll.u32 %s3065_s9, 4  ;;  %s2305_s19 = scalar_lea.hbm %s9425_s4, %s3333_s8  ;;  %s9229_s23 = int_to_ptr.vmem [resolvable:$true] %s2331_s23 }
 0xb1f   : > { %s6482_s11 = scalar_lea.hbm %s2305_s19, 16  ;;  %p6485_p1 = scmp.lt.u32.totalorder %s2305_s19, %s9425_s4 }
 0xb20   : > { %p6483_p0 = scmp.ne.s32.totalorder %s2305_s19, %s6482_s11  ;;  %p6486_p2 = scmp.lt.u32.totalorder %s8039_s7, %s6482_s11 }
 0xb21   : > { %p6488_p4 = scmp.lt.u32.totalorder %s6482_s11, %s2305_s19 }
 0xb22   : > { %p6487_p3 = por %p6486_p2, %p6485_p1 }
 0xb24   : > { %p6489_p5 = por %p6488_p4, %p6487_p3 }
 0xb26   : > { %p6490_p6 = pnand %p6489_p5, %p6483_p0 }
 0xb28   : > { %6493 = shalt.err (!%p6490_p6)  }
 0xb29   : > { %s6494_s25 = scalar_lea.vmem %s2315_s17, 16  ;;  %p6499_p12 = scmp.lt.s32.totalorder %s2315_s17, %s8047_s18 }
 0xb2a   : > { %p6495_p7 = scmp.ne.s32.totalorder %s2315_s17, %s6494_s25  ;;  %p6500_p8 = scmp.lt.s32.totalorder %s8050_s16, %s6494_s25 }
 0xb2c   : > { %p6501_p9 = por %p6500_p8, %p6499_p12 }
 0xb2e   : > { %p6502_p11 = pnand %p6501_p9, %p6495_p7 }
 0xb30   : > { %6505 = shalt.err (!%p6502_p11)  }
 0xb31   : > { %2317 = dma.hbm_to_vmem [thread:$0]  %s2305_s19, 16, %s2315_s17, %s8034_s20 }
 0xb32   : > { %s2336_s1 = sld [smem:[#allocation5 + %s2335_s21]]  ;;  %s3070_s12 = scalar_lea.vmem %s8014_s2, 62 [#allocation2] }
 0xb33   : > { %s3335_s10 = sshll.u32 %s2319_s14, 4  ;;  %s2348_s5 = sshll.u32 %s3070_s12, 4  ;;  %s2349_s5 = int_to_ptr.vmem [resolvable:$true] %s2348_s5 }
 0xb34   : > { %s2322_s8 = scalar_lea.hbm %s9425_s4, %s3335_s10 }
 0xb35   : > { %s6506_s15 = scalar_lea.hbm %s2322_s8, 16  ;;  %p6509_p0 = scmp.lt.u32.totalorder %s2322_s8, %s9425_s4 }
 0xb36   : > { %p6507_p13 = scmp.ne.s32.totalorder %s2322_s8, %s6506_s15  ;;  %p6510_p1 = scmp.lt.u32.totalorder %s8039_s7, %s6506_s15 }
 0xb37   : > { %p6512_p3 = scmp.lt.u32.totalorder %s6506_s15, %s2322_s8 }
 0xb38   : > { %p6511_p2 = por %p6510_p1, %p6509_p0 }
 0xb3a   : > { %p6513_p4 = por %p6512_p3, %p6511_p2 }
 0xb3c   : > { %p6514_p5 = pnand %p6513_p4, %p6507_p13 }
 0xb3e   : > { %6517 = shalt.err (!%p6514_p5)  }
 0xb3f   : > { %s6518_s17 = scalar_lea.vmem %s9229_s23, 16  ;;  %p6523_p7 = scmp.lt.s32.totalorder %s9229_s23, %s8047_s18 }
 0xb40   : > { %p6519_p6 = scmp.ne.s32.totalorder %s9229_s23, %s6518_s17  ;;  %p6524_p12 = scmp.lt.s32.totalorder %s8050_s16, %s6518_s17 }
 0xb42   : > { %p6525_p8 = por %p6524_p12, %p6523_p7 }
 0xb44   : > { %p6526_p9 = pnand %p6525_p8, %p6519_p6 }
 0xb46   : > { %6529 = shalt.err (!%p6526_p9)  }
 0xb47   : > { %2334 = dma.hbm_to_vmem [thread:$0]  %s2322_s8, 16, %s9229_s23, %s8034_s20 }
 0xb48   : > { %s2352_s14 = sadd.s32 63, %s8011_s0  ;;  %s3075_s21 = scalar_lea.vmem %s8014_s2, 63 [#allocation2] }
 0xb49   : > { %s2353_s19 = sld [smem:[#allocation5 + %s2352_s14]]  ;;  %s3337_s29 = sshll.u32 %s2336_s1, 4 }
 0xb4a   : > { %s2339_s10 = scalar_lea.hbm %s9425_s4, %s3337_s29  ;;  %s2365_s26 = sshll.u32 %s3075_s21, 4  ;;  %s2366_s26 = int_to_ptr.vmem [resolvable:$true] %s2365_s26 }
 0xb4b   : > { %s6530_s9 = scalar_lea.hbm %s2339_s10, 16  ;;  %p6533_p13 = scmp.lt.u32.totalorder %s2339_s10, %s9425_s4 }
 0xb4c   : > { %p6531_p11 = scmp.ne.s32.totalorder %s2339_s10, %s6530_s9  ;;  %p6534_p0 = scmp.lt.u32.totalorder %s8039_s7, %s6530_s9 }
 0xb4d   : > { %p6536_p2 = scmp.lt.u32.totalorder %s6530_s9, %s2339_s10 }
 0xb4e   : > { %p6535_p1 = por %p6534_p0, %p6533_p13 }
 0xb50   : > { %p6537_p3 = por %p6536_p2, %p6535_p1 }
 0xb52   : > { %p6538_p4 = pnand %p6537_p3, %p6531_p11 }
 0xb54   : > { %6541 = shalt.err (!%p6538_p4)  }
 0xb55   : > { %s6542_s0 = scalar_lea.vmem %s2349_s5, 16  ;;  %p6547_p6 = scmp.lt.s32.totalorder %s2349_s5, %s8047_s18 }
 0xb56   : > { %p6543_p5 = scmp.ne.s32.totalorder %s2349_s5, %s6542_s0  ;;  %p6548_p7 = scmp.lt.s32.totalorder %s8050_s16, %s6542_s0 }
 0xb58   : > { %p6549_p12 = por %p6548_p7, %p6547_p6 }
 0xb5a   : > { %p6550_p8 = pnand %p6549_p12, %p6543_p5 }
 0xb5c   : > { %6553 = shalt.err (!%p6550_p8)  }
 0xb5d   : > { %2351 = dma.hbm_to_vmem [thread:$0]  %s2339_s10, 16, %s2349_s5, %s8034_s20 }
 0xb5e   : > { %s3339_s2 = sshll.u32 %s2353_s19, 4 }
 0xb5f   : > { %s2356_s8 = scalar_lea.hbm %s9425_s4, %s3339_s2 }
 0xb60   : > { %s6554_s6 = scalar_lea.hbm %s2356_s8, 16  ;;  %p6557_p11 = scmp.lt.u32.totalorder %s2356_s8, %s9425_s4 }
 0xb61   : > { %p6555_p9 = scmp.ne.s32.totalorder %s2356_s8, %s6554_s6  ;;  %p6558_p13 = scmp.lt.u32.totalorder %s8039_s7, %s6554_s6 }
 0xb62   : > { %p6560_p1 = scmp.lt.u32.totalorder %s6554_s6, %s2356_s8 }
 0xb63   : > { %p6559_p0 = por %p6558_p13, %p6557_p11 }
 0xb65   : > { %p6561_p2 = por %p6560_p1, %p6559_p0 }
 0xb67   : > { %p6562_p3 = pnand %p6561_p2, %p6555_p9 }
 0xb69   : > { %6565 = shalt.err (!%p6562_p3)  }
 0xb6a   : > { %s6566_s21 = scalar_lea.vmem %s2366_s26, 16  ;;  %p6571_p5 = scmp.lt.s32.totalorder %s2366_s26, %s8047_s18 }
 0xb6b   : > { %p6567_p4 = scmp.ne.s32.totalorder %s2366_s26, %s6566_s21  ;;  %p6572_p6 = scmp.lt.s32.totalorder %s8050_s16, %s6566_s21 }
 0xb6d   : > { %p6573_p7 = por %p6572_p6, %p6571_p5 }
 0xb6f   : > { %p6574_p12 = pnand %p6573_p7, %p6567_p4 }
 0xb71   : > { %6577 = shalt.err (!%p6574_p12)  }
 0xb72   : > { %2368 = dma.hbm_to_vmem [thread:$0]  %s2356_s8, 16, %s2366_s26, %s8034_s20 }
 0xb73 PF: > { %s3341_s7 = sshll.u32 %s9486_s27, 6  ;;  %s2370_s5 = scalar_lea.sflag [#allocation3], %s9486_s27 }
 0xb74   : > { %6640 = dma.done.wait %s2370_s5, 1024 }
 0xb75   : > { %6641 = vsyncadd %s2370_s5, 4294966272  ;;  %v6744_v0 = vmov 0   ;;  %v2402_v1 = vld [vmem:[%s6875_s28 + $0x10] sm:$0xff]  ;;  %v2400_v2 = vld [vmem:[%s6875_s28] sm:$0xff]  ;;  %v2456_v27 = vlaneseq  ;;  %s9298_s18 = scalar_lea.vmem [#allocation2], %s3341_s7  ;;  %s3352_s27 = sshll.u32 %s6858_s22, 10 }
 0xb76   : > { %3493 = vset.pattern.permute.xlu1 %v6744_v0  ;;  %3492 = vset.pattern.permute.xlu0 %v6744_v0  ;;  %v2403_v3 = vld [vmem:[%s6875_s28 + $0x18] sm:$0xff]  ;;  %vm2410_vm0 = vcmp.eq.s32.totalorder %v2402_v1, 0  ;;  %vm2408_vm1 = vcmp.eq.s32.totalorder %v2400_v2, 0  ;;  %v2401_v4 = vld [vmem:[%s6875_s28 + $0x8] sm:$0xff]  ;;  %v2404_v8 = vld [vmem:[%s6875_s28 + $0x20] sm:$0xff]  ;;  %vm2476_vm9 = vcmp.eq.s32.totalorder %v2400_v2, 1 }
 0xb77   : > { %vm2411_vm2 = vcmp.eq.s32.totalorder %v2403_v3, 0  ;;  %v2418_v5 = vsel %vm2410_vm0, 1, %v6744_v0  ;;  %v2416_v6 = vsel %vm2408_vm1, 1, %v6744_v0  ;;  %vm2409_vm3 = vcmp.eq.s32.totalorder %v2401_v4, 0  ;;  %v2405_v7 = vld [vmem:[%s6875_s28 + $0x28] sm:$0xff]  ;;  %v2407_v11 = vld [vmem:[%s6875_s28 + $0x38] sm:$0xff] }
 0xb78   : > { %2431 = vperm.xlu1 %3493, %v2418_v5   ;;  %2425 = vperm.xlu0 %3492, %v2416_v6   ;;  %v2419_v9 = vsel %vm2411_vm2, 1, %v6744_v0  ;;  %v2417_v10 = vsel %vm2409_vm3, 1, %v6744_v0  ;;  %vm2413_vm4 = vcmp.eq.s32.totalorder %v2405_v7, 0  ;;  %vm2412_vm5 = vcmp.eq.s32.totalorder %v2404_v8, 0  ;;  %v2406_v12 = vld [vmem:[%s6875_s28 + $0x30] sm:$0xff]  ;;  %v2376_v38 = vld [vmem:[%s9298_s18 + $0x8] sm:$0xff] }
 0xb79   : > { %v2421_v13 = vsel %vm2413_vm4, 1, %v6744_v0  ;;  %v2420_v14 = vsel %vm2412_vm5, 1, %v6744_v0  ;;  %vm2415_vm6 = vcmp.eq.s32.totalorder %v2407_v11, 0  ;;  %vm2414_vm7 = vcmp.eq.s32.totalorder %v2406_v12, 0  ;;  %v2399_v35 = vld [vmem:[%s9424_s3] sm:$0x3] }
 0xb7a   : > { %v2423_v15 = vsel %vm2415_vm6, 1, %v6744_v0  ;;  %v2422_v16 = vsel %vm2414_vm7, 1, %v6744_v0  ;;  %vm2477_vm8 = vcmp.eq.s32.totalorder %v2401_v4, 1  ;;  %v2484_v18 = vsel %vm2476_vm9, 1, %v6744_v0  ;;  %v2384_v40 = vld [vmem:[%s6865_s13 + $0x8] sm:$0xff]  ;;  %v2375_v42 = vld [vmem:[%s9298_s18] sm:$0xff] }
 0xb7b   : > { %v2485_v17 = vsel %vm2477_vm8, 1, %v6744_v0  ;;  %vm2479_vm10 = vcmp.eq.s32.totalorder %v2403_v3, 1  ;;  %vm2478_vm11 = vcmp.eq.s32.totalorder %v2402_v1, 1  ;;  %vm2481_vm12 = vcmp.eq.s32.totalorder %v2405_v7, 1  ;;  %v2383_v43 = vld [vmem:[%s6865_s13] sm:$0xff]  ;;  %v2378_v46 = vld [vmem:[%s9298_s18 + $0x18] sm:$0xff] }
 0xb7c   : > { %2434 = vperm.xlu1 %3493, %v2419_v9   ;;  %2428 = vperm.xlu0 %3492, %v2417_v10   ;;  %v2487_v19 = vsel %vm2479_vm10, 1, %v6744_v0  ;;  %v2486_v20 = vsel %vm2478_vm11, 1, %v6744_v0  ;;  %vm2480_vm13 = vcmp.eq.s32.totalorder %v2404_v8, 1  ;;  %v2489_v21 = vsel %vm2481_vm12, 1, %v6744_v0  ;;  %v2386_v49 = vld [vmem:[%s6865_s13 + $0x18] sm:$0xff]  ;;  %v2377_v50 = vld [vmem:[%s9298_s18 + $0x10] sm:$0xff] }
 0xb7d   : > { %v2488_v22 = vsel %vm2480_vm13, 1, %v6744_v0  ;;  %vm2483_vm14 = vcmp.eq.s32.totalorder %v2407_v11, 1  ;;  %vm2482_vm15 = vcmp.eq.s32.totalorder %v2406_v12, 1  ;;  %v2457_v30 = vshrl.u32 %v2456_v27, 7  ;;  %v2385_v51 = vld [vmem:[%s6865_s13 + $0x10] sm:$0xff]  ;;  %v2380_v62 = vld [vmem:[%s9298_s18 + $0x28] sm:$0xff] }
 0xb7e   : > { %v2491_v23 = vsel %vm2483_vm14, 1, %v6744_v0  ;;  %v2490_v24 = vsel %vm2482_vm15, 1, %v6744_v0  ;;  %v2392_v47 = vadd.f32 %v2384_v40, %v2376_v38  ;;  %v2391_v48 = vadd.f32 %v2383_v43, %v2375_v42  ;;  %v2388_v1 = vld [vmem:[%s6865_s13 + $0x28] sm:$0xff]  ;;  %v2379_v2 = vld [vmem:[%s9298_s18 + $0x20] sm:$0xff]  ;;  %s9458_s29 = sld [smem:[#allocation281_spill]]  ;;  %s9460_s10 = sand.u32 1, %s6652_s24  }
 0xb7f   : > { %v2458_v33 = vsub.s32 0, %v2457_v30  ;;  %v2526_v34 = vsub.s32 1, %v2457_v30  ;;  %v2394_v59 = vadd.f32 %v2386_v49, %v2378_v46  ;;  %v2393_v61 = vadd.f32 %v2385_v51, %v2377_v50  ;;  %v2387_v3 = vld [vmem:[%s6865_s13 + $0x20] sm:$0xff]  ;;  %s9369_s26 = scalar_lea.sflag [#allocation7], %s9460_s10  ;;  %s6745_s15 = smov [#allocation6]  }
 0xb80   : > { %2440 = vperm.xlu1 %3493, %v2421_v13   ;;  %2437 = vperm.xlu0 %3492, %v2420_v14   ;;  %v2396_v11 = vadd.f32 %v2388_v1, %v2380_v62  ;;  %v2395_v13 = vadd.f32 %v2387_v3, %v2379_v2  ;;  %v2382_v14 = vld [vmem:[%s9298_s18 + $0x38] sm:$0xff]  ;;  %s6582_s11 = sshll.u32 %s6745_s15, 4  ;;  %s6583_s11 = int_to_ptr.vmem [resolvable:$false] %s6582_s11 }
 0xb81   : > { %v9301_v39 = vrot.slane %v2399_v35, %v2458_v33  ;;  %v9304_v41 = vrot.slane %v2399_v35, %v2526_v34  ;;  %s6584_s0 = scalar_lea.vmem %s6583_s11, 2048 }
 0xb84   : > { %2446 = vperm.xlu1 %3493, %v2423_v15   ;;  %2443 = vperm.xlu0 %3492, %v2422_v16   ;;  %s9459_s12 = smov %s9458_s29  ;;  %s9361_s25 = scalar_lea.hbm %s9458_s29, %s3352_s27 }
 0xb88   : > { %2496 = vperm.xlu1 %3493, %v2485_v17   ;;  %2493 = vperm.xlu0 %3492, %v2484_v18   ;;  %v2390_v17 = vld [vmem:[%s6865_s13 + $0x38] sm:$0xff]  ;;  %v2381_v18 = vld [vmem:[%s9298_s18 + $0x30] sm:$0xff] }
 0xb89   : > { %v2398_v27 = vadd.f32 %v2390_v17, %v2382_v14 }
 0xb8c   : > { %2502 = vperm.xlu1 %3493, %v2487_v19   ;;  %2499 = vperm.xlu0 %3492, %v2486_v20   ;;  %v2389_v19 = vld [vmem:[%s6865_s13 + $0x30] sm:$0xff]  ;;  %s2576_s13 = sshll.u32 %s6879_s30, 4  ;;  %s9363_s13 = int_to_ptr.vmem [resolvable:$true] %s2576_s13 }
 0xb8d   : > { %s6578_s9 = scalar_lea.vmem %s9363_s13, 1024  ;;  %p6585_p13 = scmp.lt.s32.totalorder %s9363_s13, %s6583_s11 }
 0xb8e   : > { %p6579_p8 = scmp.ne.s32.totalorder %s9363_s13, %s6578_s9  ;;  %p6586_p0 = scmp.lt.s32.totalorder %s6584_s0, %s6578_s9 }
 0xb90   : > { %2508 = vperm.xlu1 %3493, %v2489_v21   ;;  %2505 = vperm.xlu0 %3492, %v2488_v22   ;;  %p6580_p9 = pnand %p6579_p8, %p6834_p10  ;;  %p6587_p1 = por %p6586_p0, %p6585_p13 }
 0xb92   : > { %p6581_p11 = pneg %p6580_p9 }
 0xb94   : > { %2514 = vperm.xlu1 %3493, %v2491_v23   ;;  %2511 = vperm.xlu0 %3492, %v2490_v24   ;;  %p6588_p2 = pnand %p6587_p1, %p6581_p11 }
 0xbf7   : > { %v2432_v25 = vpop.permute.xlu1 %2431  ;;  %v2426_v26 = vpop.permute.xlu0 %2425 }
 0xbf8   : > { %vm2448_vm0 = vcmp.eq.s32.totalorder %v2426_v26, 1  ;;  %vm2450_vm4 = vcmp.eq.s32.totalorder %v2432_v25, 1 }
 0xbf9   : > { %v2460_v52 = vsel %vm2448_vm0, %v9301_v39, 0.0  ;;  %v2462_v4 = vsel %vm2450_vm4, %v9301_v39, 0.0 }
 0xbfb   : > { %v2435_v28 = vpop.permute.xlu1 %2434  ;;  %v2429_v29 = vpop.permute.xlu0 %2428 }
 0xbfc   : > { %vm2449_vm1 = vcmp.eq.s32.totalorder %v2429_v29, 1  ;;  %vm2451_vm5 = vcmp.eq.s32.totalorder %v2435_v28, 1  ;;  %v2397_v29 = vadd.f32 %v2389_v19, %v2381_v18 }
 0xbfd   : > { %v2461_v53 = vsel %vm2449_vm1, %v9301_v39, 0.0  ;;  %v2463_v5 = vsel %vm2451_vm5, %v9301_v39, 0.0 }
 0xbff   : > { %v9285_v31 = vpop.permute.xlu1 %2440  ;;  %v9287_v32 = vpop.permute.xlu0 %2437 }
 0xc00   : > { %vm2453_vm8 = vcmp.eq.s32.totalorder %v9285_v31, 1  ;;  %vm2452_vm9 = vcmp.eq.s32.totalorder %v9287_v32, 1 }
 0xc01   : > { %v2465_v20 = vsel %vm2453_vm8, %v9301_v39, 0.0  ;;  %v2464_v21 = vsel %vm2452_vm9, %v9301_v39, 0.0 }
 0xc03   : > { %v9292_v36 = vpop.permute.xlu1 %2446  ;;  %v9294_v37 = vpop.permute.xlu0 %2443 }
 0xc04   : > { %vm2455_vm12 = vcmp.eq.s32.totalorder %v9292_v36, 1  ;;  %vm2454_vm13 = vcmp.eq.s32.totalorder %v9294_v37, 1 }
 0xc05   : > { %v2467_v32 = vsel %vm2455_vm12, %v9301_v39, 0.0  ;;  %v2466_v33 = vsel %vm2454_vm13, %v9301_v39, 0.0 }
 0xc07   : > { %v2497_v44 = vpop.permute.xlu1 %2496  ;;  %v2494_v45 = vpop.permute.xlu0 %2493 }
 0xc08   : > { %vm2517_vm2 = vcmp.eq.s32.totalorder %v2497_v44, 1  ;;  %vm2516_vm3 = vcmp.eq.s32.totalorder %v2494_v45, 1 }
 0xc09   : > { %v2529_v54 = vsel %vm2517_vm2, %v9304_v41, 0.0  ;;  %v2528_v55 = vsel %vm2516_vm3, %v9304_v41, 0.0 }
 0xc0a   : > { %v2537_v56 = vadd.f32 %v2529_v54, %v2461_v53  ;;  %v2536_v57 = vadd.f32 %v2528_v55, %v2460_v52 }
 0xc0b   : > { %v2503_v58 = vpop.permute.xlu1 %2502  ;;  %v2500_v60 = vpop.permute.xlu0 %2499 }
 0xc0c   : > { %v2545_v63 = vadd.f32 %v2537_v56, %v2392_v47  ;;  %v2544_v0 = vadd.f32 %v2536_v57, %v2391_v48  ;;  %vm2519_vm6 = vcmp.eq.s32.totalorder %v2503_v58, 1  ;;  %vm2518_vm7 = vcmp.eq.s32.totalorder %v2500_v60, 1 }
 0xc0d   : > { %v2531_v6 = vsel %vm2519_vm6, %v9304_v41, 0.0  ;;  %v2530_v7 = vsel %vm2518_vm7, %v9304_v41, 0.0 }
 0xc0e   : > { %2553 = vst [vmem:[%s6879_s30 + $0x8] sm:$0xff] %v2545_v63  ;;  %2552 = vst [vmem:[%s6879_s30] sm:$0xff] %v2544_v0  ;;  %v2539_v8 = vadd.f32 %v2531_v6, %v2463_v5  ;;  %v2538_v9 = vadd.f32 %v2530_v7, %v2462_v4 }
 0xc0f   : > { %v2509_v10 = vpop.permute.xlu1 %2508  ;;  %v2506_v12 = vpop.permute.xlu0 %2505 }
 0xc10   : > { %v2547_v15 = vadd.f32 %v2539_v8, %v2394_v59  ;;  %v2546_v16 = vadd.f32 %v2538_v9, %v2393_v61  ;;  %vm2521_vm10 = vcmp.eq.s32.totalorder %v2509_v10, 1  ;;  %vm2520_vm11 = vcmp.eq.s32.totalorder %v2506_v12, 1 }
 0xc11   : > { %v2533_v22 = vsel %vm2521_vm10, %v9304_v41, 0.0  ;;  %v2532_v23 = vsel %vm2520_vm11, %v9304_v41, 0.0 }
 0xc12   : > { %2555 = vst [vmem:[%s6879_s30 + $0x18] sm:$0xff] %v2547_v15  ;;  %2554 = vst [vmem:[%s6879_s30 + $0x10] sm:$0xff] %v2546_v16  ;;  %v2541_v24 = vadd.f32 %v2533_v22, %v2465_v20  ;;  %v2540_v25 = vadd.f32 %v2532_v23, %v2464_v21 }
 0xc13   : > { %v2515_v26 = vpop.permute.xlu1 %2514  ;;  %v2512_v28 = vpop.permute.xlu0 %2511 }
 0xc14   : > { %v2549_v30 = vadd.f32 %v2541_v24, %v2396_v11  ;;  %v2548_v31 = vadd.f32 %v2540_v25, %v2395_v13  ;;  %vm2523_vm14 = vcmp.eq.s32.totalorder %v2515_v26, 1  ;;  %vm2522_vm15 = vcmp.eq.s32.totalorder %v2512_v28, 1 }
 0xc15   : > { %v2535_v34 = vsel %vm2523_vm14, %v9304_v41, 0.0  ;;  %v2534_v35 = vsel %vm2522_vm15, %v9304_v41, 0.0 }
 0xc16   : > { %2557 = vst [vmem:[%s6879_s30 + $0x28] sm:$0xff] %v2549_v30  ;;  %2556 = vst [vmem:[%s6879_s30 + $0x20] sm:$0xff] %v2548_v31  ;;  %v2543_v38 = vadd.f32 %v2535_v34, %v2467_v32  ;;  %v2542_v40 = vadd.f32 %v2534_v35, %v2466_v33 }
 0xc18   : > { %v2551_v36 = vadd.f32 %v2543_v38, %v2398_v27  ;;  %v2550_v37 = vadd.f32 %v2542_v40, %v2397_v29 }
 0xc1a   : > { %2559 = vst [vmem:[%s6879_s30 + $0x38] sm:$0xff] %v2551_v36  ;;  %2558 = vst [vmem:[%s6879_s30 + $0x30] sm:$0xff] %v2550_v37 }
 0xc1b   : > { %6591 = shalt.err (!%p6588_p2)
}
 0xc1c   : > { %s6592_s30 = scalar_lea.hbm %s9361_s25, 1024  ;;  %s6596_s1 = scalar_lea.hbm %s9459_s12, 4096 }
 0xc1d   : > { %p6593_p3 = scmp.ne.s32.totalorder %s9361_s25, %s6592_s30  ;;  %p6597_p6 = scmp.lt.u32.totalorder %s9361_s25, %s9459_s12 }
 0xc1e   : > { %p6598_p7 = scmp.lt.u32.totalorder %s6596_s1, %s6592_s30  ;;  %p6600_p8 = scmp.lt.u32.totalorder %s6592_s30, %s9361_s25 }
 0xc1f   : > { %p6594_p4 = pnand %p6593_p3, %p6834_p10 }
 0xc20   : > { %p6599_p12 = por %p6598_p7, %p6597_p6 }
 0xc21   : > { %p6595_p5 = pneg %p6594_p4 }
 0xc22   : > { %p6601_p9 = por %p6600_p8, %p6599_p12 }
 0xc24   : > { %p6602_p11 = pnand %p6601_p9, %p6595_p5 }
 0xc26   : > { %6605 = shalt.err (!%p6602_p11)
}
 0xc27   : > { %s6746_s17 = smov 128   ;;  %s6747_s14 = smov 8  }
 0xc28   : > { %3353 = dma.vmem_to_hbm [thread:$0]  (%p6834_p10), %s9363_s13, 1024, %s9361_s25, %s9369_s26, %s6746_s17, %s6746_s17, %s6747_s14  }
 0xc29 PF: > { %s9461_s21 = sld [smem:[#allocation273_spill]]  ;;  %s9462_s7 = sld [smem:[#allocation269_spill]] }
 0xc2a   : > { %s9463_s5 = sld [smem:[#allocation277_spill]] }
 0xc2f   : > { %p3359_p13 = scmp.ge.s32.totalorder %s9461_s21, 2  ;;  %s2591_s28 = sand.u32 1, %s9462_s7  }
 0xc30   : > { %p9464_p0 = scmp.ne.s32.totalorder %s9463_s5, 0  ;;  %s2592_s20 = scalar_lea.sflag [#allocation7], %s2591_s28 }
 0xc32   : > { %p3356_p1 = pnand %p3359_p13, %p9464_p0 }
 0xc34   : > { %6643 = dma.done.wait (!%p3356_p1), %s2592_s20, 1024  }
 0xc35   : > { %6645 = vsyncadd (!%p3356_p1), %s2592_s20, 4294966272  ;;  %s24_s29 = sadd.s32 1, %s9461_s21   ;;  %s9465_s18 = sld [smem:[#allocation270_spill]] }
 0xc36   : > { %p21_p2 = scmp.ge.s32.totalorder %s24_s29, 6   ;;  %s9466_s0 = sld [smem:[#allocation278_spill]] }
 0xc37   : > { %s9467_s25 = sld [smem:[#allocation271_spill]]  ;;  %s9468_s26 = sld [smem:[#allocation272_spill]] }
 0xc38   : > { %s9469_s27 = sld [smem:[#allocation274_spill]]  ;;  %s9470_s28 = sld [smem:[#allocation276_spill]] }
 0xc39   : > { %s9471_s23 = smov %s6652_s24  ;;  %23 = sbr.rel (!%p21_p2) target bundleno = 21 (0x15), region = 849 }
 0xc3b   : > { %s9472_s24 = smov %s9465_s18 }
 0xc40   :  { %2597 = vsyncpa [#allocation7], 1 }
 0xc41   :  { %2599 = vsyncpa [#allocation7 + $0x1], 1 }
 0xc42   :  { %2600 = vsyncmov [#allocation3] }
 0xc45   :  { %s2601_s13 = vpop.sfrf %2600 }
 0xc46   :  { %p3348_p10 = scmp.ne.s32.totalorder %s2601_s13, 0 }
 0xc48   :  { %2605 = shalt.err (%p3348_p10)  }
 0xc49   :  { %2607 = vsyncmov [#allocation3 + $0x1] }
 0xc4c   :  { %s2608_s16 = vpop.sfrf %2607 }
 0xc4d   :  { %p3349_p3 = scmp.ne.s32.totalorder %s2608_s16, 0 }
 0xc4f   :  { %2612 = shalt.err (%p3349_p3)  }

</bundles_post_ra>
